<compile_context>
chip_gen: v5e
topology: v5e:2x2
jax: 0.10.0
libtpu: 0.0.40
codegen_flags: <defaults>
</compile_context>

<pallas_src>
import functools

import jax
import jax.numpy as jnp
from jax.experimental import pallas as pl
from jax.experimental.pallas import tpu as pltpu

EXPANSION = 1  # BasicBlock


def _round_up(x, m):
    return (x + m - 1) // m * m


def _pick_tile(dim, candidates):
    """Largest candidate tile that exactly divides `dim`; else full-extent block."""
    for t in candidates:
        if dim % t == 0:
            return t
    return dim  # full-extent block is always legal (no padding needed)


# ---------------------------------------------------------------------------
# Pallas kernels
# ---------------------------------------------------------------------------
def _mm_bias_kernel(a_ref, b_ref, bias_ref, *rest, relu, has_residual):
    """Tiled MXU matmul (bf16 in / f32 accumulate) with fused per-column bias add,
    optional residual add and optional ReLU epilogue (BN scale is pre-folded into B)."""
    if has_residual:
        res_ref, o_ref, acc_ref = rest
    else:
        o_ref, acc_ref = rest

    k = pl.program_id(2)

    @pl.when(k == 0)
    def _():
        acc_ref[...] = jnp.zeros_like(acc_ref)

    acc_ref[...] += jnp.dot(a_ref[...], b_ref[...],
                            preferred_element_type=jnp.float32)

    @pl.when(k == pl.num_programs(2) - 1)
    def _():
        y = acc_ref[...] + bias_ref[...]
        if has_residual:
            y = y + res_ref[...].astype(jnp.float32)
        if relu:
            y = jnp.maximum(y, 0.0)
        o_ref[...] = y.astype(o_ref.dtype)


def matmul_bias_act(A, B, bias, residual=None, *, relu,
                    in_dtype=jnp.bfloat16, out_dtype=jnp.bfloat16):
    """out = act(A @ B + bias [+ residual]); bias broadcasts over rows.

    Grid = (M tiles, N tiles, K tiles); M and N axes are "parallel" (megacore), K is the
    innermost reduction.  K is zero-padded to a multiple of 128 when needed so K tiles are
    lane-aligned; only a small M row-tail is padded when required.
    """
    M, K = A.shape
    _, N = B.shape

    A = A.astype(in_dtype)
    B = B.astype(in_dtype)

    # Lane-align the reduction dimension (zero pad -> result unchanged).
    if K >= 128 and K % 128 != 0:
        Kp = _round_up(K, 128)
        A = jnp.pad(A, ((0, 0), (0, Kp - K)))
        B = jnp.pad(B, ((0, Kp - K), (0, 0)))
        K = Kp

    TN = _pick_tile(N, (256, 128))
    TK = _pick_tile(K, (512, 384, 256, 128))
    if M % 256 == 0:
        TM = 256
    elif M % 128 == 0:
        TM = 128
    elif M <= 256:
        TM = _round_up(M, 8)
    else:
        TM = 128
    Mp = _round_up(M, TM)
    if Mp != M:                                    # tail-only row padding
        A = jnp.pad(A, ((0, Mp - M), (0, 0)))

    bias = bias.reshape(1, N).astype(jnp.float32)

    in_specs = [
        pl.BlockSpec((TM, TK), lambda i, j, k: (i, k)),
        pl.BlockSpec((TK, TN), lambda i, j, k: (k, j)),
        pl.BlockSpec((1, TN), lambda i, j, k: (0, j)),
    ]
    args = [A, B, bias]
    has_residual = residual is not None
    if has_residual:
        residual = residual.astype(in_dtype)
        if Mp != residual.shape[0]:
            residual = jnp.pad(residual, ((0, Mp - residual.shape[0]), (0, 0)))
        in_specs.append(pl.BlockSpec((TM, TN), lambda i, j, k: (i, j)))
        args.append(residual)

    kern = functools.partial(_mm_bias_kernel, relu=relu, has_residual=has_residual)
    out = pl.pallas_call(
        kern,
        out_shape=jax.ShapeDtypeStruct((Mp, N), out_dtype),
        grid_spec=pltpu.PrefetchScalarGridSpec(
            num_scalar_prefetch=0,
            grid=(Mp // TM, N // TN, K // TK),
            in_specs=in_specs,
            out_specs=pl.BlockSpec((TM, TN), lambda i, j, k: (i, j)),
            scratch_shapes=[pltpu.VMEM((TM, TN), jnp.float32)],
        ),
        compiler_params=pltpu.CompilerParams(
            dimension_semantics=("parallel", "parallel", "arbitrary"),
            vmem_limit_bytes=32 * 1024 * 1024),
    )(*args)
    if Mp != M:
        out = out[:M]
    return out


def _gap_fc_kernel(x_ref, w_ref, b_ref, o_ref, acc_ref, *, inv_s):
    """Fused adaptive-average-pool(1,1,1) + Linear.  Grid iterates over spatial tiles;
    the FC matmul + bias run once in the epilogue on the pooled [N, C] activations."""
    s = pl.program_id(0)

    @pl.when(s == 0)
    def _():
        acc_ref[...] = jnp.zeros_like(acc_ref)

    acc_ref[...] += jnp.sum(x_ref[...].astype(jnp.float32), axis=1)

    @pl.when(s == pl.num_programs(0) - 1)
    def _():
        pooled = acc_ref[...] * inv_s                          # [N, C] f32
        o_ref[...] = (jnp.dot(pooled, w_ref[...],
                              preferred_element_type=jnp.float32) + b_ref[...])


def global_avg_pool_fc(x, w, b):
    """x: [N, S, C] bf16; w: [C, Np] f32 (lane-padded FC weight); b: [Np] f32.
    Returns [N, Np] f32 logits (caller slices off the padding columns)."""
    N, S, C = x.shape
    Np = w.shape[1]
    TS = min(512, _round_up(S, 8))
    Sp = _round_up(S, TS)
    if Sp != S:
        x = jnp.pad(x, ((0, 0), (0, Sp - S), (0, 0)))          # zero pad: sum unaffected
    return pl.pallas_call(
        functools.partial(_gap_fc_kernel, inv_s=1.0 / S),
        out_shape=jax.ShapeDtypeStruct((N, Np), jnp.float32),
        grid_spec=pltpu.PrefetchScalarGridSpec(
            num_scalar_prefetch=0,
            grid=(Sp // TS,),
            in_specs=[pl.BlockSpec((N, TS, C), lambda s: (0, s, 0)),
                      pl.BlockSpec((C, Np), lambda s: (0, 0)),
                      pl.BlockSpec((1, Np), lambda s: (0, 0))],
            out_specs=pl.BlockSpec((N, Np), lambda s: (0, 0)),
            scratch_shapes=[pltpu.VMEM((N, C), jnp.float32)],
        ),
        compiler_params=pltpu.CompilerParams(
            dimension_semantics=("arbitrary",)),
    )(x, w.astype(jnp.float32), b.reshape(1, Np).astype(jnp.float32))


# ---------------------------------------------------------------------------
# Conv3d = light im2col (glue) + Pallas matmul (+ fused BN-bias / residual / ReLU)
# ---------------------------------------------------------------------------
def conv3d_bn_act(x, w, bn, *, stride, padding, relu, residual=None):
    """x: [N, D, H, W, Cin] (NDHWC, bf16); w: PyTorch layout (Cout, Cin, kd, kh, kw).
    BN(inference) is folded into the weights (scale) and the epilogue bias (shift).
    `residual` (if given) is added after BN and before the final activation."""
    N, D, H, W, Cin = x.shape
    Cout, _, kd, kh, kw = w.shape
    s, p = stride, padding
    xp = jnp.pad(x, ((0, 0), (p, p), (p, p), (p, p), (0, 0)))
    Do = (D + 2 * p - kd) // s + 1
    Ho = (H + 2 * p - kh) // s + 1
    Wo = (W + 2 * p - kw) // s + 1

    # im2col: concatenate per-tap strided slices along channels so the K ordering is
    # (kd, kh, kw, Cin), matching the reshaped weight matrix below (no stack/transpose).
    patches = []
    for a in range(kd):
        for b in range(kh):
            for c in range(kw):
                patches.append(
                    xp[:, a:a + s * (Do - 1) + 1:s,
                          b:b + s * (Ho - 1) + 1:s,
                          c:c + s * (Wo - 1) + 1:s, :])
    pat = patches[0] if len(patches) == 1 else jnp.concatenate(patches, axis=-1)
    A = pat.reshape(N * Do * Ho * Wo, kd * kh * kw * Cin)

    # Fold BN: y = (x conv W) * scale + shift  ==  x conv (W * scale) + shift.
    scale, shift = bn_fold(bn)
    Bm = jnp.transpose(w, (2, 3, 4, 1, 0)).reshape(kd * kh * kw * Cin, Cout)
    Bm = Bm * scale[None, :]

    if residual is not None:
        residual = residual.reshape(N * Do * Ho * Wo, Cout)

    out = matmul_bias_act(A, Bm, shift, residual, relu=relu)
    return out.reshape(N, Do, Ho, Wo, Cout)


def bn_fold(bn, eps=1e-5):
    scale = bn["gamma"] / jnp.sqrt(bn["var"] + eps)
    shift = bn["beta"] - bn["mean"] * scale
    return scale, shift


# ---------------------------------------------------------------------------
# BasicBlock / ResNet3d forward
# ---------------------------------------------------------------------------
def basic_block(x, p, stride):
    out = conv3d_bn_act(x, p["conv1"], p["bn1"], stride=stride, padding=1, relu=True)
    if "sc_conv" in p:
        shortcut = conv3d_bn_act(x, p["sc_conv"], p["sc_bn"],
                                 stride=stride, padding=0, relu=False)
    else:
        shortcut = x
    # conv2 + BN2 with the residual add and final ReLU fused into the matmul epilogue.
    out = conv3d_bn_act(out, p["conv2"], p["bn2"], stride=1, padding=1, relu=True,
                        residual=shortcut)
    return out


def resnet3d_forward(x_ncdhw, params, num_blocks):
    # NCDHW -> NDHWC (channels on lanes); activations carried in bfloat16.
    x = jnp.transpose(x_ncdhw, (0, 2, 3, 4, 1)).astype(jnp.bfloat16)
    out = conv3d_bn_act(x, params["conv1"], params["bn1"],
                        stride=2, padding=3, relu=True)
    for li, (blocks, stride) in enumerate(zip(num_blocks, (1, 2, 2, 2)), start=1):
        layer = params[f"layer{li}"]
        strides = [stride] + [1] * (blocks - 1)
        for bi, st in enumerate(strides):
            out = basic_block(out, layer[bi], st)

    N, D, H, W, C = out.shape
    # Fused global average pool + Linear (lane-dense 128-wide output; pad FC weight only).
    Wfc = params["fc"]["weight"]                                        # (num_classes, C)
    bfc = params["fc"]["bias"]
    nc = Wfc.shape[0]
    ncp = max(128, _round_up(nc, 128))
    Wp = jnp.zeros((C, ncp), jnp.float32).at[:, :nc].set(Wfc.T)
    bp = jnp.zeros((ncp,), jnp.float32).at[:nc].set(bfc)
    logits = global_avg_pool_fc(out.reshape(N, D * H * W, C), Wp, bp)
    return logits[:, :nc]


# ---------------------------------------------------------------------------
# Deterministic parameter init (same shapes as the PyTorch module)
# ---------------------------------------------------------------------------
def init_bn(key, c):
    k1, k2, k3, k4 = jax.random.split(key, 4)
    return dict(
        gamma=1.0 + 0.1 * jax.random.normal(k1, (c,), jnp.float32),
        beta=0.1 * jax.random.normal(k2, (c,), jnp.float32),
        mean=0.1 * jax.random.normal(k3, (c,), jnp.float32),
        var=1.0 + 0.1 * jnp.abs(jax.random.normal(k4, (c,), jnp.float32)),
    )


def init_conv(key, cout, cin, k):
    fan = cin * k ** 3
    return jax.random.normal(key, (cout, cin, k, k, k), jnp.float32) * (2.0 / fan) ** 0.5


def init_params(key, num_blocks, num_classes=1):
    keys = iter(jax.random.split(key, 256))
    params = {}
    params["conv1"] = init_conv(next(keys), 64, 3, 7)
    params["bn1"] = init_bn(next(keys), 64)
    in_planes = 64
    for li, (planes, blocks, stride) in enumerate(
            zip((64, 128, 256, 512), num_blocks, (1, 2, 2, 2)), start=1):
        layer = []
        strides = [stride] + [1] * (blocks - 1)
        for st in strides:
            p = {
                "conv1": init_conv(next(keys), planes, in_planes, 3),
                "bn1": init_bn(next(keys), planes),
                "conv2": init_conv(next(keys), planes, planes, 3),
                "bn2": init_bn(next(keys), planes),
            }
            if st != 1 or in_planes != planes * EXPANSION:
                p["sc_conv"] = init_conv(next(keys), planes * EXPANSION, in_planes, 1)
                p["sc_bn"] = init_bn(next(keys), planes * EXPANSION)
            layer.append(p)
            in_planes = planes * EXPANSION
        params[f"layer{li}"] = layer
    params["fc"] = dict(
        weight=0.05 * jax.random.normal(next(keys),
                                        (num_classes, 512 * EXPANSION), jnp.float32),
        bias=jnp.zeros((num_classes,), jnp.float32),
    )
    return params


if __name__ == "__main__":
    key = jax.random.PRNGKey(0)
    kx, kp = jax.random.split(key)
    num_blocks = [1, 1, 1, 1]          # small ResNet3d configuration
    params = init_params(kp, num_blocks, num_classes=1)

    # PyTorch-style NCDHW input: batch=2, channels=3, D=H=W=8
    x = jax.random.normal(kx, (2, 3, 8, 8, 8), jnp.float32)

    fwd = jax.jit(functools.partial(resnet3d_forward, num_blocks=num_blocks))
    out = fwd(x, params)
    jax.block_until_ready(out)
    assert out.shape == (2, 1) and out.dtype == jnp.float32
    print("KERNEL_OK")
</pallas_src>

<mosaic_0001>
module attributes {stable_mosaic.version = 11 : i64} {
  func.func @_mm_bias_kernel(%arg0: i32, %arg1: i32, %arg2: i32, %arg3: memref<128x384xbf16, #tpu.memory_space<vmem>>, %arg4: memref<384x64xbf16, #tpu.memory_space<vmem>>, %arg5: memref<1x64xf32, #tpu.memory_space<vmem>>, %arg6: memref<128x64xbf16, #tpu.memory_space<vmem>>, %arg7: memref<128x64xf32, #tpu.memory_space<vmem>>) attributes {dimension_semantics = [#tpu.dimension_semantics<parallel>, #tpu.dimension_semantics<parallel>, #tpu.dimension_semantics<arbitrary>], iteration_bounds = array<i64: 1, 1, 3>, scalar_prefetch = 0 : i64, scratch_operands = 1 : i64, tpu.core_type = #tpu.core_type<tc>, window_params = [{transform_indices = @transform_0, window_bounds = array<i64: 128, 384>}, {transform_indices = @transform_1, window_bounds = array<i64: 384, 64>}, {transform_indices = @transform_2, window_bounds = array<i64: 1, 64>}, {transform_indices = @transform_3, window_bounds = array<i64: 128, 64>}]} {
    %c0_i32 = arith.constant 0 : i32
    %0 = arith.cmpi eq, %arg2, %c0_i32 : i32
    %1 = arith.extui %0 : i1 to i32
    %c0_i32_0 = arith.constant 0 : i32
    %2 = arith.cmpi ne, %1, %c0_i32_0 : i32
    scf.if %2 {
      %cst_9 = arith.constant 0.000000e+00 : f32
      %12 = vector.broadcast %cst_9 : f32 to vector<128x64xf32>
      %c0_10 = arith.constant 0 : index
      %c0_11 = arith.constant 0 : index
      %13 = vector.load %arg7[%c0_10, %c0_11] : memref<128x64xf32, #tpu.memory_space<vmem>>, vector<128x64xf32>
      tpu.vector_store %arg7[%c0_10, %c0_11], %12 {strides = array<i32>} : memref<128x64xf32, #tpu.memory_space<vmem>>, vector<128x64xf32>,
    } else {
    }
    %c0 = arith.constant 0 : index
    %c0_1 = arith.constant 0 : index
    %3 = vector.load %arg7[%c0, %c0_1] : memref<128x64xf32, #tpu.memory_space<vmem>>, vector<128x64xf32>
    %c0_2 = arith.constant 0 : index
    %c0_3 = arith.constant 0 : index
    %4 = vector.load %arg3[%c0_2, %c0_3] : memref<128x384xbf16, #tpu.memory_space<vmem>>, vector<128x384xbf16>
    %c0_4 = arith.constant 0 : index
    %c0_5 = arith.constant 0 : index
    %5 = vector.load %arg4[%c0_4, %c0_5] : memref<384x64xbf16, #tpu.memory_space<vmem>>, vector<384x64xbf16>
    %cst = arith.constant dense<0.000000e+00> : vector<128x64xf32>
    %6 = tpu.matmul %4, %5, %cst {dimension_numbers = #tpu.dot_dimension_numbers<[1], [0], [0], [1], [0, 0, 1, 1], [], []>} : vector<128x384xbf16>, vector<384x64xbf16>, vector<128x64xf32> -> vector<128x64xf32>
    %7 = arith.addf %3, %6 : vector<128x64xf32>
    %c0_6 = arith.constant 0 : index
    %c0_7 = arith.constant 0 : index
    %8 = vector.load %arg7[%c0_6, %c0_7] : memref<128x64xf32, #tpu.memory_space<vmem>>, vector<128x64xf32>
    tpu.vector_store %arg7[%c0_6, %c0_7], %7 {strides = array<i32>} : memref<128x64xf32, #tpu.memory_space<vmem>>, vector<128x64xf32>,
    %c2_i32 = arith.constant 2 : i32
    %9 = arith.cmpi eq, %arg2, %c2_i32 : i32
    %10 = arith.extui %9 : i1 to i32
    %c0_i32_8 = arith.constant 0 : i32
    %11 = arith.cmpi ne, %10, %c0_i32_8 : i32
    scf.if %11 {
      %c0_9 = arith.constant 0 : index
      %c0_10 = arith.constant 0 : index
      %12 = vector.load %arg7[%c0_9, %c0_10] : memref<128x64xf32, #tpu.memory_space<vmem>>, vector<128x64xf32>
      %c0_11 = arith.constant 0 : index
      %c0_12 = arith.constant 0 : index
      %13 = vector.load %arg5[%c0_11, %c0_12] : memref<1x64xf32, #tpu.memory_space<vmem>>, vector<1x64xf32>
      %14 = vector.broadcast %13 : vector<1x64xf32> to vector<128x64xf32>
      %15 = arith.addf %12, %14 : vector<128x64xf32>
      %cst_13 = arith.constant 0.000000e+00 : f32
      %16 = vector.broadcast %cst_13 : f32 to vector<128x64xf32>
      %17 = arith.maximumf %15, %16 : vector<128x64xf32>
      %18 = arith.truncf %17 : vector<128x64xf32> to vector<128x64xbf16>
      %c0_14 = arith.constant 0 : index
      %c0_15 = arith.constant 0 : index
      %19 = vector.load %arg6[%c0_14, %c0_15] : memref<128x64xbf16, #tpu.memory_space<vmem>>, vector<128x64xbf16>
      tpu.vector_store %arg6[%c0_14, %c0_15], %18 {strides = array<i32>} : memref<128x64xbf16, #tpu.memory_space<vmem>>, vector<128x64xbf16>,
    } else {
    }
    return
  }
  func.func @transform_0(%arg0: i32, %arg1: i32, %arg2: i32) -> (i32, i32) {
    %c0_i32 = arith.constant 0 : i32
    return %arg0, %arg2 : i32, i32
  }
  func.func @transform_1(%arg0: i32, %arg1: i32, %arg2: i32) -> (i32, i32) {
    %c0_i32 = arith.constant 0 : i32
    return %arg2, %arg1 : i32, i32
  }
  func.func @transform_2(%arg0: i32, %arg1: i32, %arg2: i32) -> (i32, i32) {
    %c0_i32 = arith.constant 0 : i32
    %c0_i32_0 = arith.constant 0 : i32
    return %c0_i32, %arg1 : i32, i32
  }
  func.func @transform_3(%arg0: i32, %arg1: i32, %arg2: i32) -> (i32, i32) {
    %c0_i32 = arith.constant 0 : i32
    return %arg0, %arg1 : i32, i32
  }
}

module attributes {stable_mosaic.version = 11 : i64} {
  func.func @_mm_bias_kernel(%arg0: i32, %arg1: i32, %arg2: i32, %arg3: memref<128x256xbf16, #tpu.memory_space<vmem>>, %arg4: memref<256x64xbf16, #tpu.memory_space<vmem>>, %arg5: memref<1x64xf32, #tpu.memory_space<vmem>>, %arg6: memref<128x64xbf16, #tpu.memory_space<vmem>>, %arg7: memref<128x64xf32, #tpu.memory_space<vmem>>) attributes {dimension_semantics = [#tpu.dimension_semantics<parallel>, #tpu.dimension_semantics<parallel>, #tpu.dimension_semantics<arbitrary>], iteration_bounds = array<i64: 1, 1, 7>, scalar_prefetch = 0 : i64, scratch_operands = 1 : i64, tpu.core_type = #tpu.core_type<tc>, window_params = [{transform_indices = @transform_0, window_bounds = array<i64: 128, 256>}, {transform_indices = @transform_1, window_bounds = array<i64: 256, 64>}, {transform_indices = @transform_2, window_bounds = array<i64: 1, 64>}, {transform_indices = @transform_3, window_bounds = array<i64: 128, 64>}]} {
    %c0_i32 = arith.constant 0 : i32
    %0 = arith.cmpi eq, %arg2, %c0_i32 : i32
    %1 = arith.extui %0 : i1 to i32
    %c0_i32_0 = arith.constant 0 : i32
    %2 = arith.cmpi ne, %1, %c0_i32_0 : i32
    scf.if %2 {
      %cst_9 = arith.constant 0.000000e+00 : f32
      %12 = vector.broadcast %cst_9 : f32 to vector<128x64xf32>
      %c0_10 = arith.constant 0 : index
      %c0_11 = arith.constant 0 : index
      %13 = vector.load %arg7[%c0_10, %c0_11] : memref<128x64xf32, #tpu.memory_space<vmem>>, vector<128x64xf32>
      tpu.vector_store %arg7[%c0_10, %c0_11], %12 {strides = array<i32>} : memref<128x64xf32, #tpu.memory_space<vmem>>, vector<128x64xf32>,
    } else {
    }
    %c0 = arith.constant 0 : index
    %c0_1 = arith.constant 0 : index
    %3 = vector.load %arg7[%c0, %c0_1] : memref<128x64xf32, #tpu.memory_space<vmem>>, vector<128x64xf32>
    %c0_2 = arith.constant 0 : index
    %c0_3 = arith.constant 0 : index
    %4 = vector.load %arg3[%c0_2, %c0_3] : memref<128x256xbf16, #tpu.memory_space<vmem>>, vector<128x256xbf16>
    %c0_4 = arith.constant 0 : index
    %c0_5 = arith.constant 0 : index
    %5 = vector.load %arg4[%c0_4, %c0_5] : memref<256x64xbf16, #tpu.memory_space<vmem>>, vector<256x64xbf16>
    %cst = arith.constant dense<0.000000e+00> : vector<128x64xf32>
    %6 = tpu.matmul %4, %5, %cst {dimension_numbers = #tpu.dot_dimension_numbers<[1], [0], [0], [1], [0, 0, 1, 1], [], []>} : vector<128x256xbf16>, vector<256x64xbf16>, vector<128x64xf32> -> vector<128x64xf32>
    %7 = arith.addf %3, %6 : vector<128x64xf32>
    %c0_6 = arith.constant 0 : index
    %c0_7 = arith.constant 0 : index
    %8 = vector.load %arg7[%c0_6, %c0_7] : memref<128x64xf32, #tpu.memory_space<vmem>>, vector<128x64xf32>
    tpu.vector_store %arg7[%c0_6, %c0_7], %7 {strides = array<i32>} : memref<128x64xf32, #tpu.memory_space<vmem>>, vector<128x64xf32>,
    %c6_i32 = arith.constant 6 : i32
    %9 = arith.cmpi eq, %arg2, %c6_i32 : i32
    %10 = arith.extui %9 : i1 to i32
    %c0_i32_8 = arith.constant 0 : i32
    %11 = arith.cmpi ne, %10, %c0_i32_8 : i32
    scf.if %11 {
      %c0_9 = arith.constant 0 : index
      %c0_10 = arith.constant 0 : index
      %12 = vector.load %arg7[%c0_9, %c0_10] : memref<128x64xf32, #tpu.memory_space<vmem>>, vector<128x64xf32>
      %c0_11 = arith.constant 0 : index
      %c0_12 = arith.constant 0 : index
      %13 = vector.load %arg5[%c0_11, %c0_12] : memref<1x64xf32, #tpu.memory_space<vmem>>, vector<1x64xf32>
      %14 = vector.broadcast %13 : vector<1x64xf32> to vector<128x64xf32>
      %15 = arith.addf %12, %14 : vector<128x64xf32>
      %cst_13 = arith.constant 0.000000e+00 : f32
      %16 = vector.broadcast %cst_13 : f32 to vector<128x64xf32>
      %17 = arith.maximumf %15, %16 : vector<128x64xf32>
      %18 = arith.truncf %17 : vector<128x64xf32> to vector<128x64xbf16>
      %c0_14 = arith.constant 0 : index
      %c0_15 = arith.constant 0 : index
      %19 = vector.load %arg6[%c0_14, %c0_15] : memref<128x64xbf16, #tpu.memory_space<vmem>>, vector<128x64xbf16>
      tpu.vector_store %arg6[%c0_14, %c0_15], %18 {strides = array<i32>} : memref<128x64xbf16, #tpu.memory_space<vmem>>, vector<128x64xbf16>,
    } else {
    }
    return
  }
  func.func @transform_0(%arg0: i32, %arg1: i32, %arg2: i32) -> (i32, i32) {
    %c0_i32 = arith.constant 0 : i32
    return %arg0, %arg2 : i32, i32
  }
  func.func @transform_1(%arg0: i32, %arg1: i32, %arg2: i32) -> (i32, i32) {
    %c0_i32 = arith.constant 0 : i32
    return %arg2, %arg1 : i32, i32
  }
  func.func @transform_2(%arg0: i32, %arg1: i32, %arg2: i32) -> (i32, i32) {
    %c0_i32 = arith.constant 0 : i32
    %c0_i32_0 = arith.constant 0 : i32
    return %c0_i32, %arg1 : i32, i32
  }
  func.func @transform_3(%arg0: i32, %arg1: i32, %arg2: i32) -> (i32, i32) {
    %c0_i32 = arith.constant 0 : i32
    return %arg0, %arg1 : i32, i32
  }
}

module attributes {stable_mosaic.version = 11 : i64} {
  func.func @_mm_bias_kernel(%arg0: i32, %arg1: i32, %arg2: i32, %arg3: memref<128x256xbf16, #tpu.memory_space<vmem>>, %arg4: memref<256x64xbf16, #tpu.memory_space<vmem>>, %arg5: memref<1x64xf32, #tpu.memory_space<vmem>>, %arg6: memref<128x64xbf16, #tpu.memory_space<vmem>>, %arg7: memref<128x64xbf16, #tpu.memory_space<vmem>>, %arg8: memref<128x64xf32, #tpu.memory_space<vmem>>) attributes {dimension_semantics = [#tpu.dimension_semantics<parallel>, #tpu.dimension_semantics<parallel>, #tpu.dimension_semantics<arbitrary>], iteration_bounds = array<i64: 1, 1, 7>, scalar_prefetch = 0 : i64, scratch_operands = 1 : i64, tpu.core_type = #tpu.core_type<tc>, window_params = [{transform_indices = @transform_0, window_bounds = array<i64: 128, 256>}, {transform_indices = @transform_1, window_bounds = array<i64: 256, 64>}, {transform_indices = @transform_2, window_bounds = array<i64: 1, 64>}, {transform_indices = @transform_3, window_bounds = array<i64: 128, 64>}, {transform_indices = @transform_4, window_bounds = array<i64: 128, 64>}]} {
    %c0_i32 = arith.constant 0 : i32
    %0 = arith.cmpi eq, %arg2, %c0_i32 : i32
    %1 = arith.extui %0 : i1 to i32
    %c0_i32_0 = arith.constant 0 : i32
    %2 = arith.cmpi ne, %1, %c0_i32_0 : i32
    scf.if %2 {
      %cst_9 = arith.constant 0.000000e+00 : f32
      %12 = vector.broadcast %cst_9 : f32 to vector<128x64xf32>
      %c0_10 = arith.constant 0 : index
      %c0_11 = arith.constant 0 : index
      %13 = vector.load %arg8[%c0_10, %c0_11] : memref<128x64xf32, #tpu.memory_space<vmem>>, vector<128x64xf32>
      tpu.vector_store %arg8[%c0_10, %c0_11], %12 {strides = array<i32>} : memref<128x64xf32, #tpu.memory_space<vmem>>, vector<128x64xf32>,
    } else {
    }
    %c0 = arith.constant 0 : index
    %c0_1 = arith.constant 0 : index
    %3 = vector.load %arg8[%c0, %c0_1] : memref<128x64xf32, #tpu.memory_space<vmem>>, vector<128x64xf32>
    %c0_2 = arith.constant 0 : index
    %c0_3 = arith.constant 0 : index
    %4 = vector.load %arg3[%c0_2, %c0_3] : memref<128x256xbf16, #tpu.memory_space<vmem>>, vector<128x256xbf16>
    %c0_4 = arith.constant 0 : index
    %c0_5 = arith.constant 0 : index
    %5 = vector.load %arg4[%c0_4, %c0_5] : memref<256x64xbf16, #tpu.memory_space<vmem>>, vector<256x64xbf16>
    %cst = arith.constant dense<0.000000e+00> : vector<128x64xf32>
    %6 = tpu.matmul %4, %5, %cst {dimension_numbers = #tpu.dot_dimension_numbers<[1], [0], [0], [1], [0, 0, 1, 1], [], []>} : vector<128x256xbf16>, vector<256x64xbf16>, vector<128x64xf32> -> vector<128x64xf32>
    %7 = arith.addf %3, %6 : vector<128x64xf32>
    %c0_6 = arith.constant 0 : index
    %c0_7 = arith.constant 0 : index
    %8 = vector.load %arg8[%c0_6, %c0_7] : memref<128x64xf32, #tpu.memory_space<vmem>>, vector<128x64xf32>
    tpu.vector_store %arg8[%c0_6, %c0_7], %7 {strides = array<i32>} : memref<128x64xf32, #tpu.memory_space<vmem>>, vector<128x64xf32>,
    %c6_i32 = arith.constant 6 : i32
    %9 = arith.cmpi eq, %arg2, %c6_i32 : i32
    %10 = arith.extui %9 : i1 to i32
    %c0_i32_8 = arith.constant 0 : i32
    %11 = arith.cmpi ne, %10, %c0_i32_8 : i32
    scf.if %11 {
      %c0_9 = arith.constant 0 : index
      %c0_10 = arith.constant 0 : index
      %12 = vector.load %arg8[%c0_9, %c0_10] : memref<128x64xf32, #tpu.memory_space<vmem>>, vector<128x64xf32>
      %c0_11 = arith.constant 0 : index
      %c0_12 = arith.constant 0 : index
      %13 = vector.load %arg5[%c0_11, %c0_12] : memref<1x64xf32, #tpu.memory_space<vmem>>, vector<1x64xf32>
      %14 = vector.broadcast %13 : vector<1x64xf32> to vector<128x64xf32>
      %15 = arith.addf %12, %14 : vector<128x64xf32>
      %c0_13 = arith.constant 0 : index
      %c0_14 = arith.constant 0 : index
      %16 = vector.load %arg6[%c0_13, %c0_14] : memref<128x64xbf16, #tpu.memory_space<vmem>>, vector<128x64xbf16>
      %17 = arith.extf %16 : vector<128x64xbf16> to vector<128x64xf32>
      %18 = arith.addf %15, %17 : vector<128x64xf32>
      %cst_15 = arith.constant 0.000000e+00 : f32
      %19 = vector.broadcast %cst_15 : f32 to vector<128x64xf32>
      %20 = arith.maximumf %18, %19 : vector<128x64xf32>
      %21 = arith.truncf %20 : vector<128x64xf32> to vector<128x64xbf16>
      %c0_16 = arith.constant 0 : index
      %c0_17 = arith.constant 0 : index
      %22 = vector.load %arg7[%c0_16, %c0_17] : memref<128x64xbf16, #tpu.memory_space<vmem>>, vector<128x64xbf16>
      tpu.vector_store %arg7[%c0_16, %c0_17], %21 {strides = array<i32>} : memref<128x64xbf16, #tpu.memory_space<vmem>>, vector<128x64xbf16>,
    } else {
    }
    return
  }
  func.func @transform_0(%arg0: i32, %arg1: i32, %arg2: i32) -> (i32, i32) {
    %c0_i32 = arith.constant 0 : i32
    return %arg0, %arg2 : i32, i32
  }
  func.func @transform_1(%arg0: i32, %arg1: i32, %arg2: i32) -> (i32, i32) {
    %c0_i32 = arith.constant 0 : i32
    return %arg2, %arg1 : i32, i32
  }
  func.func @transform_2(%arg0: i32, %arg1: i32, %arg2: i32) -> (i32, i32) {
    %c0_i32 = arith.constant 0 : i32
    %c0_i32_0 = arith.constant 0 : i32
    return %c0_i32, %arg1 : i32, i32
  }
  func.func @transform_3(%arg0: i32, %arg1: i32, %arg2: i32) -> (i32, i32) {
    %c0_i32 = arith.constant 0 : i32
    return %arg0, %arg1 : i32, i32
  }
  func.func @transform_4(%arg0: i32, %arg1: i32, %arg2: i32) -> (i32, i32) {
    %c0_i32 = arith.constant 0 : i32
    return %arg0, %arg1 : i32, i32
  }
}

module attributes {stable_mosaic.version = 11 : i64} {
  func.func @_mm_bias_kernel(%arg0: i32, %arg1: i32, %arg2: i32, %arg3: memref<16x256xbf16, #tpu.memory_space<vmem>>, %arg4: memref<256x128xbf16, #tpu.memory_space<vmem>>, %arg5: memref<1x128xf32, #tpu.memory_space<vmem>>, %arg6: memref<16x128xbf16, #tpu.memory_space<vmem>>, %arg7: memref<16x128xf32, #tpu.memory_space<vmem>>) attributes {dimension_semantics = [#tpu.dimension_semantics<parallel>, #tpu.dimension_semantics<parallel>, #tpu.dimension_semantics<arbitrary>], iteration_bounds = array<i64: 1, 1, 7>, scalar_prefetch = 0 : i64, scratch_operands = 1 : i64, tpu.core_type = #tpu.core_type<tc>, window_params = [{transform_indices = @transform_0, window_bounds = array<i64: 16, 256>}, {transform_indices = @transform_1, window_bounds = array<i64: 256, 128>}, {transform_indices = @transform_2, window_bounds = array<i64: 1, 128>}, {transform_indices = @transform_3, window_bounds = array<i64: 16, 128>}]} {
    %c0_i32 = arith.constant 0 : i32
    %0 = arith.cmpi eq, %arg2, %c0_i32 : i32
    %1 = arith.extui %0 : i1 to i32
    %c0_i32_0 = arith.constant 0 : i32
    %2 = arith.cmpi ne, %1, %c0_i32_0 : i32
    scf.if %2 {
      %cst_9 = arith.constant 0.000000e+00 : f32
      %12 = vector.broadcast %cst_9 : f32 to vector<16x128xf32>
      %c0_10 = arith.constant 0 : index
      %c0_11 = arith.constant 0 : index
      %13 = vector.load %arg7[%c0_10, %c0_11] : memref<16x128xf32, #tpu.memory_space<vmem>>, vector<16x128xf32>
      tpu.vector_store %arg7[%c0_10, %c0_11], %12 {strides = array<i32>} : memref<16x128xf32, #tpu.memory_space<vmem>>, vector<16x128xf32>,
    } else {
    }
    %c0 = arith.constant 0 : index
    %c0_1 = arith.constant 0 : index
    %3 = vector.load %arg7[%c0, %c0_1] : memref<16x128xf32, #tpu.memory_space<vmem>>, vector<16x128xf32>
    %c0_2 = arith.constant 0 : index
    %c0_3 = arith.constant 0 : index
    %4 = vector.load %arg3[%c0_2, %c0_3] : memref<16x256xbf16, #tpu.memory_space<vmem>>, vector<16x256xbf16>
    %c0_4 = arith.constant 0 : index
    %c0_5 = arith.constant 0 : index
    %5 = vector.load %arg4[%c0_4, %c0_5] : memref<256x128xbf16, #tpu.memory_space<vmem>>, vector<256x128xbf16>
    %cst = arith.constant dense<0.000000e+00> : vector<16x128xf32>
    %6 = tpu.matmul %4, %5, %cst {dimension_numbers = #tpu.dot_dimension_numbers<[1], [0], [0], [1], [0, 0, 1, 1], [], []>} : vector<16x256xbf16>, vector<256x128xbf16>, vector<16x128xf32> -> vector<16x128xf32>
    %7 = arith.addf %3, %6 : vector<16x128xf32>
    %c0_6 = arith.constant 0 : index
    %c0_7 = arith.constant 0 : index
    %8 = vector.load %arg7[%c0_6, %c0_7] : memref<16x128xf32, #tpu.memory_space<vmem>>, vector<16x128xf32>
    tpu.vector_store %arg7[%c0_6, %c0_7], %7 {strides = array<i32>} : memref<16x128xf32, #tpu.memory_space<vmem>>, vector<16x128xf32>,
    %c6_i32 = arith.constant 6 : i32
    %9 = arith.cmpi eq, %arg2, %c6_i32 : i32
    %10 = arith.extui %9 : i1 to i32
    %c0_i32_8 = arith.constant 0 : i32
    %11 = arith.cmpi ne, %10, %c0_i32_8 : i32
    scf.if %11 {
      %c0_9 = arith.constant 0 : index
      %c0_10 = arith.constant 0 : index
      %12 = vector.load %arg7[%c0_9, %c0_10] : memref<16x128xf32, #tpu.memory_space<vmem>>, vector<16x128xf32>
      %c0_11 = arith.constant 0 : index
      %c0_12 = arith.constant 0 : index
      %13 = vector.load %arg5[%c0_11, %c0_12] : memref<1x128xf32, #tpu.memory_space<vmem>>, vector<1x128xf32>
      %14 = vector.broadcast %13 : vector<1x128xf32> to vector<16x128xf32>
      %15 = arith.addf %12, %14 : vector<16x128xf32>
      %cst_13 = arith.constant 0.000000e+00 : f32
      %16 = vector.broadcast %cst_13 : f32 to vector<16x128xf32>
      %17 = arith.maximumf %15, %16 : vector<16x128xf32>
      %18 = arith.truncf %17 : vector<16x128xf32> to vector<16x128xbf16>
      %c0_14 = arith.constant 0 : index
      %c0_15 = arith.constant 0 : index
      %19 = vector.load %arg6[%c0_14, %c0_15] : memref<16x128xbf16, #tpu.memory_space<vmem>>, vector<16x128xbf16>
      tpu.vector_store %arg6[%c0_14, %c0_15], %18 {strides = array<i32>} : memref<16x128xbf16, #tpu.memory_space<vmem>>, vector<16x128xbf16>,
    } else {
    }
    return
  }
  func.func @transform_0(%arg0: i32, %arg1: i32, %arg2: i32) -> (i32, i32) {
    %c0_i32 = arith.constant 0 : i32
    return %arg0, %arg2 : i32, i32
  }
  func.func @transform_1(%arg0: i32, %arg1: i32, %arg2: i32) -> (i32, i32) {
    %c0_i32 = arith.constant 0 : i32
    return %arg2, %arg1 : i32, i32
  }
  func.func @transform_2(%arg0: i32, %arg1: i32, %arg2: i32) -> (i32, i32) {
    %c0_i32 = arith.constant 0 : i32
    %c0_i32_0 = arith.constant 0 : i32
    return %c0_i32, %arg1 : i32, i32
  }
  func.func @transform_3(%arg0: i32, %arg1: i32, %arg2: i32) -> (i32, i32) {
    %c0_i32 = arith.constant 0 : i32
    return %arg0, %arg1 : i32, i32
  }
}

module attributes {stable_mosaic.version = 11 : i64} {
  func.func @_mm_bias_kernel(%arg0: i32, %arg1: i32, %arg2: i32, %arg3: memref<16x64xbf16, #tpu.memory_space<vmem>>, %arg4: memref<64x128xbf16, #tpu.memory_space<vmem>>, %arg5: memref<1x128xf32, #tpu.memory_space<vmem>>, %arg6: memref<16x128xbf16, #tpu.memory_space<vmem>>, %arg7: memref<16x128xf32, #tpu.memory_space<vmem>>) attributes {dimension_semantics = [#tpu.dimension_semantics<parallel>, #tpu.dimension_semantics<parallel>, #tpu.dimension_semantics<arbitrary>], iteration_bounds = array<i64: 1, 1, 1>, scalar_prefetch = 0 : i64, scratch_operands = 1 : i64, tpu.core_type = #tpu.core_type<tc>, window_params = [{transform_indices = @transform_0, window_bounds = array<i64: 16, 64>}, {transform_indices = @transform_1, window_bounds = array<i64: 64, 128>}, {transform_indices = @transform_2, window_bounds = array<i64: 1, 128>}, {transform_indices = @transform_3, window_bounds = array<i64: 16, 128>}]} {
    %c0_i32 = arith.constant 0 : i32
    %0 = arith.cmpi eq, %arg2, %c0_i32 : i32
    %1 = arith.extui %0 : i1 to i32
    %c0_i32_0 = arith.constant 0 : i32
    %2 = arith.cmpi ne, %1, %c0_i32_0 : i32
    scf.if %2 {
      %cst_10 = arith.constant 0.000000e+00 : f32
      %12 = vector.broadcast %cst_10 : f32 to vector<16x128xf32>
      %c0_11 = arith.constant 0 : index
      %c0_12 = arith.constant 0 : index
      %13 = vector.load %arg7[%c0_11, %c0_12] : memref<16x128xf32, #tpu.memory_space<vmem>>, vector<16x128xf32>
      tpu.vector_store %arg7[%c0_11, %c0_12], %12 {strides = array<i32>} : memref<16x128xf32, #tpu.memory_space<vmem>>, vector<16x128xf32>,
    } else {
    }
    %c0 = arith.constant 0 : index
    %c0_1 = arith.constant 0 : index
    %3 = vector.load %arg7[%c0, %c0_1] : memref<16x128xf32, #tpu.memory_space<vmem>>, vector<16x128xf32>
    %c0_2 = arith.constant 0 : index
    %c0_3 = arith.constant 0 : index
    %4 = vector.load %arg3[%c0_2, %c0_3] : memref<16x64xbf16, #tpu.memory_space<vmem>>, vector<16x64xbf16>
    %c0_4 = arith.constant 0 : index
    %c0_5 = arith.constant 0 : index
    %5 = vector.load %arg4[%c0_4, %c0_5] : memref<64x128xbf16, #tpu.memory_space<vmem>>, vector<64x128xbf16>
    %cst = arith.constant dense<0.000000e+00> : vector<16x128xf32>
    %6 = tpu.matmul %4, %5, %cst {dimension_numbers = #tpu.dot_dimension_numbers<[1], [0], [0], [1], [0, 0, 1, 1], [], []>} : vector<16x64xbf16>, vector<64x128xbf16>, vector<16x128xf32> -> vector<16x128xf32>
    %7 = arith.addf %3, %6 : vector<16x128xf32>
    %c0_6 = arith.constant 0 : index
    %c0_7 = arith.constant 0 : index
    %8 = vector.load %arg7[%c0_6, %c0_7] : memref<16x128xf32, #tpu.memory_space<vmem>>, vector<16x128xf32>
    tpu.vector_store %arg7[%c0_6, %c0_7], %7 {strides = array<i32>} : memref<16x128xf32, #tpu.memory_space<vmem>>, vector<16x128xf32>,
    %c0_i32_8 = arith.constant 0 : i32
    %9 = arith.cmpi eq, %arg2, %c0_i32_8 : i32
    %10 = arith.extui %9 : i1 to i32
    %c0_i32_9 = arith.constant 0 : i32
    %11 = arith.cmpi ne, %10, %c0_i32_9 : i32
    scf.if %11 {
      %c0_10 = arith.constant 0 : index
      %c0_11 = arith.constant 0 : index
      %12 = vector.load %arg7[%c0_10, %c0_11] : memref<16x128xf32, #tpu.memory_space<vmem>>, vector<16x128xf32>
      %c0_12 = arith.constant 0 : index
      %c0_13 = arith.constant 0 : index
      %13 = vector.load %arg5[%c0_12, %c0_13] : memref<1x128xf32, #tpu.memory_space<vmem>>, vector<1x128xf32>
      %14 = vector.broadcast %13 : vector<1x128xf32> to vector<16x128xf32>
      %15 = arith.addf %12, %14 : vector<16x128xf32>
      %16 = arith.truncf %15 : vector<16x128xf32> to vector<16x128xbf16>
      %c0_14 = arith.constant 0 : index
      %c0_15 = arith.constant 0 : index
      %17 = vector.load %arg6[%c0_14, %c0_15] : memref<16x128xbf16, #tpu.memory_space<vmem>>, vector<16x128xbf16>
      tpu.vector_store %arg6[%c0_14, %c0_15], %16 {strides = array<i32>} : memref<16x128xbf16, #tpu.memory_space<vmem>>, vector<16x128xbf16>,
    } else {
    }
    return
  }
  func.func @transform_0(%arg0: i32, %arg1: i32, %arg2: i32) -> (i32, i32) {
    %c0_i32 = arith.constant 0 : i32
    return %arg0, %arg2 : i32, i32
  }
  func.func @transform_1(%arg0: i32, %arg1: i32, %arg2: i32) -> (i32, i32) {
    %c0_i32 = arith.constant 0 : i32
    return %arg2, %arg1 : i32, i32
  }
  func.func @transform_2(%arg0: i32, %arg1: i32, %arg2: i32) -> (i32, i32) {
    %c0_i32 = arith.constant 0 : i32
    %c0_i32_0 = arith.constant 0 : i32
    return %c0_i32, %arg1 : i32, i32
  }
  func.func @transform_3(%arg0: i32, %arg1: i32, %arg2: i32) -> (i32, i32) {
    %c0_i32 = arith.constant 0 : i32
    return %arg0, %arg1 : i32, i32
  }
}

module attributes {stable_mosaic.version = 11 : i64} {
  func.func @_mm_bias_kernel(%arg0: i32, %arg1: i32, %arg2: i32, %arg3: memref<16x384xbf16, #tpu.memory_space<vmem>>, %arg4: memref<384x128xbf16, #tpu.memory_space<vmem>>, %arg5: memref<1x128xf32, #tpu.memory_space<vmem>>, %arg6: memref<16x128xbf16, #tpu.memory_space<vmem>>, %arg7: memref<16x128xbf16, #tpu.memory_space<vmem>>, %arg8: memref<16x128xf32, #tpu.memory_space<vmem>>) attributes {dimension_semantics = [#tpu.dimension_semantics<parallel>, #tpu.dimension_semantics<parallel>, #tpu.dimension_semantics<arbitrary>], iteration_bounds = array<i64: 1, 1, 9>, scalar_prefetch = 0 : i64, scratch_operands = 1 : i64, tpu.core_type = #tpu.core_type<tc>, window_params = [{transform_indices = @transform_0, window_bounds = array<i64: 16, 384>}, {transform_indices = @transform_1, window_bounds = array<i64: 384, 128>}, {transform_indices = @transform_2, window_bounds = array<i64: 1, 128>}, {transform_indices = @transform_3, window_bounds = array<i64: 16, 128>}, {transform_indices = @transform_4, window_bounds = array<i64: 16, 128>}]} {
    %c0_i32 = arith.constant 0 : i32
    %0 = arith.cmpi eq, %arg2, %c0_i32 : i32
    %1 = arith.extui %0 : i1 to i32
    %c0_i32_0 = arith.constant 0 : i32
    %2 = arith.cmpi ne, %1, %c0_i32_0 : i32
    scf.if %2 {
      %cst_9 = arith.constant 0.000000e+00 : f32
      %12 = vector.broadcast %cst_9 : f32 to vector<16x128xf32>
      %c0_10 = arith.constant 0 : index
      %c0_11 = arith.constant 0 : index
      %13 = vector.load %arg8[%c0_10, %c0_11] : memref<16x128xf32, #tpu.memory_space<vmem>>, vector<16x128xf32>
      tpu.vector_store %arg8[%c0_10, %c0_11], %12 {strides = array<i32>} : memref<16x128xf32, #tpu.memory_space<vmem>>, vector<16x128xf32>,
    } else {
    }
    %c0 = arith.constant 0 : index
    %c0_1 = arith.constant 0 : index
    %3 = vector.load %arg8[%c0, %c0_1] : memref<16x128xf32, #tpu.memory_space<vmem>>, vector<16x128xf32>
    %c0_2 = arith.constant 0 : index
    %c0_3 = arith.constant 0 : index
    %4 = vector.load %arg3[%c0_2, %c0_3] : memref<16x384xbf16, #tpu.memory_space<vmem>>, vector<16x384xbf16>
    %c0_4 = arith.constant 0 : index
    %c0_5 = arith.constant 0 : index
    %5 = vector.load %arg4[%c0_4, %c0_5] : memref<384x128xbf16, #tpu.memory_space<vmem>>, vector<384x128xbf16>
    %cst = arith.constant dense<0.000000e+00> : vector<16x128xf32>
    %6 = tpu.matmul %4, %5, %cst {dimension_numbers = #tpu.dot_dimension_numbers<[1], [0], [0], [1], [0, 0, 1, 1], [], []>} : vector<16x384xbf16>, vector<384x128xbf16>, vector<16x128xf32> -> vector<16x128xf32>
    %7 = arith.addf %3, %6 : vector<16x128xf32>
    %c0_6 = arith.constant 0 : index
    %c0_7 = arith.constant 0 : index
    %8 = vector.load %arg8[%c0_6, %c0_7] : memref<16x128xf32, #tpu.memory_space<vmem>>, vector<16x128xf32>
    tpu.vector_store %arg8[%c0_6, %c0_7], %7 {strides = array<i32>} : memref<16x128xf32, #tpu.memory_space<vmem>>, vector<16x128xf32>,
    %c8_i32 = arith.constant 8 : i32
    %9 = arith.cmpi eq, %arg2, %c8_i32 : i32
    %10 = arith.extui %9 : i1 to i32
    %c0_i32_8 = arith.constant 0 : i32
    %11 = arith.cmpi ne, %10, %c0_i32_8 : i32
    scf.if %11 {
      %c0_9 = arith.constant 0 : index
      %c0_10 = arith.constant 0 : index
      %12 = vector.load %arg8[%c0_9, %c0_10] : memref<16x128xf32, #tpu.memory_space<vmem>>, vector<16x128xf32>
      %c0_11 = arith.constant 0 : index
      %c0_12 = arith.constant 0 : index
      %13 = vector.load %arg5[%c0_11, %c0_12] : memref<1x128xf32, #tpu.memory_space<vmem>>, vector<1x128xf32>
      %14 = vector.broadcast %13 : vector<1x128xf32> to vector<16x128xf32>
      %15 = arith.addf %12, %14 : vector<16x128xf32>
      %c0_13 = arith.constant 0 : index
      %c0_14 = arith.constant 0 : index
      %16 = vector.load %arg6[%c0_13, %c0_14] : memref<16x128xbf16, #tpu.memory_space<vmem>>, vector<16x128xbf16>
      %17 = arith.extf %16 : vector<16x128xbf16> to vector<16x128xf32>
      %18 = arith.addf %15, %17 : vector<16x128xf32>
      %cst_15 = arith.constant 0.000000e+00 : f32
      %19 = vector.broadcast %cst_15 : f32 to vector<16x128xf32>
      %20 = arith.maximumf %18, %19 : vector<16x128xf32>
      %21 = arith.truncf %20 : vector<16x128xf32> to vector<16x128xbf16>
      %c0_16 = arith.constant 0 : index
      %c0_17 = arith.constant 0 : index
      %22 = vector.load %arg7[%c0_16, %c0_17] : memref<16x128xbf16, #tpu.memory_space<vmem>>, vector<16x128xbf16>
      tpu.vector_store %arg7[%c0_16, %c0_17], %21 {strides = array<i32>} : memref<16x128xbf16, #tpu.memory_space<vmem>>, vector<16x128xbf16>,
    } else {
    }
    return
  }
  func.func @transform_0(%arg0: i32, %arg1: i32, %arg2: i32) -> (i32, i32) {
    %c0_i32 = arith.constant 0 : i32
    return %arg0, %arg2 : i32, i32
  }
  func.func @transform_1(%arg0: i32, %arg1: i32, %arg2: i32) -> (i32, i32) {
    %c0_i32 = arith.constant 0 : i32
    return %arg2, %arg1 : i32, i32
  }
  func.func @transform_2(%arg0: i32, %arg1: i32, %arg2: i32) -> (i32, i32) {
    %c0_i32 = arith.constant 0 : i32
    %c0_i32_0 = arith.constant 0 : i32
    return %c0_i32, %arg1 : i32, i32
  }
  func.func @transform_3(%arg0: i32, %arg1: i32, %arg2: i32) -> (i32, i32) {
    %c0_i32 = arith.constant 0 : i32
    return %arg0, %arg1 : i32, i32
  }
  func.func @transform_4(%arg0: i32, %arg1: i32, %arg2: i32) -> (i32, i32) {
    %c0_i32 = arith.constant 0 : i32
    return %arg0, %arg1 : i32, i32
  }
}

module attributes {stable_mosaic.version = 11 : i64} {
  func.func @_mm_bias_kernel(%arg0: i32, %arg1: i32, %arg2: i32, %arg3: memref<8x384xbf16, #tpu.memory_space<vmem>>, %arg4: memref<384x256xbf16, #tpu.memory_space<vmem>>, %arg5: memref<1x256xf32, #tpu.memory_space<vmem>>, %arg6: memref<8x256xbf16, #tpu.memory_space<vmem>>, %arg7: memref<8x256xf32, #tpu.memory_space<vmem>>) attributes {dimension_semantics = [#tpu.dimension_semantics<parallel>, #tpu.dimension_semantics<parallel>, #tpu.dimension_semantics<arbitrary>], iteration_bounds = array<i64: 1, 1, 9>, scalar_prefetch = 0 : i64, scratch_operands = 1 : i64, tpu.core_type = #tpu.core_type<tc>, window_params = [{transform_indices = @transform_0, window_bounds = array<i64: 8, 384>}, {transform_indices = @transform_1, window_bounds = array<i64: 384, 256>}, {transform_indices = @transform_2, window_bounds = array<i64: 1, 256>}, {transform_indices = @transform_3, window_bounds = array<i64: 8, 256>}]} {
    %c0_i32 = arith.constant 0 : i32
    %0 = arith.cmpi eq, %arg2, %c0_i32 : i32
    %1 = arith.extui %0 : i1 to i32
    %c0_i32_0 = arith.constant 0 : i32
    %2 = arith.cmpi ne, %1, %c0_i32_0 : i32
    scf.if %2 {
      %cst_9 = arith.constant 0.000000e+00 : f32
      %12 = vector.broadcast %cst_9 : f32 to vector<8x256xf32>
      %c0_10 = arith.constant 0 : index
      %c0_11 = arith.constant 0 : index
      %13 = vector.load %arg7[%c0_10, %c0_11] : memref<8x256xf32, #tpu.memory_space<vmem>>, vector<8x256xf32>
      tpu.vector_store %arg7[%c0_10, %c0_11], %12 {strides = array<i32>} : memref<8x256xf32, #tpu.memory_space<vmem>>, vector<8x256xf32>,
    } else {
    }
    %c0 = arith.constant 0 : index
    %c0_1 = arith.constant 0 : index
    %3 = vector.load %arg7[%c0, %c0_1] : memref<8x256xf32, #tpu.memory_space<vmem>>, vector<8x256xf32>
    %c0_2 = arith.constant 0 : index
    %c0_3 = arith.constant 0 : index
    %4 = vector.load %arg3[%c0_2, %c0_3] : memref<8x384xbf16, #tpu.memory_space<vmem>>, vector<8x384xbf16>
    %c0_4 = arith.constant 0 : index
    %c0_5 = arith.constant 0 : index
    %5 = vector.load %arg4[%c0_4, %c0_5] : memref<384x256xbf16, #tpu.memory_space<vmem>>, vector<384x256xbf16>
    %cst = arith.constant dense<0.000000e+00> : vector<8x256xf32>
    %6 = tpu.matmul %4, %5, %cst {dimension_numbers = #tpu.dot_dimension_numbers<[1], [0], [0], [1], [0, 0, 1, 1], [], []>} : vector<8x384xbf16>, vector<384x256xbf16>, vector<8x256xf32> -> vector<8x256xf32>
    %7 = arith.addf %3, %6 : vector<8x256xf32>
    %c0_6 = arith.constant 0 : index
    %c0_7 = arith.constant 0 : index
    %8 = vector.load %arg7[%c0_6, %c0_7] : memref<8x256xf32, #tpu.memory_space<vmem>>, vector<8x256xf32>
    tpu.vector_store %arg7[%c0_6, %c0_7], %7 {strides = array<i32>} : memref<8x256xf32, #tpu.memory_space<vmem>>, vector<8x256xf32>,
    %c8_i32 = arith.constant 8 : i32
    %9 = arith.cmpi eq, %arg2, %c8_i32 : i32
    %10 = arith.extui %9 : i1 to i32
    %c0_i32_8 = arith.constant 0 : i32
    %11 = arith.cmpi ne, %10, %c0_i32_8 : i32
    scf.if %11 {
      %c0_9 = arith.constant 0 : index
      %c0_10 = arith.constant 0 : index
      %12 = vector.load %arg7[%c0_9, %c0_10] : memref<8x256xf32, #tpu.memory_space<vmem>>, vector<8x256xf32>
      %c0_11 = arith.constant 0 : index
      %c0_12 = arith.constant 0 : index
      %13 = vector.load %arg5[%c0_11, %c0_12] : memref<1x256xf32, #tpu.memory_space<vmem>>, vector<1x256xf32>
      %14 = vector.broadcast %13 : vector<1x256xf32> to vector<8x256xf32>
      %15 = arith.addf %12, %14 : vector<8x256xf32>
      %cst_13 = arith.constant 0.000000e+00 : f32
      %16 = vector.broadcast %cst_13 : f32 to vector<8x256xf32>
      %17 = arith.maximumf %15, %16 : vector<8x256xf32>
      %18 = arith.truncf %17 : vector<8x256xf32> to vector<8x256xbf16>
      %c0_14 = arith.constant 0 : index
      %c0_15 = arith.constant 0 : index
      %19 = vector.load %arg6[%c0_14, %c0_15] : memref<8x256xbf16, #tpu.memory_space<vmem>>, vector<8x256xbf16>
      tpu.vector_store %arg6[%c0_14, %c0_15], %18 {strides = array<i32>} : memref<8x256xbf16, #tpu.memory_space<vmem>>, vector<8x256xbf16>,
    } else {
    }
    return
  }
  func.func @transform_0(%arg0: i32, %arg1: i32, %arg2: i32) -> (i32, i32) {
    %c0_i32 = arith.constant 0 : i32
    return %arg0, %arg2 : i32, i32
  }
  func.func @transform_1(%arg0: i32, %arg1: i32, %arg2: i32) -> (i32, i32) {
    %c0_i32 = arith.constant 0 : i32
    return %arg2, %arg1 : i32, i32
  }
  func.func @transform_2(%arg0: i32, %arg1: i32, %arg2: i32) -> (i32, i32) {
    %c0_i32 = arith.constant 0 : i32
    %c0_i32_0 = arith.constant 0 : i32
    return %c0_i32, %arg1 : i32, i32
  }
  func.func @transform_3(%arg0: i32, %arg1: i32, %arg2: i32) -> (i32, i32) {
    %c0_i32 = arith.constant 0 : i32
    return %arg0, %arg1 : i32, i32
  }
}

module attributes {stable_mosaic.version = 11 : i64} {
  func.func @_mm_bias_kernel(%arg0: i32, %arg1: i32, %arg2: i32, %arg3: memref<8x128xbf16, #tpu.memory_space<vmem>>, %arg4: memref<128x256xbf16, #tpu.memory_space<vmem>>, %arg5: memref<1x256xf32, #tpu.memory_space<vmem>>, %arg6: memref<8x256xbf16, #tpu.memory_space<vmem>>, %arg7: memref<8x256xf32, #tpu.memory_space<vmem>>) attributes {dimension_semantics = [#tpu.dimension_semantics<parallel>, #tpu.dimension_semantics<parallel>, #tpu.dimension_semantics<arbitrary>], iteration_bounds = array<i64: 1, 1, 1>, scalar_prefetch = 0 : i64, scratch_operands = 1 : i64, tpu.core_type = #tpu.core_type<tc>, window_params = [{transform_indices = @transform_0, window_bounds = array<i64: 8, 128>}, {transform_indices = @transform_1, window_bounds = array<i64: 128, 256>}, {transform_indices = @transform_2, window_bounds = array<i64: 1, 256>}, {transform_indices = @transform_3, window_bounds = array<i64: 8, 256>}]} {
    %c0_i32 = arith.constant 0 : i32
    %0 = arith.cmpi eq, %arg2, %c0_i32 : i32
    %1 = arith.extui %0 : i1 to i32
    %c0_i32_0 = arith.constant 0 : i32
    %2 = arith.cmpi ne, %1, %c0_i32_0 : i32
    scf.if %2 {
      %cst_10 = arith.constant 0.000000e+00 : f32
      %12 = vector.broadcast %cst_10 : f32 to vector<8x256xf32>
      %c0_11 = arith.constant 0 : index
      %c0_12 = arith.constant 0 : index
      %13 = vector.load %arg7[%c0_11, %c0_12] : memref<8x256xf32, #tpu.memory_space<vmem>>, vector<8x256xf32>
      tpu.vector_store %arg7[%c0_11, %c0_12], %12 {strides = array<i32>} : memref<8x256xf32, #tpu.memory_space<vmem>>, vector<8x256xf32>,
    } else {
    }
    %c0 = arith.constant 0 : index
    %c0_1 = arith.constant 0 : index
    %3 = vector.load %arg7[%c0, %c0_1] : memref<8x256xf32, #tpu.memory_space<vmem>>, vector<8x256xf32>
    %c0_2 = arith.constant 0 : index
    %c0_3 = arith.constant 0 : index
    %4 = vector.load %arg3[%c0_2, %c0_3] : memref<8x128xbf16, #tpu.memory_space<vmem>>, vector<8x128xbf16>
    %c0_4 = arith.constant 0 : index
    %c0_5 = arith.constant 0 : index
    %5 = vector.load %arg4[%c0_4, %c0_5] : memref<128x256xbf16, #tpu.memory_space<vmem>>, vector<128x256xbf16>
    %cst = arith.constant dense<0.000000e+00> : vector<8x256xf32>
    %6 = tpu.matmul %4, %5, %cst {dimension_numbers = #tpu.dot_dimension_numbers<[1], [0], [0], [1], [0, 0, 1, 1], [], []>} : vector<8x128xbf16>, vector<128x256xbf16>, vector<8x256xf32> -> vector<8x256xf32>
    %7 = arith.addf %3, %6 : vector<8x256xf32>
    %c0_6 = arith.constant 0 : index
    %c0_7 = arith.constant 0 : index
    %8 = vector.load %arg7[%c0_6, %c0_7] : memref<8x256xf32, #tpu.memory_space<vmem>>, vector<8x256xf32>
    tpu.vector_store %arg7[%c0_6, %c0_7], %7 {strides = array<i32>} : memref<8x256xf32, #tpu.memory_space<vmem>>, vector<8x256xf32>,
    %c0_i32_8 = arith.constant 0 : i32
    %9 = arith.cmpi eq, %arg2, %c0_i32_8 : i32
    %10 = arith.extui %9 : i1 to i32
    %c0_i32_9 = arith.constant 0 : i32
    %11 = arith.cmpi ne, %10, %c0_i32_9 : i32
    scf.if %11 {
      %c0_10 = arith.constant 0 : index
      %c0_11 = arith.constant 0 : index
      %12 = vector.load %arg7[%c0_10, %c0_11] : memref<8x256xf32, #tpu.memory_space<vmem>>, vector<8x256xf32>
      %c0_12 = arith.constant 0 : index
      %c0_13 = arith.constant 0 : index
      %13 = vector.load %arg5[%c0_12, %c0_13] : memref<1x256xf32, #tpu.memory_space<vmem>>, vector<1x256xf32>
      %14 = vector.broadcast %13 : vector<1x256xf32> to vector<8x256xf32>
      %15 = arith.addf %12, %14 : vector<8x256xf32>
      %16 = arith.truncf %15 : vector<8x256xf32> to vector<8x256xbf16>
      %c0_14 = arith.constant 0 : index
      %c0_15 = arith.constant 0 : index
      %17 = vector.load %arg6[%c0_14, %c0_15] : memref<8x256xbf16, #tpu.memory_space<vmem>>, vector<8x256xbf16>
      tpu.vector_store %arg6[%c0_14, %c0_15], %16 {strides = array<i32>} : memref<8x256xbf16, #tpu.memory_space<vmem>>, vector<8x256xbf16>,
    } else {
    }
    return
  }
  func.func @transform_0(%arg0: i32, %arg1: i32, %arg2: i32) -> (i32, i32) {
    %c0_i32 = arith.constant 0 : i32
    return %arg0, %arg2 : i32, i32
  }
  func.func @transform_1(%arg0: i32, %arg1: i32, %arg2: i32) -> (i32, i32) {
    %c0_i32 = arith.constant 0 : i32
    return %arg2, %arg1 : i32, i32
  }
  func.func @transform_2(%arg0: i32, %arg1: i32, %arg2: i32) -> (i32, i32) {
    %c0_i32 = arith.constant 0 : i32
    %c0_i32_0 = arith.constant 0 : i32
    return %c0_i32, %arg1 : i32, i32
  }
  func.func @transform_3(%arg0: i32, %arg1: i32, %arg2: i32) -> (i32, i32) {
    %c0_i32 = arith.constant 0 : i32
    return %arg0, %arg1 : i32, i32
  }
}

module attributes {stable_mosaic.version = 11 : i64} {
  func.func @_mm_bias_kernel(%arg0: i32, %arg1: i32, %arg2: i32, %arg3: memref<8x384xbf16, #tpu.memory_space<vmem>>, %arg4: memref<384x256xbf16, #tpu.memory_space<vmem>>, %arg5: memref<1x256xf32, #tpu.memory_space<vmem>>, %arg6: memref<8x256xbf16, #tpu.memory_space<vmem>>, %arg7: memref<8x256xbf16, #tpu.memory_space<vmem>>, %arg8: memref<8x256xf32, #tpu.memory_space<vmem>>) attributes {dimension_semantics = [#tpu.dimension_semantics<parallel>, #tpu.dimension_semantics<parallel>, #tpu.dimension_semantics<arbitrary>], iteration_bounds = array<i64: 1, 1, 18>, scalar_prefetch = 0 : i64, scratch_operands = 1 : i64, tpu.core_type = #tpu.core_type<tc>, window_params = [{transform_indices = @transform_0, window_bounds = array<i64: 8, 384>}, {transform_indices = @transform_1, window_bounds = array<i64: 384, 256>}, {transform_indices = @transform_2, window_bounds = array<i64: 1, 256>}, {transform_indices = @transform_3, window_bounds = array<i64: 8, 256>}, {transform_indices = @transform_4, window_bounds = array<i64: 8, 256>}]} {
    %c0_i32 = arith.constant 0 : i32
    %0 = arith.cmpi eq, %arg2, %c0_i32 : i32
    %1 = arith.extui %0 : i1 to i32
    %c0_i32_0 = arith.constant 0 : i32
    %2 = arith.cmpi ne, %1, %c0_i32_0 : i32
    scf.if %2 {
      %cst_9 = arith.constant 0.000000e+00 : f32
      %12 = vector.broadcast %cst_9 : f32 to vector<8x256xf32>
      %c0_10 = arith.constant 0 : index
      %c0_11 = arith.constant 0 : index
      %13 = vector.load %arg8[%c0_10, %c0_11] : memref<8x256xf32, #tpu.memory_space<vmem>>, vector<8x256xf32>
      tpu.vector_store %arg8[%c0_10, %c0_11], %12 {strides = array<i32>} : memref<8x256xf32, #tpu.memory_space<vmem>>, vector<8x256xf32>,
    } else {
    }
    %c0 = arith.constant 0 : index
    %c0_1 = arith.constant 0 : index
    %3 = vector.load %arg8[%c0, %c0_1] : memref<8x256xf32, #tpu.memory_space<vmem>>, vector<8x256xf32>
    %c0_2 = arith.constant 0 : index
    %c0_3 = arith.constant 0 : index
    %4 = vector.load %arg3[%c0_2, %c0_3] : memref<8x384xbf16, #tpu.memory_space<vmem>>, vector<8x384xbf16>
    %c0_4 = arith.constant 0 : index
    %c0_5 = arith.constant 0 : index
    %5 = vector.load %arg4[%c0_4, %c0_5] : memref<384x256xbf16, #tpu.memory_space<vmem>>, vector<384x256xbf16>
    %cst = arith.constant dense<0.000000e+00> : vector<8x256xf32>
    %6 = tpu.matmul %4, %5, %cst {dimension_numbers = #tpu.dot_dimension_numbers<[1], [0], [0], [1], [0, 0, 1, 1], [], []>} : vector<8x384xbf16>, vector<384x256xbf16>, vector<8x256xf32> -> vector<8x256xf32>
    %7 = arith.addf %3, %6 : vector<8x256xf32>
    %c0_6 = arith.constant 0 : index
    %c0_7 = arith.constant 0 : index
    %8 = vector.load %arg8[%c0_6, %c0_7] : memref<8x256xf32, #tpu.memory_space<vmem>>, vector<8x256xf32>
    tpu.vector_store %arg8[%c0_6, %c0_7], %7 {strides = array<i32>} : memref<8x256xf32, #tpu.memory_space<vmem>>, vector<8x256xf32>,
    %c17_i32 = arith.constant 17 : i32
    %9 = arith.cmpi eq, %arg2, %c17_i32 : i32
    %10 = arith.extui %9 : i1 to i32
    %c0_i32_8 = arith.constant 0 : i32
    %11 = arith.cmpi ne, %10, %c0_i32_8 : i32
    scf.if %11 {
      %c0_9 = arith.constant 0 : index
      %c0_10 = arith.constant 0 : index
      %12 = vector.load %arg8[%c0_9, %c0_10] : memref<8x256xf32, #tpu.memory_space<vmem>>, vector<8x256xf32>
      %c0_11 = arith.constant 0 : index
      %c0_12 = arith.constant 0 : index
      %13 = vector.load %arg5[%c0_11, %c0_12] : memref<1x256xf32, #tpu.memory_space<vmem>>, vector<1x256xf32>
      %14 = vector.broadcast %13 : vector<1x256xf32> to vector<8x256xf32>
      %15 = arith.addf %12, %14 : vector<8x256xf32>
      %c0_13 = arith.constant 0 : index
      %c0_14 = arith.constant 0 : index
      %16 = vector.load %arg6[%c0_13, %c0_14] : memref<8x256xbf16, #tpu.memory_space<vmem>>, vector<8x256xbf16>
      %17 = arith.extf %16 : vector<8x256xbf16> to vector<8x256xf32>
      %18 = arith.addf %15, %17 : vector<8x256xf32>
      %cst_15 = arith.constant 0.000000e+00 : f32
      %19 = vector.broadcast %cst_15 : f32 to vector<8x256xf32>
      %20 = arith.maximumf %18, %19 : vector<8x256xf32>
      %21 = arith.truncf %20 : vector<8x256xf32> to vector<8x256xbf16>
      %c0_16 = arith.constant 0 : index
      %c0_17 = arith.constant 0 : index
      %22 = vector.load %arg7[%c0_16, %c0_17] : memref<8x256xbf16, #tpu.memory_space<vmem>>, vector<8x256xbf16>
      tpu.vector_store %arg7[%c0_16, %c0_17], %21 {strides = array<i32>} : memref<8x256xbf16, #tpu.memory_space<vmem>>, vector<8x256xbf16>,
    } else {
    }
    return
  }
  func.func @transform_0(%arg0: i32, %arg1: i32, %arg2: i32) -> (i32, i32) {
    %c0_i32 = arith.constant 0 : i32
    return %arg0, %arg2 : i32, i32
  }
  func.func @transform_1(%arg0: i32, %arg1: i32, %arg2: i32) -> (i32, i32) {
    %c0_i32 = arith.constant 0 : i32
    return %arg2, %arg1 : i32, i32
  }
  func.func @transform_2(%arg0: i32, %arg1: i32, %arg2: i32) -> (i32, i32) {
    %c0_i32 = arith.constant 0 : i32
    %c0_i32_0 = arith.constant 0 : i32
    return %c0_i32, %arg1 : i32, i32
  }
  func.func @transform_3(%arg0: i32, %arg1: i32, %arg2: i32) -> (i32, i32) {
    %c0_i32 = arith.constant 0 : i32
    return %arg0, %arg1 : i32, i32
  }
  func.func @transform_4(%arg0: i32, %arg1: i32, %arg2: i32) -> (i32, i32) {
    %c0_i32 = arith.constant 0 : i32
    return %arg0, %arg1 : i32, i32
  }
}

module attributes {stable_mosaic.version = 11 : i64} {
  func.func @_mm_bias_kernel(%arg0: i32, %arg1: i32, %arg2: i32, %arg3: memref<8x384xbf16, #tpu.memory_space<vmem>>, %arg4: memref<384x256xbf16, #tpu.memory_space<vmem>>, %arg5: memref<1x256xf32, #tpu.memory_space<vmem>>, %arg6: memref<8x256xbf16, #tpu.memory_space<vmem>>, %arg7: memref<8x256xf32, #tpu.memory_space<vmem>>) attributes {dimension_semantics = [#tpu.dimension_semantics<parallel>, #tpu.dimension_semantics<parallel>, #tpu.dimension_semantics<arbitrary>], iteration_bounds = array<i64: 1, 2, 18>, scalar_prefetch = 0 : i64, scratch_operands = 1 : i64, tpu.core_type = #tpu.core_type<tc>, window_params = [{transform_indices = @transform_0, window_bounds = array<i64: 8, 384>}, {transform_indices = @transform_1, window_bounds = array<i64: 384, 256>}, {transform_indices = @transform_2, window_bounds = array<i64: 1, 256>}, {transform_indices = @transform_3, window_bounds = array<i64: 8, 256>}]} {
    %c0_i32 = arith.constant 0 : i32
    %0 = arith.cmpi eq, %arg2, %c0_i32 : i32
    %1 = arith.extui %0 : i1 to i32
    %c0_i32_0 = arith.constant 0 : i32
    %2 = arith.cmpi ne, %1, %c0_i32_0 : i32
    scf.if %2 {
      %cst_9 = arith.constant 0.000000e+00 : f32
      %12 = vector.broadcast %cst_9 : f32 to vector<8x256xf32>
      %c0_10 = arith.constant 0 : index
      %c0_11 = arith.constant 0 : index
      %13 = vector.load %arg7[%c0_10, %c0_11] : memref<8x256xf32, #tpu.memory_space<vmem>>, vector<8x256xf32>
      tpu.vector_store %arg7[%c0_10, %c0_11], %12 {strides = array<i32>} : memref<8x256xf32, #tpu.memory_space<vmem>>, vector<8x256xf32>,
    } else {
    }
    %c0 = arith.constant 0 : index
    %c0_1 = arith.constant 0 : index
    %3 = vector.load %arg7[%c0, %c0_1] : memref<8x256xf32, #tpu.memory_space<vmem>>, vector<8x256xf32>
    %c0_2 = arith.constant 0 : index
    %c0_3 = arith.constant 0 : index
    %4 = vector.load %arg3[%c0_2, %c0_3] : memref<8x384xbf16, #tpu.memory_space<vmem>>, vector<8x384xbf16>
    %c0_4 = arith.constant 0 : index
    %c0_5 = arith.constant 0 : index
    %5 = vector.load %arg4[%c0_4, %c0_5] : memref<384x256xbf16, #tpu.memory_space<vmem>>, vector<384x256xbf16>
    %cst = arith.constant dense<0.000000e+00> : vector<8x256xf32>
    %6 = tpu.matmul %4, %5, %cst {dimension_numbers = #tpu.dot_dimension_numbers<[1], [0], [0], [1], [0, 0, 1, 1], [], []>} : vector<8x384xbf16>, vector<384x256xbf16>, vector<8x256xf32> -> vector<8x256xf32>
    %7 = arith.addf %3, %6 : vector<8x256xf32>
    %c0_6 = arith.constant 0 : index
    %c0_7 = arith.constant 0 : index
    %8 = vector.load %arg7[%c0_6, %c0_7] : memref<8x256xf32, #tpu.memory_space<vmem>>, vector<8x256xf32>
    tpu.vector_store %arg7[%c0_6, %c0_7], %7 {strides = array<i32>} : memref<8x256xf32, #tpu.memory_space<vmem>>, vector<8x256xf32>,
    %c17_i32 = arith.constant 17 : i32
    %9 = arith.cmpi eq, %arg2, %c17_i32 : i32
    %10 = arith.extui %9 : i1 to i32
    %c0_i32_8 = arith.constant 0 : i32
    %11 = arith.cmpi ne, %10, %c0_i32_8 : i32
    scf.if %11 {
      %c0_9 = arith.constant 0 : index
      %c0_10 = arith.constant 0 : index
      %12 = vector.load %arg7[%c0_9, %c0_10] : memref<8x256xf32, #tpu.memory_space<vmem>>, vector<8x256xf32>
      %c0_11 = arith.constant 0 : index
      %c0_12 = arith.constant 0 : index
      %13 = vector.load %arg5[%c0_11, %c0_12] : memref<1x256xf32, #tpu.memory_space<vmem>>, vector<1x256xf32>
      %14 = vector.broadcast %13 : vector<1x256xf32> to vector<8x256xf32>
      %15 = arith.addf %12, %14 : vector<8x256xf32>
      %cst_13 = arith.constant 0.000000e+00 : f32
      %16 = vector.broadcast %cst_13 : f32 to vector<8x256xf32>
      %17 = arith.maximumf %15, %16 : vector<8x256xf32>
      %18 = arith.truncf %17 : vector<8x256xf32> to vector<8x256xbf16>
      %c0_14 = arith.constant 0 : index
      %c0_15 = arith.constant 0 : index
      %19 = vector.load %arg6[%c0_14, %c0_15] : memref<8x256xbf16, #tpu.memory_space<vmem>>, vector<8x256xbf16>
      tpu.vector_store %arg6[%c0_14, %c0_15], %18 {strides = array<i32>} : memref<8x256xbf16, #tpu.memory_space<vmem>>, vector<8x256xbf16>,
    } else {
    }
    return
  }
  func.func @transform_0(%arg0: i32, %arg1: i32, %arg2: i32) -> (i32, i32) {
    %c0_i32 = arith.constant 0 : i32
    return %arg0, %arg2 : i32, i32
  }
  func.func @transform_1(%arg0: i32, %arg1: i32, %arg2: i32) -> (i32, i32) {
    %c0_i32 = arith.constant 0 : i32
    return %arg2, %arg1 : i32, i32
  }
  func.func @transform_2(%arg0: i32, %arg1: i32, %arg2: i32) -> (i32, i32) {
    %c0_i32 = arith.constant 0 : i32
    %c0_i32_0 = arith.constant 0 : i32
    return %c0_i32, %arg1 : i32, i32
  }
  func.func @transform_3(%arg0: i32, %arg1: i32, %arg2: i32) -> (i32, i32) {
    %c0_i32 = arith.constant 0 : i32
    return %arg0, %arg1 : i32, i32
  }
}

module attributes {stable_mosaic.version = 11 : i64} {
  func.func @_mm_bias_kernel(%arg0: i32, %arg1: i32, %arg2: i32, %arg3: memref<8x256xbf16, #tpu.memory_space<vmem>>, %arg4: memref<256x256xbf16, #tpu.memory_space<vmem>>, %arg5: memref<1x256xf32, #tpu.memory_space<vmem>>, %arg6: memref<8x256xbf16, #tpu.memory_space<vmem>>, %arg7: memref<8x256xf32, #tpu.memory_space<vmem>>) attributes {dimension_semantics = [#tpu.dimension_semantics<parallel>, #tpu.dimension_semantics<parallel>, #tpu.dimension_semantics<arbitrary>], iteration_bounds = array<i64: 1, 2, 1>, scalar_prefetch = 0 : i64, scratch_operands = 1 : i64, tpu.core_type = #tpu.core_type<tc>, window_params = [{transform_indices = @transform_0, window_bounds = array<i64: 8, 256>}, {transform_indices = @transform_1, window_bounds = array<i64: 256, 256>}, {transform_indices = @transform_2, window_bounds = array<i64: 1, 256>}, {transform_indices = @transform_3, window_bounds = array<i64: 8, 256>}]} {
    %c0_i32 = arith.constant 0 : i32
    %0 = arith.cmpi eq, %arg2, %c0_i32 : i32
    %1 = arith.extui %0 : i1 to i32
    %c0_i32_0 = arith.constant 0 : i32
    %2 = arith.cmpi ne, %1, %c0_i32_0 : i32
    scf.if %2 {
      %cst_10 = arith.constant 0.000000e+00 : f32
      %12 = vector.broadcast %cst_10 : f32 to vector<8x256xf32>
      %c0_11 = arith.constant 0 : index
      %c0_12 = arith.constant 0 : index
      %13 = vector.load %arg7[%c0_11, %c0_12] : memref<8x256xf32, #tpu.memory_space<vmem>>, vector<8x256xf32>
      tpu.vector_store %arg7[%c0_11, %c0_12], %12 {strides = array<i32>} : memref<8x256xf32, #tpu.memory_space<vmem>>, vector<8x256xf32>,
    } else {
    }
    %c0 = arith.constant 0 : index
    %c0_1 = arith.constant 0 : index
    %3 = vector.load %arg7[%c0, %c0_1] : memref<8x256xf32, #tpu.memory_space<vmem>>, vector<8x256xf32>
    %c0_2 = arith.constant 0 : index
    %c0_3 = arith.constant 0 : index
    %4 = vector.load %arg3[%c0_2, %c0_3] : memref<8x256xbf16, #tpu.memory_space<vmem>>, vector<8x256xbf16>
    %c0_4 = arith.constant 0 : index
    %c0_5 = arith.constant 0 : index
    %5 = vector.load %arg4[%c0_4, %c0_5] : memref<256x256xbf16, #tpu.memory_space<vmem>>, vector<256x256xbf16>
    %cst = arith.constant dense<0.000000e+00> : vector<8x256xf32>
    %6 = tpu.matmul %4, %5, %cst {dimension_numbers = #tpu.dot_dimension_numbers<[1], [0], [0], [1], [0, 0, 1, 1], [], []>} : vector<8x256xbf16>, vector<256x256xbf16>, vector<8x256xf32> -> vector<8x256xf32>
    %7 = arith.addf %3, %6 : vector<8x256xf32>
    %c0_6 = arith.constant 0 : index
    %c0_7 = arith.constant 0 : index
    %8 = vector.load %arg7[%c0_6, %c0_7] : memref<8x256xf32, #tpu.memory_space<vmem>>, vector<8x256xf32>
    tpu.vector_store %arg7[%c0_6, %c0_7], %7 {strides = array<i32>} : memref<8x256xf32, #tpu.memory_space<vmem>>, vector<8x256xf32>,
    %c0_i32_8 = arith.constant 0 : i32
    %9 = arith.cmpi eq, %arg2, %c0_i32_8 : i32
    %10 = arith.extui %9 : i1 to i32
    %c0_i32_9 = arith.constant 0 : i32
    %11 = arith.cmpi ne, %10, %c0_i32_9 : i32
    scf.if %11 {
      %c0_10 = arith.constant 0 : index
      %c0_11 = arith.constant 0 : index
      %12 = vector.load %arg7[%c0_10, %c0_11] : memref<8x256xf32, #tpu.memory_space<vmem>>, vector<8x256xf32>
      %c0_12 = arith.constant 0 : index
      %c0_13 = arith.constant 0 : index
      %13 = vector.load %arg5[%c0_12, %c0_13] : memref<1x256xf32, #tpu.memory_space<vmem>>, vector<1x256xf32>
      %14 = vector.broadcast %13 : vector<1x256xf32> to vector<8x256xf32>
      %15 = arith.addf %12, %14 : vector<8x256xf32>
      %16 = arith.truncf %15 : vector<8x256xf32> to vector<8x256xbf16>
      %c0_14 = arith.constant 0 : index
      %c0_15 = arith.constant 0 : index
      %17 = vector.load %arg6[%c0_14, %c0_15] : memref<8x256xbf16, #tpu.memory_space<vmem>>, vector<8x256xbf16>
      tpu.vector_store %arg6[%c0_14, %c0_15], %16 {strides = array<i32>} : memref<8x256xbf16, #tpu.memory_space<vmem>>, vector<8x256xbf16>,
    } else {
    }
    return
  }
  func.func @transform_0(%arg0: i32, %arg1: i32, %arg2: i32) -> (i32, i32) {
    %c0_i32 = arith.constant 0 : i32
    return %arg0, %arg2 : i32, i32
  }
  func.func @transform_1(%arg0: i32, %arg1: i32, %arg2: i32) -> (i32, i32) {
    %c0_i32 = arith.constant 0 : i32
    return %arg2, %arg1 : i32, i32
  }
  func.func @transform_2(%arg0: i32, %arg1: i32, %arg2: i32) -> (i32, i32) {
    %c0_i32 = arith.constant 0 : i32
    %c0_i32_0 = arith.constant 0 : i32
    return %c0_i32, %arg1 : i32, i32
  }
  func.func @transform_3(%arg0: i32, %arg1: i32, %arg2: i32) -> (i32, i32) {
    %c0_i32 = arith.constant 0 : i32
    return %arg0, %arg1 : i32, i32
  }
}

module attributes {stable_mosaic.version = 11 : i64} {
  func.func @_mm_bias_kernel(%arg0: i32, %arg1: i32, %arg2: i32, %arg3: memref<8x512xbf16, #tpu.memory_space<vmem>>, %arg4: memref<512x256xbf16, #tpu.memory_space<vmem>>, %arg5: memref<1x256xf32, #tpu.memory_space<vmem>>, %arg6: memref<8x256xbf16, #tpu.memory_space<vmem>>, %arg7: memref<8x256xbf16, #tpu.memory_space<vmem>>, %arg8: memref<8x256xf32, #tpu.memory_space<vmem>>) attributes {dimension_semantics = [#tpu.dimension_semantics<parallel>, #tpu.dimension_semantics<parallel>, #tpu.dimension_semantics<arbitrary>], iteration_bounds = array<i64: 1, 2, 27>, scalar_prefetch = 0 : i64, scratch_operands = 1 : i64, tpu.core_type = #tpu.core_type<tc>, window_params = [{transform_indices = @transform_0, window_bounds = array<i64: 8, 512>}, {transform_indices = @transform_1, window_bounds = array<i64: 512, 256>}, {transform_indices = @transform_2, window_bounds = array<i64: 1, 256>}, {transform_indices = @transform_3, window_bounds = array<i64: 8, 256>}, {transform_indices = @transform_4, window_bounds = array<i64: 8, 256>}]} {
    %c0_i32 = arith.constant 0 : i32
    %0 = arith.cmpi eq, %arg2, %c0_i32 : i32
    %1 = arith.extui %0 : i1 to i32
    %c0_i32_0 = arith.constant 0 : i32
    %2 = arith.cmpi ne, %1, %c0_i32_0 : i32
    scf.if %2 {
      %cst_9 = arith.constant 0.000000e+00 : f32
      %12 = vector.broadcast %cst_9 : f32 to vector<8x256xf32>
      %c0_10 = arith.constant 0 : index
      %c0_11 = arith.constant 0 : index
      %13 = vector.load %arg8[%c0_10, %c0_11] : memref<8x256xf32, #tpu.memory_space<vmem>>, vector<8x256xf32>
      tpu.vector_store %arg8[%c0_10, %c0_11], %12 {strides = array<i32>} : memref<8x256xf32, #tpu.memory_space<vmem>>, vector<8x256xf32>,
    } else {
    }
    %c0 = arith.constant 0 : index
    %c0_1 = arith.constant 0 : index
    %3 = vector.load %arg8[%c0, %c0_1] : memref<8x256xf32, #tpu.memory_space<vmem>>, vector<8x256xf32>
    %c0_2 = arith.constant 0 : index
    %c0_3 = arith.constant 0 : index
    %4 = vector.load %arg3[%c0_2, %c0_3] : memref<8x512xbf16, #tpu.memory_space<vmem>>, vector<8x512xbf16>
    %c0_4 = arith.constant 0 : index
    %c0_5 = arith.constant 0 : index
    %5 = vector.load %arg4[%c0_4, %c0_5] : memref<512x256xbf16, #tpu.memory_space<vmem>>, vector<512x256xbf16>
    %cst = arith.constant dense<0.000000e+00> : vector<8x256xf32>
    %6 = tpu.matmul %4, %5, %cst {dimension_numbers = #tpu.dot_dimension_numbers<[1], [0], [0], [1], [0, 0, 1, 1], [], []>} : vector<8x512xbf16>, vector<512x256xbf16>, vector<8x256xf32> -> vector<8x256xf32>
    %7 = arith.addf %3, %6 : vector<8x256xf32>
    %c0_6 = arith.constant 0 : index
    %c0_7 = arith.constant 0 : index
    %8 = vector.load %arg8[%c0_6, %c0_7] : memref<8x256xf32, #tpu.memory_space<vmem>>, vector<8x256xf32>
    tpu.vector_store %arg8[%c0_6, %c0_7], %7 {strides = array<i32>} : memref<8x256xf32, #tpu.memory_space<vmem>>, vector<8x256xf32>,
    %c26_i32 = arith.constant 26 : i32
    %9 = arith.cmpi eq, %arg2, %c26_i32 : i32
    %10 = arith.extui %9 : i1 to i32
    %c0_i32_8 = arith.constant 0 : i32
    %11 = arith.cmpi ne, %10, %c0_i32_8 : i32
    scf.if %11 {
      %c0_9 = arith.constant 0 : index
      %c0_10 = arith.constant 0 : index
      %12 = vector.load %arg8[%c0_9, %c0_10] : memref<8x256xf32, #tpu.memory_space<vmem>>, vector<8x256xf32>
      %c0_11 = arith.constant 0 : index
      %c0_12 = arith.constant 0 : index
      %13 = vector.load %arg5[%c0_11, %c0_12] : memref<1x256xf32, #tpu.memory_space<vmem>>, vector<1x256xf32>
      %14 = vector.broadcast %13 : vector<1x256xf32> to vector<8x256xf32>
      %15 = arith.addf %12, %14 : vector<8x256xf32>
      %c0_13 = arith.constant 0 : index
      %c0_14 = arith.constant 0 : index
      %16 = vector.load %arg6[%c0_13, %c0_14] : memref<8x256xbf16, #tpu.memory_space<vmem>>, vector<8x256xbf16>
      %17 = arith.extf %16 : vector<8x256xbf16> to vector<8x256xf32>
      %18 = arith.addf %15, %17 : vector<8x256xf32>
      %cst_15 = arith.constant 0.000000e+00 : f32
      %19 = vector.broadcast %cst_15 : f32 to vector<8x256xf32>
      %20 = arith.maximumf %18, %19 : vector<8x256xf32>
      %21 = arith.truncf %20 : vector<8x256xf32> to vector<8x256xbf16>
      %c0_16 = arith.constant 0 : index
      %c0_17 = arith.constant 0 : index
      %22 = vector.load %arg7[%c0_16, %c0_17] : memref<8x256xbf16, #tpu.memory_space<vmem>>, vector<8x256xbf16>
      tpu.vector_store %arg7[%c0_16, %c0_17], %21 {strides = array<i32>} : memref<8x256xbf16, #tpu.memory_space<vmem>>, vector<8x256xbf16>,
    } else {
    }
    return
  }
  func.func @transform_0(%arg0: i32, %arg1: i32, %arg2: i32) -> (i32, i32) {
    %c0_i32 = arith.constant 0 : i32
    return %arg0, %arg2 : i32, i32
  }
  func.func @transform_1(%arg0: i32, %arg1: i32, %arg2: i32) -> (i32, i32) {
    %c0_i32 = arith.constant 0 : i32
    return %arg2, %arg1 : i32, i32
  }
  func.func @transform_2(%arg0: i32, %arg1: i32, %arg2: i32) -> (i32, i32) {
    %c0_i32 = arith.constant 0 : i32
    %c0_i32_0 = arith.constant 0 : i32
    return %c0_i32, %arg1 : i32, i32
  }
  func.func @transform_3(%arg0: i32, %arg1: i32, %arg2: i32) -> (i32, i32) {
    %c0_i32 = arith.constant 0 : i32
    return %arg0, %arg1 : i32, i32
  }
  func.func @transform_4(%arg0: i32, %arg1: i32, %arg2: i32) -> (i32, i32) {
    %c0_i32 = arith.constant 0 : i32
    return %arg0, %arg1 : i32, i32
  }
}

module attributes {stable_mosaic.version = 11 : i64} {
  func.func @_gap_fc_kernel(%arg0: i32, %arg1: memref<2x8x512xbf16, #tpu.memory_space<vmem>>, %arg2: memref<512x128xf32, #tpu.memory_space<vmem>>, %arg3: memref<1x128xf32, #tpu.memory_space<vmem>>, %arg4: memref<2x128xf32, #tpu.memory_space<vmem>>, %arg5: memref<2x512xf32, #tpu.memory_space<vmem>>) attributes {dimension_semantics = [#tpu.dimension_semantics<arbitrary>], iteration_bounds = array<i64: 1>, scalar_prefetch = 0 : i64, scratch_operands = 1 : i64, tpu.core_type = #tpu.core_type<tc>, window_params = [{transform_indices = @transform_0, window_bounds = array<i64: 2, 8, 512>}, {pipeline_mode = #tpu.pipeline_mode<synchronous>, transform_indices = @transform_1, window_bounds = array<i64: 512, 128>}, {pipeline_mode = #tpu.pipeline_mode<synchronous>, transform_indices = @transform_2, window_bounds = array<i64: 1, 128>}, {pipeline_mode = #tpu.pipeline_mode<synchronous>, transform_indices = @transform_3, window_bounds = array<i64: 2, 128>}]} {
    %c0_i32 = arith.constant 0 : i32
    %0 = arith.cmpi eq, %arg0, %c0_i32 : i32
    %1 = arith.extui %0 : i1 to i32
    %c0_i32_0 = arith.constant 0 : i32
    %2 = arith.cmpi ne, %1, %c0_i32_0 : i32
    scf.if %2 {
      %cst_9 = arith.constant 0.000000e+00 : f32
      %12 = vector.broadcast %cst_9 : f32 to vector<2x512xf32>
      %c0_10 = arith.constant 0 : index
      %c0_11 = arith.constant 0 : index
      %13 = vector.load %arg5[%c0_10, %c0_11] : memref<2x512xf32, #tpu.memory_space<vmem>>, vector<2x512xf32>
      tpu.vector_store %arg5[%c0_10, %c0_11], %12 {strides = array<i32>} : memref<2x512xf32, #tpu.memory_space<vmem>>, vector<2x512xf32>,
    } else {
    }
    %c0 = arith.constant 0 : index
    %c0_1 = arith.constant 0 : index
    %3 = vector.load %arg5[%c0, %c0_1] : memref<2x512xf32, #tpu.memory_space<vmem>>, vector<2x512xf32>
    %c0_2 = arith.constant 0 : index
    %c0_3 = arith.constant 0 : index
    %c0_4 = arith.constant 0 : index
    %4 = vector.load %arg1[%c0_2, %c0_3, %c0_4] : memref<2x8x512xbf16, #tpu.memory_space<vmem>>, vector<2x8x512xbf16>
    %5 = arith.extf %4 : vector<2x8x512xbf16> to vector<2x8x512xf32>
    %cst = arith.constant dense<0.000000e+00> : vector<2x512xf32>
    %6 = vector.multi_reduction <add>, %5, %cst [1] : vector<2x8x512xf32> to vector<2x512xf32>
    %7 = arith.addf %3, %6 : vector<2x512xf32>
    %c0_5 = arith.constant 0 : index
    %c0_6 = arith.constant 0 : index
    %8 = vector.load %arg5[%c0_5, %c0_6] : memref<2x512xf32, #tpu.memory_space<vmem>>, vector<2x512xf32>
    tpu.vector_store %arg5[%c0_5, %c0_6], %7 {strides = array<i32>} : memref<2x512xf32, #tpu.memory_space<vmem>>, vector<2x512xf32>,
    %c0_i32_7 = arith.constant 0 : i32
    %9 = arith.cmpi eq, %arg0, %c0_i32_7 : i32
    %10 = arith.extui %9 : i1 to i32
    %c0_i32_8 = arith.constant 0 : i32
    %11 = arith.cmpi ne, %10, %c0_i32_8 : i32
    scf.if %11 {
      %c0_9 = arith.constant 0 : index
      %c0_10 = arith.constant 0 : index
      %12 = vector.load %arg5[%c0_9, %c0_10] : memref<2x512xf32, #tpu.memory_space<vmem>>, vector<2x512xf32>
      %cst_11 = arith.constant 1.000000e+00 : f32
      %13 = vector.broadcast %cst_11 : f32 to vector<2x512xf32>
      %14 = arith.mulf %12, %13 : vector<2x512xf32>
      %c0_12 = arith.constant 0 : index
      %c0_13 = arith.constant 0 : index
      %15 = vector.load %arg2[%c0_12, %c0_13] : memref<512x128xf32, #tpu.memory_space<vmem>>, vector<512x128xf32>
      %cst_14 = arith.constant dense<0.000000e+00> : vector<2x128xf32>
      %16 = tpu.matmul %14, %15, %cst_14 {dimension_numbers = #tpu.dot_dimension_numbers<[1], [0], [0], [1], [0, 0, 1, 1], [], []>} : vector<2x512xf32>, vector<512x128xf32>, vector<2x128xf32> -> vector<2x128xf32>
      %c0_15 = arith.constant 0 : index
      %c0_16 = arith.constant 0 : index
      %17 = vector.load %arg3[%c0_15, %c0_16] : memref<1x128xf32, #tpu.memory_space<vmem>>, vector<1x128xf32>
      %18 = vector.broadcast %17 : vector<1x128xf32> to vector<2x128xf32>
      %19 = arith.addf %16, %18 : vector<2x128xf32>
      %c0_17 = arith.constant 0 : index
      %c0_18 = arith.constant 0 : index
      %20 = vector.load %arg4[%c0_17, %c0_18] : memref<2x128xf32, #tpu.memory_space<vmem>>, vector<2x128xf32>
      tpu.vector_store %arg4[%c0_17, %c0_18], %19 {strides = array<i32>} : memref<2x128xf32, #tpu.memory_space<vmem>>, vector<2x128xf32>,
    } else {
    }
    return
  }
  func.func @transform_0(%arg0: i32) -> (i32, i32, i32) {
    %c0_i32 = arith.constant 0 : i32
    %c0_i32_0 = arith.constant 0 : i32
    %c0_i32_1 = arith.constant 0 : i32
    return %c0_i32, %arg0, %c0_i32_0 : i32, i32, i32
  }
  func.func @transform_1(%arg0: i32) -> (i32, i32) {
    %c0_i32 = arith.constant 0 : i32
    %c0_i32_0 = arith.constant 0 : i32
    %c0_i32_1 = arith.constant 0 : i32
    return %c0_i32, %c0_i32_0 : i32, i32
  }
  func.func @transform_2(%arg0: i32) -> (i32, i32) {
    %c0_i32 = arith.constant 0 : i32
    %c0_i32_0 = arith.constant 0 : i32
    %c0_i32_1 = arith.constant 0 : i32
    return %c0_i32, %c0_i32_0 : i32, i32
  }
  func.func @transform_3(%arg0: i32) -> (i32, i32) {
    %c0_i32 = arith.constant 0 : i32
    %c0_i32_0 = arith.constant 0 : i32
    %c0_i32_1 = arith.constant 0 : i32
    return %c0_i32, %c0_i32_0 : i32, i32
  }
}

</mosaic_0001>

<bundles_post_ra>
// kernel: resnet3d_forward.13
= control target key start
LH: loop header
LB: loop body
LE: loop exit
PB: predicated region body
PF: predicated region fallthrough
CT: control target
= control target key end

     0   :  { %s1533_s12 = smov 0   ;;  %s1535_s13 = smov 0   ;;  %s1895_s0 = inlined_call_operand.vmem [shape: bf16[128,1152], index: 0, kind: input, shape index: {}]   ;;  %s1896_s1 = inlined_call_operand.vmem [shape: bf16[1152,64], index: 1, kind: input, shape index: {}]   ;;  %s1897_s2 = inlined_call_operand.vmem [shape: f32[1,64], index: 2, kind: input, shape index: {}]   ;;  %s1898_s3 = inlined_call_operand.vmem [shape: bf16[128,64], index: 3, kind: output, shape index: {}]  }
   0x1   :  { %s1537_s14 = smov 0   ;;  %s1539_s15 = smov 0  }
   0x2   :  { %s1541_s16 = smov 0  }
   0x3 LB: > { %s25_s17 = sadd.s32 1, %s1506_s15  ;;  %p48_p1 = scmp.ne.s32.totalorder %s1498_s13, %s1494_s12  ;;  %s1510_s16 = sphi %s1541_s16, %s13_s16   ;;  %s1506_s15 = sphi %s1539_s15, %s1902_s15   ;;  %s1502_s14 = sphi %s1537_s14, %s1901_s14   ;;  %s1498_s13 = sphi %s1535_s13, %s1900_s13   ;;  %s1494_s12 = sphi %s1533_s12, %s1899_s12  }
   0x4   : > { %p26_p0 = scmp.ge.s32.totalorder %s25_s17, 3  ;;  %p49_p2 = scmp.eq.s32.totalorder %s1510_s16, 0 }
   0x5   : > { %s41_s19 = sadd.s32 1, %s1498_s13  ;;  %p1121_p5 = scmp.ge.s32.totalorder %s1510_s16, 3 }
   0x6   : > { %s1904_s17 = smov (%p26_p0, %s25_s17), 0  ;;  %p50_p3 = por %p49_p2, %p48_p1 }
   0x7   : > { %s37_s18 = ssub.s32 %s1506_s15, %s1904_s17  ;;  %162 = sbr.rel (%p1121_p5) target bundleno = 49 (0x31), region = 20 }
   0x8   : > { %p39_p4 = scmp.eq.s32.totalorder %s37_s18, 0 }
   0xa   : > { %s1568_s20 = scalar_select %p39_p4, %s1498_s13, %s41_s19  }
   0xc   : > { %165 = sbr.rel (!%p50_p3) target bundleno = 49 (0x31), region = 24  ;;  %s167_s21 = sand.u32 (%p50_p3), 1, %s1498_s13  }
   0xd   : > { %s1355_s22 = smul.u32 (%p50_p3), 12, %s1506_s15 }
   0xe   : > { %s1428_s23 = smul.u32 (%p50_p3), 192, %s167_s21 }
   0xf   : > { %s1576_s26 = scalar_lea.vmem (%p50_p3), %s1895_s0, %s1355_s22 }
  0x10   : > { %v190_v0 = vld [vmem:[%s1576_s26] sm:$0xff] (%p50_p3)  ;;  %v194_v2 = vld [vmem:[%s1576_s26 + $0x48] sm:$0xff] (%p50_p3)  ;;  %s1581_s27 = scalar_lea.vmem (%p50_p3), [#allocation3], %s1428_s23  ;;  %v198_v4 = vld [vmem:[%s1576_s26 + $0x90] sm:$0xff] (%p50_p3) }
  0x11   : > { %v192_v1 = vld [vmem:[%s1576_s26 + $0x24] sm:$0xff]  ;;  %191 = vst [vmem:[%s1581_s27] sm:$0xff] %v190_v0  ;;  %v196_v3 = vld [vmem:[%s1576_s26 + $0x6c] sm:$0xff]  ;;  %v200_v5 = vld [vmem:[%s1576_s26 + $0xb4] sm:$0xff] }
  0x12   : > { %193 = vst [vmem:[%s1581_s27 + $0xc] sm:$0xff] %v192_v1  ;;  %v202_v6 = vld [vmem:[%s1576_s26 + $0xd8] sm:$0xff]  ;;  %v206_v8 = vld [vmem:[%s1576_s26 + $0x120] sm:$0xff]  ;;  %v210_v10 = vld [vmem:[%s1576_s26 + $0x168] sm:$0xff] }
  0x13   : > { %195 = vst [vmem:[%s1581_s27 + $0x18] sm:$0xff] %v194_v2  ;;  %v204_v7 = vld [vmem:[%s1576_s26 + $0xfc] sm:$0xff]  ;;  %v208_v9 = vld [vmem:[%s1576_s26 + $0x144] sm:$0xff]  ;;  %v212_v11 = vld [vmem:[%s1576_s26 + $0x18c] sm:$0xff] }
  0x14   : > { %197 = vst [vmem:[%s1581_s27 + $0x24] sm:$0xff] %v196_v3  ;;  %v214_v12 = vld [vmem:[%s1576_s26 + $0x1b0] sm:$0xff]  ;;  %v218_v14 = vld [vmem:[%s1576_s26 + $0x1f8] sm:$0xff]  ;;  %v1123_v16 = vld [vmem:[%s1576_s26 + $0x8] sm:$0xf] }
  0x15   : > { %199 = vst [vmem:[%s1581_s27 + $0x30] sm:$0xff] %v198_v4  ;;  %v216_v13 = vld [vmem:[%s1576_s26 + $0x1d4] sm:$0xff]  ;;  %v220_v15 = vld [vmem:[%s1576_s26 + $0x21c] sm:$0xff]  ;;  %v1125_v17 = vld [vmem:[%s1576_s26 + $0x2c] sm:$0xf] }
  0x16   : > { %201 = vst [vmem:[%s1581_s27 + $0x3c] sm:$0xff] %v200_v5  ;;  %v1127_v18 = vld [vmem:[%s1576_s26 + $0x50] sm:$0xf]  ;;  %v1129_v19 = vld [vmem:[%s1576_s26 + $0x74] sm:$0xf] }
  0x17   : > { %203 = vst [vmem:[%s1581_s27 + $0x48] sm:$0xff] %v202_v6  ;;  %v1131_v20 = vld [vmem:[%s1576_s26 + $0x98] sm:$0xf]  ;;  %v1133_v21 = vld [vmem:[%s1576_s26 + $0xbc] sm:$0xf] }
  0x18   : > { %205 = vst [vmem:[%s1581_s27 + $0x54] sm:$0xff] %v204_v7  ;;  %v1135_v22 = vld [vmem:[%s1576_s26 + $0xe0] sm:$0xf]  ;;  %v1137_v23 = vld [vmem:[%s1576_s26 + $0x104] sm:$0xf] }
  0x19   : > { %207 = vst [vmem:[%s1581_s27 + $0x60] sm:$0xff] %v206_v8  ;;  %v1139_v24 = vld [vmem:[%s1576_s26 + $0x128] sm:$0xf]  ;;  %v1141_v25 = vld [vmem:[%s1576_s26 + $0x14c] sm:$0xf] }
  0x1a   : > { %209 = vst [vmem:[%s1581_s27 + $0x6c] sm:$0xff] %v208_v9  ;;  %v1143_v26 = vld [vmem:[%s1576_s26 + $0x170] sm:$0xf]  ;;  %v1145_v27 = vld [vmem:[%s1576_s26 + $0x194] sm:$0xf] }
  0x1b   : > { %211 = vst [vmem:[%s1581_s27 + $0x78] sm:$0xff] %v210_v10  ;;  %v1147_v28 = vld [vmem:[%s1576_s26 + $0x1b8] sm:$0xf]  ;;  %v1149_v29 = vld [vmem:[%s1576_s26 + $0x1dc] sm:$0xf] }
  0x1c   : > { %213 = vst [vmem:[%s1581_s27 + $0x84] sm:$0xff] %v212_v11  ;;  %v1151_v30 = vld [vmem:[%s1576_s26 + $0x200] sm:$0xf]  ;;  %v1153_v31 = vld [vmem:[%s1576_s26 + $0x224] sm:$0xf] }
  0x1d   : > { %215 = vst [vmem:[%s1581_s27 + $0x90] sm:$0xff] %v214_v12 }
  0x1e   : > { %217 = vst [vmem:[%s1581_s27 + $0x9c] sm:$0xff] %v216_v13 }
  0x1f   : > { %219 = vst [vmem:[%s1581_s27 + $0xa8] sm:$0xff] %v218_v14 }
  0x20   : > { %221 = vst [vmem:[%s1581_s27 + $0xb4] sm:$0xff] %v220_v15 }
  0x21   : > { %1124 = vst [vmem:[%s1581_s27 + $0x8] sm:$0xf] %v1123_v16 }
  0x22   : > { %1126 = vst [vmem:[%s1581_s27 + $0x14] sm:$0xf] %v1125_v17 }
  0x23   : > { %1128 = vst [vmem:[%s1581_s27 + $0x20] sm:$0xf] %v1127_v18 }
  0x24   : > { %1130 = vst [vmem:[%s1581_s27 + $0x2c] sm:$0xf] %v1129_v19 }
  0x25   : > { %1132 = vst [vmem:[%s1581_s27 + $0x38] sm:$0xf] %v1131_v20 }
  0x26   : > { %1134 = vst [vmem:[%s1581_s27 + $0x44] sm:$0xf] %v1133_v21 }
  0x27   : > { %1136 = vst [vmem:[%s1581_s27 + $0x50] sm:$0xf] %v1135_v22 }
  0x28   : > { %1138 = vst [vmem:[%s1581_s27 + $0x5c] sm:$0xf] %v1137_v23 }
  0x29   : > { %1140 = vst [vmem:[%s1581_s27 + $0x68] sm:$0xf] %v1139_v24 }
  0x2a   : > { %1142 = vst [vmem:[%s1581_s27 + $0x74] sm:$0xf] %v1141_v25 }
  0x2b   : > { %1144 = vst [vmem:[%s1581_s27 + $0x80] sm:$0xf] %v1143_v26 }
  0x2c   : > { %1146 = vst [vmem:[%s1581_s27 + $0x8c] sm:$0xf] %v1145_v27 }
  0x2d   : > { %1148 = vst [vmem:[%s1581_s27 + $0x98] sm:$0xf] %v1147_v28 }
  0x2e   : > { %1150 = vst [vmem:[%s1581_s27 + $0xa4] sm:$0xf] %v1149_v29 }
  0x2f   : > { %1152 = vst [vmem:[%s1581_s27 + $0xb0] sm:$0xf] %v1151_v30 }
  0x30   : > { %1154 = vst [vmem:[%s1581_s27 + $0xbc] sm:$0xf] %v1153_v31 }
  0x31 PF: > { %p1155_p6 = scmp.ge.s32.totalorder %s1510_s16, 1  ;;  %p278_p7 = scmp.lt.s32.totalorder %s1510_s16, 4 }
  0x33   : > { %p279_p8 = pnand %p1155_p6, %p278_p7 }
  0x34   : > { %s285_s28 = sand.u32 (!%p279_p8), 1, %s1494_s12   ;;  %s324_s29 = smul.u32 (!%p279_p8), 48, %s1502_s14 }
  0x35   : > { %282 = sbr.rel (%p279_p8) target bundleno = 363 (0x16b), region = 54  ;;  %p1157_p10 = scmp.ne.s32.totalorder (!%p279_p8), %s1502_s14, 0 }
  0x36   : > { %s1429_s30 = smul.u32 (!%p279_p8), 192, %s285_s28  ;;  %p325_p9 = scmp.lt.s32.totalorder (!%p279_p8), %s324_s29, 143 }
  0x38   : > { %s1653_s8 = scalar_lea.vmem (!%p279_p8), [#allocation3], %s1429_s30 }
  0x3a   : > { %s1906_s29 = smov (!%p325_p9, %s324_s29), 143  ;;  %348 = sbr.rel (%p1157_p10) target bundleno = 80 (0x50), region = 62 }
  0x3b   : > { %s1156_s4 = sshll.u32 %s1906_s29, 2 }
  0x3c   : > { %s1651_s7 = scalar_lea.vmem %s1896_s1, %s1156_s4 }
  0x3f   : > { %vm349_vm0 = vcmask 523264   ;;  %v1512_v32 = vmov 0.0  }
  0x40   : > { %350 = vst.msk [vmem:[#allocation2] sm:$0xff] %vm349_vm0, %v1512_v32 }
  0x41   : > { %351 = vst.msk [vmem:[#allocation2 + $0x8] sm:$0xff] %vm349_vm0, %v1512_v32 }
  0x42   : > { %352 = vst.msk [vmem:[#allocation2 + $0x10] sm:$0xff] %vm349_vm0, %v1512_v32 }
  0x43   : > { %353 = vst.msk [vmem:[#allocation2 + $0x18] sm:$0xff] %vm349_vm0, %v1512_v32 }
  0x44   : > { %354 = vst.msk [vmem:[#allocation2 + $0x20] sm:$0xff] %vm349_vm0, %v1512_v32 }
  0x45   : > { %355 = vst.msk [vmem:[#allocation2 + $0x28] sm:$0xff] %vm349_vm0, %v1512_v32 }
  0x46   : > { %356 = vst.msk [vmem:[#allocation2 + $0x30] sm:$0xff] %vm349_vm0, %v1512_v32 }
  0x47   : > { %357 = vst.msk [vmem:[#allocation2 + $0x38] sm:$0xff] %vm349_vm0, %v1512_v32 }
  0x48   : > { %358 = vst.msk [vmem:[#allocation2 + $0x40] sm:$0xff] %vm349_vm0, %v1512_v32 }
  0x49   : > { %359 = vst.msk [vmem:[#allocation2 + $0x48] sm:$0xff] %vm349_vm0, %v1512_v32 }
  0x4a   : > { %360 = vst.msk [vmem:[#allocation2 + $0x50] sm:$0xff] %vm349_vm0, %v1512_v32 }
  0x4b   : > { %361 = vst.msk [vmem:[#allocation2 + $0x58] sm:$0xff] %vm349_vm0, %v1512_v32 }
  0x4c   : > { %362 = vst.msk [vmem:[#allocation2 + $0x60] sm:$0xff] %vm349_vm0, %v1512_v32 }
  0x4d   : > { %363 = vst.msk [vmem:[#allocation2 + $0x68] sm:$0xff] %vm349_vm0, %v1512_v32 }
  0x4e   : > { %364 = vst.msk [vmem:[#allocation2 + $0x70] sm:$0xff] %vm349_vm0, %v1512_v32 }
  0x4f   : > { %365 = vst.msk [vmem:[#allocation2 + $0x78] sm:$0xff] %vm349_vm0, %v1512_v32 }
  0x50 PF: > { %v1387_v33 = vld [vmem:[%s1651_s7 + $0x38] sm:$0xff]  ;;  %v1386_v36 = vld [vmem:[%s1651_s7 + $0x30] sm:$0xff]  ;;  %v1385_v39 = vld [vmem:[%s1651_s7 + $0x28] sm:$0xff]  ;;  %vm897_vm1 = vcmask 523264   ;;  %p1350_p11 = scmp.ne.s32.totalorder %s1502_s14, 2 }
  0x51   : > { %v1674_v34 = vld [vmem:[%s1651_s7 + $0x78] sm:$0xff]  ;;  %734 = vmatpush.bf16.msra.mxu0 %v1387_v33  ;;  %1404 = vmatpush.bf16.msra.mxu3 %v1387_v33  ;;  %v1683_v37 = vld [vmem:[%s1651_s7 + $0x70] sm:$0xff]  ;;  %v1393_v40 = vld [vmem:[%s1651_s7 + $0x68] sm:$0xff] }
  0x52   : > { %v1677_v35 = vld [vmem:[%s1651_s7 + $0xb8] sm:$0xff]  ;;  %783 = vmatpush.bf16.msra.mxu1 %v1674_v34  ;;  %v1686_v38 = vld [vmem:[%s1651_s7 + $0xb0] sm:$0xff]  ;;  %v1693_v41 = vld [vmem:[%s1651_s7 + $0xa8] sm:$0xff] }
  0x53   : > { %832 = vmatpush.bf16.msra.mxu2 %v1677_v35  ;;  %v1384_v42 = vld [vmem:[%s1651_s7 + $0x20] sm:$0xff]  ;;  %v1383_v45 = vld [vmem:[%s1651_s7 + $0x18] sm:$0xff]  ;;  %v1382_v48 = vld [vmem:[%s1651_s7 + $0x10] sm:$0xff] }
  0x54   : > { %v1392_v43 = vld [vmem:[%s1651_s7 + $0x60] sm:$0xff]  ;;  %v1391_v46 = vld [vmem:[%s1651_s7 + $0x58] sm:$0xff]  ;;  %v1390_v49 = vld [vmem:[%s1651_s7 + $0x50] sm:$0xff] }
  0x55   : > { %735 = vmatpush.bf16.msra.mxu0 %v1386_v36  ;;  %1405 = vmatpush.bf16.msra.mxu3 %v1386_v36  ;;  %v1699_v44 = vld [vmem:[%s1651_s7 + $0xa0] sm:$0xff]  ;;  %v1705_v47 = vld [vmem:[%s1651_s7 + $0x98] sm:$0xff]  ;;  %v1711_v50 = vld [vmem:[%s1651_s7 + $0x90] sm:$0xff] }
  0x56   : > { %784 = vmatpush.bf16.msra.mxu1 %v1683_v37  ;;  %v1381_v51 = vld [vmem:[%s1651_s7 + $0x8] sm:$0xff]  ;;  %v1380_v54 = vld [vmem:[%s1651_s7] sm:$0xff]  ;;  %v1232_v59 = vld [vmem:[%s1653_s8 + $0x90] sm:$0xf] }
  0x57   : > { %833 = vmatpush.bf16.msra.mxu2 %v1686_v38  ;;  %v1389_v52 = vld [vmem:[%s1651_s7 + $0x48] sm:$0xff]  ;;  %v1388_v55 = vld [vmem:[%s1651_s7 + $0x40] sm:$0xff]  ;;  %v1375_v60 = vld [vmem:[%s1653_s8 + $0x98] sm:$0xf0] }
  0x58   : > { %v1717_v53 = vld [vmem:[%s1651_s7 + $0x88] sm:$0xff]  ;;  %v1722_v56 = vld [vmem:[%s1651_s7 + $0x80] sm:$0xff]  ;;  %v1162_v62 = vld [vmem:[%s1653_s8 + $0xc] sm:$0xf0]  ;;  %v1233_v2 = vor.u32 %v1375_v60, %v1232_v59 }
  0x59   : > { %736 = vmatpush.bf16.msra.mxu0 %v1385_v39  ;;  %1406 = vmatpush.bf16.msra.mxu3 %v1385_v39  ;;  %v1160_v57 = vld [vmem:[%s1653_s8] sm:$0xf]  ;;  %v1357_v58 = vld [vmem:[%s1653_s8 + $0x8] sm:$0xf0]  ;;  %v1356_v61 = vld [vmem:[%s1653_s8 + $0x4] sm:$0xf] }
  0x5a   : > { %785 = vmatpush.bf16.msra.mxu1 %v1393_v40  ;;  %v1168_v63 = vld [vmem:[%s1653_s8 + $0x8] sm:$0xf]  ;;  %v1358_v0 = vld [vmem:[%s1653_s8 + $0x10] sm:$0xf0]  ;;  %v1161_v1 = vor.u32 %v1357_v58, %v1160_v57  ;;  %v1165_v3 = vor.u32 %v1356_v61, %v1162_v62  ;;  %v1172_v5 = vld [vmem:[%s1653_s8 + $0x18] sm:$0xf] }
  0x5b   : > { %834 = vmatpush.bf16.msra.mxu2 %v1693_v41  ;;  %v1169_v4 = vor.u32 %v1358_v0, %v1168_v63  ;;  %v1360_v6 = vld [vmem:[%s1653_s8 + $0x20] sm:$0xf0]  ;;  %v1244_v7 = vld [vmem:[%s1653_s8 + $0xa8] sm:$0xf]  ;;  %v1378_v8 = vld [vmem:[%s1653_s8 + $0xb0] sm:$0xf0] }
  0x5c   : > { %v1359_v9 = vld [vmem:[%s1653_s8 + $0x1c] sm:$0xf]  ;;  %v1174_v10 = vld [vmem:[%s1653_s8 + $0x24] sm:$0xf0]  ;;  %v1180_v11 = vld [vmem:[%s1653_s8 + $0x20] sm:$0xf]  ;;  %v1173_v13 = vor.u32 %v1360_v6, %v1172_v5  ;;  %v1245_v14 = vor.u32 %v1378_v8, %v1244_v7 }
  0x5d   : > { %737 = vmatpush.bf16.msra.mxu0 %v1384_v42  ;;  %1407 = vmatpush.bf16.msra.mxu3 %v1384_v42  ;;  %v1361_v12 = vld [vmem:[%s1653_s8 + $0x28] sm:$0xf0]  ;;  %v1177_v15 = vor.u32 %v1359_v9, %v1174_v10  ;;  %v1184_v17 = vld [vmem:[%s1653_s8 + $0x30] sm:$0xf]  ;;  %v1363_v18 = vld [vmem:[%s1653_s8 + $0x38] sm:$0xf0] }
  0x5e   : > { %786 = vmatpush.bf16.msra.mxu1 %v1392_v43  ;;  %v1181_v16 = vor.u32 %v1361_v12, %v1180_v11  ;;  %v1362_v19 = vld [vmem:[%s1653_s8 + $0x34] sm:$0xf]  ;;  %v1234_v21 = vld [vmem:[%s1653_s8 + $0x9c] sm:$0xf0]  ;;  %v1192_v23 = vld [vmem:[%s1653_s8 + $0x38] sm:$0xf]  ;;  %v1185_v25 = vor.u32 %v1363_v18, %v1184_v17 }
  0x5f   : > { %835 = vmatpush.bf16.msra.mxu2 %v1699_v44  ;;  %v1374_v20 = vld [vmem:[%s1653_s8 + $0x94] sm:$0xf]  ;;  %v1186_v22 = vld [vmem:[%s1653_s8 + $0x3c] sm:$0xf0]  ;;  %v1364_v24 = vld [vmem:[%s1653_s8 + $0x40] sm:$0xf0] }
  0x60   : > { %v1237_v26 = vor.u32 %v1374_v20, %v1234_v21  ;;  %v1189_v27 = vor.u32 %v1362_v19, %v1186_v22  ;;  %v1193_v28 = vor.u32 %v1364_v24, %v1192_v23  ;;  %v1196_v29 = vld [vmem:[%s1653_s8 + $0x48] sm:$0xf]  ;;  %v1366_v30 = vld [vmem:[%s1653_s8 + $0x50] sm:$0xf0]  ;;  %v1365_v31 = vld [vmem:[%s1653_s8 + $0x4c] sm:$0xf] }
  0x61   : > { %738 = vmatpush.bf16.msra.mxu0 %v1383_v45  ;;  %1408 = vmatpush.bf16.msra.mxu3 %v1383_v45  ;;  %v1377_v32 = vld [vmem:[%s1653_s8 + $0xac] sm:$0xf]  ;;  %v1246_v33 = vld [vmem:[%s1653_s8 + $0xb4] sm:$0xf0]  ;;  %v1367_v36 = vld [vmem:[%s1653_s8 + $0x58] sm:$0xf0] }
  0x62   : > { %787 = vmatpush.bf16.msra.mxu1 %v1391_v46  ;;  %v1249_v39 = vor.u32 %v1377_v32, %v1246_v33  ;;  %v1369_v42 = vld [vmem:[%s1653_s8 + $0x68] sm:$0xf0]  ;;  %v1376_v45 = vld [vmem:[%s1653_s8 + $0xa0] sm:$0xf0]  ;;  %v1252_v57 = vld [vmem:[%s1653_s8 + $0xb0] sm:$0xf] }
  0x63   : > { %836 = vmatpush.bf16.msra.mxu2 %v1705_v47  ;;  %v1222_v58 = vld [vmem:[%s1653_s8 + $0x84] sm:$0xf0]  ;;  %v1228_v59 = vld [vmem:[%s1653_s8 + $0x80] sm:$0xf]  ;;  %v1373_v60 = vld [vmem:[%s1653_s8 + $0x88] sm:$0xf0] }
  0x64   : > { %v1229_v0 = vor.u32 %v1373_v60, %v1228_v59  ;;  %v366_v5 = vld [vmem:[#allocation2] sm:$0xff]  ;;  %v368_v21 = vld [vmem:[#allocation2 + $0x10] sm:$0xff] }
  0x65   : > { %739 = vmatpush.bf16.msra.mxu0 %v1382_v48  ;;  %1409 = vmatpush.bf16.msra.mxu3 %v1382_v48  ;;  %v1370_v48 = vld [vmem:[%s1653_s8 + $0x70] sm:$0xf0] }
  0x66   : > { %788 = vmatpush.bf16.msra.mxu1 %v1390_v49 }
  0x67   : > { %837 = vmatpush.bf16.msra.mxu2 %v1711_v50 }
  0x69   : > { %740 = vmatpush.bf16.msra.mxu0 %v1381_v51  ;;  %1410 = vmatpush.bf16.msra.mxu3 %v1381_v51 }
  0x6a   : > { %789 = vmatpush.bf16.msra.mxu1 %v1389_v52 }
  0x6b   : > { %838 = vmatpush.bf16.msra.mxu2 %v1717_v53 }
  0x6d   : > { %741 = vmatpush.bf16.msra.mxu0 %v1380_v54  ;;  %1411 = vmatpush.bf16.msra.mxu3 %v1380_v54  ;;  %v1372_v54 = vld [vmem:[%s1653_s8 + $0x80] sm:$0xf0] }
  0x6e   : > { %790 = vmatpush.bf16.msra.mxu1 %v1388_v55 }
  0x6f   : > { %839 = vmatpush.bf16.msra.mxu2 %v1722_v56 }
  0x70   : > { %742 = vmatmul.bf16.vlgmr.msra.gmra.mxu0 %v1161_v1  ;;  %772 = vmatmul.bf16.vlgmr.msra.gmra.mxu3 %v1233_v2 }
  0x71   : > { %1412 = vmatpush.bf16.msrb.mxu3 %v1674_v34  ;;  %791 = vmatmul.bf16.vlgmr.msra.gmra.mxu1 %v1165_v3  ;;  %v1198_v34 = vld [vmem:[%s1653_s8 + $0x54] sm:$0xf0] }
  0x72   : > { %840 = vmatmul.bf16.vlgmr.msra.gmra.mxu2 %v1169_v4 }
  0x75   : > { %1413 = vmatpush.bf16.msrb.mxu3 %v1683_v37  ;;  %v1197_v37 = vor.u32 %v1366_v30, %v1196_v29  ;;  %v369_v29 = vld [vmem:[#allocation2 + $0x18] sm:$0xff] }
  0x79   : > { %1414 = vmatpush.bf16.msrb.mxu3 %v1393_v40 }
  0x7d   : > { %1415 = vmatpush.bf16.msrb.mxu3 %v1392_v43  ;;  %v1368_v43 = vld [vmem:[%s1653_s8 + $0x64] sm:$0xf] }
  0x80   : > { %747 = vmatmul.bf16.gmra.mxu0 %v1173_v13  ;;  %777 = vmatmul.bf16.gmra.mxu3 %v1245_v14  ;;  %v367_v13 = vld [vmem:[#allocation2 + $0x8] sm:$0xff] }
  0x81   : > { %1416 = vmatpush.bf16.msrb.mxu3 %v1391_v46  ;;  %796 = vmatmul.bf16.gmra.mxu1 %v1177_v15  ;;  %v1210_v46 = vld [vmem:[%s1653_s8 + $0x6c] sm:$0xf0] }
  0x82   : > { %845 = vmatmul.bf16.gmra.mxu2 %v1181_v16  ;;  %v1213_v51 = vor.u32 %v1368_v43, %v1210_v46 }
  0x85   : > { %1417 = vmatpush.bf16.msrb.mxu3 %v1390_v49 }
  0x89   : > { %1418 = vmatpush.bf16.msrb.mxu3 %v1389_v52 }
  0x8d   : > { %1419 = vmatpush.bf16.msrb.mxu3 %v1388_v55  ;;  %v1371_v55 = vld [vmem:[%s1653_s8 + $0x7c] sm:$0xf] }
  0x8e   : > { %v1225_v63 = vor.u32 %v1371_v55, %v1222_v58 }
  0x90   : > { %752 = vmatmul.bf16.gmra.mxu0 %v1185_v25  ;;  %821 = vmatmul.bf16.vlgmr.msrb.gmra.mxu3 %v1237_v26 }
  0x91   : > { %1420 = vmatpush.bf16.msra.mxu3 %v1677_v35  ;;  %801 = vmatmul.bf16.gmra.mxu1 %v1189_v27  ;;  %v1204_v35 = vld [vmem:[%s1653_s8 + $0x50] sm:$0xf] }
  0x92   : > { %850 = vmatmul.bf16.gmra.mxu2 %v1193_v28  ;;  %v1205_v40 = vor.u32 %v1367_v36, %v1204_v35 }
  0x95   : > { %1421 = vmatpush.bf16.msra.mxu3 %v1686_v38  ;;  %v1201_v38 = vor.u32 %v1365_v31, %v1198_v34 }
  0x99   : > { %1422 = vmatpush.bf16.msra.mxu3 %v1693_v41  ;;  %v1208_v41 = vld [vmem:[%s1653_s8 + $0x60] sm:$0xf] }
  0x9a   : > { %v1209_v49 = vor.u32 %v1369_v42, %v1208_v41 }
  0x9d   : > { %1423 = vmatpush.bf16.msra.mxu3 %v1699_v44  ;;  %v1240_v44 = vld [vmem:[%s1653_s8 + $0x98] sm:$0xf] }
  0xa0   : > { %757 = vmatmul.bf16.gmra.mxu0 %v1197_v37  ;;  %826 = vmatmul.bf16.gmra.mxu3 %v1249_v39  ;;  %v370_v37 = vld [vmem:[#allocation2 + $0x20] sm:$0xff] }
  0xa1   : > { %1424 = vmatpush.bf16.msra.mxu3 %v1705_v47  ;;  %806 = vmatmul.bf16.gmra.mxu1 %v1201_v38  ;;  %v1216_v47 = vld [vmem:[%s1653_s8 + $0x68] sm:$0xf] }
  0xa2   : > { %855 = vmatmul.bf16.gmra.mxu2 %v1205_v40  ;;  %v1217_v52 = vor.u32 %v1370_v48, %v1216_v47 }
  0xa5   : > { %1425 = vmatpush.bf16.msra.mxu3 %v1711_v50  ;;  %v1241_v50 = vor.u32 %v1376_v45, %v1240_v44  ;;  %v371_v45 = vld [vmem:[#allocation2 + $0x28] sm:$0xff] }
  0xa9   : > { %1426 = vmatpush.bf16.msra.mxu3 %v1717_v53  ;;  %v1220_v53 = vld [vmem:[%s1653_s8 + $0x78] sm:$0xf] }
  0xaa   : > { %v1221_v61 = vor.u32 %v1372_v54, %v1220_v53  ;;  %v372_v53 = vld [vmem:[#allocation2 + $0x30] sm:$0xff] }
  0xad   : > { %1427 = vmatpush.bf16.msra.mxu3 %v1722_v56  ;;  %v1379_v56 = vld [vmem:[%s1653_s8 + $0xb8] sm:$0xf0] }
  0xae   : > { %v1253_v62 = vor.u32 %v1379_v56, %v1252_v57 }
  0xb0   : > { %762 = vmatmul.bf16.gmra.mxu0 %v1209_v49  ;;  %870 = vmatmul.bf16.vlgmr.msra.gmra.mxu3 %v1241_v50 }
  0xb1   : > { %811 = vmatmul.bf16.gmra.mxu1 %v1213_v51 }
  0xb2   : > { %860 = vmatmul.bf16.gmra.mxu2 %v1217_v52 }
  0xc0   : > { %767 = vmatmul.bf16.gmra.mxu0 %v1221_v61  ;;  %875 = vmatmul.bf16.gmra.mxu3 %v1253_v62  ;;  %v373_v61 = vld [vmem:[#allocation2 + $0x38] sm:$0xff] }
  0xc1   : > { %816 = vmatmul.bf16.gmra.mxu1 %v1225_v63 }
  0xc2   : > { %865 = vmatmul.bf16.gmra.mxu2 %v1229_v0 }
  0xed   : > { %v743_v1 = vpop.f32.mrf.mxu0 }
  0xee   : > { %v792_v2 = vpop.f32.mrf.mxu1 }
  0xef   : > { %v793_v3 = vadd.f32 %v792_v2, %v743_v1 }
  0xf3   : > { %v1784_v4 = vpop.f32.mrf.mxu3 }
  0xf5   : > { %v841_v6 = vpop.f32.mrf.mxu2  ;;  %v745_v8 = vpop.f32.mrf.mxu0 }
  0xf6   : > { %v842_v7 = vadd.f32 %v841_v6, %v793_v3  ;;  %v794_v9 = vpop.f32.mrf.mxu1  ;;  %v378_v6 = vld [vmem:[#allocation2 + $0x60] sm:$0xff] }
  0xf7   : > { %v795_v11 = vadd.f32 %v794_v9, %v745_v8  ;;  %v374_v8 = vld [vmem:[#allocation2 + $0x40] sm:$0xff] }
  0xf8   : > { %v881_v10 = vadd.f32 %v842_v7, %v366_v5 }
  0xfa   : > { %898 = vst.msk [vmem:[#allocation2] sm:$0xff] %vm897_vm1, %v881_v10 }
  0xfb   : > { %v1787_v12 = vpop.f32.mrf.mxu3 }
  0xfd   : > { %v843_v14 = vpop.f32.mrf.mxu2  ;;  %v748_v16 = vpop.f32.mrf.mxu0 }
  0xfe   : > { %v844_v15 = vadd.f32 %v843_v14, %v795_v11  ;;  %v797_v17 = vpop.f32.mrf.mxu1 }
  0xff   : > { %v798_v19 = vadd.f32 %v797_v17, %v748_v16 }
 0x100   : > { %v882_v18 = vadd.f32 %v844_v15, %v367_v13 }
 0x102   : > { %899 = vst.msk [vmem:[#allocation2 + $0x8] sm:$0xff] %vm897_vm1, %v882_v18 }
 0x103   : > { %v1790_v20 = vpop.f32.mrf.mxu3 }
 0x105   : > { %v846_v22 = vpop.f32.mrf.mxu2  ;;  %v750_v24 = vpop.f32.mrf.mxu0 }
 0x106   : > { %v847_v23 = vadd.f32 %v846_v22, %v798_v19  ;;  %v799_v25 = vpop.f32.mrf.mxu1  ;;  %v379_v19 = vld [vmem:[#allocation2 + $0x68] sm:$0xff] }
 0x107   : > { %v800_v27 = vadd.f32 %v799_v25, %v750_v24 }
 0x108   : > { %v883_v26 = vadd.f32 %v847_v23, %v368_v21 }
 0x10a   : > { %900 = vst.msk [vmem:[#allocation2 + $0x10] sm:$0xff] %vm897_vm1, %v883_v26 }
 0x10b   : > { %v1793_v28 = vpop.f32.mrf.mxu3 }
 0x10d   : > { %v848_v30 = vpop.f32.mrf.mxu2  ;;  %v753_v32 = vpop.f32.mrf.mxu0 }
 0x10e   : > { %v849_v31 = vadd.f32 %v848_v30, %v800_v27  ;;  %v802_v33 = vpop.f32.mrf.mxu1 }
 0x10f   : > { %v803_v35 = vadd.f32 %v802_v33, %v753_v32  ;;  %v380_v32 = vld [vmem:[#allocation2 + $0x70] sm:$0xff] }
 0x110   : > { %v884_v34 = vadd.f32 %v849_v31, %v369_v29  ;;  %v376_v33 = vld [vmem:[#allocation2 + $0x50] sm:$0xff] }
 0x112   : > { %901 = vst.msk [vmem:[#allocation2 + $0x18] sm:$0xff] %vm897_vm1, %v884_v34 }
 0x113   : > { %v822_v36 = vpop.f32.mrf.mxu3 }
 0x114   : > { %v823_v5 = vadd.f32 %v822_v36, %v1784_v4  ;;  %v375_v4 = vld [vmem:[#allocation2 + $0x48] sm:$0xff] }
 0x115   : > { %v851_v39 = vpop.f32.mrf.mxu2  ;;  %v755_v40 = vpop.f32.mrf.mxu0 }
 0x116   : > { %v852_v38 = vadd.f32 %v851_v39, %v803_v35  ;;  %v804_v41 = vpop.f32.mrf.mxu1 }
 0x117   : > { %v805_v43 = vadd.f32 %v804_v41, %v755_v40 }
 0x118   : > { %v885_v42 = vadd.f32 %v852_v38, %v370_v37 }
 0x11a   : > { %902 = vst.msk [vmem:[#allocation2 + $0x20] sm:$0xff] %vm897_vm1, %v885_v42 }
 0x11b   : > { %v824_v44 = vpop.f32.mrf.mxu3 }
 0x11c   : > { %v825_v17 = vadd.f32 %v824_v44, %v1787_v12 }
 0x11d   : > { %v853_v46 = vpop.f32.mrf.mxu2  ;;  %v758_v48 = vpop.f32.mrf.mxu0 }
 0x11e   : > { %v854_v47 = vadd.f32 %v853_v46, %v805_v43  ;;  %v807_v49 = vpop.f32.mrf.mxu1  ;;  %v381_v43 = vld [vmem:[#allocation2 + $0x78] sm:$0xff] }
 0x11f   : > { %v808_v51 = vadd.f32 %v807_v49, %v758_v48 }
 0x120   : > { %v886_v50 = vadd.f32 %v854_v47, %v371_v45 }
 0x122   : > { %903 = vst.msk [vmem:[#allocation2 + $0x28] sm:$0xff] %vm897_vm1, %v886_v50 }
 0x123   : > { %v827_v52 = vpop.f32.mrf.mxu3 }
 0x124   : > { %v828_v31 = vadd.f32 %v827_v52, %v1790_v20  ;;  %v377_v20 = vld [vmem:[#allocation2 + $0x58] sm:$0xff] }
 0x125   : > { %v856_v54 = vpop.f32.mrf.mxu2  ;;  %v760_v57 = vpop.f32.mrf.mxu0 }
 0x126   : > { %v857_v55 = vadd.f32 %v856_v54, %v808_v51  ;;  %v809_v56 = vpop.f32.mrf.mxu1 }
 0x127   : > { %v810_v59 = vadd.f32 %v809_v56, %v760_v57 }
 0x128   : > { %v887_v58 = vadd.f32 %v857_v55, %v372_v53 }
 0x12a   : > { %904 = vst.msk [vmem:[#allocation2 + $0x30] sm:$0xff] %vm897_vm1, %v887_v58 }
 0x12b   : > { %v829_v60 = vpop.f32.mrf.mxu3 }
 0x12c   : > { %v830_v41 = vadd.f32 %v829_v60, %v1793_v28 }
 0x12d   : > { %v858_v62 = vpop.f32.mrf.mxu2  ;;  %v763_v0 = vpop.f32.mrf.mxu0 }
 0x12e   : > { %v859_v63 = vadd.f32 %v858_v62, %v810_v59  ;;  %v812_v1 = vpop.f32.mrf.mxu1 }
 0x12f   : > { %v813_v3 = vadd.f32 %v812_v1, %v763_v0 }
 0x130   : > { %v888_v2 = vadd.f32 %v859_v63, %v373_v61 }
 0x132   : > { %905 = vst.msk [vmem:[#allocation2 + $0x38] sm:$0xff] %vm897_vm1, %v888_v2 }
 0x133   : > { %v871_v7 = vpop.f32.mrf.mxu3 }
 0x134   : > { %v872_v10 = vadd.f32 %v871_v7, %v823_v5 }
 0x135   : > { %v861_v9 = vpop.f32.mrf.mxu2  ;;  %v765_v13 = vpop.f32.mrf.mxu0 }
 0x136   : > { %v862_v11 = vadd.f32 %v861_v9, %v813_v3  ;;  %v893_v14 = vadd.f32 %v872_v10, %v378_v6  ;;  %v814_v15 = vpop.f32.mrf.mxu1 }
 0x137   : > { %v815_v18 = vadd.f32 %v814_v15, %v765_v13 }
 0x138   : > { %v889_v16 = vadd.f32 %v862_v11, %v374_v8  ;;  %910 = vst.msk [vmem:[#allocation2 + $0x60] sm:$0xff] %vm897_vm1, %v893_v14 }
 0x13a   : > { %906 = vst.msk [vmem:[#allocation2 + $0x40] sm:$0xff] %vm897_vm1, %v889_v16 }
 0x13b   : > { %v873_v21 = vpop.f32.mrf.mxu3 }
 0x13c   : > { %v874_v23 = vadd.f32 %v873_v21, %v825_v17 }
 0x13d   : > { %v863_v22 = vpop.f32.mrf.mxu2  ;;  %v768_v26 = vpop.f32.mrf.mxu0 }
 0x13e   : > { %v864_v24 = vadd.f32 %v863_v22, %v815_v18  ;;  %v894_v25 = vadd.f32 %v874_v23, %v379_v19  ;;  %v817_v27 = vpop.f32.mrf.mxu1 }
 0x13f   : > { %v818_v30 = vadd.f32 %v817_v27, %v768_v26 }
 0x140   : > { %v890_v29 = vadd.f32 %v864_v24, %v375_v4  ;;  %911 = vst.msk [vmem:[#allocation2 + $0x68] sm:$0xff] %vm897_vm1, %v894_v25 }
 0x142   : > { %907 = vst.msk [vmem:[#allocation2 + $0x48] sm:$0xff] %vm897_vm1, %v890_v29 }
 0x143   : > { %v876_v12 = vpop.f32.mrf.mxu3 }
 0x144   : > { %v877_v35 = vadd.f32 %v876_v12, %v828_v31 }
 0x145   : > { %v866_v34 = vpop.f32.mrf.mxu2  ;;  %v770_v38 = vpop.f32.mrf.mxu0 }
 0x146   : > { %v867_v36 = vadd.f32 %v866_v34, %v818_v30  ;;  %v895_v37 = vadd.f32 %v877_v35, %v380_v32  ;;  %v819_v40 = vpop.f32.mrf.mxu1 }
 0x147   : > { %v820_v42 = vadd.f32 %v819_v40, %v770_v38 }
 0x148   : > { %v891_v39 = vadd.f32 %v867_v36, %v376_v33  ;;  %912 = vst.msk [vmem:[#allocation2 + $0x70] sm:$0xff] %vm897_vm1, %v895_v37 }
 0x14a   : > { %908 = vst.msk [vmem:[#allocation2 + $0x50] sm:$0xff] %vm897_vm1, %v891_v39 }
 0x14b   : > { %v878_v44 = vpop.f32.mrf.mxu3 }
 0x14c   : > { %v879_v46 = vadd.f32 %v878_v44, %v830_v41 }
 0x14d   : > { %v868_v45 = vpop.f32.mrf.mxu2 }
 0x14e   : > { %v869_v47 = vadd.f32 %v868_v45, %v820_v42  ;;  %v896_v48 = vadd.f32 %v879_v46, %v381_v43  ;;  %917 = sbr.rel (%p1350_p11) target bundleno = 363 (0x16b), region = 66 }
 0x150   : > { %v892_v49 = vadd.f32 %v869_v47, %v377_v20  ;;  %913 = vst.msk [vmem:[#allocation2 + $0x78] sm:$0xff] %vm897_vm1, %v896_v48 }
 0x152   : > { %909 = vst.msk [vmem:[#allocation2 + $0x58] sm:$0xff] %vm897_vm1, %v892_v49 }
 0x153   : > { %v918_v50 = vld [vmem:[#allocation2] sm:$0xff]  ;;  %v919_v51 = vld [vmem:[#allocation2 + $0x8] sm:$0xff]  ;;  %v920_v52 = vld [vmem:[#allocation2 + $0x10] sm:$0xff]  ;;  %vm986_vm2 = vcmask 519168  }
 0x154   : > { %v1471_v28 = vld [vmem:[%s1897_s2] ss:$0 sm:$0xff]  ;;  %v921_v53 = vld [vmem:[#allocation2 + $0x18] sm:$0xff]  ;;  %v923_v59 = vld [vmem:[#allocation2 + $0x28] sm:$0xff] }
 0x155   : > { %v938_v54 = vadd.f32 %v1471_v28, %v918_v50  ;;  %v939_v55 = vadd.f32 %v1471_v28, %v919_v51  ;;  %v940_v57 = vadd.f32 %v1471_v28, %v920_v52  ;;  %v941_v56 = vadd.f32 %v1471_v28, %v921_v53  ;;  %v922_v58 = vld [vmem:[#allocation2 + $0x20] sm:$0xff]  ;;  %v924_v60 = vld [vmem:[#allocation2 + $0x30] sm:$0xff]  ;;  %v925_v0 = vld [vmem:[#allocation2 + $0x38] sm:$0xff] }
 0x156   : > { %v942_v61 = vadd.f32 %v1471_v28, %v922_v58  ;;  %v943_v62 = vadd.f32 %v1471_v28, %v923_v59  ;;  %v944_v63 = vadd.f32 %v1471_v28, %v924_v60  ;;  %v926_v6 = vld [vmem:[#allocation2 + $0x40] sm:$0xff]  ;;  %v945_v10 = vadd.f32 %v1471_v28, %v925_v0  ;;  %v927_v11 = vld [vmem:[#allocation2 + $0x48] sm:$0xff]  ;;  %v928_v13 = vld [vmem:[#allocation2 + $0x50] sm:$0xff] }
 0x157   : > { %v954_v1 = vmax.f32 %v938_v54, 0.0  ;;  %v955_v2 = vmax.f32 %v939_v55, 0.0  ;;  %v956_v3 = vmax.f32 %v940_v57, 0.0  ;;  %v957_v5 = vmax.f32 %v941_v56, 0.0  ;;  %v930_v18 = vld [vmem:[#allocation2 + $0x60] sm:$0xff]  ;;  %v931_v19 = vld [vmem:[#allocation2 + $0x68] sm:$0xff] }
 0x158   : > { %v958_v7 = vmax.f32 %v942_v61, 0.0  ;;  %v959_v8 = vmax.f32 %v943_v62, 0.0  ;;  %v960_v9 = vmax.f32 %v944_v63, 0.0  ;;  %v961_v22 = vmax.f32 %v945_v10, 0.0  ;;  %v932_v23 = vld [vmem:[#allocation2 + $0x70] sm:$0xff]  ;;  %v933_v29 = vld [vmem:[#allocation2 + $0x78] sm:$0xff] }
 0x159   : > { %v929_v14 = vld [vmem:[#allocation2 + $0x58] sm:$0xff]  ;;  %v970_v15 = vpack.c.bf16 %v954_v1, %v954_v1  ;;  %v971_v16 = vpack.c.bf16 %v955_v2, %v955_v2  ;;  %v972_v17 = vpack.c.bf16 %v956_v3, %v956_v3  ;;  %v973_v21 = vpack.c.bf16 %v957_v5, %v957_v5 }
 0x15a   : > { %v974_v4 = vpack.c.bf16 %v958_v7, %v958_v7  ;;  %v946_v24 = vadd.f32 %v1471_v28, %v926_v6  ;;  %v947_v25 = vadd.f32 %v1471_v28, %v927_v11  ;;  %v948_v26 = vadd.f32 %v1471_v28, %v928_v13 }
 0x15b   : > { %987 = vst.msk [vmem:[%s1898_s3] sm:$0xf] %vm986_vm2, %v970_v15  ;;  %v949_v27 = vadd.f32 %v1471_v28, %v929_v14  ;;  %v975_v30 = vpack.c.bf16 %v959_v8, %v959_v8  ;;  %v976_v31 = vpack.c.bf16 %v960_v9, %v960_v9  ;;  %v950_v32 = vadd.f32 %v1471_v28, %v930_v18 }
 0x15c   : > { %988 = vst.msk [vmem:[%s1898_s3 + $0x4] sm:$0xf] %vm986_vm2, %v971_v16  ;;  %v951_v12 = vadd.f32 %v1471_v28, %v931_v19  ;;  %v962_v33 = vmax.f32 %v946_v24, 0.0  ;;  %v963_v34 = vmax.f32 %v947_v25, 0.0  ;;  %v964_v35 = vmax.f32 %v948_v26, 0.0 }
 0x15d   : > { %989 = vst.msk [vmem:[%s1898_s3 + $0x8] sm:$0xf] %vm986_vm2, %v972_v17  ;;  %v952_v36 = vadd.f32 %v1471_v28, %v932_v23  ;;  %v977_v37 = vpack.c.bf16 %v961_v22, %v961_v22  ;;  %v965_v39 = vmax.f32 %v949_v27, 0.0  ;;  %v953_v38 = vadd.f32 %v1471_v28, %v933_v29 }
 0x15e   : > { %990 = vst.msk [vmem:[%s1898_s3 + $0xc] sm:$0xf] %vm986_vm2, %v973_v21  ;;  %v978_v40 = vpack.c.bf16 %v962_v33, %v962_v33  ;;  %v966_v41 = vmax.f32 %v950_v32, 0.0  ;;  %v979_v42 = vpack.c.bf16 %v963_v34, %v963_v34  ;;  %v967_v43 = vmax.f32 %v951_v12, 0.0 }
 0x15f   : > { %991 = vst.msk [vmem:[%s1898_s3 + $0x10] sm:$0xf] %vm986_vm2, %v974_v4  ;;  %v980_v44 = vpack.c.bf16 %v964_v35, %v964_v35  ;;  %v968_v20 = vmax.f32 %v952_v36, 0.0  ;;  %v981_v45 = vpack.c.bf16 %v965_v39, %v965_v39  ;;  %v969_v46 = vmax.f32 %v953_v38, 0.0 }
 0x160   : > { %992 = vst.msk [vmem:[%s1898_s3 + $0x14] sm:$0xf] %vm986_vm2, %v975_v30  ;;  %v982_v47 = vpack.c.bf16 %v966_v41, %v966_v41  ;;  %v983_v48 = vpack.c.bf16 %v967_v43, %v967_v43 }
 0x161   : > { %993 = vst.msk [vmem:[%s1898_s3 + $0x18] sm:$0xf] %vm986_vm2, %v976_v31  ;;  %v984_v49 = vpack.c.bf16 %v968_v20, %v968_v20  ;;  %v985_v50 = vpack.c.bf16 %v969_v46, %v969_v46 }
 0x162   : > { %994 = vst.msk [vmem:[%s1898_s3 + $0x1c] sm:$0xf] %vm986_vm2, %v977_v37 }
 0x163   : > { %995 = vst.msk [vmem:[%s1898_s3 + $0x20] sm:$0xf] %vm986_vm2, %v978_v40 }
 0x164   : > { %996 = vst.msk [vmem:[%s1898_s3 + $0x24] sm:$0xf] %vm986_vm2, %v979_v42 }
 0x165   : > { %997 = vst.msk [vmem:[%s1898_s3 + $0x28] sm:$0xf] %vm986_vm2, %v980_v44 }
 0x166   : > { %998 = vst.msk [vmem:[%s1898_s3 + $0x2c] sm:$0xf] %vm986_vm2, %v981_v45 }
 0x167   : > { %999 = vst.msk [vmem:[%s1898_s3 + $0x30] sm:$0xf] %vm986_vm2, %v982_v47 }
 0x168   : > { %1000 = vst.msk [vmem:[%s1898_s3 + $0x34] sm:$0xf] %vm986_vm2, %v983_v48 }
 0x169   : > { %1001 = vst.msk [vmem:[%s1898_s3 + $0x38] sm:$0xf] %vm986_vm2, %v984_v49 }
 0x16a   : > { %1002 = vst.msk [vmem:[%s1898_s3 + $0x3c] sm:$0xf] %vm986_vm2, %v985_v50 }
 0x16b PF: > { %s13_s16 = sadd.s32 1, %s1510_s16   ;;  %s1899_s12 = smov %s1498_s13 }
 0x16c   : > { %p10_p12 = scmp.ge.s32.totalorder %s13_s16, 5   ;;  %s1900_s13 = smov %s1568_s20 }
 0x16d   : > { %s1901_s14 = smov %s1506_s15  ;;  %s1902_s15 = smov %s1904_s17 }
 0x16e   :  { %12 = sbr.rel (!%p10_p12) target bundleno = 3 (0x3), region = 113 }

// kernel: resnet3d_forward.14
= control target key start
LH: loop header
LB: loop body
LE: loop exit
PB: predicated region body
PF: predicated region fallthrough
CT: control target
= control target key end

     0   :  { %s1238_s12 = smov 0   ;;  %s1240_s13 = smov 0   ;;  %s1474_s0 = inlined_call_operand.vmem [shape: bf16[128,1792], index: 0, kind: input, shape index: {}]   ;;  %s1475_s1 = inlined_call_operand.vmem [shape: bf16[1792,64], index: 1, kind: input, shape index: {}]   ;;  %s1476_s2 = inlined_call_operand.vmem [shape: f32[1,64], index: 2, kind: input, shape index: {}]   ;;  %s1477_s3 = inlined_call_operand.vmem [shape: bf16[128,64], index: 3, kind: output, shape index: {}]  }
   0x1   :  { %s1242_s14 = smov 0   ;;  %s1244_s15 = smov 0  }
   0x2   :  { %s1246_s16 = smov 0  }
   0x3 LB: > { %s25_s17 = sadd.s32 1, %s1211_s15  ;;  %p48_p1 = scmp.ne.s32.totalorder %s1203_s13, %s1199_s12  ;;  %s1215_s16 = sphi %s1246_s16, %s13_s16   ;;  %s1211_s15 = sphi %s1244_s15, %s1481_s15   ;;  %s1207_s14 = sphi %s1242_s14, %s1480_s14   ;;  %s1203_s13 = sphi %s1240_s13, %s1479_s13   ;;  %s1199_s12 = sphi %s1238_s12, %s1478_s12  }
   0x4   : > { %p26_p0 = scmp.ge.s32.totalorder %s25_s17, 7  ;;  %p49_p2 = scmp.eq.s32.totalorder %s1215_s16, 0 }
   0x5   : > { %s41_s19 = sadd.s32 1, %s1203_s13  ;;  %p944_p5 = scmp.ge.s32.totalorder %s1215_s16, 7 }
   0x6   : > { %s1483_s17 = smov (%p26_p0, %s25_s17), 0  ;;  %p50_p3 = por %p49_p2, %p48_p1 }
   0x7   : > { %s37_s18 = ssub.s32 %s1211_s15, %s1483_s17  ;;  %162 = sbr.rel (%p944_p5) target bundleno = 32 (0x20), region = 20 }
   0x8   : > { %p39_p4 = scmp.eq.s32.totalorder %s37_s18, 0 }
   0xa   : > { %s1273_s20 = scalar_select %p39_p4, %s1203_s13, %s41_s19  }
   0xc   : > { %165 = sbr.rel (!%p50_p3) target bundleno = 32 (0x20), region = 24  ;;  %s167_s21 = sand.u32 (%p50_p3), 1, %s1203_s13  }
   0xd   : > { %s1086_s22 = sshll.u32 (%p50_p3), %s1211_s15, 3  ;;  %s945_s23 = sshll.u32 (%p50_p3), %s167_s21, 7 }
   0xe   : > { %s1281_s26 = scalar_lea.vmem (%p50_p3), %s1474_s0, %s1086_s22  ;;  %s169_s27 = scalar_lea.vmem (%p50_p3), [#allocation3], %s945_s23 }
   0xf   : > { %v234_v0 = vld [vmem:[%s1281_s26] sm:$0xff] (%p50_p3)  ;;  %v236_v1 = vld [vmem:[%s1281_s26 + $0x38] sm:$0xff] (%p50_p3)  ;;  %v238_v2 = vld [vmem:[%s1281_s26 + $0x70] sm:$0xff] (%p50_p3) }
  0x10   : > { %235 = vst [vmem:[%s169_s27] sm:$0xff] (%p50_p3), %v234_v0  ;;  %v240_v3 = vld [vmem:[%s1281_s26 + $0xa8] sm:$0xff] (%p50_p3)  ;;  %v242_v4 = vld [vmem:[%s1281_s26 + $0xe0] sm:$0xff] (%p50_p3)  ;;  %v244_v5 = vld [vmem:[%s1281_s26 + $0x118] sm:$0xff] (%p50_p3) }
  0x11   : > { %237 = vst [vmem:[%s169_s27 + $0x8] sm:$0xff] %v236_v1  ;;  %v246_v6 = vld [vmem:[%s1281_s26 + $0x150] sm:$0xff]  ;;  %v248_v7 = vld [vmem:[%s1281_s26 + $0x188] sm:$0xff]  ;;  %v250_v8 = vld [vmem:[%s1281_s26 + $0x1c0] sm:$0xff] }
  0x12   : > { %239 = vst [vmem:[%s169_s27 + $0x10] sm:$0xff] %v238_v2  ;;  %v252_v9 = vld [vmem:[%s1281_s26 + $0x1f8] sm:$0xff]  ;;  %v254_v10 = vld [vmem:[%s1281_s26 + $0x230] sm:$0xff]  ;;  %v256_v11 = vld [vmem:[%s1281_s26 + $0x268] sm:$0xff] }
  0x13   : > { %241 = vst [vmem:[%s169_s27 + $0x18] sm:$0xff] %v240_v3  ;;  %v258_v12 = vld [vmem:[%s1281_s26 + $0x2a0] sm:$0xff]  ;;  %v260_v13 = vld [vmem:[%s1281_s26 + $0x2d8] sm:$0xff]  ;;  %v262_v14 = vld [vmem:[%s1281_s26 + $0x310] sm:$0xff] }
  0x14   : > { %243 = vst [vmem:[%s169_s27 + $0x20] sm:$0xff] %v242_v4  ;;  %v264_v15 = vld [vmem:[%s1281_s26 + $0x348] sm:$0xff] }
  0x15   : > { %245 = vst [vmem:[%s169_s27 + $0x28] sm:$0xff] %v244_v5 }
  0x16   : > { %247 = vst [vmem:[%s169_s27 + $0x30] sm:$0xff] %v246_v6 }
  0x17   : > { %249 = vst [vmem:[%s169_s27 + $0x38] sm:$0xff] %v248_v7 }
  0x18   : > { %251 = vst [vmem:[%s169_s27 + $0x40] sm:$0xff] %v250_v8 }
  0x19   : > { %253 = vst [vmem:[%s169_s27 + $0x48] sm:$0xff] %v252_v9 }
  0x1a   : > { %255 = vst [vmem:[%s169_s27 + $0x50] sm:$0xff] %v254_v10 }
  0x1b   : > { %257 = vst [vmem:[%s169_s27 + $0x58] sm:$0xff] %v256_v11 }
  0x1c   : > { %259 = vst [vmem:[%s169_s27 + $0x60] sm:$0xff] %v258_v12 }
  0x1d   : > { %261 = vst [vmem:[%s169_s27 + $0x68] sm:$0xff] %v260_v13 }
  0x1e   : > { %263 = vst [vmem:[%s169_s27 + $0x70] sm:$0xff] %v262_v14 }
  0x1f   : > { %265 = vst [vmem:[%s169_s27 + $0x78] sm:$0xff] %v264_v15 }
  0x20 PF: > { %p948_p6 = scmp.ge.s32.totalorder %s1215_s16, 1  ;;  %p282_p7 = scmp.lt.s32.totalorder %s1215_s16, 8 }
  0x22   : > { %p283_p8 = pnand %p948_p6, %p282_p7 }
  0x23   : > { %s289_s28 = sand.u32 (!%p283_p8), 1, %s1199_s12   ;;  %s950_s29 = sshll.u32 (!%p283_p8), %s1207_s14, 5 }
  0x24   : > { %286 = sbr.rel (%p283_p8) target bundleno = 313 (0x139), region = 66  ;;  %s949_s30 = sshll.u32 (!%p283_p8), %s289_s28, 7 }
  0x25   : > { %p329_p9 = scmp.lt.s32.totalorder (!%p283_p8), %s950_s29, 223  ;;  %s1308_s8 = scalar_lea.vmem (!%p283_p8), [#allocation3], %s949_s30 }
  0x26   : > { %p952_p10 = scmp.ne.s32.totalorder (!%p283_p8), %s1207_s14, 0 }
  0x29   : > { %s1485_s29 = smov (!%p329_p9, %s950_s29), 223  ;;  %352 = sbr.rel (%p952_p10) target bundleno = 63 (0x3f), region = 74 }
  0x2a   : > { %s951_s4 = sshll.u32 %s1485_s29, 2 }
  0x2b   : > { %s1306_s7 = scalar_lea.vmem %s1475_s1, %s951_s4 }
  0x2e   : > { %vm353_vm0 = vcmask 523264   ;;  %v1217_v16 = vmov 0.0  }
  0x2f   : > { %354 = vst.msk [vmem:[#allocation2] sm:$0xff] %vm353_vm0, %v1217_v16 }
  0x30   : > { %355 = vst.msk [vmem:[#allocation2 + $0x8] sm:$0xff] %vm353_vm0, %v1217_v16 }
  0x31   : > { %356 = vst.msk [vmem:[#allocation2 + $0x10] sm:$0xff] %vm353_vm0, %v1217_v16 }
  0x32   : > { %357 = vst.msk [vmem:[#allocation2 + $0x18] sm:$0xff] %vm353_vm0, %v1217_v16 }
  0x33   : > { %358 = vst.msk [vmem:[#allocation2 + $0x20] sm:$0xff] %vm353_vm0, %v1217_v16 }
  0x34   : > { %359 = vst.msk [vmem:[#allocation2 + $0x28] sm:$0xff] %vm353_vm0, %v1217_v16 }
  0x35   : > { %360 = vst.msk [vmem:[#allocation2 + $0x30] sm:$0xff] %vm353_vm0, %v1217_v16 }
  0x36   : > { %361 = vst.msk [vmem:[#allocation2 + $0x38] sm:$0xff] %vm353_vm0, %v1217_v16 }
  0x37   : > { %362 = vst.msk [vmem:[#allocation2 + $0x40] sm:$0xff] %vm353_vm0, %v1217_v16 }
  0x38   : > { %363 = vst.msk [vmem:[#allocation2 + $0x48] sm:$0xff] %vm353_vm0, %v1217_v16 }
  0x39   : > { %364 = vst.msk [vmem:[#allocation2 + $0x50] sm:$0xff] %vm353_vm0, %v1217_v16 }
  0x3a   : > { %365 = vst.msk [vmem:[#allocation2 + $0x58] sm:$0xff] %vm353_vm0, %v1217_v16 }
  0x3b   : > { %366 = vst.msk [vmem:[#allocation2 + $0x60] sm:$0xff] %vm353_vm0, %v1217_v16 }
  0x3c   : > { %367 = vst.msk [vmem:[#allocation2 + $0x68] sm:$0xff] %vm353_vm0, %v1217_v16 }
  0x3d   : > { %368 = vst.msk [vmem:[#allocation2 + $0x70] sm:$0xff] %vm353_vm0, %v1217_v16 }
  0x3e   : > { %369 = vst.msk [vmem:[#allocation2 + $0x78] sm:$0xff] %vm353_vm0, %v1217_v16 }
  0x3f PF: > { %v1110_v17 = vld [vmem:[%s1306_s7 + $0x38] sm:$0xff]  ;;  %v1109_v19 = vld [vmem:[%s1306_s7 + $0x30] sm:$0xff]  ;;  %v1108_v21 = vld [vmem:[%s1306_s7 + $0x28] sm:$0xff]  ;;  %vm724_vm1 = vcmask 523264   ;;  %p1081_p11 = scmp.ne.s32.totalorder %s1207_s14, 6 }
  0x40   : > { %v1118_v18 = vld [vmem:[%s1306_s7 + $0x78] sm:$0xff]  ;;  %610 = vmatpush.bf16.msra.mxu0 %v1110_v17  ;;  %1119 = vmatpush.bf16.msra.mxu2 %v1110_v17  ;;  %v1117_v20 = vld [vmem:[%s1306_s7 + $0x70] sm:$0xff]  ;;  %v1116_v22 = vld [vmem:[%s1306_s7 + $0x68] sm:$0xff] }
  0x41   : > { %659 = vmatpush.bf16.msra.mxu1 %v1118_v18  ;;  %1127 = vmatpush.bf16.msra.mxu3 %v1118_v18  ;;  %v1107_v23 = vld [vmem:[%s1306_s7 + $0x20] sm:$0xff]  ;;  %v1106_v25 = vld [vmem:[%s1306_s7 + $0x18] sm:$0xff]  ;;  %v1105_v27 = vld [vmem:[%s1306_s7 + $0x10] sm:$0xff] }
  0x42   : > { %v1115_v24 = vld [vmem:[%s1306_s7 + $0x60] sm:$0xff]  ;;  %v1114_v26 = vld [vmem:[%s1306_s7 + $0x58] sm:$0xff]  ;;  %v1113_v28 = vld [vmem:[%s1306_s7 + $0x50] sm:$0xff] }
  0x43   : > { %v1104_v29 = vld [vmem:[%s1306_s7 + $0x8] sm:$0xff]  ;;  %v1103_v31 = vld [vmem:[%s1306_s7] sm:$0xff]  ;;  %v963_v45 = vld [vmem:[%s1308_s8 + $0x10] sm:$0xf] }
  0x44   : > { %611 = vmatpush.bf16.msra.mxu0 %v1109_v19  ;;  %1120 = vmatpush.bf16.msra.mxu2 %v1109_v19  ;;  %v1112_v30 = vld [vmem:[%s1306_s7 + $0x48] sm:$0xff]  ;;  %v1111_v32 = vld [vmem:[%s1306_s7 + $0x40] sm:$0xff]  ;;  %v1090_v46 = vld [vmem:[%s1308_s8 + $0x14] sm:$0xf0] }
  0x45   : > { %660 = vmatpush.bf16.msra.mxu1 %v1117_v20  ;;  %1128 = vmatpush.bf16.msra.mxu3 %v1117_v20  ;;  %v955_v33 = vld [vmem:[%s1308_s8] sm:$0xf]  ;;  %v1088_v34 = vld [vmem:[%s1308_s8 + $0x4] sm:$0xf0]  ;;  %v1087_v37 = vld [vmem:[%s1308_s8 + $0x4] sm:$0xf]  ;;  %v964_v53 = vor.u32 %v1090_v46, %v963_v45 }
  0x46   : > { %v987_v35 = vld [vmem:[%s1308_s8 + $0x40] sm:$0xf]  ;;  %v1096_v36 = vld [vmem:[%s1308_s8 + $0x44] sm:$0xf0]  ;;  %v957_v38 = vld [vmem:[%s1308_s8 + $0x8] sm:$0xf0]  ;;  %v956_v41 = vor.u32 %v1088_v34, %v955_v33 }
  0x47   : > { %v1095_v39 = vld [vmem:[%s1308_s8 + $0x44] sm:$0xf]  ;;  %v989_v40 = vld [vmem:[%s1308_s8 + $0x48] sm:$0xf0]  ;;  %v988_v42 = vor.u32 %v1096_v36, %v987_v35  ;;  %v960_v43 = vor.u32 %v1087_v37, %v957_v38  ;;  %v995_v47 = vld [vmem:[%s1308_s8 + $0x50] sm:$0xf] }
  0x48   : > { %612 = vmatpush.bf16.msra.mxu0 %v1108_v21  ;;  %1121 = vmatpush.bf16.msra.mxu2 %v1108_v21  ;;  %v992_v44 = vor.u32 %v1095_v39, %v989_v40  ;;  %v1098_v48 = vld [vmem:[%s1308_s8 + $0x54] sm:$0xf0]  ;;  %v1089_v49 = vld [vmem:[%s1308_s8 + $0x14] sm:$0xf]  ;;  %v965_v50 = vld [vmem:[%s1308_s8 + $0x18] sm:$0xf0] }
  0x49   : > { %661 = vmatpush.bf16.msra.mxu1 %v1116_v22  ;;  %1129 = vmatpush.bf16.msra.mxu3 %v1116_v22  ;;  %v1097_v51 = vld [vmem:[%s1308_s8 + $0x54] sm:$0xf]  ;;  %v997_v52 = vld [vmem:[%s1308_s8 + $0x58] sm:$0xf0]  ;;  %v996_v54 = vor.u32 %v1098_v48, %v995_v47  ;;  %v968_v55 = vor.u32 %v1089_v49, %v965_v50  ;;  %v971_v57 = vld [vmem:[%s1308_s8 + $0x20] sm:$0xf] }
  0x4a   : > { %v1000_v56 = vor.u32 %v1097_v51, %v997_v52  ;;  %v1092_v58 = vld [vmem:[%s1308_s8 + $0x24] sm:$0xf0]  ;;  %v1003_v59 = vld [vmem:[%s1308_s8 + $0x60] sm:$0xf]  ;;  %v1091_v61 = vld [vmem:[%s1308_s8 + $0x24] sm:$0xf] }
  0x4b   : > { %v1100_v60 = vld [vmem:[%s1308_s8 + $0x64] sm:$0xf0]  ;;  %v973_v62 = vld [vmem:[%s1308_s8 + $0x28] sm:$0xf0]  ;;  %v1099_v63 = vld [vmem:[%s1308_s8 + $0x64] sm:$0xf]  ;;  %v972_v1 = vor.u32 %v1092_v58, %v971_v57 }
  0x4c   : > { %613 = vmatpush.bf16.msra.mxu0 %v1107_v23  ;;  %1122 = vmatpush.bf16.msra.mxu2 %v1107_v23  ;;  %v1005_v0 = vld [vmem:[%s1308_s8 + $0x68] sm:$0xf0]  ;;  %v1004_v2 = vor.u32 %v1100_v60, %v1003_v59  ;;  %v976_v3 = vor.u32 %v1091_v61, %v973_v62  ;;  %v979_v5 = vld [vmem:[%s1308_s8 + $0x30] sm:$0xf]  ;;  %v1094_v6 = vld [vmem:[%s1308_s8 + $0x34] sm:$0xf0] }
  0x4d   : > { %662 = vmatpush.bf16.msra.mxu1 %v1115_v24  ;;  %1130 = vmatpush.bf16.msra.mxu3 %v1115_v24  ;;  %v1008_v4 = vor.u32 %v1099_v63, %v1005_v0  ;;  %v1011_v7 = vld [vmem:[%s1308_s8 + $0x70] sm:$0xf]  ;;  %v1102_v8 = vld [vmem:[%s1308_s8 + $0x74] sm:$0xf0]  ;;  %v1093_v9 = vld [vmem:[%s1308_s8 + $0x34] sm:$0xf]  ;;  %v980_v13 = vor.u32 %v1094_v6, %v979_v5 }
  0x4e   : > { %v981_v10 = vld [vmem:[%s1308_s8 + $0x38] sm:$0xf0]  ;;  %v1101_v11 = vld [vmem:[%s1308_s8 + $0x74] sm:$0xf]  ;;  %v1012_v14 = vor.u32 %v1102_v8, %v1011_v7  ;;  %v370_v18 = vld [vmem:[#allocation2] sm:$0xff] }
  0x4f   : > { %v1013_v12 = vld [vmem:[%s1308_s8 + $0x78] sm:$0xf0]  ;;  %v984_v15 = vor.u32 %v1093_v9, %v981_v10  ;;  %v378_v23 = vld [vmem:[#allocation2 + $0x40] sm:$0xff]  ;;  %v379_v33 = vld [vmem:[#allocation2 + $0x48] sm:$0xff] }
  0x50   : > { %614 = vmatpush.bf16.msra.mxu0 %v1106_v25  ;;  %1123 = vmatpush.bf16.msra.mxu2 %v1106_v25  ;;  %v1016_v16 = vor.u32 %v1101_v11, %v1013_v12  ;;  %v372_v37 = vld [vmem:[#allocation2 + $0x10] sm:$0xff]  ;;  %v373_v47 = vld [vmem:[#allocation2 + $0x18] sm:$0xff]  ;;  %v374_v57 = vld [vmem:[#allocation2 + $0x20] sm:$0xff] }
  0x51   : > { %663 = vmatpush.bf16.msra.mxu1 %v1114_v26  ;;  %1131 = vmatpush.bf16.msra.mxu3 %v1114_v26  ;;  %v382_v63 = vld [vmem:[#allocation2 + $0x60] sm:$0xff]  ;;  %v383_v9 = vld [vmem:[#allocation2 + $0x68] sm:$0xff] }
  0x54   : > { %615 = vmatpush.bf16.msra.mxu0 %v1105_v27  ;;  %1124 = vmatpush.bf16.msra.mxu2 %v1105_v27  ;;  %v371_v27 = vld [vmem:[#allocation2 + $0x8] sm:$0xff] }
  0x55   : > { %664 = vmatpush.bf16.msra.mxu1 %v1113_v28  ;;  %1132 = vmatpush.bf16.msra.mxu3 %v1113_v28 }
  0x58   : > { %616 = vmatpush.bf16.msra.mxu0 %v1104_v29  ;;  %1125 = vmatpush.bf16.msra.mxu2 %v1104_v29 }
  0x59   : > { %665 = vmatpush.bf16.msra.mxu1 %v1112_v30  ;;  %1133 = vmatpush.bf16.msra.mxu3 %v1112_v30 }
  0x5c   : > { %617 = vmatpush.bf16.msra.mxu0 %v1103_v31  ;;  %1126 = vmatpush.bf16.msra.mxu2 %v1103_v31 }
  0x5d   : > { %666 = vmatpush.bf16.msra.mxu1 %v1111_v32  ;;  %1134 = vmatpush.bf16.msra.mxu3 %v1111_v32 }
  0x5f   : > { %618 = vmatmul.bf16.vlgmr.msra.gmra.mxu0 %v956_v41  ;;  %638 = vmatmul.bf16.vlgmr.msra.gmra.mxu2 %v988_v42 }
  0x60   : > { %667 = vmatmul.bf16.vlgmr.msra.gmra.mxu1 %v960_v43  ;;  %687 = vmatmul.bf16.vlgmr.msra.gmra.mxu3 %v992_v44  ;;  %v380_v43 = vld [vmem:[#allocation2 + $0x50] sm:$0xff] }
  0x6f   : > { %623 = vmatmul.bf16.gmra.mxu0 %v964_v53  ;;  %643 = vmatmul.bf16.gmra.mxu2 %v996_v54  ;;  %v381_v53 = vld [vmem:[#allocation2 + $0x58] sm:$0xff] }
  0x70   : > { %672 = vmatmul.bf16.gmra.mxu1 %v968_v55  ;;  %692 = vmatmul.bf16.gmra.mxu3 %v1000_v56 }
  0x7f   : > { %628 = vmatmul.bf16.gmra.mxu0 %v972_v1  ;;  %648 = vmatmul.bf16.gmra.mxu2 %v1004_v2 }
  0x80   : > { %677 = vmatmul.bf16.gmra.mxu1 %v976_v3  ;;  %697 = vmatmul.bf16.gmra.mxu3 %v1008_v4  ;;  %v375_v3 = vld [vmem:[#allocation2 + $0x28] sm:$0xff] }
  0x8f   : > { %633 = vmatmul.bf16.gmra.mxu0 %v980_v13  ;;  %653 = vmatmul.bf16.gmra.mxu2 %v1012_v14  ;;  %v376_v13 = vld [vmem:[#allocation2 + $0x30] sm:$0xff] }
  0x90   : > { %682 = vmatmul.bf16.gmra.mxu1 %v984_v15  ;;  %702 = vmatmul.bf16.gmra.mxu3 %v1016_v16 }
  0xdc   : > { %v619_v17 = vpop.f32.mrf.mxu0 }
  0xdd   : > { %v668_v19 = vpop.f32.mrf.mxu1 }
  0xde   : > { %v669_v20 = vadd.f32 %v668_v19, %v619_v17  ;;  %v384_v19 = vld [vmem:[#allocation2 + $0x70] sm:$0xff] }
  0xe0   : > { %v708_v21 = vadd.f32 %v669_v20, %v370_v18 }
  0xe2   : > { %725 = vst.msk [vmem:[#allocation2] sm:$0xff] %vm724_vm1, %v708_v21  ;;  %v639_v22 = vpop.f32.mrf.mxu2 }
  0xe3   : > { %v688_v24 = vpop.f32.mrf.mxu3 }
  0xe4   : > { %v689_v25 = vadd.f32 %v688_v24, %v639_v22  ;;  %v621_v26 = vpop.f32.mrf.mxu0 }
  0xe5   : > { %v670_v28 = vpop.f32.mrf.mxu1 }
  0xe6   : > { %v716_v29 = vadd.f32 %v689_v25, %v378_v23  ;;  %v671_v30 = vadd.f32 %v670_v28, %v621_v26  ;;  %v377_v23 = vld [vmem:[#allocation2 + $0x38] sm:$0xff] }
  0xe8   : > { %733 = vst.msk [vmem:[#allocation2 + $0x40] sm:$0xff] %vm724_vm1, %v716_v29  ;;  %v709_v31 = vadd.f32 %v671_v30, %v371_v27  ;;  %v385_v29 = vld [vmem:[#allocation2 + $0x78] sm:$0xff] }
  0xea   : > { %726 = vst.msk [vmem:[#allocation2 + $0x8] sm:$0xff] %vm724_vm1, %v709_v31  ;;  %v641_v32 = vpop.f32.mrf.mxu2 }
  0xeb   : > { %v690_v34 = vpop.f32.mrf.mxu3 }
  0xec   : > { %v691_v35 = vadd.f32 %v690_v34, %v641_v32  ;;  %v624_v36 = vpop.f32.mrf.mxu0 }
  0xed   : > { %v673_v38 = vpop.f32.mrf.mxu1 }
  0xee   : > { %v717_v39 = vadd.f32 %v691_v35, %v379_v33  ;;  %v674_v40 = vadd.f32 %v673_v38, %v624_v36 }
  0xf0   : > { %734 = vst.msk [vmem:[#allocation2 + $0x48] sm:$0xff] %vm724_vm1, %v717_v39  ;;  %v710_v41 = vadd.f32 %v674_v40, %v372_v37 }
  0xf2   : > { %727 = vst.msk [vmem:[#allocation2 + $0x10] sm:$0xff] %vm724_vm1, %v710_v41  ;;  %v644_v42 = vpop.f32.mrf.mxu2 }
  0xf3   : > { %v693_v44 = vpop.f32.mrf.mxu3 }
  0xf4   : > { %v694_v45 = vadd.f32 %v693_v44, %v644_v42  ;;  %v626_v46 = vpop.f32.mrf.mxu0 }
  0xf5   : > { %v675_v48 = vpop.f32.mrf.mxu1 }
  0xf6   : > { %v718_v49 = vadd.f32 %v694_v45, %v380_v43  ;;  %v676_v50 = vadd.f32 %v675_v48, %v626_v46 }
  0xf8   : > { %735 = vst.msk [vmem:[#allocation2 + $0x50] sm:$0xff] %vm724_vm1, %v718_v49  ;;  %v711_v51 = vadd.f32 %v676_v50, %v373_v47 }
  0xfa   : > { %728 = vst.msk [vmem:[#allocation2 + $0x18] sm:$0xff] %vm724_vm1, %v711_v51  ;;  %v646_v52 = vpop.f32.mrf.mxu2 }
  0xfb   : > { %v695_v54 = vpop.f32.mrf.mxu3 }
  0xfc   : > { %v696_v55 = vadd.f32 %v695_v54, %v646_v52  ;;  %v629_v56 = vpop.f32.mrf.mxu0 }
  0xfd   : > { %v678_v58 = vpop.f32.mrf.mxu1 }
  0xfe   : > { %v719_v59 = vadd.f32 %v696_v55, %v381_v53  ;;  %v679_v60 = vadd.f32 %v678_v58, %v629_v56 }
 0x100   : > { %736 = vst.msk [vmem:[#allocation2 + $0x58] sm:$0xff] %vm724_vm1, %v719_v59  ;;  %v712_v61 = vadd.f32 %v679_v60, %v374_v57 }
 0x102   : > { %729 = vst.msk [vmem:[#allocation2 + $0x20] sm:$0xff] %vm724_vm1, %v712_v61  ;;  %v649_v62 = vpop.f32.mrf.mxu2 }
 0x103   : > { %v698_v0 = vpop.f32.mrf.mxu3 }
 0x104   : > { %v699_v1 = vadd.f32 %v698_v0, %v649_v62  ;;  %v631_v2 = vpop.f32.mrf.mxu0 }
 0x105   : > { %v680_v4 = vpop.f32.mrf.mxu1 }
 0x106   : > { %v720_v5 = vadd.f32 %v699_v1, %v382_v63  ;;  %v681_v6 = vadd.f32 %v680_v4, %v631_v2 }
 0x108   : > { %737 = vst.msk [vmem:[#allocation2 + $0x60] sm:$0xff] %vm724_vm1, %v720_v5  ;;  %v713_v7 = vadd.f32 %v681_v6, %v375_v3 }
 0x10a   : > { %730 = vst.msk [vmem:[#allocation2 + $0x28] sm:$0xff] %vm724_vm1, %v713_v7  ;;  %v651_v8 = vpop.f32.mrf.mxu2 }
 0x10b   : > { %v700_v10 = vpop.f32.mrf.mxu3 }
 0x10c   : > { %v701_v11 = vadd.f32 %v700_v10, %v651_v8  ;;  %v634_v12 = vpop.f32.mrf.mxu0 }
 0x10d   : > { %v683_v14 = vpop.f32.mrf.mxu1 }
 0x10e   : > { %v721_v15 = vadd.f32 %v701_v11, %v383_v9  ;;  %v684_v16 = vadd.f32 %v683_v14, %v634_v12 }
 0x110   : > { %738 = vst.msk [vmem:[#allocation2 + $0x68] sm:$0xff] %vm724_vm1, %v721_v15  ;;  %v714_v17 = vadd.f32 %v684_v16, %v376_v13 }
 0x112   : > { %731 = vst.msk [vmem:[#allocation2 + $0x30] sm:$0xff] %vm724_vm1, %v714_v17  ;;  %v654_v18 = vpop.f32.mrf.mxu2 }
 0x113   : > { %v703_v20 = vpop.f32.mrf.mxu3 }
 0x114   : > { %v704_v21 = vadd.f32 %v703_v20, %v654_v18  ;;  %v636_v22 = vpop.f32.mrf.mxu0 }
 0x115   : > { %v685_v24 = vpop.f32.mrf.mxu1 }
 0x116   : > { %v722_v25 = vadd.f32 %v704_v21, %v384_v19  ;;  %v686_v26 = vadd.f32 %v685_v24, %v636_v22 }
 0x118   : > { %739 = vst.msk [vmem:[#allocation2 + $0x70] sm:$0xff] %vm724_vm1, %v722_v25  ;;  %v715_v27 = vadd.f32 %v686_v26, %v377_v23 }
 0x11a   : > { %732 = vst.msk [vmem:[#allocation2 + $0x38] sm:$0xff] %vm724_vm1, %v715_v27  ;;  %v656_v28 = vpop.f32.mrf.mxu2 }
 0x11b   : > { %v705_v30 = vpop.f32.mrf.mxu3 }
 0x11c   : > { %v706_v31 = vadd.f32 %v705_v30, %v656_v28  ;;  %744 = sbr.rel (%p1081_p11) target bundleno = 313 (0x139), region = 78 }
 0x11e   : > { %v723_v32 = vadd.f32 %v706_v31, %v385_v29 }
 0x120   : > { %740 = vst.msk [vmem:[#allocation2 + $0x78] sm:$0xff] %vm724_vm1, %v723_v32 }
 0x121   : > { %v745_v33 = vld [vmem:[#allocation2] sm:$0xff]  ;;  %v746_v35 = vld [vmem:[#allocation2 + $0x8] sm:$0xff]  ;;  %v747_v36 = vld [vmem:[#allocation2 + $0x10] sm:$0xff]  ;;  %vm813_vm2 = vcmask 519168  }
 0x122   : > { %v1176_v34 = vld [vmem:[%s1476_s2] ss:$0 sm:$0xff]  ;;  %v748_v37 = vld [vmem:[#allocation2 + $0x18] sm:$0xff]  ;;  %v750_v43 = vld [vmem:[#allocation2 + $0x28] sm:$0xff] }
 0x123   : > { %v765_v38 = vadd.f32 %v1176_v34, %v745_v33  ;;  %v766_v39 = vadd.f32 %v1176_v34, %v746_v35  ;;  %v767_v40 = vadd.f32 %v1176_v34, %v747_v36  ;;  %v768_v41 = vadd.f32 %v1176_v34, %v748_v37  ;;  %v749_v42 = vld [vmem:[#allocation2 + $0x20] sm:$0xff]  ;;  %v751_v44 = vld [vmem:[#allocation2 + $0x30] sm:$0xff]  ;;  %v752_v48 = vld [vmem:[#allocation2 + $0x38] sm:$0xff] }
 0x124   : > { %v769_v45 = vadd.f32 %v1176_v34, %v749_v42  ;;  %v770_v46 = vadd.f32 %v1176_v34, %v750_v43  ;;  %v771_v47 = vadd.f32 %v1176_v34, %v751_v44  ;;  %v753_v53 = vld [vmem:[#allocation2 + $0x40] sm:$0xff]  ;;  %v772_v57 = vadd.f32 %v1176_v34, %v752_v48  ;;  %v754_v58 = vld [vmem:[#allocation2 + $0x48] sm:$0xff]  ;;  %v755_v59 = vld [vmem:[#allocation2 + $0x50] sm:$0xff] }
 0x125   : > { %v781_v49 = vmax.f32 %v765_v38, 0.0  ;;  %v782_v50 = vmax.f32 %v766_v39, 0.0  ;;  %v783_v51 = vmax.f32 %v767_v40, 0.0  ;;  %v784_v52 = vmax.f32 %v768_v41, 0.0  ;;  %v756_v60 = vld [vmem:[#allocation2 + $0x58] sm:$0xff]  ;;  %v757_v0 = vld [vmem:[#allocation2 + $0x60] sm:$0xff] }
 0x126   : > { %v785_v54 = vmax.f32 %v769_v45, 0.0  ;;  %v786_v55 = vmax.f32 %v770_v46, 0.0  ;;  %v787_v56 = vmax.f32 %v771_v47, 0.0  ;;  %v758_v1 = vld [vmem:[#allocation2 + $0x68] sm:$0xff]  ;;  %v788_v4 = vmax.f32 %v772_v57, 0.0  ;;  %v759_v5 = vld [vmem:[#allocation2 + $0x70] sm:$0xff] }
 0x127   : > { %v797_v61 = vpack.c.bf16 %v781_v49, %v781_v49  ;;  %v798_v62 = vpack.c.bf16 %v782_v50, %v782_v50  ;;  %v799_v63 = vpack.c.bf16 %v783_v51, %v783_v51  ;;  %v800_v2 = vpack.c.bf16 %v784_v52, %v784_v52  ;;  %v760_v10 = vld [vmem:[#allocation2 + $0x78] sm:$0xff] }
 0x128   : > { %v801_v3 = vpack.c.bf16 %v785_v54, %v785_v54  ;;  %v773_v6 = vadd.f32 %v1176_v34, %v753_v53  ;;  %v774_v7 = vadd.f32 %v1176_v34, %v754_v58  ;;  %v775_v8 = vadd.f32 %v1176_v34, %v755_v59 }
 0x129   : > { %814 = vst.msk [vmem:[%s1477_s3] sm:$0xf] %vm813_vm2, %v797_v61  ;;  %v776_v9 = vadd.f32 %v1176_v34, %v756_v60  ;;  %v802_v11 = vpack.c.bf16 %v786_v55, %v786_v55  ;;  %v803_v12 = vpack.c.bf16 %v787_v56, %v787_v56  ;;  %v777_v13 = vadd.f32 %v1176_v34, %v757_v0 }
 0x12a   : > { %815 = vst.msk [vmem:[%s1477_s3 + $0x4] sm:$0xf] %vm813_vm2, %v798_v62  ;;  %v778_v14 = vadd.f32 %v1176_v34, %v758_v1  ;;  %v789_v15 = vmax.f32 %v773_v6, 0.0  ;;  %v790_v16 = vmax.f32 %v774_v7, 0.0  ;;  %v791_v17 = vmax.f32 %v775_v8, 0.0 }
 0x12b   : > { %816 = vst.msk [vmem:[%s1477_s3 + $0x8] sm:$0xf] %vm813_vm2, %v799_v63  ;;  %v779_v18 = vadd.f32 %v1176_v34, %v759_v5  ;;  %v804_v19 = vpack.c.bf16 %v788_v4, %v788_v4  ;;  %v792_v20 = vmax.f32 %v776_v9, 0.0  ;;  %v780_v21 = vadd.f32 %v1176_v34, %v760_v10 }
 0x12c   : > { %817 = vst.msk [vmem:[%s1477_s3 + $0xc] sm:$0xf] %vm813_vm2, %v800_v2  ;;  %v805_v22 = vpack.c.bf16 %v789_v15, %v789_v15  ;;  %v793_v23 = vmax.f32 %v777_v13, 0.0  ;;  %v806_v24 = vpack.c.bf16 %v790_v16, %v790_v16  ;;  %v794_v25 = vmax.f32 %v778_v14, 0.0 }
 0x12d   : > { %818 = vst.msk [vmem:[%s1477_s3 + $0x10] sm:$0xf] %vm813_vm2, %v801_v3  ;;  %v807_v26 = vpack.c.bf16 %v791_v17, %v791_v17  ;;  %v795_v27 = vmax.f32 %v779_v18, 0.0  ;;  %v808_v28 = vpack.c.bf16 %v792_v20, %v792_v20  ;;  %v796_v29 = vmax.f32 %v780_v21, 0.0 }
 0x12e   : > { %819 = vst.msk [vmem:[%s1477_s3 + $0x14] sm:$0xf] %vm813_vm2, %v802_v11  ;;  %v809_v30 = vpack.c.bf16 %v793_v23, %v793_v23  ;;  %v810_v31 = vpack.c.bf16 %v794_v25, %v794_v25 }
 0x12f   : > { %820 = vst.msk [vmem:[%s1477_s3 + $0x18] sm:$0xf] %vm813_vm2, %v803_v12  ;;  %v811_v32 = vpack.c.bf16 %v795_v27, %v795_v27  ;;  %v812_v33 = vpack.c.bf16 %v796_v29, %v796_v29 }
 0x130   : > { %821 = vst.msk [vmem:[%s1477_s3 + $0x1c] sm:$0xf] %vm813_vm2, %v804_v19 }
 0x131   : > { %822 = vst.msk [vmem:[%s1477_s3 + $0x20] sm:$0xf] %vm813_vm2, %v805_v22 }
 0x132   : > { %823 = vst.msk [vmem:[%s1477_s3 + $0x24] sm:$0xf] %vm813_vm2, %v806_v24 }
 0x133   : > { %824 = vst.msk [vmem:[%s1477_s3 + $0x28] sm:$0xf] %vm813_vm2, %v807_v26 }
 0x134   : > { %825 = vst.msk [vmem:[%s1477_s3 + $0x2c] sm:$0xf] %vm813_vm2, %v808_v28 }
 0x135   : > { %826 = vst.msk [vmem:[%s1477_s3 + $0x30] sm:$0xf] %vm813_vm2, %v809_v30 }
 0x136   : > { %827 = vst.msk [vmem:[%s1477_s3 + $0x34] sm:$0xf] %vm813_vm2, %v810_v31 }
 0x137   : > { %828 = vst.msk [vmem:[%s1477_s3 + $0x38] sm:$0xf] %vm813_vm2, %v811_v32 }
 0x138   : > { %829 = vst.msk [vmem:[%s1477_s3 + $0x3c] sm:$0xf] %vm813_vm2, %v812_v33 }
 0x139 PF: > { %s13_s16 = sadd.s32 1, %s1215_s16   ;;  %s1478_s12 = smov %s1203_s13 }
 0x13a   : > { %p10_p12 = scmp.ge.s32.totalorder %s13_s16, 9   ;;  %s1479_s13 = smov %s1273_s20 }
 0x13b   : > { %s1480_s14 = smov %s1211_s15  ;;  %s1481_s15 = smov %s1483_s17 }
 0x13c   :  { %12 = sbr.rel (!%p10_p12) target bundleno = 3 (0x3), region = 119 }

// kernel: resnet3d_forward.15
= control target key start
LH: loop header
LB: loop body
LE: loop exit
PB: predicated region body
PF: predicated region fallthrough
CT: control target
= control target key end

     0   :  { %s1409_s15 = smov 0   ;;  %s1411_s16 = smov 0   ;;  %s1687_s0 = inlined_call_operand.vmem [shape: bf16[128,1792], index: 0, kind: input, shape index: {}]   ;;  %s1688_s1 = inlined_call_operand.vmem [shape: bf16[1792,64], index: 1, kind: input, shape index: {}]   ;;  %s1689_s2 = inlined_call_operand.vmem [shape: f32[1,64], index: 2, kind: input, shape index: {}]   ;;  %s1690_s3 = inlined_call_operand.vmem [shape: bf16[128,64], index: 3, kind: input, shape index: {}]   ;;  %s1691_s4 = inlined_call_operand.vmem [shape: bf16[128,64], index: 4, kind: output, shape index: {}]  }
   0x1   :  { %s1413_s17 = smov 0   ;;  %s1415_s18 = smov 0  }
   0x2   :  { %s1417_s19 = smov 0  }
   0x3 LB: > { %s26_s20 = sadd.s32 1, %s1377_s18  ;;  %p49_p1 = scmp.ne.s32.totalorder %s1369_s16, %s1365_s15  ;;  %s1381_s19 = sphi %s1417_s19, %s14_s19   ;;  %s1377_s18 = sphi %s1415_s18, %s1695_s18   ;;  %s1373_s17 = sphi %s1413_s17, %s1694_s17   ;;  %s1369_s16 = sphi %s1411_s16, %s1693_s16   ;;  %s1365_s15 = sphi %s1409_s15, %s1692_s15  }
   0x4   : > { %p27_p0 = scmp.ge.s32.totalorder %s26_s20, 7  ;;  %p50_p2 = scmp.eq.s32.totalorder %s1381_s19, 0 }
   0x5   : > { %s42_s22 = sadd.s32 1, %s1369_s16  ;;  %p1071_p5 = scmp.ge.s32.totalorder %s1381_s19, 7 }
   0x6   : > { %s1697_s20 = smov (%p27_p0, %s26_s20), 0  ;;  %p51_p3 = por %p50_p2, %p49_p1 }
   0x7   : > { %s38_s21 = ssub.s32 %s1377_s18, %s1697_s20  ;;  %203 = sbr.rel (%p1071_p5) target bundleno = 32 (0x20), region = 24 }
   0x8   : > { %p40_p4 = scmp.eq.s32.totalorder %s38_s21, 0 }
   0xa   : > { %s1444_s23 = scalar_select %p40_p4, %s1369_s16, %s42_s22  }
   0xc   : > { %206 = sbr.rel (!%p51_p3) target bundleno = 32 (0x20), region = 28  ;;  %s208_s24 = sand.u32 (%p51_p3), 1, %s1369_s16  }
   0xd   : > { %s1213_s25 = sshll.u32 (%p51_p3), %s1377_s18, 3  ;;  %s1072_s26 = sshll.u32 (%p51_p3), %s208_s24, 7 }
   0xe   : > { %s1452_s29 = scalar_lea.vmem (%p51_p3), %s1687_s0, %s1213_s25  ;;  %s210_s30 = scalar_lea.vmem (%p51_p3), [#allocation3], %s1072_s26 }
   0xf   : > { %v275_v0 = vld [vmem:[%s1452_s29] sm:$0xff] (%p51_p3)  ;;  %v277_v1 = vld [vmem:[%s1452_s29 + $0x38] sm:$0xff] (%p51_p3)  ;;  %v279_v2 = vld [vmem:[%s1452_s29 + $0x70] sm:$0xff] (%p51_p3) }
  0x10   : > { %276 = vst [vmem:[%s210_s30] sm:$0xff] (%p51_p3), %v275_v0  ;;  %v281_v3 = vld [vmem:[%s1452_s29 + $0xa8] sm:$0xff] (%p51_p3)  ;;  %v283_v4 = vld [vmem:[%s1452_s29 + $0xe0] sm:$0xff] (%p51_p3)  ;;  %v285_v5 = vld [vmem:[%s1452_s29 + $0x118] sm:$0xff] (%p51_p3) }
  0x11   : > { %278 = vst [vmem:[%s210_s30 + $0x8] sm:$0xff] %v277_v1  ;;  %v287_v6 = vld [vmem:[%s1452_s29 + $0x150] sm:$0xff]  ;;  %v289_v7 = vld [vmem:[%s1452_s29 + $0x188] sm:$0xff]  ;;  %v291_v8 = vld [vmem:[%s1452_s29 + $0x1c0] sm:$0xff] }
  0x12   : > { %280 = vst [vmem:[%s210_s30 + $0x10] sm:$0xff] %v279_v2  ;;  %v293_v9 = vld [vmem:[%s1452_s29 + $0x1f8] sm:$0xff]  ;;  %v295_v10 = vld [vmem:[%s1452_s29 + $0x230] sm:$0xff]  ;;  %v297_v11 = vld [vmem:[%s1452_s29 + $0x268] sm:$0xff] }
  0x13   : > { %282 = vst [vmem:[%s210_s30 + $0x18] sm:$0xff] %v281_v3  ;;  %v299_v12 = vld [vmem:[%s1452_s29 + $0x2a0] sm:$0xff]  ;;  %v301_v13 = vld [vmem:[%s1452_s29 + $0x2d8] sm:$0xff]  ;;  %v303_v14 = vld [vmem:[%s1452_s29 + $0x310] sm:$0xff] }
  0x14   : > { %284 = vst [vmem:[%s210_s30 + $0x20] sm:$0xff] %v283_v4  ;;  %v305_v15 = vld [vmem:[%s1452_s29 + $0x348] sm:$0xff] }
  0x15   : > { %286 = vst [vmem:[%s210_s30 + $0x28] sm:$0xff] %v285_v5 }
  0x16   : > { %288 = vst [vmem:[%s210_s30 + $0x30] sm:$0xff] %v287_v6 }
  0x17   : > { %290 = vst [vmem:[%s210_s30 + $0x38] sm:$0xff] %v289_v7 }
  0x18   : > { %292 = vst [vmem:[%s210_s30 + $0x40] sm:$0xff] %v291_v8 }
  0x19   : > { %294 = vst [vmem:[%s210_s30 + $0x48] sm:$0xff] %v293_v9 }
  0x1a   : > { %296 = vst [vmem:[%s210_s30 + $0x50] sm:$0xff] %v295_v10 }
  0x1b   : > { %298 = vst [vmem:[%s210_s30 + $0x58] sm:$0xff] %v297_v11 }
  0x1c   : > { %300 = vst [vmem:[%s210_s30 + $0x60] sm:$0xff] %v299_v12 }
  0x1d   : > { %302 = vst [vmem:[%s210_s30 + $0x68] sm:$0xff] %v301_v13 }
  0x1e   : > { %304 = vst [vmem:[%s210_s30 + $0x70] sm:$0xff] %v303_v14 }
  0x1f   : > { %306 = vst [vmem:[%s210_s30 + $0x78] sm:$0xff] %v305_v15 }
  0x20 PF: > { %p1075_p6 = scmp.ge.s32.totalorder %s1381_s19, 1  ;;  %p323_p7 = scmp.lt.s32.totalorder %s1381_s19, 8 }
  0x22   : > { %p324_p8 = pnand %p1075_p6, %p323_p7 }
  0x23   : > { %s330_s5 = sand.u32 (!%p324_p8), 1, %s1365_s15   ;;  %s1077_s6 = sshll.u32 (!%p324_p8), %s1373_s17, 5 }
  0x24   : > { %327 = sbr.rel (%p324_p8) target bundleno = 317 (0x13d), region = 70  ;;  %s1076_s7 = sshll.u32 (!%p324_p8), %s330_s5, 7 }
  0x25   : > { %p380_p9 = scmp.lt.s32.totalorder (!%p324_p8), %s1077_s6, 223  ;;  %s1479_s12 = scalar_lea.vmem (!%p324_p8), [#allocation3], %s1076_s7 }
  0x26   : > { %p1079_p10 = scmp.ne.s32.totalorder (!%p324_p8), %s1373_s17, 0 }
  0x29   : > { %s1699_s6 = smov (!%p380_p9, %s1077_s6), 223  ;;  %412 = sbr.rel (%p1079_p10) target bundleno = 63 (0x3f), region = 78 }
  0x2a   : > { %s1078_s8 = sshll.u32 %s1699_s6, 2 }
  0x2b   : > { %s1477_s11 = scalar_lea.vmem %s1688_s1, %s1078_s8 }
  0x2e   : > { %vm413_vm0 = vcmask 523264   ;;  %v1383_v16 = vmov 0.0  }
  0x2f   : > { %414 = vst.msk [vmem:[#allocation2] sm:$0xff] %vm413_vm0, %v1383_v16 }
  0x30   : > { %415 = vst.msk [vmem:[#allocation2 + $0x8] sm:$0xff] %vm413_vm0, %v1383_v16 }
  0x31   : > { %416 = vst.msk [vmem:[#allocation2 + $0x10] sm:$0xff] %vm413_vm0, %v1383_v16 }
  0x32   : > { %417 = vst.msk [vmem:[#allocation2 + $0x18] sm:$0xff] %vm413_vm0, %v1383_v16 }
  0x33   : > { %418 = vst.msk [vmem:[#allocation2 + $0x20] sm:$0xff] %vm413_vm0, %v1383_v16 }
  0x34   : > { %419 = vst.msk [vmem:[#allocation2 + $0x28] sm:$0xff] %vm413_vm0, %v1383_v16 }
  0x35   : > { %420 = vst.msk [vmem:[#allocation2 + $0x30] sm:$0xff] %vm413_vm0, %v1383_v16 }
  0x36   : > { %421 = vst.msk [vmem:[#allocation2 + $0x38] sm:$0xff] %vm413_vm0, %v1383_v16 }
  0x37   : > { %422 = vst.msk [vmem:[#allocation2 + $0x40] sm:$0xff] %vm413_vm0, %v1383_v16 }
  0x38   : > { %423 = vst.msk [vmem:[#allocation2 + $0x48] sm:$0xff] %vm413_vm0, %v1383_v16 }
  0x39   : > { %424 = vst.msk [vmem:[#allocation2 + $0x50] sm:$0xff] %vm413_vm0, %v1383_v16 }
  0x3a   : > { %425 = vst.msk [vmem:[#allocation2 + $0x58] sm:$0xff] %vm413_vm0, %v1383_v16 }
  0x3b   : > { %426 = vst.msk [vmem:[#allocation2 + $0x60] sm:$0xff] %vm413_vm0, %v1383_v16 }
  0x3c   : > { %427 = vst.msk [vmem:[#allocation2 + $0x68] sm:$0xff] %vm413_vm0, %v1383_v16 }
  0x3d   : > { %428 = vst.msk [vmem:[#allocation2 + $0x70] sm:$0xff] %vm413_vm0, %v1383_v16 }
  0x3e   : > { %429 = vst.msk [vmem:[#allocation2 + $0x78] sm:$0xff] %vm413_vm0, %v1383_v16 }
  0x3f PF: > { %v1237_v17 = vld [vmem:[%s1477_s11 + $0x38] sm:$0xff]  ;;  %v1236_v19 = vld [vmem:[%s1477_s11 + $0x30] sm:$0xff]  ;;  %v1235_v21 = vld [vmem:[%s1477_s11 + $0x28] sm:$0xff]  ;;  %vm784_vm1 = vcmask 523264   ;;  %p1208_p11 = scmp.ne.s32.totalorder %s1373_s17, 6 }
  0x40   : > { %v1245_v18 = vld [vmem:[%s1477_s11 + $0x78] sm:$0xff]  ;;  %670 = vmatpush.bf16.msra.mxu0 %v1237_v17  ;;  %1285 = vmatpush.bf16.msra.mxu2 %v1237_v17  ;;  %v1244_v20 = vld [vmem:[%s1477_s11 + $0x70] sm:$0xff]  ;;  %v1243_v22 = vld [vmem:[%s1477_s11 + $0x68] sm:$0xff] }
  0x41   : > { %719 = vmatpush.bf16.msra.mxu1 %v1245_v18  ;;  %1293 = vmatpush.bf16.msra.mxu3 %v1245_v18  ;;  %v1234_v23 = vld [vmem:[%s1477_s11 + $0x20] sm:$0xff]  ;;  %v1233_v25 = vld [vmem:[%s1477_s11 + $0x18] sm:$0xff]  ;;  %v1232_v27 = vld [vmem:[%s1477_s11 + $0x10] sm:$0xff] }
  0x42   : > { %v1242_v24 = vld [vmem:[%s1477_s11 + $0x60] sm:$0xff]  ;;  %v1241_v26 = vld [vmem:[%s1477_s11 + $0x58] sm:$0xff]  ;;  %v1240_v28 = vld [vmem:[%s1477_s11 + $0x50] sm:$0xff] }
  0x43   : > { %v1231_v29 = vld [vmem:[%s1477_s11 + $0x8] sm:$0xff]  ;;  %v1230_v31 = vld [vmem:[%s1477_s11] sm:$0xff]  ;;  %v1090_v45 = vld [vmem:[%s1479_s12 + $0x10] sm:$0xf] }
  0x44   : > { %671 = vmatpush.bf16.msra.mxu0 %v1236_v19  ;;  %1286 = vmatpush.bf16.msra.mxu2 %v1236_v19  ;;  %v1239_v30 = vld [vmem:[%s1477_s11 + $0x48] sm:$0xff]  ;;  %v1238_v32 = vld [vmem:[%s1477_s11 + $0x40] sm:$0xff]  ;;  %v1217_v46 = vld [vmem:[%s1479_s12 + $0x14] sm:$0xf0] }
  0x45   : > { %720 = vmatpush.bf16.msra.mxu1 %v1244_v20  ;;  %1294 = vmatpush.bf16.msra.mxu3 %v1244_v20  ;;  %v1082_v33 = vld [vmem:[%s1479_s12] sm:$0xf]  ;;  %v1215_v34 = vld [vmem:[%s1479_s12 + $0x4] sm:$0xf0]  ;;  %v1214_v37 = vld [vmem:[%s1479_s12 + $0x4] sm:$0xf]  ;;  %v1091_v53 = vor.u32 %v1217_v46, %v1090_v45 }
  0x46   : > { %v1114_v35 = vld [vmem:[%s1479_s12 + $0x40] sm:$0xf]  ;;  %v1223_v36 = vld [vmem:[%s1479_s12 + $0x44] sm:$0xf0]  ;;  %v1084_v38 = vld [vmem:[%s1479_s12 + $0x8] sm:$0xf0]  ;;  %v1083_v41 = vor.u32 %v1215_v34, %v1082_v33 }
  0x47   : > { %v1222_v39 = vld [vmem:[%s1479_s12 + $0x44] sm:$0xf]  ;;  %v1116_v40 = vld [vmem:[%s1479_s12 + $0x48] sm:$0xf0]  ;;  %v1115_v42 = vor.u32 %v1223_v36, %v1114_v35  ;;  %v1087_v43 = vor.u32 %v1214_v37, %v1084_v38  ;;  %v1122_v47 = vld [vmem:[%s1479_s12 + $0x50] sm:$0xf] }
  0x48   : > { %672 = vmatpush.bf16.msra.mxu0 %v1235_v21  ;;  %1287 = vmatpush.bf16.msra.mxu2 %v1235_v21  ;;  %v1119_v44 = vor.u32 %v1222_v39, %v1116_v40  ;;  %v1225_v48 = vld [vmem:[%s1479_s12 + $0x54] sm:$0xf0]  ;;  %v1216_v49 = vld [vmem:[%s1479_s12 + $0x14] sm:$0xf]  ;;  %v1092_v50 = vld [vmem:[%s1479_s12 + $0x18] sm:$0xf0] }
  0x49   : > { %721 = vmatpush.bf16.msra.mxu1 %v1243_v22  ;;  %1295 = vmatpush.bf16.msra.mxu3 %v1243_v22  ;;  %v1224_v51 = vld [vmem:[%s1479_s12 + $0x54] sm:$0xf]  ;;  %v1124_v52 = vld [vmem:[%s1479_s12 + $0x58] sm:$0xf0]  ;;  %v1123_v54 = vor.u32 %v1225_v48, %v1122_v47  ;;  %v1095_v55 = vor.u32 %v1216_v49, %v1092_v50  ;;  %v1098_v57 = vld [vmem:[%s1479_s12 + $0x20] sm:$0xf] }
  0x4a   : > { %v1127_v56 = vor.u32 %v1224_v51, %v1124_v52  ;;  %v1219_v58 = vld [vmem:[%s1479_s12 + $0x24] sm:$0xf0]  ;;  %v1130_v59 = vld [vmem:[%s1479_s12 + $0x60] sm:$0xf]  ;;  %v1218_v61 = vld [vmem:[%s1479_s12 + $0x24] sm:$0xf] }
  0x4b   : > { %v1227_v60 = vld [vmem:[%s1479_s12 + $0x64] sm:$0xf0]  ;;  %v1100_v62 = vld [vmem:[%s1479_s12 + $0x28] sm:$0xf0]  ;;  %v1226_v63 = vld [vmem:[%s1479_s12 + $0x64] sm:$0xf]  ;;  %v1099_v1 = vor.u32 %v1219_v58, %v1098_v57 }
  0x4c   : > { %673 = vmatpush.bf16.msra.mxu0 %v1234_v23  ;;  %1288 = vmatpush.bf16.msra.mxu2 %v1234_v23  ;;  %v1132_v0 = vld [vmem:[%s1479_s12 + $0x68] sm:$0xf0]  ;;  %v1131_v2 = vor.u32 %v1227_v60, %v1130_v59  ;;  %v1103_v3 = vor.u32 %v1218_v61, %v1100_v62  ;;  %v1106_v5 = vld [vmem:[%s1479_s12 + $0x30] sm:$0xf]  ;;  %v1221_v6 = vld [vmem:[%s1479_s12 + $0x34] sm:$0xf0] }
  0x4d   : > { %722 = vmatpush.bf16.msra.mxu1 %v1242_v24  ;;  %1296 = vmatpush.bf16.msra.mxu3 %v1242_v24  ;;  %v1135_v4 = vor.u32 %v1226_v63, %v1132_v0  ;;  %v1138_v7 = vld [vmem:[%s1479_s12 + $0x70] sm:$0xf]  ;;  %v1229_v8 = vld [vmem:[%s1479_s12 + $0x74] sm:$0xf0]  ;;  %v1220_v9 = vld [vmem:[%s1479_s12 + $0x34] sm:$0xf]  ;;  %v1107_v13 = vor.u32 %v1221_v6, %v1106_v5 }
  0x4e   : > { %v1108_v10 = vld [vmem:[%s1479_s12 + $0x38] sm:$0xf0]  ;;  %v1228_v11 = vld [vmem:[%s1479_s12 + $0x74] sm:$0xf]  ;;  %v1139_v14 = vor.u32 %v1229_v8, %v1138_v7  ;;  %v430_v18 = vld [vmem:[#allocation2] sm:$0xff] }
  0x4f   : > { %v1140_v12 = vld [vmem:[%s1479_s12 + $0x78] sm:$0xf0]  ;;  %v1111_v15 = vor.u32 %v1220_v9, %v1108_v10  ;;  %v438_v23 = vld [vmem:[#allocation2 + $0x40] sm:$0xff]  ;;  %v439_v33 = vld [vmem:[#allocation2 + $0x48] sm:$0xff] }
  0x50   : > { %674 = vmatpush.bf16.msra.mxu0 %v1233_v25  ;;  %1289 = vmatpush.bf16.msra.mxu2 %v1233_v25  ;;  %v1143_v16 = vor.u32 %v1228_v11, %v1140_v12  ;;  %v432_v37 = vld [vmem:[#allocation2 + $0x10] sm:$0xff]  ;;  %v433_v47 = vld [vmem:[#allocation2 + $0x18] sm:$0xff]  ;;  %v434_v57 = vld [vmem:[#allocation2 + $0x20] sm:$0xff] }
  0x51   : > { %723 = vmatpush.bf16.msra.mxu1 %v1241_v26  ;;  %1297 = vmatpush.bf16.msra.mxu3 %v1241_v26  ;;  %v442_v63 = vld [vmem:[#allocation2 + $0x60] sm:$0xff]  ;;  %v443_v9 = vld [vmem:[#allocation2 + $0x68] sm:$0xff] }
  0x54   : > { %675 = vmatpush.bf16.msra.mxu0 %v1232_v27  ;;  %1290 = vmatpush.bf16.msra.mxu2 %v1232_v27  ;;  %v431_v27 = vld [vmem:[#allocation2 + $0x8] sm:$0xff] }
  0x55   : > { %724 = vmatpush.bf16.msra.mxu1 %v1240_v28  ;;  %1298 = vmatpush.bf16.msra.mxu3 %v1240_v28 }
  0x58   : > { %676 = vmatpush.bf16.msra.mxu0 %v1231_v29  ;;  %1291 = vmatpush.bf16.msra.mxu2 %v1231_v29 }
  0x59   : > { %725 = vmatpush.bf16.msra.mxu1 %v1239_v30  ;;  %1299 = vmatpush.bf16.msra.mxu3 %v1239_v30 }
  0x5c   : > { %677 = vmatpush.bf16.msra.mxu0 %v1230_v31  ;;  %1292 = vmatpush.bf16.msra.mxu2 %v1230_v31 }
  0x5d   : > { %726 = vmatpush.bf16.msra.mxu1 %v1238_v32  ;;  %1300 = vmatpush.bf16.msra.mxu3 %v1238_v32 }
  0x5f   : > { %678 = vmatmul.bf16.vlgmr.msra.gmra.mxu0 %v1083_v41  ;;  %698 = vmatmul.bf16.vlgmr.msra.gmra.mxu2 %v1115_v42 }
  0x60   : > { %727 = vmatmul.bf16.vlgmr.msra.gmra.mxu1 %v1087_v43  ;;  %747 = vmatmul.bf16.vlgmr.msra.gmra.mxu3 %v1119_v44  ;;  %v440_v43 = vld [vmem:[#allocation2 + $0x50] sm:$0xff] }
  0x6f   : > { %683 = vmatmul.bf16.gmra.mxu0 %v1091_v53  ;;  %703 = vmatmul.bf16.gmra.mxu2 %v1123_v54  ;;  %v441_v53 = vld [vmem:[#allocation2 + $0x58] sm:$0xff] }
  0x70   : > { %732 = vmatmul.bf16.gmra.mxu1 %v1095_v55  ;;  %752 = vmatmul.bf16.gmra.mxu3 %v1127_v56 }
  0x7f   : > { %688 = vmatmul.bf16.gmra.mxu0 %v1099_v1  ;;  %708 = vmatmul.bf16.gmra.mxu2 %v1131_v2 }
  0x80   : > { %737 = vmatmul.bf16.gmra.mxu1 %v1103_v3  ;;  %757 = vmatmul.bf16.gmra.mxu3 %v1135_v4  ;;  %v435_v3 = vld [vmem:[#allocation2 + $0x28] sm:$0xff] }
  0x8f   : > { %693 = vmatmul.bf16.gmra.mxu0 %v1107_v13  ;;  %713 = vmatmul.bf16.gmra.mxu2 %v1139_v14  ;;  %v436_v13 = vld [vmem:[#allocation2 + $0x30] sm:$0xff] }
  0x90   : > { %742 = vmatmul.bf16.gmra.mxu1 %v1111_v15  ;;  %762 = vmatmul.bf16.gmra.mxu3 %v1143_v16 }
  0xdc   : > { %v679_v17 = vpop.f32.mrf.mxu0 }
  0xdd   : > { %v728_v19 = vpop.f32.mrf.mxu1 }
  0xde   : > { %v729_v20 = vadd.f32 %v728_v19, %v679_v17  ;;  %v444_v19 = vld [vmem:[#allocation2 + $0x70] sm:$0xff] }
  0xe0   : > { %v768_v21 = vadd.f32 %v729_v20, %v430_v18 }
  0xe2   : > { %785 = vst.msk [vmem:[#allocation2] sm:$0xff] %vm784_vm1, %v768_v21  ;;  %v699_v22 = vpop.f32.mrf.mxu2 }
  0xe3   : > { %v748_v24 = vpop.f32.mrf.mxu3 }
  0xe4   : > { %v749_v25 = vadd.f32 %v748_v24, %v699_v22  ;;  %v681_v26 = vpop.f32.mrf.mxu0 }
  0xe5   : > { %v730_v28 = vpop.f32.mrf.mxu1 }
  0xe6   : > { %v776_v29 = vadd.f32 %v749_v25, %v438_v23  ;;  %v731_v30 = vadd.f32 %v730_v28, %v681_v26  ;;  %v437_v23 = vld [vmem:[#allocation2 + $0x38] sm:$0xff] }
  0xe8   : > { %793 = vst.msk [vmem:[#allocation2 + $0x40] sm:$0xff] %vm784_vm1, %v776_v29  ;;  %v769_v31 = vadd.f32 %v731_v30, %v431_v27  ;;  %v445_v29 = vld [vmem:[#allocation2 + $0x78] sm:$0xff] }
  0xea   : > { %786 = vst.msk [vmem:[#allocation2 + $0x8] sm:$0xff] %vm784_vm1, %v769_v31  ;;  %v701_v32 = vpop.f32.mrf.mxu2 }
  0xeb   : > { %v750_v34 = vpop.f32.mrf.mxu3 }
  0xec   : > { %v751_v35 = vadd.f32 %v750_v34, %v701_v32  ;;  %v684_v36 = vpop.f32.mrf.mxu0 }
  0xed   : > { %v733_v38 = vpop.f32.mrf.mxu1 }
  0xee   : > { %v777_v39 = vadd.f32 %v751_v35, %v439_v33  ;;  %v734_v40 = vadd.f32 %v733_v38, %v684_v36 }
  0xf0   : > { %794 = vst.msk [vmem:[#allocation2 + $0x48] sm:$0xff] %vm784_vm1, %v777_v39  ;;  %v770_v41 = vadd.f32 %v734_v40, %v432_v37 }
  0xf2   : > { %787 = vst.msk [vmem:[#allocation2 + $0x10] sm:$0xff] %vm784_vm1, %v770_v41  ;;  %v704_v42 = vpop.f32.mrf.mxu2 }
  0xf3   : > { %v753_v44 = vpop.f32.mrf.mxu3 }
  0xf4   : > { %v754_v45 = vadd.f32 %v753_v44, %v704_v42  ;;  %v686_v46 = vpop.f32.mrf.mxu0 }
  0xf5   : > { %v735_v48 = vpop.f32.mrf.mxu1 }
  0xf6   : > { %v778_v49 = vadd.f32 %v754_v45, %v440_v43  ;;  %v736_v50 = vadd.f32 %v735_v48, %v686_v46 }
  0xf8   : > { %795 = vst.msk [vmem:[#allocation2 + $0x50] sm:$0xff] %vm784_vm1, %v778_v49  ;;  %v771_v51 = vadd.f32 %v736_v50, %v433_v47 }
  0xfa   : > { %788 = vst.msk [vmem:[#allocation2 + $0x18] sm:$0xff] %vm784_vm1, %v771_v51  ;;  %v706_v52 = vpop.f32.mrf.mxu2 }
  0xfb   : > { %v755_v54 = vpop.f32.mrf.mxu3 }
  0xfc   : > { %v756_v55 = vadd.f32 %v755_v54, %v706_v52  ;;  %v689_v56 = vpop.f32.mrf.mxu0 }
  0xfd   : > { %v738_v58 = vpop.f32.mrf.mxu1 }
  0xfe   : > { %v779_v59 = vadd.f32 %v756_v55, %v441_v53  ;;  %v739_v60 = vadd.f32 %v738_v58, %v689_v56 }
 0x100   : > { %796 = vst.msk [vmem:[#allocation2 + $0x58] sm:$0xff] %vm784_vm1, %v779_v59  ;;  %v772_v61 = vadd.f32 %v739_v60, %v434_v57 }
 0x102   : > { %789 = vst.msk [vmem:[#allocation2 + $0x20] sm:$0xff] %vm784_vm1, %v772_v61  ;;  %v709_v62 = vpop.f32.mrf.mxu2 }
 0x103   : > { %v758_v0 = vpop.f32.mrf.mxu3 }
 0x104   : > { %v759_v1 = vadd.f32 %v758_v0, %v709_v62  ;;  %v691_v2 = vpop.f32.mrf.mxu0 }
 0x105   : > { %v740_v4 = vpop.f32.mrf.mxu1 }
 0x106   : > { %v780_v5 = vadd.f32 %v759_v1, %v442_v63  ;;  %v741_v6 = vadd.f32 %v740_v4, %v691_v2 }
 0x108   : > { %797 = vst.msk [vmem:[#allocation2 + $0x60] sm:$0xff] %vm784_vm1, %v780_v5  ;;  %v773_v7 = vadd.f32 %v741_v6, %v435_v3 }
 0x10a   : > { %790 = vst.msk [vmem:[#allocation2 + $0x28] sm:$0xff] %vm784_vm1, %v773_v7  ;;  %v711_v8 = vpop.f32.mrf.mxu2 }
 0x10b   : > { %v760_v10 = vpop.f32.mrf.mxu3 }
 0x10c   : > { %v761_v11 = vadd.f32 %v760_v10, %v711_v8  ;;  %v694_v12 = vpop.f32.mrf.mxu0 }
 0x10d   : > { %v743_v14 = vpop.f32.mrf.mxu1 }
 0x10e   : > { %v781_v15 = vadd.f32 %v761_v11, %v443_v9  ;;  %v744_v16 = vadd.f32 %v743_v14, %v694_v12 }
 0x110   : > { %798 = vst.msk [vmem:[#allocation2 + $0x68] sm:$0xff] %vm784_vm1, %v781_v15  ;;  %v774_v17 = vadd.f32 %v744_v16, %v436_v13 }
 0x112   : > { %791 = vst.msk [vmem:[#allocation2 + $0x30] sm:$0xff] %vm784_vm1, %v774_v17  ;;  %v714_v18 = vpop.f32.mrf.mxu2 }
 0x113   : > { %v763_v20 = vpop.f32.mrf.mxu3 }
 0x114   : > { %v764_v21 = vadd.f32 %v763_v20, %v714_v18  ;;  %v696_v22 = vpop.f32.mrf.mxu0 }
 0x115   : > { %v745_v24 = vpop.f32.mrf.mxu1 }
 0x116   : > { %v782_v25 = vadd.f32 %v764_v21, %v444_v19  ;;  %v746_v26 = vadd.f32 %v745_v24, %v696_v22 }
 0x118   : > { %799 = vst.msk [vmem:[#allocation2 + $0x70] sm:$0xff] %vm784_vm1, %v782_v25  ;;  %v775_v27 = vadd.f32 %v746_v26, %v437_v23 }
 0x11a   : > { %792 = vst.msk [vmem:[#allocation2 + $0x38] sm:$0xff] %vm784_vm1, %v775_v27  ;;  %v716_v28 = vpop.f32.mrf.mxu2 }
 0x11b   : > { %v765_v30 = vpop.f32.mrf.mxu3 }
 0x11c   : > { %v766_v31 = vadd.f32 %v765_v30, %v716_v28  ;;  %804 = sbr.rel (%p1208_p11) target bundleno = 317 (0x13d), region = 82 }
 0x11e   : > { %v783_v32 = vadd.f32 %v766_v31, %v445_v29 }
 0x120   : > { %800 = vst.msk [vmem:[#allocation2 + $0x78] sm:$0xff] %vm784_vm1, %v783_v32 }
 0x121   : > { %v805_v33 = vld [vmem:[#allocation2] sm:$0xff]  ;;  %vm921_vm2 = vcmask 519168   ;;  %v806_v36 = vld [vmem:[#allocation2 + $0x8] sm:$0xff]  ;;  %v807_v37 = vld [vmem:[#allocation2 + $0x10] sm:$0xff] }
 0x122   : > { %v1566_v34 = vld [vmem:[%s1689_s2] ss:$0 sm:$0xff]  ;;  %v1278_v42 = vld [vmem:[%s1690_s3 + $0x8] sm:$0xff]   ;;  %v808_v43 = vld [vmem:[#allocation2 + $0x18] sm:$0xff] }
 0x123   : > { %v1247_v35 = vld [vmem:[%s1690_s3] sm:$0xff]   ;;  %v825_v38 = vadd.f32 %v1566_v34, %v805_v33  ;;  %v826_v40 = vadd.f32 %v1566_v34, %v806_v36  ;;  %v827_v45 = vadd.f32 %v1566_v34, %v807_v37  ;;  %v1252_v46 = vunpack.c.l.bf16 %v1278_v42  ;;  %v1279_v49 = vld [vmem:[%s1690_s3 + $0x10] sm:$0xff]   ;;  %v810_v50 = vld [vmem:[#allocation2 + $0x28] sm:$0xff] }
 0x124   : > { %v1248_v39 = vunpack.c.l.bf16 %v1247_v35  ;;  %v1249_v41 = vunpack.c.h.bf16 %v1247_v35  ;;  %v809_v44 = vld [vmem:[#allocation2 + $0x20] sm:$0xff]  ;;  %v828_v47 = vadd.f32 %v1566_v34, %v808_v43  ;;  %v1253_v48 = vunpack.c.h.bf16 %v1278_v42  ;;  %v811_v51 = vld [vmem:[#allocation2 + $0x30] sm:$0xff]  ;;  %v1280_v56 = vld [vmem:[%s1690_s3 + $0x18] sm:$0xff]  }
 0x125   : > { %v829_v54 = vadd.f32 %v1566_v34, %v809_v44  ;;  %v1256_v55 = vunpack.c.l.bf16 %v1279_v49  ;;  %v875_v57 = vadd.f32 %v1252_v46, %v827_v45  ;;  %v830_v59 = vadd.f32 %v1566_v34, %v810_v50  ;;  %v812_v61 = vld [vmem:[#allocation2 + $0x38] sm:$0xff]  ;;  %v813_v6 = vld [vmem:[#allocation2 + $0x40] sm:$0xff]  ;;  %v814_v12 = vld [vmem:[#allocation2 + $0x48] sm:$0xff] }
 0x126   : > { %v873_v52 = vadd.f32 %v1248_v39, %v825_v38  ;;  %v874_v53 = vadd.f32 %v1249_v41, %v826_v40  ;;  %v876_v58 = vadd.f32 %v1253_v48, %v828_v47  ;;  %v1257_v60 = vunpack.c.h.bf16 %v1279_v49  ;;  %v1281_v7 = vld [vmem:[%s1690_s3 + $0x20] sm:$0xff]   ;;  %v815_v17 = vld [vmem:[#allocation2 + $0x50] sm:$0xff]  ;;  %v1282_v18 = vld [vmem:[%s1690_s3 + $0x28] sm:$0xff]  }
 0x127   : > { %v877_v0 = vadd.f32 %v1256_v55, %v829_v54  ;;  %v831_v1 = vadd.f32 %v1566_v34, %v811_v51  ;;  %v891_v2 = vmax.f32 %v875_v57, 0.0  ;;  %v1260_v5 = vunpack.c.l.bf16 %v1280_v56  ;;  %v816_v23 = vld [vmem:[#allocation2 + $0x58] sm:$0xff]  ;;  %v817_v28 = vld [vmem:[#allocation2 + $0x60] sm:$0xff]  ;;  %v1283_v33 = vld [vmem:[%s1690_s3 + $0x30] sm:$0xff]  }
 0x128   : > { %v889_v62 = vmax.f32 %v873_v52, 0.0  ;;  %v890_v63 = vmax.f32 %v874_v53, 0.0  ;;  %v892_v3 = vmax.f32 %v876_v58, 0.0  ;;  %v878_v4 = vadd.f32 %v1257_v60, %v830_v59  ;;  %v818_v35 = vld [vmem:[#allocation2 + $0x68] sm:$0xff]  ;;  %v819_v44 = vld [vmem:[#allocation2 + $0x70] sm:$0xff]  ;;  %v1284_v49 = vld [vmem:[%s1690_s3 + $0x38] sm:$0xff]  }
 0x129   : > { %v893_v10 = vmax.f32 %v877_v0, 0.0  ;;  %v832_v11 = vadd.f32 %v1566_v34, %v812_v61  ;;  %v907_v13 = vpack.c.bf16 %v891_v2, %v891_v2  ;;  %v879_v16 = vadd.f32 %v1260_v5, %v831_v1  ;;  %v820_v50 = vld [vmem:[#allocation2 + $0x78] sm:$0xff] }
 0x12a   : > { %v905_v8 = vpack.c.bf16 %v889_v62, %v889_v62  ;;  %v906_v9 = vpack.c.bf16 %v890_v63, %v890_v63  ;;  %v908_v14 = vpack.c.bf16 %v892_v3, %v892_v3  ;;  %v894_v15 = vmax.f32 %v878_v4, 0.0 }
 0x12b   : > { %v909_v19 = vpack.c.bf16 %v893_v10, %v893_v10  ;;  %v1261_v20 = vunpack.c.h.bf16 %v1280_v56  ;;  %v833_v21 = vadd.f32 %v1566_v34, %v813_v6  ;;  %v1264_v22 = vunpack.c.l.bf16 %v1281_v7  ;;  %924 = vst.msk [vmem:[%s1691_s4 + $0x8] sm:$0xf] %vm921_vm2, %v907_v13 }
 0x12c   : > { %922 = vst.msk [vmem:[%s1691_s4] sm:$0xf] %vm921_vm2, %v905_v8  ;;  %v910_v24 = vpack.c.bf16 %v894_v15, %v894_v15  ;;  %v895_v25 = vmax.f32 %v879_v16, 0.0  ;;  %v834_v26 = vadd.f32 %v1566_v34, %v814_v12  ;;  %v1265_v27 = vunpack.c.h.bf16 %v1281_v7 }
 0x12d   : > { %923 = vst.msk [vmem:[%s1691_s4 + $0x4] sm:$0xf] %vm921_vm2, %v906_v9  ;;  %v880_v29 = vadd.f32 %v1261_v20, %v832_v11  ;;  %v881_v30 = vadd.f32 %v1264_v22, %v833_v21  ;;  %v835_v31 = vadd.f32 %v1566_v34, %v815_v17  ;;  %v1268_v32 = vunpack.c.l.bf16 %v1282_v18 }
 0x12e   : > { %925 = vst.msk [vmem:[%s1691_s4 + $0xc] sm:$0xf] %vm921_vm2, %v908_v14  ;;  %v911_v36 = vpack.c.bf16 %v895_v25, %v895_v25  ;;  %v882_v37 = vadd.f32 %v1265_v27, %v834_v26  ;;  %v836_v38 = vadd.f32 %v1566_v34, %v816_v23  ;;  %v1269_v39 = vunpack.c.h.bf16 %v1282_v18 }
 0x12f   : > { %926 = vst.msk [vmem:[%s1691_s4 + $0x10] sm:$0xf] %vm921_vm2, %v909_v19  ;;  %v896_v40 = vmax.f32 %v880_v29, 0.0  ;;  %v897_v41 = vmax.f32 %v881_v30, 0.0  ;;  %v883_v42 = vadd.f32 %v1268_v32, %v835_v31  ;;  %v837_v43 = vadd.f32 %v1566_v34, %v817_v28 }
 0x130   : > { %927 = vst.msk [vmem:[%s1691_s4 + $0x14] sm:$0xf] %vm921_vm2, %v910_v24  ;;  %v898_v45 = vmax.f32 %v882_v37, 0.0  ;;  %v884_v46 = vadd.f32 %v1269_v39, %v836_v38  ;;  %v1272_v47 = vunpack.c.l.bf16 %v1283_v33  ;;  %v838_v48 = vadd.f32 %v1566_v34, %v818_v35 }
 0x131   : > { %928 = vst.msk [vmem:[%s1691_s4 + $0x18] sm:$0xf] %vm921_vm2, %v911_v36  ;;  %v912_v51 = vpack.c.bf16 %v896_v40, %v896_v40  ;;  %v913_v52 = vpack.c.bf16 %v897_v41, %v897_v41  ;;  %v899_v53 = vmax.f32 %v883_v42, 0.0  ;;  %v1273_v54 = vunpack.c.h.bf16 %v1283_v33 }
 0x132   : > { %v914_v55 = vpack.c.bf16 %v898_v45, %v898_v45  ;;  %v900_v56 = vmax.f32 %v884_v46, 0.0  ;;  %v885_v57 = vadd.f32 %v1272_v47, %v837_v43  ;;  %v839_v58 = vadd.f32 %v1566_v34, %v819_v44 }
 0x133   : > { %929 = vst.msk [vmem:[%s1691_s4 + $0x1c] sm:$0xf] %vm921_vm2, %v912_v51  ;;  %v915_v59 = vpack.c.bf16 %v899_v53, %v899_v53  ;;  %v886_v60 = vadd.f32 %v1273_v54, %v838_v48  ;;  %v1276_v61 = vunpack.c.l.bf16 %v1284_v49  ;;  %v840_v62 = vadd.f32 %v1566_v34, %v820_v50 }
 0x134   : > { %930 = vst.msk [vmem:[%s1691_s4 + $0x20] sm:$0xf] %vm921_vm2, %v913_v52  ;;  %v916_v63 = vpack.c.bf16 %v900_v56, %v900_v56  ;;  %v901_v0 = vmax.f32 %v885_v57, 0.0  ;;  %v1277_v1 = vunpack.c.h.bf16 %v1284_v49 }
 0x135   : > { %931 = vst.msk [vmem:[%s1691_s4 + $0x24] sm:$0xf] %vm921_vm2, %v914_v55  ;;  %v902_v2 = vmax.f32 %v886_v60, 0.0  ;;  %v887_v3 = vadd.f32 %v1276_v61, %v839_v58 }
 0x136   : > { %932 = vst.msk [vmem:[%s1691_s4 + $0x28] sm:$0xf] %vm921_vm2, %v915_v59  ;;  %v917_v34 = vpack.c.bf16 %v901_v0, %v901_v0  ;;  %v888_v4 = vadd.f32 %v1277_v1, %v840_v62 }
 0x137   : > { %933 = vst.msk [vmem:[%s1691_s4 + $0x2c] sm:$0xf] %vm921_vm2, %v916_v63  ;;  %v918_v5 = vpack.c.bf16 %v902_v2, %v902_v2  ;;  %v903_v6 = vmax.f32 %v887_v3, 0.0 }
 0x138   : > { %934 = vst.msk [vmem:[%s1691_s4 + $0x30] sm:$0xf] %vm921_vm2, %v917_v34  ;;  %v904_v7 = vmax.f32 %v888_v4, 0.0 }
 0x139   : > { %935 = vst.msk [vmem:[%s1691_s4 + $0x34] sm:$0xf] %vm921_vm2, %v918_v5  ;;  %v919_v8 = vpack.c.bf16 %v903_v6, %v903_v6 }
 0x13a   : > { %v920_v9 = vpack.c.bf16 %v904_v7, %v904_v7 }
 0x13b   : > { %936 = vst.msk [vmem:[%s1691_s4 + $0x38] sm:$0xf] %vm921_vm2, %v919_v8 }
 0x13c   : > { %937 = vst.msk [vmem:[%s1691_s4 + $0x3c] sm:$0xf] %vm921_vm2, %v920_v9 }
 0x13d PF: > { %s14_s19 = sadd.s32 1, %s1381_s19   ;;  %s1692_s15 = smov %s1369_s16 }
 0x13e   : > { %p11_p12 = scmp.ge.s32.totalorder %s14_s19, 9   ;;  %s1693_s16 = smov %s1444_s23 }
 0x13f   : > { %s1694_s17 = smov %s1377_s18  ;;  %s1695_s18 = smov %s1697_s20 }
 0x140   :  { %13 = sbr.rel (!%p11_p12) target bundleno = 3 (0x3), region = 126 }

// kernel: resnet3d_forward.16
= control target key start
LH: loop header
LB: loop body
LE: loop exit
PB: predicated region body
PF: predicated region fallthrough
CT: control target
= control target key end

     0   :  { %s818_s12 = smov 0   ;;  %s820_s13 = smov 0   ;;  %s915_s0 = inlined_call_operand.vmem [shape: bf16[16,1792], index: 0, kind: input, shape index: {}]   ;;  %s916_s1 = inlined_call_operand.vmem [shape: bf16[1792,128], index: 1, kind: input, shape index: {}]   ;;  %s917_s2 = inlined_call_operand.vmem [shape: f32[1,128], index: 2, kind: input, shape index: {}]   ;;  %s918_s3 = inlined_call_operand.vmem [shape: bf16[16,128], index: 3, kind: output, shape index: {}]  }
   0x1   :  { %s822_s14 = smov 0   ;;  %s824_s15 = smov 0  }
   0x2   :  { %s826_s16 = smov 0  }
   0x3 LB: > { %s25_s17 = sadd.s32 1, %s791_s15  ;;  %p48_p1 = scmp.ne.s32.totalorder %s783_s13, %s779_s12  ;;  %s795_s16 = sphi %s826_s16, %s13_s16   ;;  %s791_s15 = sphi %s824_s15, %s922_s15   ;;  %s787_s14 = sphi %s822_s14, %s921_s14   ;;  %s783_s13 = sphi %s820_s13, %s920_s13   ;;  %s779_s12 = sphi %s818_s12, %s919_s12  }
   0x4   : > { %p26_p0 = scmp.ge.s32.totalorder %s25_s17, 7  ;;  %p49_p2 = scmp.eq.s32.totalorder %s795_s16, 0 }
   0x5   : > { %s41_s19 = sadd.s32 1, %s783_s13  ;;  %p605_p5 = scmp.ge.s32.totalorder %s795_s16, 7 }
   0x6   : > { %s924_s17 = smov (%p26_p0, %s25_s17), 0  ;;  %p50_p3 = por %p49_p2, %p48_p1 }
   0x7   : > { %s37_s18 = ssub.s32 %s791_s15, %s924_s17  ;;  %162 = sbr.rel (%p605_p5) target bundleno = 18 (0x12), region = 20 }
   0x8   : > { %p39_p4 = scmp.eq.s32.totalorder %s37_s18, 0 }
   0xa   : > { %s853_s20 = scalar_select %p39_p4, %s783_s13, %s41_s19  }
   0xc   : > { %165 = sbr.rel (!%p50_p3) target bundleno = 18 (0x12), region = 24  ;;  %s167_s21 = sand.u32 (%p50_p3), 1, %s783_s13  }
   0xd   : > { %s691_s22 = sshll.u32 (%p50_p3), %s791_s15, 3  ;;  %s606_s23 = sshll.u32 (%p50_p3), %s167_s21, 4 }
   0xe   : > { %s175_s26 = scalar_lea.vmem (%p50_p3), %s915_s0, %s691_s22  ;;  %s169_s27 = scalar_lea.vmem (%p50_p3), [#allocation3], %s606_s23 }
   0xf   : > { %v206_v0 = vld [vmem:[%s175_s26] sm:$0xff] (%p50_p3)  ;;  %v208_v1 = vld [vmem:[%s175_s26 + $0x38] sm:$0xff] (%p50_p3) }
  0x10   : > { %207 = vst [vmem:[%s169_s27] sm:$0xff] (%p50_p3), %v206_v0 }
  0x11   : > { %209 = vst [vmem:[%s169_s27 + $0x8] sm:$0xff] %v208_v1 }
  0x12 PF: > { %p609_p6 = scmp.ge.s32.totalorder %s795_s16, 1  ;;  %p226_p7 = scmp.lt.s32.totalorder %s795_s16, 8 }
  0x14   : > { %p227_p8 = pnand %p609_p6, %p226_p7 }
  0x15   : > { %s233_s28 = sand.u32 (!%p227_p8), 1, %s779_s12   ;;  %s611_s29 = sshll.u32 (!%p227_p8), %s787_s14, 5 }
  0x16   : > { %230 = sbr.rel (%p227_p8) target bundleno = 221 (0xdd), region = 66  ;;  %s610_s30 = sshll.u32 (!%p227_p8), %s233_s28, 4 }
  0x17   : > { %p273_p9 = scmp.lt.s32.totalorder (!%p227_p8), %s611_s29, 223  ;;  %s870_s8 = scalar_lea.vmem (!%p227_p8), [#allocation3], %s610_s30 }
  0x18   : > { %p613_p10 = scmp.ne.s32.totalorder (!%p227_p8), %s787_s14, 0 }
  0x1b   : > { %s926_s29 = smov (!%p273_p9, %s611_s29), 223  ;;  %296 = sbr.rel (%p613_p10) target bundleno = 35 (0x23), region = 74 }
  0x1c   : > { %s612_s4 = sshll.u32 %s926_s29, 2 }
  0x1d   : > { %s868_s7 = scalar_lea.vmem %s916_s1, %s612_s4 }
  0x20   : > { %v797_v2 = vmov 0.0  }
  0x21   : > { %297 = vst [vmem:[#allocation2] sm:$0xff] %v797_v2 }
  0x22   : > { %298 = vst [vmem:[#allocation2 + $0x8] sm:$0xff] %v797_v2 }
  0x23 PF: > { %v701_v3 = vld [vmem:[%s868_s7 + $0x38] sm:$0xff]  ;;  %v700_v5 = vld [vmem:[%s868_s7 + $0x30] sm:$0xff]  ;;  %v699_v7 = vld [vmem:[%s868_s7 + $0x28] sm:$0xff]  ;;  %p686_p11 = scmp.ne.s32.totalorder %s787_s14, 6 }
  0x24   : > { %v709_v4 = vld [vmem:[%s868_s7 + $0x78] sm:$0xff]  ;;  %441 = vmatpush.bf16.msra.mxu0 %v701_v3  ;;  %v708_v6 = vld [vmem:[%s868_s7 + $0x70] sm:$0xff]  ;;  %v707_v8 = vld [vmem:[%s868_s7 + $0x68] sm:$0xff] }
  0x25   : > { %455 = vmatpush.bf16.msra.mxu1 %v709_v4  ;;  %v698_v9 = vld [vmem:[%s868_s7 + $0x20] sm:$0xff]  ;;  %v697_v11 = vld [vmem:[%s868_s7 + $0x18] sm:$0xff]  ;;  %v696_v13 = vld [vmem:[%s868_s7 + $0x10] sm:$0xff] }
  0x26   : > { %v706_v10 = vld [vmem:[%s868_s7 + $0x60] sm:$0xff]  ;;  %v705_v12 = vld [vmem:[%s868_s7 + $0x58] sm:$0xff]  ;;  %v704_v14 = vld [vmem:[%s868_s7 + $0x50] sm:$0xff] }
  0x27   : > { %v695_v15 = vld [vmem:[%s868_s7 + $0x8] sm:$0xff]  ;;  %v694_v17 = vld [vmem:[%s868_s7] sm:$0xff] }
  0x28   : > { %442 = vmatpush.bf16.msra.mxu0 %v700_v5  ;;  %v703_v16 = vld [vmem:[%s868_s7 + $0x48] sm:$0xff]  ;;  %v702_v18 = vld [vmem:[%s868_s7 + $0x40] sm:$0xff] }
  0x29   : > { %456 = vmatpush.bf16.msra.mxu1 %v708_v6  ;;  %v616_v19 = vld [vmem:[%s870_s8] sm:$0xf]  ;;  %v693_v20 = vld [vmem:[%s870_s8 + $0x4] sm:$0xf0]  ;;  %v692_v21 = vld [vmem:[%s870_s8 + $0x4] sm:$0xf] }
  0x2a   : > { %v618_v22 = vld [vmem:[%s870_s8 + $0x8] sm:$0xf0]  ;;  %v617_v23 = vor.u32 %v693_v20, %v616_v19  ;;  %v299_v26 = vld [vmem:[#allocation2] sm:$0xff] }
  0x2b   : > { %v621_v24 = vor.u32 %v692_v21, %v618_v22  ;;  %v300_v31 = vld [vmem:[#allocation2 + $0x8] sm:$0xff] }
  0x2c   : > { %443 = vmatpush.bf16.msra.mxu0 %v699_v7 }
  0x2d   : > { %457 = vmatpush.bf16.msra.mxu1 %v707_v8 }
  0x30   : > { %444 = vmatpush.bf16.msra.mxu0 %v698_v9 }
  0x31   : > { %458 = vmatpush.bf16.msra.mxu1 %v706_v10 }
  0x34   : > { %445 = vmatpush.bf16.msra.mxu0 %v697_v11 }
  0x35   : > { %459 = vmatpush.bf16.msra.mxu1 %v705_v12 }
  0x38   : > { %446 = vmatpush.bf16.msra.mxu0 %v696_v13 }
  0x39   : > { %460 = vmatpush.bf16.msra.mxu1 %v704_v14 }
  0x3c   : > { %447 = vmatpush.bf16.msra.mxu0 %v695_v15 }
  0x3d   : > { %461 = vmatpush.bf16.msra.mxu1 %v703_v16 }
  0x40   : > { %448 = vmatpush.bf16.msra.mxu0 %v694_v17 }
  0x41   : > { %462 = vmatpush.bf16.msra.mxu1 %v702_v18 }
  0x43   : > { %449 = vmatmul.bf16.vlgmr.msra.gmra.mxu0 %v617_v23 }
  0x44   : > { %463 = vmatmul.bf16.vlgmr.msra.gmra.mxu1 %v621_v24 }
  0xc0   : > { %v450_v25 = vpop.f32.mrf.mxu0 }
  0xc1   : > { %v464_v27 = vpop.f32.mrf.mxu1 }
  0xc2   : > { %v465_v28 = vadd.f32 %v464_v27, %v450_v25 }
  0xc4   : > { %v469_v29 = vadd.f32 %v465_v28, %v299_v26 }
  0xc6   : > { %471 = vst [vmem:[#allocation2] sm:$0xff] %v469_v29 }
  0xc8   : > { %v452_v30 = vpop.f32.mrf.mxu0 }
  0xc9   : > { %v466_v32 = vpop.f32.mrf.mxu1 }
  0xca   : > { %v467_v33 = vadd.f32 %v466_v32, %v452_v30  ;;  %476 = sbr.rel (%p686_p11) target bundleno = 221 (0xdd), region = 78 }
  0xcc   : > { %v470_v34 = vadd.f32 %v467_v33, %v300_v31 }
  0xce   : > { %472 = vst [vmem:[#allocation2 + $0x8] sm:$0xff] %v470_v34 }
  0xcf   : > { %v477_v35 = vld [vmem:[#allocation2] sm:$0xff] }
  0xd0   : > { %v756_v37 = vld [vmem:[%s917_s2] ss:$0 sm:$0xff] }
  0xd1   : > { %v483_v38 = vadd.f32 %v756_v37, %v477_v35 }
  0xd3   : > { %v485_v40 = vmax.f32 %v483_v38, 0.0 }
  0xd5   : > { %v478_v36 = vld [vmem:[#allocation2 + $0x8] sm:$0xff] }
  0xd6   : > { %v484_v39 = vadd.f32 %v756_v37, %v478_v36 }
  0xd8   : > { %v486_v41 = vmax.f32 %v484_v39, 0.0 }
  0xda   : > { %v713_v42 = vpack.c.bf16 %v486_v41, %v485_v40 }
  0xdc   : > { %714 = vst [vmem:[%s918_s3] sm:$0xff] %v713_v42  }
  0xdd PF: > { %s13_s16 = sadd.s32 1, %s795_s16   ;;  %s919_s12 = smov %s783_s13 }
  0xde   : > { %p10_p12 = scmp.ge.s32.totalorder %s13_s16, 9   ;;  %s920_s13 = smov %s853_s20 }
  0xdf   : > { %s921_s14 = smov %s791_s15  ;;  %s922_s15 = smov %s924_s17 }
  0xe0   :  { %12 = sbr.rel (!%p10_p12) target bundleno = 3 (0x3), region = 119 }

// kernel: resnet3d_forward.17
= control target key start
LH: loop header
LB: loop body
LE: loop exit
PB: predicated region body
PF: predicated region fallthrough
CT: control target
= control target key end

     0   :  { %vm62_vm0 = vcmask 523264   ;;  %s176_s1 = inlined_call_operand.vmem [shape: bf16[64,128], index: 1, kind: input, shape index: {}]   ;;  %s177_s2 = inlined_call_operand.vmem [shape: f32[1,128], index: 2, kind: input, shape index: {}]   ;;  %s178_s0 = inlined_call_operand.vmem [shape: bf16[16,64], index: 0, kind: input, shape index: {}]   ;;  %s179_s3 = inlined_call_operand.vmem [shape: bf16[16,128], index: 3, kind: output, shape index: {}]  }
   0x1   :  { %v128_v0 = vld [vmem:[%s176_s1 + $0x18] sm:$0xff]  ;;  %v127_v1 = vld [vmem:[%s176_s1 + $0x10] sm:$0xff]  ;;  %v126_v2 = vld [vmem:[%s176_s1 + $0x8] sm:$0xff] }
   0x2   :  { %70 = vmatpush.bf16.msra.mxu0 %v128_v0  ;;  %v125_v3 = vld [vmem:[%s176_s1] sm:$0xff] }
   0x3   :  { %v124_v4 = vld [vmem:[%s178_s0] sm:$0xff] }
   0x4   :  { %v134_v6 = vld [vmem:[%s177_s2] ss:$0 sm:$0xff] }
   0x6   :  { %71 = vmatpush.bf16.msra.mxu0 %v127_v1 }
   0xa   :  { %72 = vmatpush.bf16.msra.mxu0 %v126_v2 }
   0xe   :  { %73 = vmatpush.bf16.msra.mxu0 %v125_v3 }
  0x11   :  { %123 = vmatmul.msk.bf16.vlgmr.msra.gmra.mxu0 %vm62_vm0, %v124_v4 }
  0x8e   :  { %v75_v5 = vpop.f32.mrf.mxu0 }
  0x8f   :  { %v93_v8 = vadd.f32 %v134_v6, %v75_v5 }
  0x96   :  { %v77_v7 = vpop.f32.mrf.mxu0 }
  0x97   :  { %v94_v9 = vadd.f32 %v134_v6, %v77_v7 }
  0x99   :  { %v132_v10 = vpack.c.bf16 %v94_v9, %v93_v8 }
  0x9b   :  { %133 = vst [vmem:[%s179_s3] sm:$0xff] %v132_v10  }

// kernel: resnet3d_forward.18
= control target key start
LH: loop header
LB: loop body
LE: loop exit
PB: predicated region body
PF: predicated region fallthrough
CT: control target
= control target key end

     0   :  { %s1045_s15 = smov 0   ;;  %s1047_s16 = smov 0   ;;  %s1155_s0 = inlined_call_operand.vmem [shape: bf16[16,3456], index: 0, kind: input, shape index: {}]   ;;  %s1156_s1 = inlined_call_operand.vmem [shape: bf16[3456,128], index: 1, kind: input, shape index: {}]   ;;  %s1157_s2 = inlined_call_operand.vmem [shape: f32[1,128], index: 2, kind: input, shape index: {}]   ;;  %s1158_s3 = inlined_call_operand.vmem [shape: bf16[16,128], index: 3, kind: input, shape index: {}]   ;;  %s1159_s4 = inlined_call_operand.vmem [shape: bf16[16,128], index: 4, kind: output, shape index: {}]  }
   0x1   :  { %s1049_s17 = smov 0   ;;  %s1051_s18 = smov 0  }
   0x2   :  { %s1053_s19 = smov 0  }
   0x3 LB: > { %s26_s20 = sadd.s32 1, %s1013_s18  ;;  %p49_p1 = scmp.ne.s32.totalorder %s1005_s16, %s1001_s15  ;;  %s1017_s19 = sphi %s1053_s19, %s14_s19   ;;  %s1013_s18 = sphi %s1051_s18, %s1163_s18   ;;  %s1009_s17 = sphi %s1049_s17, %s1162_s17   ;;  %s1005_s16 = sphi %s1047_s16, %s1161_s16   ;;  %s1001_s15 = sphi %s1045_s15, %s1160_s15  }
   0x4   : > { %p27_p0 = scmp.ge.s32.totalorder %s26_s20, 9  ;;  %p50_p2 = scmp.eq.s32.totalorder %s1017_s19, 0 }
   0x5   : > { %s42_s22 = sadd.s32 1, %s1005_s16  ;;  %p776_p5 = scmp.ge.s32.totalorder %s1017_s19, 9 }
   0x6   : > { %s1165_s20 = smov (%p27_p0, %s26_s20), 0  ;;  %p51_p3 = por %p50_p2, %p49_p1 }
   0x7   : > { %s38_s21 = ssub.s32 %s1013_s18, %s1165_s20  ;;  %203 = sbr.rel (%p776_p5) target bundleno = 21 (0x15), region = 24 }
   0x8   : > { %p40_p4 = scmp.eq.s32.totalorder %s38_s21, 0 }
   0xa   : > { %s1080_s23 = scalar_select %p40_p4, %s1005_s16, %s42_s22  }
   0xc   : > { %206 = sbr.rel (!%p51_p3) target bundleno = 21 (0x15), region = 28  ;;  %s208_s24 = sand.u32 (%p51_p3), 1, %s1005_s16  }
   0xd   : > { %s898_s25 = smul.u32 (%p51_p3), 12, %s1013_s18 }
   0xe   : > { %s935_s26 = smul.u32 (%p51_p3), 24, %s208_s24 }
   0xf   : > { %s216_s29 = scalar_lea.vmem (%p51_p3), %s1155_s0, %s898_s25 }
  0x10   : > { %v231_v0 = vld [vmem:[%s216_s29] sm:$0xff] (%p51_p3)  ;;  %v233_v1 = vld [vmem:[%s216_s29 + $0x6c] sm:$0xff] (%p51_p3)  ;;  %v778_v2 = vld [vmem:[%s216_s29 + $0x8] sm:$0xf] (%p51_p3)  ;;  %s210_s30 = scalar_lea.vmem (%p51_p3), [#allocation3], %s935_s26 }
  0x11   : > { %232 = vst [vmem:[%s210_s30] sm:$0xff] %v231_v0  ;;  %v780_v3 = vld [vmem:[%s216_s29 + $0x74] sm:$0xf] }
  0x12   : > { %234 = vst [vmem:[%s210_s30 + $0xc] sm:$0xff] %v233_v1 }
  0x13   : > { %779 = vst [vmem:[%s210_s30 + $0x8] sm:$0xf] %v778_v2 }
  0x14   : > { %781 = vst [vmem:[%s210_s30 + $0x14] sm:$0xf] %v780_v3 }
  0x15 PF: > { %p782_p6 = scmp.ge.s32.totalorder %s1017_s19, 1  ;;  %p263_p7 = scmp.lt.s32.totalorder %s1017_s19, 10 }
  0x17   : > { %p264_p8 = pnand %p782_p6, %p263_p7 }
  0x18   : > { %s270_s5 = sand.u32 (!%p264_p8), 1, %s1001_s15   ;;  %s319_s6 = smul.u32 (!%p264_p8), 48, %s1009_s17 }
  0x19   : > { %267 = sbr.rel (%p264_p8) target bundleno = 233 (0xe9), region = 58  ;;  %p784_p10 = scmp.ne.s32.totalorder (!%p264_p8), %s1009_s17, 0 }
  0x1a   : > { %s936_s7 = smul.u32 (!%p264_p8), 24, %s270_s5  ;;  %p320_p9 = scmp.lt.s32.totalorder (!%p264_p8), %s319_s6, 431 }
  0x1c   : > { %s1097_s12 = scalar_lea.vmem (!%p264_p8), [#allocation3], %s936_s7 }
  0x1e   : > { %s1167_s6 = smov (!%p320_p9, %s319_s6), 431  ;;  %352 = sbr.rel (%p784_p10) target bundleno = 38 (0x26), region = 66 }
  0x1f   : > { %s783_s8 = sshll.u32 %s1167_s6, 2 }
  0x20   : > { %s1095_s11 = scalar_lea.vmem %s1156_s1, %s783_s8 }
  0x23   : > { %v1019_v4 = vmov 0.0  }
  0x24   : > { %353 = vst [vmem:[#allocation2] sm:$0xff] %v1019_v4 }
  0x25   : > { %354 = vst [vmem:[#allocation2 + $0x8] sm:$0xff] %v1019_v4 }
  0x26 PF: > { %v909_v5 = vld [vmem:[%s1095_s11 + $0x38] sm:$0xff]  ;;  %v908_v8 = vld [vmem:[%s1095_s11 + $0x30] sm:$0xff]  ;;  %v907_v11 = vld [vmem:[%s1095_s11 + $0x28] sm:$0xff]  ;;  %p893_p11 = scmp.ne.s32.totalorder %s1009_s17, 8 }
  0x27   : > { %v917_v6 = vld [vmem:[%s1095_s11 + $0x78] sm:$0xff]  ;;  %569 = vmatpush.bf16.msra.mxu0 %v909_v5  ;;  %v916_v9 = vld [vmem:[%s1095_s11 + $0x70] sm:$0xff]  ;;  %v915_v12 = vld [vmem:[%s1095_s11 + $0x68] sm:$0xff] }
  0x28   : > { %v925_v7 = vld [vmem:[%s1095_s11 + $0xb8] sm:$0xff]  ;;  %583 = vmatpush.bf16.msra.mxu1 %v917_v6  ;;  %v924_v10 = vld [vmem:[%s1095_s11 + $0xb0] sm:$0xff]  ;;  %v923_v13 = vld [vmem:[%s1095_s11 + $0xa8] sm:$0xff] }
  0x29   : > { %597 = vmatpush.bf16.msra.mxu2 %v925_v7  ;;  %v906_v14 = vld [vmem:[%s1095_s11 + $0x20] sm:$0xff]  ;;  %v905_v17 = vld [vmem:[%s1095_s11 + $0x18] sm:$0xff]  ;;  %v904_v20 = vld [vmem:[%s1095_s11 + $0x10] sm:$0xff] }
  0x2a   : > { %v914_v15 = vld [vmem:[%s1095_s11 + $0x60] sm:$0xff]  ;;  %v913_v18 = vld [vmem:[%s1095_s11 + $0x58] sm:$0xff]  ;;  %v912_v21 = vld [vmem:[%s1095_s11 + $0x50] sm:$0xff] }
  0x2b   : > { %570 = vmatpush.bf16.msra.mxu0 %v908_v8  ;;  %v922_v16 = vld [vmem:[%s1095_s11 + $0xa0] sm:$0xff]  ;;  %v921_v19 = vld [vmem:[%s1095_s11 + $0x98] sm:$0xff]  ;;  %v920_v22 = vld [vmem:[%s1095_s11 + $0x90] sm:$0xff] }
  0x2c   : > { %584 = vmatpush.bf16.msra.mxu1 %v916_v9  ;;  %v903_v23 = vld [vmem:[%s1095_s11 + $0x8] sm:$0xff]  ;;  %v902_v26 = vld [vmem:[%s1095_s11] sm:$0xff]  ;;  %v900_v29 = vld [vmem:[%s1097_s12 + $0x8] sm:$0xf0] }
  0x2d   : > { %598 = vmatpush.bf16.msra.mxu2 %v924_v10  ;;  %v911_v24 = vld [vmem:[%s1095_s11 + $0x48] sm:$0xff]  ;;  %v910_v27 = vld [vmem:[%s1095_s11 + $0x40] sm:$0xff]  ;;  %v795_v33 = vld [vmem:[%s1097_s12 + $0x8] sm:$0xf] }
  0x2e   : > { %v919_v25 = vld [vmem:[%s1095_s11 + $0x88] sm:$0xff]  ;;  %v789_v31 = vld [vmem:[%s1097_s12 + $0xc] sm:$0xf0]  ;;  %v901_v34 = vld [vmem:[%s1097_s12 + $0x10] sm:$0xf0] }
  0x2f   : > { %571 = vmatpush.bf16.msra.mxu0 %v907_v11  ;;  %v787_v28 = vld [vmem:[%s1097_s12] sm:$0xf]  ;;  %v899_v30 = vld [vmem:[%s1097_s12 + $0x4] sm:$0xf]  ;;  %v918_v32 = vld [vmem:[%s1095_s11 + $0x80] sm:$0xff]  ;;  %v796_v37 = vor.u32 %v901_v34, %v795_v33 }
  0x30   : > { %585 = vmatpush.bf16.msra.mxu1 %v915_v12  ;;  %v788_v35 = vor.u32 %v900_v29, %v787_v28  ;;  %v792_v36 = vor.u32 %v899_v30, %v789_v31  ;;  %v355_v41 = vld [vmem:[#allocation2] sm:$0xff]  ;;  %v356_v48 = vld [vmem:[#allocation2 + $0x8] sm:$0xff] }
  0x31   : > { %599 = vmatpush.bf16.msra.mxu2 %v923_v13 }
  0x33   : > { %572 = vmatpush.bf16.msra.mxu0 %v906_v14 }
  0x34   : > { %586 = vmatpush.bf16.msra.mxu1 %v914_v15 }
  0x35   : > { %600 = vmatpush.bf16.msra.mxu2 %v922_v16 }
  0x37   : > { %573 = vmatpush.bf16.msra.mxu0 %v905_v17 }
  0x38   : > { %587 = vmatpush.bf16.msra.mxu1 %v913_v18 }
  0x39   : > { %601 = vmatpush.bf16.msra.mxu2 %v921_v19 }
  0x3b   : > { %574 = vmatpush.bf16.msra.mxu0 %v904_v20 }
  0x3c   : > { %588 = vmatpush.bf16.msra.mxu1 %v912_v21 }
  0x3d   : > { %602 = vmatpush.bf16.msra.mxu2 %v920_v22 }
  0x3f   : > { %575 = vmatpush.bf16.msra.mxu0 %v903_v23 }
  0x40   : > { %589 = vmatpush.bf16.msra.mxu1 %v911_v24 }
  0x41   : > { %603 = vmatpush.bf16.msra.mxu2 %v919_v25 }
  0x43   : > { %576 = vmatpush.bf16.msra.mxu0 %v902_v26 }
  0x44   : > { %590 = vmatpush.bf16.msra.mxu1 %v910_v27 }
  0x45   : > { %604 = vmatpush.bf16.msra.mxu2 %v918_v32 }
  0x46   : > { %577 = vmatmul.bf16.vlgmr.msra.gmra.mxu0 %v788_v35 }
  0x47   : > { %591 = vmatmul.bf16.vlgmr.msra.gmra.mxu1 %v792_v36 }
  0x48   : > { %605 = vmatmul.bf16.vlgmr.msra.gmra.mxu2 %v796_v37 }
  0xc3   : > { %v578_v38 = vpop.f32.mrf.mxu0 }
  0xc4   : > { %v592_v39 = vpop.f32.mrf.mxu1 }
  0xc5   : > { %v593_v40 = vadd.f32 %v592_v39, %v578_v38 }
  0xcb   : > { %v606_v42 = vpop.f32.mrf.mxu2  ;;  %v580_v45 = vpop.f32.mrf.mxu0 }
  0xcc   : > { %v607_v43 = vadd.f32 %v606_v42, %v593_v40  ;;  %v594_v46 = vpop.f32.mrf.mxu1 }
  0xcd   : > { %v595_v47 = vadd.f32 %v594_v46, %v580_v45 }
  0xce   : > { %v611_v44 = vadd.f32 %v607_v43, %v355_v41 }
  0xd0   : > { %613 = vst [vmem:[#allocation2] sm:$0xff] %v611_v44 }
  0xd3   : > { %v608_v49 = vpop.f32.mrf.mxu2 }
  0xd4   : > { %v609_v50 = vadd.f32 %v608_v49, %v595_v47  ;;  %618 = sbr.rel (%p893_p11) target bundleno = 233 (0xe9), region = 70 }
  0xd6   : > { %v612_v51 = vadd.f32 %v609_v50, %v356_v48 }
  0xd8   : > { %614 = vst [vmem:[#allocation2 + $0x8] sm:$0xff] %v612_v51 }
  0xd9   : > { %v619_v52 = vld [vmem:[#allocation2] sm:$0xff] }
  0xda   : > { %v978_v54 = vld [vmem:[%s1157_s2] ss:$0 sm:$0xff] }
  0xdb   : > { %v927_v55 = vld [vmem:[%s1158_s3] sm:$0xff]   ;;  %v625_v58 = vadd.f32 %v978_v54, %v619_v52 }
  0xdc   : > { %v928_v56 = vunpack.c.l.bf16 %v927_v55  ;;  %v929_v57 = vunpack.c.h.bf16 %v927_v55 }
  0xde   : > { %v631_v60 = vadd.f32 %v928_v56, %v625_v58 }
  0xdf   : > { %v620_v53 = vld [vmem:[#allocation2 + $0x8] sm:$0xff] }
  0xe0   : > { %v626_v59 = vadd.f32 %v978_v54, %v620_v53  ;;  %v633_v62 = vmax.f32 %v631_v60, 0.0 }
  0xe2   : > { %v632_v61 = vadd.f32 %v929_v57, %v626_v59 }
  0xe4   : > { %v634_v63 = vmax.f32 %v632_v61, 0.0 }
  0xe6   : > { %v933_v0 = vpack.c.bf16 %v634_v63, %v633_v62 }
  0xe8   : > { %934 = vst [vmem:[%s1159_s4] sm:$0xff] %v933_v0  }
  0xe9 PF: > { %s14_s19 = sadd.s32 1, %s1017_s19   ;;  %s1160_s15 = smov %s1005_s16 }
  0xea   : > { %p11_p12 = scmp.ge.s32.totalorder %s14_s19, 11   ;;  %s1161_s16 = smov %s1080_s23 }
  0xeb   : > { %s1162_s17 = smov %s1013_s18  ;;  %s1163_s18 = smov %s1165_s20 }
  0xec   :  { %13 = sbr.rel (!%p11_p12) target bundleno = 3 (0x3), region = 120 }

// kernel: resnet3d_forward.19
= control target key start
LH: loop header
LB: loop body
LE: loop exit
PB: predicated region body
PF: predicated region fallthrough
CT: control target
= control target key end

     0   :  { %s1128_s12 = smov 0   ;;  %s1130_s13 = smov 0   ;;  %s1279_s0 = inlined_call_operand.vmem [shape: bf16[8,3456], index: 0, kind: input, shape index: {}]   ;;  %s1280_s1 = inlined_call_operand.vmem [shape: bf16[3456,256], index: 1, kind: input, shape index: {}]   ;;  %s1281_s2 = inlined_call_operand.vmem [shape: f32[1,256], index: 2, kind: input, shape index: {}]   ;;  %s1282_s3 = inlined_call_operand.vmem [shape: bf16[8,256], index: 3, kind: output, shape index: {}]  }
   0x1   :  { %s1132_s14 = smov 0  }
   0x2 LB: > { %s25_s15 = sadd.s32 1, %s1101_s13  ;;  %p807_p0 = scmp.ge.s32.totalorder %s1105_s14, 1  ;;  %s1105_s14 = sphi %s1132_s14, %s13_s14   ;;  %s1101_s13 = sphi %s1130_s13, %s1284_s13   ;;  %s1097_s12 = sphi %s1128_s12, %s1283_s12  }
   0x3   : > { %p26_p1 = scmp.ge.s32.totalorder %s25_s15, 9  ;;  %p194_p2 = scmp.lt.s32.totalorder %s1105_s14, 10 }
   0x5   : > { %s1286_s15 = smov (%p26_p1, %s25_s15), 0  ;;  %p195_p3 = pnand %p807_p0, %p194_p2 }
   0x6   : > { %s240_s16 = smul.u32 (!%p195_p3), 3, %s1097_s12  ;;  %p811_p6 = scmp.ne.s32.totalorder (!%p195_p3), %s1097_s12, 0 }
   0x7   : > { %198 = sbr.rel (%p195_p3) target bundleno = 236 (0xec), region = 32 }
   0x8   : > { %s250_s17 = smul.u32 (!%p195_p3), 48, %s1097_s12  ;;  %p243_p4 = scmp.lt.s32.totalorder (!%p195_p3), %s240_s16, 26 }
   0xa   : > { %p252_p5 = scmp.lt.s32.totalorder (!%p195_p3), %s250_s17, 431 }
   0xc   : > { %s1288_s16 = smov (!%p243_p4, %s240_s16), 26  ;;  %s1290_s17 = smov (!%p252_p5, %s250_s17), 431 }
   0xd   : > { %s808_s18 = sshll.u32 %s1288_s16, 2  ;;  %s1009_s22 = sshll.u32 %s1290_s17, 3 }
   0xe   : > { %s1153_s21 = scalar_lea.vmem %s1279_s0, %s808_s18  ;;  %s1158_s25 = scalar_lea.vmem %s1280_s1, %s1009_s22 }
   0xf   : > { %280 = sbr.rel (%p811_p6) target bundleno = 23 (0x17), region = 36 }
  0x14   : > { %v1107_v0 = vmov 0.0  }
  0x15   : > { %281 = vst [vmem:[#allocation2] sm:$0xff] %v1107_v0 }
  0x16   : > { %282 = vst [vmem:[#allocation2 + $0x8] sm:$0xff] %v1107_v0 }
  0x17 PF: > { %v870_v1 = vld [vmem:[%s1158_s25 + $0x70] sm:$0xf]  ;;  %v1025_v2 = vld [vmem:[%s1158_s25 + $0x74] sm:$0xf0]  ;;  %v862_v6 = vld [vmem:[%s1158_s25 + $0x60] sm:$0xf] }
  0x18   : > { %v934_v3 = vld [vmem:[%s1158_s25 + $0xf0] sm:$0xf]  ;;  %v871_v4 = vor.u32 %v1025_v2, %v870_v1  ;;  %v1041_v5 = vld [vmem:[%s1158_s25 + $0xf4] sm:$0xf0]  ;;  %v1023_v7 = vld [vmem:[%s1158_s25 + $0x64] sm:$0xf0] }
  0x19   : > { %v935_v8 = vor.u32 %v1041_v5, %v934_v3  ;;  %v926_v9 = vld [vmem:[%s1158_s25 + $0xe0] sm:$0xf]  ;;  %v1039_v10 = vld [vmem:[%s1158_s25 + $0xe4] sm:$0xf0]  ;;  %v863_v11 = vor.u32 %v1023_v7, %v862_v6  ;;  %v854_v12 = vld [vmem:[%s1158_s25 + $0x50] sm:$0xf] }
  0x1a   : > { %586 = vmatpush.bf16.msra.mxu0 %v871_v4  ;;  %v927_v13 = vor.u32 %v1039_v10, %v926_v9  ;;  %v1021_v14 = vld [vmem:[%s1158_s25 + $0x54] sm:$0xf0]  ;;  %v998_v15 = vld [vmem:[%s1158_s25 + $0x170] sm:$0xf]  ;;  %v990_v20 = vld [vmem:[%s1158_s25 + $0x160] sm:$0xf] }
  0x1b   : > { %599 = vmatpush.bf16.msra.mxu1 %v935_v8  ;;  %v1057_v16 = vld [vmem:[%s1158_s25 + $0x174] sm:$0xf0]  ;;  %v918_v17 = vld [vmem:[%s1158_s25 + $0xd0] sm:$0xf]  ;;  %v1055_v21 = vld [vmem:[%s1158_s25 + $0x164] sm:$0xf0]  ;;  %v855_v23 = vor.u32 %v1021_v14, %v854_v12 }
  0x1c   : > { %v1037_v18 = vld [vmem:[%s1158_s25 + $0xd4] sm:$0xf0]  ;;  %v999_v19 = vor.u32 %v1057_v16, %v998_v15  ;;  %v1024_v22 = vld [vmem:[%s1158_s25 + $0x74] sm:$0xf]  ;;  %v846_v24 = vld [vmem:[%s1158_s25 + $0x40] sm:$0xf]  ;;  %v991_v26 = vor.u32 %v1055_v21, %v990_v20 }
  0x1d   : > { %v1019_v25 = vld [vmem:[%s1158_s25 + $0x44] sm:$0xf0]  ;;  %v872_v27 = vld [vmem:[%s1158_s25 + $0x78] sm:$0xf0]  ;;  %v919_v28 = vor.u32 %v1037_v18, %v918_v17  ;;  %v910_v29 = vld [vmem:[%s1158_s25 + $0xc0] sm:$0xf] }
  0x1e   : > { %587 = vmatpush.bf16.msra.mxu0 %v863_v11  ;;  %612 = vmatpush.bf16.msra.mxu2 %v999_v19  ;;  %v1035_v30 = vld [vmem:[%s1158_s25 + $0xc4] sm:$0xf0]  ;;  %v875_v31 = vor.u32 %v1024_v22, %v872_v27  ;;  %v982_v32 = vld [vmem:[%s1158_s25 + $0x150] sm:$0xf]  ;;  %v1053_v33 = vld [vmem:[%s1158_s25 + $0x154] sm:$0xf0]  ;;  %v847_v37 = vor.u32 %v1019_v25, %v846_v24 }
  0x1f   : > { %600 = vmatpush.bf16.msra.mxu1 %v927_v13  ;;  %v1022_v34 = vld [vmem:[%s1158_s25 + $0x64] sm:$0xf]  ;;  %v864_v35 = vld [vmem:[%s1158_s25 + $0x68] sm:$0xf0]  ;;  %v838_v38 = vld [vmem:[%s1158_s25 + $0x30] sm:$0xf]  ;;  %v983_v40 = vor.u32 %v1053_v33, %v982_v32  ;;  %v911_v42 = vor.u32 %v1035_v30, %v910_v29 }
  0x20   : > { %625 = vmatpush.bf16.msra.mxu3 %v875_v31  ;;  %v867_v36 = vor.u32 %v1022_v34, %v864_v35  ;;  %v1017_v39 = vld [vmem:[%s1158_s25 + $0x34] sm:$0xf0]  ;;  %v974_v41 = vld [vmem:[%s1158_s25 + $0x140] sm:$0xf]  ;;  %v1051_v43 = vld [vmem:[%s1158_s25 + $0x144] sm:$0xf0] }
  0x21   : > { %v1020_v44 = vld [vmem:[%s1158_s25 + $0x54] sm:$0xf]  ;;  %v856_v45 = vld [vmem:[%s1158_s25 + $0x58] sm:$0xf0]  ;;  %v902_v46 = vld [vmem:[%s1158_s25 + $0xb0] sm:$0xf]  ;;  %v839_v49 = vor.u32 %v1017_v39, %v838_v38  ;;  %v975_v51 = vor.u32 %v1051_v43, %v974_v41 }
  0x22   : > { %588 = vmatpush.bf16.msra.mxu0 %v855_v23  ;;  %613 = vmatpush.bf16.msra.mxu2 %v991_v26  ;;  %v1033_v47 = vld [vmem:[%s1158_s25 + $0xb4] sm:$0xf0]  ;;  %v859_v48 = vor.u32 %v1020_v44, %v856_v45  ;;  %v830_v50 = vld [vmem:[%s1158_s25 + $0x20] sm:$0xf]  ;;  %v1018_v52 = vld [vmem:[%s1158_s25 + $0x44] sm:$0xf] }
  0x23   : > { %601 = vmatpush.bf16.msra.mxu1 %v919_v28  ;;  %v848_v53 = vld [vmem:[%s1158_s25 + $0x48] sm:$0xf0]  ;;  %v903_v54 = vor.u32 %v1033_v47, %v902_v46  ;;  %v1015_v55 = vld [vmem:[%s1158_s25 + $0x24] sm:$0xf0]  ;;  %v966_v56 = vld [vmem:[%s1158_s25 + $0x130] sm:$0xf] }
  0x24   : > { %626 = vmatpush.bf16.msra.mxu3 %v867_v36  ;;  %v1049_v57 = vld [vmem:[%s1158_s25 + $0x134] sm:$0xf0]  ;;  %v894_v58 = vld [vmem:[%s1158_s25 + $0xa0] sm:$0xf]  ;;  %v1031_v59 = vld [vmem:[%s1158_s25 + $0xa4] sm:$0xf0]  ;;  %v851_v60 = vor.u32 %v1018_v52, %v848_v53  ;;  %v831_v61 = vor.u32 %v1015_v55, %v830_v50 }
  0x25   : > { %v822_v62 = vld [vmem:[%s1158_s25 + $0x10] sm:$0xf]  ;;  %v967_v63 = vor.u32 %v1049_v57, %v966_v56  ;;  %v1016_v0 = vld [vmem:[%s1158_s25 + $0x34] sm:$0xf]  ;;  %v840_v1 = vld [vmem:[%s1158_s25 + $0x38] sm:$0xf0]  ;;  %v895_v2 = vor.u32 %v1031_v59, %v894_v58 }
  0x26   : > { %589 = vmatpush.bf16.msra.mxu0 %v847_v37  ;;  %614 = vmatpush.bf16.msra.mxu2 %v983_v40  ;;  %v1013_v3 = vld [vmem:[%s1158_s25 + $0x14] sm:$0xf0]  ;;  %v958_v4 = vld [vmem:[%s1158_s25 + $0x120] sm:$0xf]  ;;  %v1047_v5 = vld [vmem:[%s1158_s25 + $0x124] sm:$0xf0]  ;;  %v843_v10 = vor.u32 %v1016_v0, %v840_v1 }
  0x27   : > { %602 = vmatpush.bf16.msra.mxu1 %v911_v42  ;;  %v886_v6 = vld [vmem:[%s1158_s25 + $0x90] sm:$0xf]  ;;  %v1029_v7 = vld [vmem:[%s1158_s25 + $0x94] sm:$0xf0]  ;;  %v814_v8 = vld [vmem:[%s1158_s25] sm:$0xf]  ;;  %v823_v11 = vor.u32 %v1013_v3, %v822_v62  ;;  %v959_v12 = vor.u32 %v1047_v5, %v958_v4 }
  0x28   : > { %627 = vmatpush.bf16.msra.mxu3 %v859_v48  ;;  %v1011_v9 = vld [vmem:[%s1158_s25 + $0x4] sm:$0xf0]  ;;  %v1014_v13 = vld [vmem:[%s1158_s25 + $0x24] sm:$0xf]  ;;  %v832_v14 = vld [vmem:[%s1158_s25 + $0x28] sm:$0xf0]  ;;  %v887_v16 = vor.u32 %v1029_v7, %v886_v6 }
  0x29   : > { %v285_v15 = vld [vmem:[%s1153_s21] sm:$0xff]  ;;  %v950_v18 = vld [vmem:[%s1158_s25 + $0x110] sm:$0xf]  ;;  %v1045_v19 = vld [vmem:[%s1158_s25 + $0x114] sm:$0xf0]  ;;  %v835_v25 = vor.u32 %v1014_v13, %v832_v14  ;;  %v815_v27 = vor.u32 %v1011_v9, %v814_v8  ;;  %p1004_p7 = scmp.ne.s32.totalorder %s1097_s12, 8 }
  0x2a   : > { %590 = vmatpush.bf16.msra.mxu0 %v839_v49  ;;  %615 = vmatpush.bf16.msra.mxu2 %v975_v51  ;;  %v878_v17 = vld [vmem:[%s1158_s25 + $0x80] sm:$0xf]  ;;  %v1027_v20 = vld [vmem:[%s1158_s25 + $0x84] sm:$0xf0]  ;;  %v1040_v21 = vld [vmem:[%s1158_s25 + $0xf4] sm:$0xf]  ;;  %v337_v26 = vunpack.c.l.b16 %v285_v15  ;;  %v951_v28 = vor.u32 %v1045_v19, %v950_v18  ;;  %v338_v29 = vunpack.c.h.b16 %v285_v15 }
  0x2b   : > { %603 = vmatpush.bf16.msra.mxu1 %v903_v54  ;;  %v936_v22 = vld [vmem:[%s1158_s25 + $0xf8] sm:$0xf0]  ;;  %v1056_v23 = vld [vmem:[%s1158_s25 + $0x174] sm:$0xf]  ;;  %v286_v32 = vld [vmem:[%s1153_s21 + $0x8] sm:$0xf]  ;;  %v879_v33 = vor.u32 %v1027_v20, %v878_v17 }
  0x2c   : > { %628 = vmatpush.bf16.msra.mxu3 %v851_v60  ;;  %v1000_v24 = vld [vmem:[%s1158_s25 + $0x178] sm:$0xf0]  ;;  %v1012_v30 = vld [vmem:[%s1158_s25 + $0x14] sm:$0xf]  ;;  %v939_v34 = vor.u32 %v1040_v21, %v936_v22  ;;  %v942_v35 = vld [vmem:[%s1158_s25 + $0x100] sm:$0xf]  ;;  %v340_v42 = vpack.c.b16 %v337_v26, %v337_v26  ;;  %v339_v44 = vunpack.c.l.b16 %v286_v32  ;;  %v1233_v45 = vpack.c.b16 %v338_v29, %v338_v29 }
  0x2d   : > { %v824_v31 = vld [vmem:[%s1158_s25 + $0x18] sm:$0xf0]  ;;  %v1043_v36 = vld [vmem:[%s1158_s25 + $0x104] sm:$0xf0]  ;;  %v1003_v37 = vor.u32 %v1056_v23, %v1000_v24  ;;  %v1038_v38 = vld [vmem:[%s1158_s25 + $0xe4] sm:$0xf] }
  0x2e   : > { %591 = vmatpush.bf16.msra.mxu0 %v831_v61  ;;  %616 = vmatpush.bf16.msra.mxu2 %v967_v63  ;;  %v928_v39 = vld [vmem:[%s1158_s25 + $0xe8] sm:$0xf0]  ;;  %v1054_v40 = vld [vmem:[%s1158_s25 + $0x164] sm:$0xf]  ;;  %v827_v43 = vor.u32 %v1012_v30, %v824_v31  ;;  %v943_v46 = vor.u32 %v1043_v36, %v942_v35  ;;  %v1036_v51 = vld [vmem:[%s1158_s25 + $0xd4] sm:$0xf]  ;;  %v342_v55 = vpack.c.b16 %v339_v44, %v339_v44 }
  0x2f   : > { %604 = vmatpush.bf16.msra.mxu1 %v895_v2  ;;  %v992_v41 = vld [vmem:[%s1158_s25 + $0x168] sm:$0xf0]  ;;  %v1010_v47 = vld [vmem:[%s1158_s25 + $0x4] sm:$0xf]  ;;  %v931_v49 = vor.u32 %v1038_v38, %v928_v39  ;;  %v920_v52 = vld [vmem:[%s1158_s25 + $0xd8] sm:$0xf0] }
  0x30   : > { %629 = vmatpush.bf16.msra.mxu3 %v843_v10  ;;  %v816_v48 = vld [vmem:[%s1158_s25 + $0x8] sm:$0xf0]  ;;  %v995_v50 = vor.u32 %v1054_v40, %v992_v41  ;;  %v1052_v53 = vld [vmem:[%s1158_s25 + $0x154] sm:$0xf]  ;;  %v984_v54 = vld [vmem:[%s1158_s25 + $0x158] sm:$0xf0]  ;;  %v923_v57 = vor.u32 %v1036_v51, %v920_v52 }
  0x31   : > { %v819_v56 = vor.u32 %v1010_v47, %v816_v48  ;;  %v987_v58 = vor.u32 %v1052_v53, %v984_v54  ;;  %v1034_v59 = vld [vmem:[%s1158_s25 + $0xc4] sm:$0xf]  ;;  %v912_v60 = vld [vmem:[%s1158_s25 + $0xc8] sm:$0xf0]  ;;  %v1032_v1 = vld [vmem:[%s1158_s25 + $0xb4] sm:$0xf] }
  0x32   : > { %592 = vmatpush.bf16.msra.mxu0 %v823_v11  ;;  %617 = vmatpush.bf16.msra.mxu2 %v959_v12  ;;  %v1050_v61 = vld [vmem:[%s1158_s25 + $0x144] sm:$0xf]  ;;  %v976_v62 = vld [vmem:[%s1158_s25 + $0x148] sm:$0xf0]  ;;  %v915_v63 = vor.u32 %v1034_v59, %v912_v60  ;;  %v904_v2 = vld [vmem:[%s1158_s25 + $0xb8] sm:$0xf0] }
  0x33   : > { %605 = vmatpush.bf16.msra.mxu1 %v887_v16  ;;  %v979_v0 = vor.u32 %v1050_v61, %v976_v62  ;;  %v1048_v3 = vld [vmem:[%s1158_s25 + $0x134] sm:$0xf]  ;;  %v968_v4 = vld [vmem:[%s1158_s25 + $0x138] sm:$0xf0]  ;;  %v907_v5 = vor.u32 %v1032_v1, %v904_v2  ;;  %v1030_v7 = vld [vmem:[%s1158_s25 + $0xa4] sm:$0xf] }
  0x34   : > { %630 = vmatpush.bf16.msra.mxu3 %v835_v25  ;;  %v971_v6 = vor.u32 %v1048_v3, %v968_v4  ;;  %v896_v8 = vld [vmem:[%s1158_s25 + $0xa8] sm:$0xf0]  ;;  %v1046_v9 = vld [vmem:[%s1158_s25 + $0x124] sm:$0xf]  ;;  %v1028_v13 = vld [vmem:[%s1158_s25 + $0x94] sm:$0xf] }
  0x35   : > { %v960_v10 = vld [vmem:[%s1158_s25 + $0x128] sm:$0xf0]  ;;  %v899_v11 = vor.u32 %v1030_v7, %v896_v8  ;;  %v888_v14 = vld [vmem:[%s1158_s25 + $0x98] sm:$0xf0]  ;;  %v1044_v15 = vld [vmem:[%s1158_s25 + $0x114] sm:$0xf] }
  0x36   : > { %593 = vmatpush.bf16.msra.mxu0 %v815_v27  ;;  %618 = vmatpush.bf16.msra.mxu2 %v951_v28  ;;  %v963_v12 = vor.u32 %v1046_v9, %v960_v10  ;;  %v952_v16 = vld [vmem:[%s1158_s25 + $0x118] sm:$0xf0]  ;;  %v891_v17 = vor.u32 %v1028_v13, %v888_v14  ;;  %v1026_v19 = vld [vmem:[%s1158_s25 + $0x84] sm:$0xf]  ;;  %v880_v20 = vld [vmem:[%s1158_s25 + $0x88] sm:$0xf0] }
  0x37   : > { %606 = vmatpush.bf16.msra.mxu1 %v879_v33  ;;  %v955_v18 = vor.u32 %v1044_v15, %v952_v16  ;;  %v1042_v21 = vld [vmem:[%s1158_s25 + $0x104] sm:$0xf]  ;;  %v944_v22 = vld [vmem:[%s1158_s25 + $0x108] sm:$0xf0]  ;;  %v883_v23 = vor.u32 %v1026_v19, %v880_v20 }
  0x38   : > { %631 = vmatpush.bf16.msra.mxu3 %v827_v43  ;;  %v947_v24 = vor.u32 %v1042_v21, %v944_v22  ;;  %v283_v30 = vld [vmem:[#allocation2] sm:$0xff]  ;;  %v284_v40 = vld [vmem:[#allocation2 + $0x8] sm:$0xff] }
  0x39   : > { %594 = vmatmul.bf16.vlgmr.msra.gmra.mxu0 %v340_v42 }
  0x3a   : > { %638 = vmatpush.bf16.msrb.mxu0 %v939_v34  ;;  %607 = vmatmul.bf16.vlgmr.msra.gmra.mxu1 %v1233_v45 }
  0x3b   : > { %651 = vmatpush.bf16.msrb.mxu1 %v1003_v37  ;;  %619 = vmatpush.bf16.msra.mxu2 %v943_v46 }
  0x3c   : > { %632 = vmatpush.bf16.msra.mxu3 %v819_v56 }
  0x3e   : > { %639 = vmatpush.bf16.msrb.mxu0 %v931_v49  ;;  %620 = vmatmul.bf16.vlgmr.msra.gmra.mxu2 %v342_v55 }
  0x3f   : > { %652 = vmatpush.bf16.msrb.mxu1 %v995_v50  ;;  %633 = vmatmul.bf16.vlgmr.msra.gmra.mxu3 %v340_v42 }
  0x42   : > { %640 = vmatpush.bf16.msrb.mxu0 %v923_v57 }
  0x43   : > { %653 = vmatpush.bf16.msrb.mxu1 %v987_v58 }
  0x46   : > { %641 = vmatpush.bf16.msrb.mxu0 %v915_v63 }
  0x47   : > { %654 = vmatpush.bf16.msrb.mxu1 %v979_v0 }
  0x4a   : > { %642 = vmatpush.bf16.msrb.mxu0 %v907_v5 }
  0x4b   : > { %655 = vmatpush.bf16.msrb.mxu1 %v971_v6 }
  0x4e   : > { %643 = vmatpush.bf16.msrb.mxu0 %v899_v11 }
  0x4f   : > { %656 = vmatpush.bf16.msrb.mxu1 %v963_v12 }
  0x52   : > { %644 = vmatpush.bf16.msrb.mxu0 %v891_v17 }
  0x53   : > { %657 = vmatpush.bf16.msrb.mxu1 %v955_v18 }
  0x56   : > { %645 = vmatpush.bf16.msrb.mxu0 %v883_v23 }
  0x57   : > { %658 = vmatpush.bf16.msrb.mxu1 %v947_v24 }
  0x59   : > { %646 = vmatmul.bf16.vlgmr.msrb.gmra.mxu0 %v1233_v45 }
  0x5a   : > { %659 = vmatmul.bf16.vlgmr.msrb.gmra.mxu1 %v342_v55 }
  0xb6   : > { %v595_v25 = vpop.f32.mrf.mxu0 }
  0xb7   : > { %v608_v26 = vpop.f32.mrf.mxu1 }
  0xb8   : > { %v609_v27 = vadd.f32 %v608_v26, %v595_v25 }
  0xbe   : > { %v597_v28 = vpop.f32.mrf.mxu0 }
  0xbf   : > { %v610_v29 = vpop.f32.mrf.mxu1 }
  0xc1   : > { %v621_v31 = vpop.f32.mrf.mxu2 }
  0xc2   : > { %v622_v32 = vadd.f32 %v621_v31, %v609_v27  ;;  %v634_v34 = vpop.f32.mrf.mxu3 }
  0xc4   : > { %v664_v33 = vadd.f32 %v622_v32, %v283_v30 }
  0xc6   : > { %666 = vst [vmem:[#allocation2] sm:$0xff] %v664_v33 }
  0xc9   : > { %v623_v35 = vpop.f32.mrf.mxu2 }
  0xca   : > { %v636_v36 = vpop.f32.mrf.mxu3 }
  0xd6   : > { %v647_v37 = vpop.f32.mrf.mxu0 }
  0xd7   : > { %v648_v38 = vadd.f32 %v647_v37, %v634_v34  ;;  %v660_v39 = vpop.f32.mrf.mxu1 }
  0xd9   : > { %v661_v41 = vadd.f32 %v660_v39, %v648_v38 }
  0xdb   : > { %v665_v42 = vadd.f32 %v661_v41, %v284_v40  ;;  %671 = sbr.rel (%p1004_p7) target bundleno = 236 (0xec), region = 40 }
  0xdd   : > { %667 = vst [vmem:[#allocation2 + $0x8] sm:$0xff] %v665_v42 }
  0xde   : > { %v649_v43 = vpop.f32.mrf.mxu0 }
  0xdf   : > { %v662_v44 = vpop.f32.mrf.mxu1 }
  0xe0   : > { %v672_v45 = vld [vmem:[#allocation2] sm:$0xff] }
  0xe1   : > { %v674_v47 = vld [vmem:[%s1281_s2] sm:$0x3] }
  0xe2   : > { %v676_v48 = vperm.slane %v674_v47, 0  ;;  %v677_v49 = vperm.slane %v674_v47, 1 }
  0xe4   : > { %v673_v46 = vld [vmem:[#allocation2 + $0x8] sm:$0xff]  ;;  %v680_v50 = vadd.f32 %v676_v48, %v672_v45 }
  0xe5   : > { %v681_v51 = vadd.f32 %v677_v49, %v673_v46 }
  0xe6   : > { %v682_v52 = vmax.f32 %v680_v50, 0.0 }
  0xe7   : > { %v683_v53 = vmax.f32 %v681_v51, 0.0 }
  0xe9   : > { %v684_v54 = vpack.c.bf16 %v683_v53, %v682_v52 }
  0xeb   : > { %685 = vst [vmem:[%s1282_s3] sm:$0xff] %v684_v54 }
  0xec PF: > { %s13_s14 = sadd.s32 1, %s1105_s14   ;;  %s1283_s12 = smov %s1101_s13 }
  0xed   : > { %p10_p8 = scmp.ge.s32.totalorder %s13_s14, 11   ;;  %s1284_s13 = smov %s1286_s15 }
  0xef   :  { %12 = sbr.rel (!%p10_p8) target bundleno = 2 (0x2), region = 76 }

// kernel: resnet3d_forward.20
= control target key start
LH: loop header
LB: loop body
LE: loop exit
PB: predicated region body
PF: predicated region fallthrough
CT: control target
= control target key end

     0   :  { %s373_s1 = inlined_call_operand.vmem [shape: bf16[128,256], index: 1, kind: input, shape index: {}]   ;;  %s374_s0 = inlined_call_operand.vmem [shape: bf16[8,128], index: 0, kind: input, shape index: {}]   ;;  %s375_s2 = inlined_call_operand.vmem [shape: f32[1,256], index: 2, kind: input, shape index: {}]   ;;  %s376_s3 = inlined_call_operand.vmem [shape: bf16[8,256], index: 3, kind: output, shape index: {}]  }
   0x1   :  { %v226_v0 = vld [vmem:[%s373_s1 + $0x70] sm:$0xf]  ;;  %v247_v1 = vld [vmem:[%s373_s1 + $0x74] sm:$0xf0]  ;;  %v246_v2 = vld [vmem:[%s373_s1 + $0x74] sm:$0xf] }
   0x2   :  { %v227_v3 = vor.u32 %v247_v1, %v226_v0  ;;  %v228_v4 = vld [vmem:[%s373_s1 + $0x78] sm:$0xf0]  ;;  %v218_v5 = vld [vmem:[%s373_s1 + $0x60] sm:$0xf]  ;;  %v245_v6 = vld [vmem:[%s373_s1 + $0x64] sm:$0xf0] }
   0x3   :  { %v231_v7 = vor.u32 %v246_v2, %v228_v4  ;;  %v244_v8 = vld [vmem:[%s373_s1 + $0x64] sm:$0xf]  ;;  %v220_v9 = vld [vmem:[%s373_s1 + $0x68] sm:$0xf0]  ;;  %v219_v10 = vor.u32 %v245_v6, %v218_v5  ;;  %v210_v12 = vld [vmem:[%s373_s1 + $0x50] sm:$0xf] }
   0x4   :  { %119 = vmatpush.bf16.msra.mxu0 %v227_v3  ;;  %v223_v11 = vor.u32 %v244_v8, %v220_v9  ;;  %v243_v13 = vld [vmem:[%s373_s1 + $0x54] sm:$0xf0]  ;;  %v242_v14 = vld [vmem:[%s373_s1 + $0x54] sm:$0xf]  ;;  %v212_v15 = vld [vmem:[%s373_s1 + $0x58] sm:$0xf0] }
   0x5   :  { %132 = vmatpush.bf16.msra.mxu1 %v231_v7  ;;  %v211_v16 = vor.u32 %v243_v13, %v210_v12  ;;  %v215_v17 = vor.u32 %v242_v14, %v212_v15  ;;  %v202_v18 = vld [vmem:[%s373_s1 + $0x40] sm:$0xf]  ;;  %v241_v19 = vld [vmem:[%s373_s1 + $0x44] sm:$0xf0]  ;;  %v240_v20 = vld [vmem:[%s373_s1 + $0x44] sm:$0xf] }
   0x6   :  { %v204_v21 = vld [vmem:[%s373_s1 + $0x48] sm:$0xf0]  ;;  %v203_v22 = vor.u32 %v241_v19, %v202_v18  ;;  %v194_v24 = vld [vmem:[%s373_s1 + $0x30] sm:$0xf]  ;;  %v239_v25 = vld [vmem:[%s373_s1 + $0x34] sm:$0xf0] }
   0x7   :  { %v207_v23 = vor.u32 %v240_v20, %v204_v21  ;;  %v238_v26 = vld [vmem:[%s373_s1 + $0x34] sm:$0xf]  ;;  %v196_v27 = vld [vmem:[%s373_s1 + $0x38] sm:$0xf0]  ;;  %v195_v28 = vor.u32 %v239_v25, %v194_v24  ;;  %v186_v30 = vld [vmem:[%s373_s1 + $0x20] sm:$0xf] }
   0x8   :  { %120 = vmatpush.bf16.msra.mxu0 %v219_v10  ;;  %v199_v29 = vor.u32 %v238_v26, %v196_v27  ;;  %v237_v31 = vld [vmem:[%s373_s1 + $0x24] sm:$0xf0]  ;;  %v236_v32 = vld [vmem:[%s373_s1 + $0x24] sm:$0xf]  ;;  %v188_v33 = vld [vmem:[%s373_s1 + $0x28] sm:$0xf0] }
   0x9   :  { %133 = vmatpush.bf16.msra.mxu1 %v223_v11  ;;  %v187_v34 = vor.u32 %v237_v31, %v186_v30  ;;  %v191_v35 = vor.u32 %v236_v32, %v188_v33  ;;  %v178_v36 = vld [vmem:[%s373_s1 + $0x10] sm:$0xf]  ;;  %v235_v37 = vld [vmem:[%s373_s1 + $0x14] sm:$0xf0]  ;;  %v234_v38 = vld [vmem:[%s373_s1 + $0x14] sm:$0xf] }
   0xa   :  { %v180_v39 = vld [vmem:[%s373_s1 + $0x18] sm:$0xf0]  ;;  %v179_v40 = vor.u32 %v235_v37, %v178_v36  ;;  %v170_v42 = vld [vmem:[%s373_s1] sm:$0xf]  ;;  %v233_v43 = vld [vmem:[%s373_s1 + $0x4] sm:$0xf0] }
   0xb   :  { %v183_v41 = vor.u32 %v234_v38, %v180_v39  ;;  %v232_v44 = vld [vmem:[%s373_s1 + $0x4] sm:$0xf]  ;;  %v172_v45 = vld [vmem:[%s373_s1 + $0x8] sm:$0xf0]  ;;  %v171_v46 = vor.u32 %v233_v43, %v170_v42  ;;  %v22_v48 = vld [vmem:[%s374_s0] sm:$0xf] }
   0xc   :  { %121 = vmatpush.bf16.msra.mxu0 %v211_v16  ;;  %v175_v47 = vor.u32 %v232_v44, %v172_v45  ;;  %v154_v49 = vld [vmem:[%s375_s2] sm:$0x3] }
   0xd   :  { %134 = vmatpush.bf16.msra.mxu1 %v215_v17  ;;  %v156_v50 = vperm.slane %v154_v49, 0  ;;  %v157_v51 = vperm.slane %v154_v49, 1 }
  0x10   :  { %122 = vmatpush.bf16.msra.mxu0 %v203_v22 }
  0x11   :  { %135 = vmatpush.bf16.msra.mxu1 %v207_v23 }
  0x14   :  { %123 = vmatpush.bf16.msra.mxu0 %v195_v28 }
  0x15   :  { %136 = vmatpush.bf16.msra.mxu1 %v199_v29 }
  0x18   :  { %124 = vmatpush.bf16.msra.mxu0 %v187_v34 }
  0x19   :  { %137 = vmatpush.bf16.msra.mxu1 %v191_v35 }
  0x1c   :  { %125 = vmatpush.bf16.msra.mxu0 %v179_v40 }
  0x1d   :  { %138 = vmatpush.bf16.msra.mxu1 %v183_v41 }
  0x20   :  { %126 = vmatpush.bf16.msra.mxu0 %v171_v46 }
  0x21   :  { %139 = vmatpush.bf16.msra.mxu1 %v175_v47 }
  0x23   :  { %127 = vmatmul.bf16.vlgmr.msra.gmra.mxu0 %v22_v48 }
  0x24   :  { %140 = vmatmul.bf16.vlgmr.msra.gmra.mxu1 %v22_v48 }
  0xa0   :  { %v128_v52 = vpop.f32.mrf.mxu0 }
  0xa1   :  { %v160_v53 = vadd.f32 %v156_v50, %v128_v52  ;;  %v141_v54 = vpop.f32.mrf.mxu1 }
  0xa2   :  { %v161_v55 = vadd.f32 %v157_v51, %v141_v54 }
  0xa4   :  { %v162_v56 = vpack.c.bf16 %v161_v55, %v160_v53 }
  0xa6   :  { %163 = vst [vmem:[%s376_s3] sm:$0xff] %v162_v56 }
  0xa8   :  { %v130_v57 = vpop.f32.mrf.mxu0 }
  0xa9   :  { %v143_v58 = vpop.f32.mrf.mxu1 }

// kernel: resnet3d_forward.21
= control target key start
LH: loop header
LB: loop body
LE: loop exit
PB: predicated region body
PF: predicated region fallthrough
CT: control target
= control target key end

     0   :  { %s1223_s15 = smov 0   ;;  %s1225_s16 = smov 0   ;;  %s1377_s0 = inlined_call_operand.vmem [shape: bf16[8,6912], index: 0, kind: input, shape index: {}]   ;;  %s1378_s1 = inlined_call_operand.vmem [shape: bf16[6912,256], index: 1, kind: input, shape index: {}]   ;;  %s1379_s2 = inlined_call_operand.vmem [shape: f32[1,256], index: 2, kind: input, shape index: {}]   ;;  %s1380_s3 = inlined_call_operand.vmem [shape: bf16[8,256], index: 3, kind: input, shape index: {}]   ;;  %s1381_s4 = inlined_call_operand.vmem [shape: bf16[8,256], index: 4, kind: output, shape index: {}]  }
   0x1   :  { %s1227_s17 = smov 0  }
   0x2 LB: > { %s26_s18 = sadd.s32 1, %s1191_s16  ;;  %p897_p0 = scmp.ge.s32.totalorder %s1195_s17, 1  ;;  %s1195_s17 = sphi %s1227_s17, %s14_s17   ;;  %s1191_s16 = sphi %s1225_s16, %s1383_s16   ;;  %s1187_s15 = sphi %s1223_s15, %s1382_s15  }
   0x3   : > { %p27_p1 = scmp.ge.s32.totalorder %s26_s18, 18  ;;  %p236_p2 = scmp.lt.s32.totalorder %s1195_s17, 19 }
   0x5   : > { %s1385_s18 = smov (%p27_p1, %s26_s18), 0  ;;  %p237_p3 = pnand %p897_p0, %p236_p2 }
   0x6   : > { %s293_s19 = smul.u32 (!%p237_p3), 3, %s1187_s15  ;;  %p901_p6 = scmp.ne.s32.totalorder (!%p237_p3), %s1187_s15, 0 }
   0x7   : > { %240 = sbr.rel (%p237_p3) target bundleno = 238 (0xee), region = 36 }
   0x8   : > { %s303_s20 = smul.u32 (!%p237_p3), 48, %s1187_s15  ;;  %p296_p4 = scmp.lt.s32.totalorder (!%p237_p3), %s293_s19, 53 }
   0xa   : > { %p305_p5 = scmp.lt.s32.totalorder (!%p237_p3), %s303_s20, 863 }
   0xc   : > { %s1387_s19 = smov (!%p296_p4, %s293_s19), 53  ;;  %s1389_s20 = smov (!%p305_p5, %s303_s20), 863 }
   0xd   : > { %s898_s21 = sshll.u32 %s1387_s19, 2  ;;  %s1099_s25 = sshll.u32 %s1389_s20, 3 }
   0xe   : > { %s1248_s24 = scalar_lea.vmem %s1377_s0, %s898_s21  ;;  %s1253_s28 = scalar_lea.vmem %s1378_s1, %s1099_s25 }
   0xf   : > { %343 = sbr.rel (%p901_p6) target bundleno = 23 (0x17), region = 40 }
  0x14   : > { %v1197_v0 = vmov 0.0  }
  0x15   : > { %344 = vst [vmem:[#allocation2] sm:$0xff] %v1197_v0 }
  0x16   : > { %345 = vst [vmem:[#allocation2 + $0x8] sm:$0xff] %v1197_v0 }
  0x17 PF: > { %v960_v1 = vld [vmem:[%s1253_s28 + $0x70] sm:$0xf]  ;;  %v1115_v2 = vld [vmem:[%s1253_s28 + $0x74] sm:$0xf0]  ;;  %v952_v6 = vld [vmem:[%s1253_s28 + $0x60] sm:$0xf] }
  0x18   : > { %v1024_v3 = vld [vmem:[%s1253_s28 + $0xf0] sm:$0xf]  ;;  %v961_v4 = vor.u32 %v1115_v2, %v960_v1  ;;  %v1131_v5 = vld [vmem:[%s1253_s28 + $0xf4] sm:$0xf0]  ;;  %v1113_v7 = vld [vmem:[%s1253_s28 + $0x64] sm:$0xf0] }
  0x19   : > { %v1025_v8 = vor.u32 %v1131_v5, %v1024_v3  ;;  %v1016_v9 = vld [vmem:[%s1253_s28 + $0xe0] sm:$0xf]  ;;  %v1129_v10 = vld [vmem:[%s1253_s28 + $0xe4] sm:$0xf0]  ;;  %v953_v11 = vor.u32 %v1113_v7, %v952_v6  ;;  %v944_v12 = vld [vmem:[%s1253_s28 + $0x50] sm:$0xf] }
  0x1a   : > { %649 = vmatpush.bf16.msra.mxu0 %v961_v4  ;;  %v1017_v13 = vor.u32 %v1129_v10, %v1016_v9  ;;  %v1111_v14 = vld [vmem:[%s1253_s28 + $0x54] sm:$0xf0]  ;;  %v1088_v15 = vld [vmem:[%s1253_s28 + $0x170] sm:$0xf]  ;;  %v1080_v20 = vld [vmem:[%s1253_s28 + $0x160] sm:$0xf] }
  0x1b   : > { %662 = vmatpush.bf16.msra.mxu1 %v1025_v8  ;;  %v1147_v16 = vld [vmem:[%s1253_s28 + $0x174] sm:$0xf0]  ;;  %v1008_v17 = vld [vmem:[%s1253_s28 + $0xd0] sm:$0xf]  ;;  %v1145_v21 = vld [vmem:[%s1253_s28 + $0x164] sm:$0xf0]  ;;  %v945_v23 = vor.u32 %v1111_v14, %v944_v12 }
  0x1c   : > { %v1127_v18 = vld [vmem:[%s1253_s28 + $0xd4] sm:$0xf0]  ;;  %v1089_v19 = vor.u32 %v1147_v16, %v1088_v15  ;;  %v1114_v22 = vld [vmem:[%s1253_s28 + $0x74] sm:$0xf]  ;;  %v936_v24 = vld [vmem:[%s1253_s28 + $0x40] sm:$0xf]  ;;  %v1081_v26 = vor.u32 %v1145_v21, %v1080_v20 }
  0x1d   : > { %v1109_v25 = vld [vmem:[%s1253_s28 + $0x44] sm:$0xf0]  ;;  %v962_v27 = vld [vmem:[%s1253_s28 + $0x78] sm:$0xf0]  ;;  %v1009_v28 = vor.u32 %v1127_v18, %v1008_v17  ;;  %v1000_v29 = vld [vmem:[%s1253_s28 + $0xc0] sm:$0xf] }
  0x1e   : > { %650 = vmatpush.bf16.msra.mxu0 %v953_v11  ;;  %675 = vmatpush.bf16.msra.mxu2 %v1089_v19  ;;  %v1125_v30 = vld [vmem:[%s1253_s28 + $0xc4] sm:$0xf0]  ;;  %v965_v31 = vor.u32 %v1114_v22, %v962_v27  ;;  %v1072_v32 = vld [vmem:[%s1253_s28 + $0x150] sm:$0xf]  ;;  %v1143_v33 = vld [vmem:[%s1253_s28 + $0x154] sm:$0xf0]  ;;  %v937_v37 = vor.u32 %v1109_v25, %v936_v24 }
  0x1f   : > { %663 = vmatpush.bf16.msra.mxu1 %v1017_v13  ;;  %v1112_v34 = vld [vmem:[%s1253_s28 + $0x64] sm:$0xf]  ;;  %v954_v35 = vld [vmem:[%s1253_s28 + $0x68] sm:$0xf0]  ;;  %v928_v38 = vld [vmem:[%s1253_s28 + $0x30] sm:$0xf]  ;;  %v1073_v40 = vor.u32 %v1143_v33, %v1072_v32  ;;  %v1001_v42 = vor.u32 %v1125_v30, %v1000_v29 }
  0x20   : > { %688 = vmatpush.bf16.msra.mxu3 %v965_v31  ;;  %v957_v36 = vor.u32 %v1112_v34, %v954_v35  ;;  %v1107_v39 = vld [vmem:[%s1253_s28 + $0x34] sm:$0xf0]  ;;  %v1064_v41 = vld [vmem:[%s1253_s28 + $0x140] sm:$0xf]  ;;  %v1141_v43 = vld [vmem:[%s1253_s28 + $0x144] sm:$0xf0] }
  0x21   : > { %v1110_v44 = vld [vmem:[%s1253_s28 + $0x54] sm:$0xf]  ;;  %v946_v45 = vld [vmem:[%s1253_s28 + $0x58] sm:$0xf0]  ;;  %v992_v46 = vld [vmem:[%s1253_s28 + $0xb0] sm:$0xf]  ;;  %v929_v49 = vor.u32 %v1107_v39, %v928_v38  ;;  %v1065_v51 = vor.u32 %v1141_v43, %v1064_v41 }
  0x22   : > { %651 = vmatpush.bf16.msra.mxu0 %v945_v23  ;;  %676 = vmatpush.bf16.msra.mxu2 %v1081_v26  ;;  %v1123_v47 = vld [vmem:[%s1253_s28 + $0xb4] sm:$0xf0]  ;;  %v949_v48 = vor.u32 %v1110_v44, %v946_v45  ;;  %v920_v50 = vld [vmem:[%s1253_s28 + $0x20] sm:$0xf]  ;;  %v1108_v52 = vld [vmem:[%s1253_s28 + $0x44] sm:$0xf] }
  0x23   : > { %664 = vmatpush.bf16.msra.mxu1 %v1009_v28  ;;  %v938_v53 = vld [vmem:[%s1253_s28 + $0x48] sm:$0xf0]  ;;  %v993_v54 = vor.u32 %v1123_v47, %v992_v46  ;;  %v1105_v55 = vld [vmem:[%s1253_s28 + $0x24] sm:$0xf0]  ;;  %v1056_v56 = vld [vmem:[%s1253_s28 + $0x130] sm:$0xf] }
  0x24   : > { %689 = vmatpush.bf16.msra.mxu3 %v957_v36  ;;  %v1139_v57 = vld [vmem:[%s1253_s28 + $0x134] sm:$0xf0]  ;;  %v984_v58 = vld [vmem:[%s1253_s28 + $0xa0] sm:$0xf]  ;;  %v1121_v59 = vld [vmem:[%s1253_s28 + $0xa4] sm:$0xf0]  ;;  %v941_v60 = vor.u32 %v1108_v52, %v938_v53  ;;  %v921_v61 = vor.u32 %v1105_v55, %v920_v50 }
  0x25   : > { %v912_v62 = vld [vmem:[%s1253_s28 + $0x10] sm:$0xf]  ;;  %v1057_v63 = vor.u32 %v1139_v57, %v1056_v56  ;;  %v1106_v0 = vld [vmem:[%s1253_s28 + $0x34] sm:$0xf]  ;;  %v930_v1 = vld [vmem:[%s1253_s28 + $0x38] sm:$0xf0]  ;;  %v985_v2 = vor.u32 %v1121_v59, %v984_v58 }
  0x26   : > { %652 = vmatpush.bf16.msra.mxu0 %v937_v37  ;;  %677 = vmatpush.bf16.msra.mxu2 %v1073_v40  ;;  %v1103_v3 = vld [vmem:[%s1253_s28 + $0x14] sm:$0xf0]  ;;  %v1048_v4 = vld [vmem:[%s1253_s28 + $0x120] sm:$0xf]  ;;  %v1137_v5 = vld [vmem:[%s1253_s28 + $0x124] sm:$0xf0]  ;;  %v933_v10 = vor.u32 %v1106_v0, %v930_v1 }
  0x27   : > { %665 = vmatpush.bf16.msra.mxu1 %v1001_v42  ;;  %v976_v6 = vld [vmem:[%s1253_s28 + $0x90] sm:$0xf]  ;;  %v1119_v7 = vld [vmem:[%s1253_s28 + $0x94] sm:$0xf0]  ;;  %v904_v8 = vld [vmem:[%s1253_s28] sm:$0xf]  ;;  %v913_v11 = vor.u32 %v1103_v3, %v912_v62  ;;  %v1049_v12 = vor.u32 %v1137_v5, %v1048_v4 }
  0x28   : > { %690 = vmatpush.bf16.msra.mxu3 %v949_v48  ;;  %v1101_v9 = vld [vmem:[%s1253_s28 + $0x4] sm:$0xf0]  ;;  %v1104_v13 = vld [vmem:[%s1253_s28 + $0x24] sm:$0xf]  ;;  %v922_v14 = vld [vmem:[%s1253_s28 + $0x28] sm:$0xf0]  ;;  %v977_v16 = vor.u32 %v1119_v7, %v976_v6 }
  0x29   : > { %v348_v15 = vld [vmem:[%s1248_s24] sm:$0xff]  ;;  %v1040_v18 = vld [vmem:[%s1253_s28 + $0x110] sm:$0xf]  ;;  %v1135_v19 = vld [vmem:[%s1253_s28 + $0x114] sm:$0xf0]  ;;  %v925_v25 = vor.u32 %v1104_v13, %v922_v14  ;;  %v905_v27 = vor.u32 %v1101_v9, %v904_v8  ;;  %p1094_p7 = scmp.ne.s32.totalorder %s1187_s15, 17 }
  0x2a   : > { %653 = vmatpush.bf16.msra.mxu0 %v929_v49  ;;  %678 = vmatpush.bf16.msra.mxu2 %v1065_v51  ;;  %v968_v17 = vld [vmem:[%s1253_s28 + $0x80] sm:$0xf]  ;;  %v1117_v20 = vld [vmem:[%s1253_s28 + $0x84] sm:$0xf0]  ;;  %v1130_v21 = vld [vmem:[%s1253_s28 + $0xf4] sm:$0xf]  ;;  %v400_v26 = vunpack.c.l.b16 %v348_v15  ;;  %v1041_v28 = vor.u32 %v1135_v19, %v1040_v18  ;;  %v401_v29 = vunpack.c.h.b16 %v348_v15 }
  0x2b   : > { %666 = vmatpush.bf16.msra.mxu1 %v993_v54  ;;  %v1026_v22 = vld [vmem:[%s1253_s28 + $0xf8] sm:$0xf0]  ;;  %v1146_v23 = vld [vmem:[%s1253_s28 + $0x174] sm:$0xf]  ;;  %v349_v32 = vld [vmem:[%s1248_s24 + $0x8] sm:$0xf]  ;;  %v969_v33 = vor.u32 %v1117_v20, %v968_v17 }
  0x2c   : > { %691 = vmatpush.bf16.msra.mxu3 %v941_v60  ;;  %v1090_v24 = vld [vmem:[%s1253_s28 + $0x178] sm:$0xf0]  ;;  %v1102_v30 = vld [vmem:[%s1253_s28 + $0x14] sm:$0xf]  ;;  %v1029_v34 = vor.u32 %v1130_v21, %v1026_v22  ;;  %v1032_v35 = vld [vmem:[%s1253_s28 + $0x100] sm:$0xf]  ;;  %v403_v42 = vpack.c.b16 %v400_v26, %v400_v26  ;;  %v402_v44 = vunpack.c.l.b16 %v349_v32  ;;  %v1328_v45 = vpack.c.b16 %v401_v29, %v401_v29 }
  0x2d   : > { %v914_v31 = vld [vmem:[%s1253_s28 + $0x18] sm:$0xf0]  ;;  %v1133_v36 = vld [vmem:[%s1253_s28 + $0x104] sm:$0xf0]  ;;  %v1093_v37 = vor.u32 %v1146_v23, %v1090_v24  ;;  %v1128_v38 = vld [vmem:[%s1253_s28 + $0xe4] sm:$0xf] }
  0x2e   : > { %654 = vmatpush.bf16.msra.mxu0 %v921_v61  ;;  %679 = vmatpush.bf16.msra.mxu2 %v1057_v63  ;;  %v1018_v39 = vld [vmem:[%s1253_s28 + $0xe8] sm:$0xf0]  ;;  %v1144_v40 = vld [vmem:[%s1253_s28 + $0x164] sm:$0xf]  ;;  %v917_v43 = vor.u32 %v1102_v30, %v914_v31  ;;  %v1033_v46 = vor.u32 %v1133_v36, %v1032_v35  ;;  %v1126_v51 = vld [vmem:[%s1253_s28 + $0xd4] sm:$0xf]  ;;  %v405_v55 = vpack.c.b16 %v402_v44, %v402_v44 }
  0x2f   : > { %667 = vmatpush.bf16.msra.mxu1 %v985_v2  ;;  %v1082_v41 = vld [vmem:[%s1253_s28 + $0x168] sm:$0xf0]  ;;  %v1100_v47 = vld [vmem:[%s1253_s28 + $0x4] sm:$0xf]  ;;  %v1021_v49 = vor.u32 %v1128_v38, %v1018_v39  ;;  %v1010_v52 = vld [vmem:[%s1253_s28 + $0xd8] sm:$0xf0] }
  0x30   : > { %692 = vmatpush.bf16.msra.mxu3 %v933_v10  ;;  %v906_v48 = vld [vmem:[%s1253_s28 + $0x8] sm:$0xf0]  ;;  %v1085_v50 = vor.u32 %v1144_v40, %v1082_v41  ;;  %v1142_v53 = vld [vmem:[%s1253_s28 + $0x154] sm:$0xf]  ;;  %v1074_v54 = vld [vmem:[%s1253_s28 + $0x158] sm:$0xf0]  ;;  %v1013_v57 = vor.u32 %v1126_v51, %v1010_v52 }
  0x31   : > { %v909_v56 = vor.u32 %v1100_v47, %v906_v48  ;;  %v1077_v58 = vor.u32 %v1142_v53, %v1074_v54  ;;  %v1124_v59 = vld [vmem:[%s1253_s28 + $0xc4] sm:$0xf]  ;;  %v1002_v60 = vld [vmem:[%s1253_s28 + $0xc8] sm:$0xf0]  ;;  %v1122_v1 = vld [vmem:[%s1253_s28 + $0xb4] sm:$0xf] }
  0x32   : > { %655 = vmatpush.bf16.msra.mxu0 %v913_v11  ;;  %680 = vmatpush.bf16.msra.mxu2 %v1049_v12  ;;  %v1140_v61 = vld [vmem:[%s1253_s28 + $0x144] sm:$0xf]  ;;  %v1066_v62 = vld [vmem:[%s1253_s28 + $0x148] sm:$0xf0]  ;;  %v1005_v63 = vor.u32 %v1124_v59, %v1002_v60  ;;  %v994_v2 = vld [vmem:[%s1253_s28 + $0xb8] sm:$0xf0] }
  0x33   : > { %668 = vmatpush.bf16.msra.mxu1 %v977_v16  ;;  %v1069_v0 = vor.u32 %v1140_v61, %v1066_v62  ;;  %v1138_v3 = vld [vmem:[%s1253_s28 + $0x134] sm:$0xf]  ;;  %v1058_v4 = vld [vmem:[%s1253_s28 + $0x138] sm:$0xf0]  ;;  %v997_v5 = vor.u32 %v1122_v1, %v994_v2  ;;  %v1120_v7 = vld [vmem:[%s1253_s28 + $0xa4] sm:$0xf] }
  0x34   : > { %693 = vmatpush.bf16.msra.mxu3 %v925_v25  ;;  %v1061_v6 = vor.u32 %v1138_v3, %v1058_v4  ;;  %v986_v8 = vld [vmem:[%s1253_s28 + $0xa8] sm:$0xf0]  ;;  %v1136_v9 = vld [vmem:[%s1253_s28 + $0x124] sm:$0xf]  ;;  %v1118_v13 = vld [vmem:[%s1253_s28 + $0x94] sm:$0xf] }
  0x35   : > { %v1050_v10 = vld [vmem:[%s1253_s28 + $0x128] sm:$0xf0]  ;;  %v989_v11 = vor.u32 %v1120_v7, %v986_v8  ;;  %v978_v14 = vld [vmem:[%s1253_s28 + $0x98] sm:$0xf0]  ;;  %v1134_v15 = vld [vmem:[%s1253_s28 + $0x114] sm:$0xf] }
  0x36   : > { %656 = vmatpush.bf16.msra.mxu0 %v905_v27  ;;  %681 = vmatpush.bf16.msra.mxu2 %v1041_v28  ;;  %v1053_v12 = vor.u32 %v1136_v9, %v1050_v10  ;;  %v1042_v16 = vld [vmem:[%s1253_s28 + $0x118] sm:$0xf0]  ;;  %v981_v17 = vor.u32 %v1118_v13, %v978_v14  ;;  %v1116_v19 = vld [vmem:[%s1253_s28 + $0x84] sm:$0xf]  ;;  %v970_v20 = vld [vmem:[%s1253_s28 + $0x88] sm:$0xf0] }
  0x37   : > { %669 = vmatpush.bf16.msra.mxu1 %v969_v33  ;;  %v1045_v18 = vor.u32 %v1134_v15, %v1042_v16  ;;  %v1132_v21 = vld [vmem:[%s1253_s28 + $0x104] sm:$0xf]  ;;  %v1034_v22 = vld [vmem:[%s1253_s28 + $0x108] sm:$0xf0]  ;;  %v973_v23 = vor.u32 %v1116_v19, %v970_v20 }
  0x38   : > { %694 = vmatpush.bf16.msra.mxu3 %v917_v43  ;;  %v1037_v24 = vor.u32 %v1132_v21, %v1034_v22  ;;  %v346_v30 = vld [vmem:[#allocation2] sm:$0xff]  ;;  %v347_v40 = vld [vmem:[#allocation2 + $0x8] sm:$0xff] }
  0x39   : > { %657 = vmatmul.bf16.vlgmr.msra.gmra.mxu0 %v403_v42 }
  0x3a   : > { %701 = vmatpush.bf16.msrb.mxu0 %v1029_v34  ;;  %670 = vmatmul.bf16.vlgmr.msra.gmra.mxu1 %v1328_v45 }
  0x3b   : > { %714 = vmatpush.bf16.msrb.mxu1 %v1093_v37  ;;  %682 = vmatpush.bf16.msra.mxu2 %v1033_v46 }
  0x3c   : > { %695 = vmatpush.bf16.msra.mxu3 %v909_v56 }
  0x3e   : > { %702 = vmatpush.bf16.msrb.mxu0 %v1021_v49  ;;  %683 = vmatmul.bf16.vlgmr.msra.gmra.mxu2 %v405_v55 }
  0x3f   : > { %715 = vmatpush.bf16.msrb.mxu1 %v1085_v50  ;;  %696 = vmatmul.bf16.vlgmr.msra.gmra.mxu3 %v403_v42 }
  0x42   : > { %703 = vmatpush.bf16.msrb.mxu0 %v1013_v57 }
  0x43   : > { %716 = vmatpush.bf16.msrb.mxu1 %v1077_v58 }
  0x46   : > { %704 = vmatpush.bf16.msrb.mxu0 %v1005_v63 }
  0x47   : > { %717 = vmatpush.bf16.msrb.mxu1 %v1069_v0 }
  0x4a   : > { %705 = vmatpush.bf16.msrb.mxu0 %v997_v5 }
  0x4b   : > { %718 = vmatpush.bf16.msrb.mxu1 %v1061_v6 }
  0x4e   : > { %706 = vmatpush.bf16.msrb.mxu0 %v989_v11 }
  0x4f   : > { %719 = vmatpush.bf16.msrb.mxu1 %v1053_v12 }
  0x52   : > { %707 = vmatpush.bf16.msrb.mxu0 %v981_v17 }
  0x53   : > { %720 = vmatpush.bf16.msrb.mxu1 %v1045_v18 }
  0x56   : > { %708 = vmatpush.bf16.msrb.mxu0 %v973_v23 }
  0x57   : > { %721 = vmatpush.bf16.msrb.mxu1 %v1037_v24 }
  0x59   : > { %709 = vmatmul.bf16.vlgmr.msrb.gmra.mxu0 %v1328_v45 }
  0x5a   : > { %722 = vmatmul.bf16.vlgmr.msrb.gmra.mxu1 %v405_v55 }
  0xb6   : > { %v658_v25 = vpop.f32.mrf.mxu0 }
  0xb7   : > { %v671_v26 = vpop.f32.mrf.mxu1 }
  0xb8   : > { %v672_v27 = vadd.f32 %v671_v26, %v658_v25 }
  0xbe   : > { %v660_v28 = vpop.f32.mrf.mxu0 }
  0xbf   : > { %v673_v29 = vpop.f32.mrf.mxu1 }
  0xc1   : > { %v684_v31 = vpop.f32.mrf.mxu2 }
  0xc2   : > { %v685_v32 = vadd.f32 %v684_v31, %v672_v27  ;;  %v697_v34 = vpop.f32.mrf.mxu3 }
  0xc4   : > { %v727_v33 = vadd.f32 %v685_v32, %v346_v30 }
  0xc6   : > { %729 = vst [vmem:[#allocation2] sm:$0xff] %v727_v33 }
  0xc9   : > { %v686_v35 = vpop.f32.mrf.mxu2 }
  0xca   : > { %v699_v36 = vpop.f32.mrf.mxu3 }
  0xd6   : > { %v710_v37 = vpop.f32.mrf.mxu0 }
  0xd7   : > { %v711_v38 = vadd.f32 %v710_v37, %v697_v34  ;;  %v723_v39 = vpop.f32.mrf.mxu1 }
  0xd9   : > { %v724_v41 = vadd.f32 %v723_v39, %v711_v38 }
  0xdb   : > { %v728_v42 = vadd.f32 %v724_v41, %v347_v40  ;;  %734 = sbr.rel (%p1094_p7) target bundleno = 238 (0xee), region = 44 }
  0xdd   : > { %730 = vst [vmem:[#allocation2 + $0x8] sm:$0xff] %v728_v42 }
  0xde   : > { %v712_v43 = vpop.f32.mrf.mxu0 }
  0xdf   : > { %v725_v44 = vpop.f32.mrf.mxu1 }
  0xe0   : > { %v735_v45 = vld [vmem:[#allocation2] sm:$0xff] }
  0xe1   : > { %v737_v47 = vld [vmem:[%s1379_s2] sm:$0x3] }
  0xe2   : > { %v739_v48 = vperm.slane %v737_v47, 0  ;;  %v740_v49 = vperm.slane %v737_v47, 1  ;;  %v745_v50 = vld [vmem:[%s1380_s3] sm:$0xff] }
  0xe3   : > { %v746_v51 = vunpack.c.l.bf16 %v745_v50  ;;  %v747_v52 = vunpack.c.h.bf16 %v745_v50 }
  0xe4   : > { %v736_v46 = vld [vmem:[#allocation2 + $0x8] sm:$0xff]  ;;  %v743_v53 = vadd.f32 %v739_v48, %v735_v45 }
  0xe5   : > { %v744_v54 = vadd.f32 %v740_v49, %v736_v46 }
  0xe6   : > { %v748_v55 = vadd.f32 %v746_v51, %v743_v53 }
  0xe7   : > { %v749_v56 = vadd.f32 %v747_v52, %v744_v54 }
  0xe8   : > { %v750_v57 = vmax.f32 %v748_v55, 0.0 }
  0xe9   : > { %v751_v58 = vmax.f32 %v749_v56, 0.0 }
  0xeb   : > { %v752_v59 = vpack.c.bf16 %v751_v58, %v750_v57 }
  0xed   : > { %753 = vst [vmem:[%s1381_s4] sm:$0xff] %v752_v59 }
  0xee PF: > { %s14_s17 = sadd.s32 1, %s1195_s17   ;;  %s1382_s15 = smov %s1191_s16 }
  0xef   : > { %p11_p8 = scmp.ge.s32.totalorder %s14_s17, 20   ;;  %s1383_s16 = smov %s1385_s18 }
  0xf1   :  { %13 = sbr.rel (!%p11_p8) target bundleno = 2 (0x2), region = 83 }

// kernel: resnet3d_forward.22
= control target key start
LH: loop header
LB: loop body
LE: loop exit
PB: predicated region body
PF: predicated region fallthrough
CT: control target
= control target key end

     0   :  { %s1412_s12 = smov 0   ;;  %s1414_s13 = smov 0   ;;  %s1727_s0 = inlined_call_operand.vmem [shape: bf16[8,6912], index: 0, kind: input, shape index: {}]   ;;  %s1728_s1 = inlined_call_operand.vmem [shape: bf16[6912,512], index: 1, kind: input, shape index: {}]   ;;  %s1729_s2 = inlined_call_operand.vmem [shape: f32[1,512], index: 2, kind: input, shape index: {}]   ;;  %s1730_s3 = inlined_call_operand.vmem [shape: bf16[8,512], index: 3, kind: output, shape index: {}]  }
   0x1   :  { %s1416_s14 = smov 0   ;;  %s1418_s15 = smov 0  }
   0x2   :  { %s1420_s16 = smov 0   ;;  %s1422_s17 = smov 0  }
   0x3   :  { %s1424_s18 = smov 0  }
   0x4 LB: > { %s25_s19 = sadd.s32 1, %s1381_s16  ;;  %s28_s20 = sadd.s32 1, %s1385_s17  ;;  %s1389_s18 = sphi %s1424_s18, %s13_s18   ;;  %s1385_s17 = sphi %s1422_s17, %s1736_s17   ;;  %s1381_s16 = sphi %s1420_s16, %s1735_s16   ;;  %s1377_s15 = sphi %s1418_s15, %s1734_s15   ;;  %s1373_s14 = sphi %s1416_s14, %s1733_s14   ;;  %s1369_s13 = sphi %s1414_s13, %s1732_s13   ;;  %s1365_s12 = sphi %s1412_s12, %s1731_s12  }
   0x5   : > { %p26_p0 = scmp.ge.s32.totalorder %s25_s19, 18  ;;  %p76_p1 = scmp.ne.s32.totalorder %s1369_s13, %s1365_s12 }
   0x6   : > { %p77_p2 = scmp.eq.s32.totalorder %s1389_s18, 0  ;;  %s69_s24 = sadd.s32 1, %s1369_s13 }
   0x7   : > { %s1738_s19 = smov (%p26_p0, %s25_s19), 0  ;;  %s1740_s20 = smov (!%p26_p0, %s28_s20), %s1385_s17 }
   0x8   : > { %p78_p3 = por %p77_p2, %p76_p1  ;;  %p30_p4 = scmp.ge.s32.totalorder %s1740_s20, 2 }
   0x9   : > { %s64_s21 = ssub.s32 %s1381_s16, %s1738_s19  ;;  %p1022_p6 = scmp.ge.s32.totalorder %s1389_s18, 36 }
   0xa   : > { %s1742_s20 = smov (%p30_p4, %s1740_s20), 0 }
   0xb   : > { %s65_s22 = ssub.s32 %s1385_s17, %s1742_s20  ;;  %156 = sbr.rel (%p1022_p6) target bundleno = 72 (0x48), region = 16 }
   0xc   : > { %s66_s23 = sor.u32 %s65_s22, %s64_s21 }
   0xd   : > { %p67_p5 = scmp.eq.s32.totalorder %s66_s23, 0 }
   0xf   : > { %s1463_s25 = scalar_select %p67_p5, %s1369_s13, %s69_s24  }
  0x10   : > { %172 = sbr.rel (!%p78_p3) target bundleno = 72 (0x48), region = 24  ;;  %s174_s26 = sand.u32 (%p78_p3), 1, %s1369_s13  }
  0x11   : > { %s1276_s27 = smul.u32 (%p78_p3), 384, %s174_s26  ;;  %s1023_s28 = sshll.u32 (%p78_p3), %s1385_s17, 1 }
  0x12   : > { %s1227_s29 = smul.u32 (%p78_p3), 192, %s1381_s16 }
  0x13   : > { %s1477_s8 = scalar_lea.vmem (%p78_p3), [#allocation3], %s1276_s27 }
  0x14   : > { %s180_s30 = sadd.s32 (%p78_p3), %s1227_s29, %s1023_s28 }
  0x15   : > { %s1025_s4 = sshll.u32 %s180_s30, 2 }
  0x16   : > { %s1472_s7 = scalar_lea.vmem %s1728_s1, %s1025_s4 }
  0x17   : > { %v305_v0 = vld [vmem:[%s1472_s7] sm:$0xff]  ;;  %v307_v1 = vld [vmem:[%s1472_s7 + $0x10] sm:$0xff] }
  0x18   : > { %v309_v2 = vld [vmem:[%s1472_s7 + $0x20] sm:$0xff]  ;;  %306 = vst [vmem:[%s1477_s8] sm:$0xff] %v305_v0  ;;  %v311_v3 = vld [vmem:[%s1472_s7 + $0x30] sm:$0xff] }
  0x19   : > { %308 = vst [vmem:[%s1477_s8 + $0x8] sm:$0xff] %v307_v1  ;;  %v313_v4 = vld [vmem:[%s1472_s7 + $0x40] sm:$0xff]  ;;  %v315_v5 = vld [vmem:[%s1472_s7 + $0x50] sm:$0xff] }
  0x1a   : > { %310 = vst [vmem:[%s1477_s8 + $0x10] sm:$0xff] %v309_v2  ;;  %v317_v6 = vld [vmem:[%s1472_s7 + $0x60] sm:$0xff]  ;;  %v319_v7 = vld [vmem:[%s1472_s7 + $0x70] sm:$0xff] }
  0x1b   : > { %312 = vst [vmem:[%s1477_s8 + $0x18] sm:$0xff] %v311_v3  ;;  %v321_v8 = vld [vmem:[%s1472_s7 + $0x80] sm:$0xff]  ;;  %v323_v9 = vld [vmem:[%s1472_s7 + $0x90] sm:$0xff] }
  0x1c   : > { %314 = vst [vmem:[%s1477_s8 + $0x20] sm:$0xff] %v313_v4  ;;  %v325_v10 = vld [vmem:[%s1472_s7 + $0xa0] sm:$0xff]  ;;  %v327_v11 = vld [vmem:[%s1472_s7 + $0xb0] sm:$0xff] }
  0x1d   : > { %316 = vst [vmem:[%s1477_s8 + $0x28] sm:$0xff] %v315_v5  ;;  %v329_v12 = vld [vmem:[%s1472_s7 + $0xc0] sm:$0xff]  ;;  %v331_v13 = vld [vmem:[%s1472_s7 + $0xd0] sm:$0xff] }
  0x1e   : > { %318 = vst [vmem:[%s1477_s8 + $0x30] sm:$0xff] %v317_v6  ;;  %v333_v14 = vld [vmem:[%s1472_s7 + $0xe0] sm:$0xff]  ;;  %v335_v15 = vld [vmem:[%s1472_s7 + $0xf0] sm:$0xff] }
  0x1f   : > { %320 = vst [vmem:[%s1477_s8 + $0x38] sm:$0xff] %v319_v7  ;;  %v337_v16 = vld [vmem:[%s1472_s7 + $0x100] sm:$0xff]  ;;  %v339_v17 = vld [vmem:[%s1472_s7 + $0x110] sm:$0xff] }
  0x20   : > { %322 = vst [vmem:[%s1477_s8 + $0x40] sm:$0xff] %v321_v8  ;;  %v341_v18 = vld [vmem:[%s1472_s7 + $0x120] sm:$0xff]  ;;  %v343_v19 = vld [vmem:[%s1472_s7 + $0x130] sm:$0xff] }
  0x21   : > { %324 = vst [vmem:[%s1477_s8 + $0x48] sm:$0xff] %v323_v9  ;;  %v345_v20 = vld [vmem:[%s1472_s7 + $0x140] sm:$0xff]  ;;  %v347_v21 = vld [vmem:[%s1472_s7 + $0x150] sm:$0xff] }
  0x22   : > { %326 = vst [vmem:[%s1477_s8 + $0x50] sm:$0xff] %v325_v10  ;;  %v349_v22 = vld [vmem:[%s1472_s7 + $0x160] sm:$0xff]  ;;  %v351_v23 = vld [vmem:[%s1472_s7 + $0x170] sm:$0xff] }
  0x23   : > { %328 = vst [vmem:[%s1477_s8 + $0x58] sm:$0xff] %v327_v11  ;;  %v353_v24 = vld [vmem:[%s1472_s7 + $0x180] sm:$0xff]  ;;  %v355_v25 = vld [vmem:[%s1472_s7 + $0x190] sm:$0xff] }
  0x24   : > { %330 = vst [vmem:[%s1477_s8 + $0x60] sm:$0xff] %v329_v12  ;;  %v357_v26 = vld [vmem:[%s1472_s7 + $0x1a0] sm:$0xff]  ;;  %v359_v27 = vld [vmem:[%s1472_s7 + $0x1b0] sm:$0xff] }
  0x25   : > { %332 = vst [vmem:[%s1477_s8 + $0x68] sm:$0xff] %v331_v13  ;;  %v361_v28 = vld [vmem:[%s1472_s7 + $0x1c0] sm:$0xff]  ;;  %v363_v29 = vld [vmem:[%s1472_s7 + $0x1d0] sm:$0xff] }
  0x26   : > { %334 = vst [vmem:[%s1477_s8 + $0x70] sm:$0xff] %v333_v14  ;;  %v365_v30 = vld [vmem:[%s1472_s7 + $0x1e0] sm:$0xff]  ;;  %v367_v31 = vld [vmem:[%s1472_s7 + $0x1f0] sm:$0xff] }
  0x27   : > { %336 = vst [vmem:[%s1477_s8 + $0x78] sm:$0xff] %v335_v15  ;;  %v369_v32 = vld [vmem:[%s1472_s7 + $0x200] sm:$0xff]  ;;  %v371_v33 = vld [vmem:[%s1472_s7 + $0x210] sm:$0xff] }
  0x28   : > { %338 = vst [vmem:[%s1477_s8 + $0x80] sm:$0xff] %v337_v16  ;;  %v373_v34 = vld [vmem:[%s1472_s7 + $0x220] sm:$0xff]  ;;  %v375_v35 = vld [vmem:[%s1472_s7 + $0x230] sm:$0xff] }
  0x29   : > { %340 = vst [vmem:[%s1477_s8 + $0x88] sm:$0xff] %v339_v17  ;;  %v377_v36 = vld [vmem:[%s1472_s7 + $0x240] sm:$0xff]  ;;  %v379_v37 = vld [vmem:[%s1472_s7 + $0x250] sm:$0xff] }
  0x2a   : > { %342 = vst [vmem:[%s1477_s8 + $0x90] sm:$0xff] %v341_v18  ;;  %v381_v38 = vld [vmem:[%s1472_s7 + $0x260] sm:$0xff]  ;;  %v383_v39 = vld [vmem:[%s1472_s7 + $0x270] sm:$0xff] }
  0x2b   : > { %344 = vst [vmem:[%s1477_s8 + $0x98] sm:$0xff] %v343_v19  ;;  %v385_v40 = vld [vmem:[%s1472_s7 + $0x280] sm:$0xff]  ;;  %v387_v41 = vld [vmem:[%s1472_s7 + $0x290] sm:$0xff] }
  0x2c   : > { %346 = vst [vmem:[%s1477_s8 + $0xa0] sm:$0xff] %v345_v20  ;;  %v389_v42 = vld [vmem:[%s1472_s7 + $0x2a0] sm:$0xff]  ;;  %v391_v43 = vld [vmem:[%s1472_s7 + $0x2b0] sm:$0xff] }
  0x2d   : > { %348 = vst [vmem:[%s1477_s8 + $0xa8] sm:$0xff] %v347_v21  ;;  %v393_v44 = vld [vmem:[%s1472_s7 + $0x2c0] sm:$0xff]  ;;  %v395_v45 = vld [vmem:[%s1472_s7 + $0x2d0] sm:$0xff] }
  0x2e   : > { %350 = vst [vmem:[%s1477_s8 + $0xb0] sm:$0xff] %v349_v22  ;;  %v397_v46 = vld [vmem:[%s1472_s7 + $0x2e0] sm:$0xff]  ;;  %v399_v47 = vld [vmem:[%s1472_s7 + $0x2f0] sm:$0xff] }
  0x2f   : > { %352 = vst [vmem:[%s1477_s8 + $0xb8] sm:$0xff] %v351_v23 }
  0x30   : > { %354 = vst [vmem:[%s1477_s8 + $0xc0] sm:$0xff] %v353_v24 }
  0x31   : > { %356 = vst [vmem:[%s1477_s8 + $0xc8] sm:$0xff] %v355_v25 }
  0x32   : > { %358 = vst [vmem:[%s1477_s8 + $0xd0] sm:$0xff] %v357_v26 }
  0x33   : > { %360 = vst [vmem:[%s1477_s8 + $0xd8] sm:$0xff] %v359_v27 }
  0x34   : > { %362 = vst [vmem:[%s1477_s8 + $0xe0] sm:$0xff] %v361_v28 }
  0x35   : > { %364 = vst [vmem:[%s1477_s8 + $0xe8] sm:$0xff] %v363_v29 }
  0x36   : > { %366 = vst [vmem:[%s1477_s8 + $0xf0] sm:$0xff] %v365_v30 }
  0x37   : > { %368 = vst [vmem:[%s1477_s8 + $0xf8] sm:$0xff] %v367_v31 }
  0x38   : > { %370 = vst [vmem:[%s1477_s8 + $0x100] sm:$0xff] %v369_v32 }
  0x39   : > { %372 = vst [vmem:[%s1477_s8 + $0x108] sm:$0xff] %v371_v33 }
  0x3a   : > { %374 = vst [vmem:[%s1477_s8 + $0x110] sm:$0xff] %v373_v34 }
  0x3b   : > { %376 = vst [vmem:[%s1477_s8 + $0x118] sm:$0xff] %v375_v35 }
  0x3c   : > { %378 = vst [vmem:[%s1477_s8 + $0x120] sm:$0xff] %v377_v36 }
  0x3d   : > { %380 = vst [vmem:[%s1477_s8 + $0x128] sm:$0xff] %v379_v37 }
  0x3e   : > { %382 = vst [vmem:[%s1477_s8 + $0x130] sm:$0xff] %v381_v38 }
  0x3f   : > { %384 = vst [vmem:[%s1477_s8 + $0x138] sm:$0xff] %v383_v39 }
  0x40   : > { %386 = vst [vmem:[%s1477_s8 + $0x140] sm:$0xff] %v385_v40 }
  0x41   : > { %388 = vst [vmem:[%s1477_s8 + $0x148] sm:$0xff] %v387_v41 }
  0x42   : > { %390 = vst [vmem:[%s1477_s8 + $0x150] sm:$0xff] %v389_v42 }
  0x43   : > { %392 = vst [vmem:[%s1477_s8 + $0x158] sm:$0xff] %v391_v43 }
  0x44   : > { %394 = vst [vmem:[%s1477_s8 + $0x160] sm:$0xff] %v393_v44 }
  0x45   : > { %396 = vst [vmem:[%s1477_s8 + $0x168] sm:$0xff] %v395_v45 }
  0x46   : > { %398 = vst [vmem:[%s1477_s8 + $0x170] sm:$0xff] %v397_v46 }
  0x47   : > { %400 = vst [vmem:[%s1477_s8 + $0x178] sm:$0xff] %v399_v47 }
  0x48 PF: > { %p1026_p7 = scmp.ge.s32.totalorder %s1389_s18, 1  ;;  %p413_p8 = scmp.lt.s32.totalorder %s1389_s18, 37 }
  0x4a   : > { %p414_p9 = pnand %p1026_p7, %p413_p8 }
  0x4b   : > { %s420_s9 = sand.u32 (!%p414_p9), 1, %s1365_s12   ;;  %s460_s10 = smul.u32 (!%p414_p9), 3, %s1373_s14 }
  0x4c   : > { %417 = sbr.rel (%p414_p9) target bundleno = 305 (0x131), region = 66  ;;  %s1028_s21 = sshll.u32 (!%p414_p9), %s1377_s15, 1 }
  0x4d   : > { %s1277_s11 = smul.u32 (!%p414_p9), 384, %s420_s9  ;;  %p463_p10 = scmp.lt.s32.totalorder (!%p414_p9), %s460_s10, 53 }
  0x4e   : > { %p473_p11 = scmp.lt.s32.totalorder (!%p414_p9), %s1028_s21, 3  ;;  %p1031_p12 = scmp.ne.s32.totalorder (!%p414_p9), %s1373_s14, 0 }
  0x4f   : > { %s1594_s5 = scalar_lea.vmem (!%p414_p9), [#allocation3], %s1277_s11 }
  0x51   : > { %s1744_s10 = smov (!%p463_p10, %s460_s10), 53  ;;  %s1746_s21 = smov (!%p473_p11, %s1028_s21), 3 }
  0x52   : > { %s1027_s22 = sshll.u32 %s1744_s10, 2  ;;  %s475_s12 = scalar_lea.vmem %s1729_s2, %s1746_s21 }
  0x53   : > { %s1582_s26 = scalar_lea.vmem %s1727_s0, %s1027_s22  ;;  %s1030_s29 = sshll.u32 %s1746_s21, 2 }
  0x54   : > { %s1592_s4 = scalar_lea.vmem %s1730_s3, %s1030_s29  ;;  %490 = sbr.rel (%p1031_p12) target bundleno = 92 (0x5c), region = 74 }
  0x59   : > { %v1391_v48 = vmov 0.0  }
  0x5a   : > { %491 = vst [vmem:[#allocation2] sm:$0xff] %v1391_v48 }
  0x5b   : > { %492 = vst [vmem:[#allocation2 + $0x8] sm:$0xff] %v1391_v48 }
  0x5c PF: > { %v1090_v49 = vld [vmem:[%s1594_s5 + $0x70] sm:$0xf]  ;;  %v1243_v50 = vld [vmem:[%s1594_s5 + $0x74] sm:$0xf0]  ;;  %v1082_v54 = vld [vmem:[%s1594_s5 + $0x60] sm:$0xf] }
  0x5d   : > { %v1154_v51 = vld [vmem:[%s1594_s5 + $0xf0] sm:$0xf]  ;;  %v1091_v52 = vor.u32 %v1243_v50, %v1090_v49  ;;  %v1259_v53 = vld [vmem:[%s1594_s5 + $0xf4] sm:$0xf0]  ;;  %v1241_v55 = vld [vmem:[%s1594_s5 + $0x64] sm:$0xf0] }
  0x5e   : > { %v1155_v56 = vor.u32 %v1259_v53, %v1154_v51  ;;  %v1146_v57 = vld [vmem:[%s1594_s5 + $0xe0] sm:$0xf]  ;;  %v1257_v58 = vld [vmem:[%s1594_s5 + $0xe4] sm:$0xf0]  ;;  %v1083_v59 = vor.u32 %v1241_v55, %v1082_v54  ;;  %v1074_v60 = vld [vmem:[%s1594_s5 + $0x50] sm:$0xf] }
  0x5f   : > { %796 = vmatpush.bf16.msra.mxu0 %v1091_v52  ;;  %v1147_v61 = vor.u32 %v1257_v58, %v1146_v57  ;;  %v1239_v62 = vld [vmem:[%s1594_s5 + $0x54] sm:$0xf0]  ;;  %v1218_v63 = vld [vmem:[%s1594_s5 + $0x170] sm:$0xf]  ;;  %v1210_v4 = vld [vmem:[%s1594_s5 + $0x160] sm:$0xf] }
  0x60   : > { %809 = vmatpush.bf16.msra.mxu1 %v1155_v56  ;;  %v1275_v0 = vld [vmem:[%s1594_s5 + $0x174] sm:$0xf0]  ;;  %v1138_v1 = vld [vmem:[%s1594_s5 + $0xd0] sm:$0xf]  ;;  %v1273_v5 = vld [vmem:[%s1594_s5 + $0x164] sm:$0xf0]  ;;  %v1075_v7 = vor.u32 %v1239_v62, %v1074_v60 }
  0x61   : > { %v1255_v2 = vld [vmem:[%s1594_s5 + $0xd4] sm:$0xf0]  ;;  %v1219_v3 = vor.u32 %v1275_v0, %v1218_v63  ;;  %v1242_v6 = vld [vmem:[%s1594_s5 + $0x74] sm:$0xf]  ;;  %v1066_v8 = vld [vmem:[%s1594_s5 + $0x40] sm:$0xf]  ;;  %v1211_v10 = vor.u32 %v1273_v5, %v1210_v4 }
  0x62   : > { %v1237_v9 = vld [vmem:[%s1594_s5 + $0x44] sm:$0xf0]  ;;  %v1092_v11 = vld [vmem:[%s1594_s5 + $0x78] sm:$0xf0]  ;;  %v1139_v12 = vor.u32 %v1255_v2, %v1138_v1  ;;  %v1130_v13 = vld [vmem:[%s1594_s5 + $0xc0] sm:$0xf] }
  0x63   : > { %797 = vmatpush.bf16.msra.mxu0 %v1083_v59  ;;  %822 = vmatpush.bf16.msra.mxu2 %v1219_v3  ;;  %v1253_v14 = vld [vmem:[%s1594_s5 + $0xc4] sm:$0xf0]  ;;  %v1095_v15 = vor.u32 %v1242_v6, %v1092_v11  ;;  %v1202_v16 = vld [vmem:[%s1594_s5 + $0x150] sm:$0xf]  ;;  %v1271_v17 = vld [vmem:[%s1594_s5 + $0x154] sm:$0xf0]  ;;  %v1067_v21 = vor.u32 %v1237_v9, %v1066_v8 }
  0x64   : > { %810 = vmatpush.bf16.msra.mxu1 %v1147_v61  ;;  %v1240_v18 = vld [vmem:[%s1594_s5 + $0x64] sm:$0xf]  ;;  %v1084_v19 = vld [vmem:[%s1594_s5 + $0x68] sm:$0xf0]  ;;  %v1058_v22 = vld [vmem:[%s1594_s5 + $0x30] sm:$0xf]  ;;  %v1203_v24 = vor.u32 %v1271_v17, %v1202_v16  ;;  %v1131_v26 = vor.u32 %v1253_v14, %v1130_v13 }
  0x65   : > { %835 = vmatpush.bf16.msra.mxu3 %v1095_v15  ;;  %v1087_v20 = vor.u32 %v1240_v18, %v1084_v19  ;;  %v1235_v23 = vld [vmem:[%s1594_s5 + $0x34] sm:$0xf0]  ;;  %v1194_v25 = vld [vmem:[%s1594_s5 + $0x140] sm:$0xf]  ;;  %v1269_v27 = vld [vmem:[%s1594_s5 + $0x144] sm:$0xf0] }
  0x66   : > { %v1238_v28 = vld [vmem:[%s1594_s5 + $0x54] sm:$0xf]  ;;  %v1076_v29 = vld [vmem:[%s1594_s5 + $0x58] sm:$0xf0]  ;;  %v1122_v30 = vld [vmem:[%s1594_s5 + $0xb0] sm:$0xf]  ;;  %v1059_v33 = vor.u32 %v1235_v23, %v1058_v22  ;;  %v1195_v35 = vor.u32 %v1269_v27, %v1194_v25 }
  0x67   : > { %798 = vmatpush.bf16.msra.mxu0 %v1075_v7  ;;  %823 = vmatpush.bf16.msra.mxu2 %v1211_v10  ;;  %v1251_v31 = vld [vmem:[%s1594_s5 + $0xb4] sm:$0xf0]  ;;  %v1079_v32 = vor.u32 %v1238_v28, %v1076_v29  ;;  %v1050_v34 = vld [vmem:[%s1594_s5 + $0x20] sm:$0xf]  ;;  %v1236_v36 = vld [vmem:[%s1594_s5 + $0x44] sm:$0xf] }
  0x68   : > { %811 = vmatpush.bf16.msra.mxu1 %v1139_v12  ;;  %v1068_v37 = vld [vmem:[%s1594_s5 + $0x48] sm:$0xf0]  ;;  %v1123_v38 = vor.u32 %v1251_v31, %v1122_v30  ;;  %v1233_v39 = vld [vmem:[%s1594_s5 + $0x24] sm:$0xf0]  ;;  %v1186_v40 = vld [vmem:[%s1594_s5 + $0x130] sm:$0xf] }
  0x69   : > { %836 = vmatpush.bf16.msra.mxu3 %v1087_v20  ;;  %v1267_v41 = vld [vmem:[%s1594_s5 + $0x134] sm:$0xf0]  ;;  %v1114_v42 = vld [vmem:[%s1594_s5 + $0xa0] sm:$0xf]  ;;  %v1249_v43 = vld [vmem:[%s1594_s5 + $0xa4] sm:$0xf0]  ;;  %v1071_v44 = vor.u32 %v1236_v36, %v1068_v37  ;;  %v1051_v45 = vor.u32 %v1233_v39, %v1050_v34 }
  0x6a   : > { %v1042_v46 = vld [vmem:[%s1594_s5 + $0x10] sm:$0xf]  ;;  %v1187_v47 = vor.u32 %v1267_v41, %v1186_v40  ;;  %v1234_v48 = vld [vmem:[%s1594_s5 + $0x34] sm:$0xf]  ;;  %v1060_v49 = vld [vmem:[%s1594_s5 + $0x38] sm:$0xf0]  ;;  %v1115_v50 = vor.u32 %v1249_v43, %v1114_v42 }
  0x6b   : > { %799 = vmatpush.bf16.msra.mxu0 %v1067_v21  ;;  %824 = vmatpush.bf16.msra.mxu2 %v1203_v24  ;;  %v1231_v51 = vld [vmem:[%s1594_s5 + $0x14] sm:$0xf0]  ;;  %v1178_v52 = vld [vmem:[%s1594_s5 + $0x120] sm:$0xf]  ;;  %v1265_v53 = vld [vmem:[%s1594_s5 + $0x124] sm:$0xf0]  ;;  %v1063_v58 = vor.u32 %v1234_v48, %v1060_v49 }
  0x6c   : > { %812 = vmatpush.bf16.msra.mxu1 %v1131_v26  ;;  %v1106_v54 = vld [vmem:[%s1594_s5 + $0x90] sm:$0xf]  ;;  %v1247_v55 = vld [vmem:[%s1594_s5 + $0x94] sm:$0xf0]  ;;  %v1034_v56 = vld [vmem:[%s1594_s5] sm:$0xf]  ;;  %v1043_v59 = vor.u32 %v1231_v51, %v1042_v46  ;;  %v1179_v60 = vor.u32 %v1265_v53, %v1178_v52 }
  0x6d   : > { %837 = vmatpush.bf16.msra.mxu3 %v1079_v32  ;;  %v1229_v57 = vld [vmem:[%s1594_s5 + $0x4] sm:$0xf0]  ;;  %v1232_v61 = vld [vmem:[%s1594_s5 + $0x24] sm:$0xf]  ;;  %v1052_v62 = vld [vmem:[%s1594_s5 + $0x28] sm:$0xf0]  ;;  %v1107_v0 = vor.u32 %v1247_v55, %v1106_v54 }
  0x6e   : > { %v495_v63 = vld [vmem:[%s1582_s26] sm:$0xff]  ;;  %v1098_v1 = vld [vmem:[%s1594_s5 + $0x80] sm:$0xf]  ;;  %v1263_v3 = vld [vmem:[%s1594_s5 + $0x114] sm:$0xf0]  ;;  %v1055_v9 = vor.u32 %v1232_v61, %v1052_v62  ;;  %v1035_v11 = vor.u32 %v1229_v57, %v1034_v56  ;;  %p1224_p13 = scmp.ne.s32.totalorder %s1373_s14, 17 }
  0x6f   : > { %800 = vmatpush.bf16.msra.mxu0 %v1059_v33  ;;  %825 = vmatpush.bf16.msra.mxu2 %v1195_v35  ;;  %v1170_v2 = vld [vmem:[%s1594_s5 + $0x110] sm:$0xf]  ;;  %v1245_v4 = vld [vmem:[%s1594_s5 + $0x84] sm:$0xf0]  ;;  %v1258_v5 = vld [vmem:[%s1594_s5 + $0xf4] sm:$0xf]  ;;  %v547_v10 = vunpack.c.l.b16 %v495_v63  ;;  %v548_v13 = vunpack.c.h.b16 %v495_v63 }
  0x70   : > { %813 = vmatpush.bf16.msra.mxu1 %v1123_v38  ;;  %v1156_v6 = vld [vmem:[%s1594_s5 + $0xf8] sm:$0xf0]  ;;  %v1274_v7 = vld [vmem:[%s1594_s5 + $0x174] sm:$0xf]  ;;  %v1171_v12 = vor.u32 %v1263_v3, %v1170_v2  ;;  %v496_v16 = vld [vmem:[%s1582_s26 + $0x8] sm:$0xf]  ;;  %v1099_v17 = vor.u32 %v1245_v4, %v1098_v1 }
  0x71   : > { %838 = vmatpush.bf16.msra.mxu3 %v1071_v44  ;;  %v1220_v8 = vld [vmem:[%s1594_s5 + $0x178] sm:$0xf0]  ;;  %v1230_v14 = vld [vmem:[%s1594_s5 + $0x14] sm:$0xf]  ;;  %v1159_v18 = vor.u32 %v1258_v5, %v1156_v6  ;;  %v1162_v19 = vld [vmem:[%s1594_s5 + $0x100] sm:$0xf]  ;;  %v550_v26 = vpack.c.b16 %v547_v10, %v547_v10  ;;  %v549_v28 = vunpack.c.l.b16 %v496_v16  ;;  %v1669_v29 = vpack.c.b16 %v548_v13, %v548_v13 }
  0x72   : > { %v1044_v15 = vld [vmem:[%s1594_s5 + $0x18] sm:$0xf0]  ;;  %v1261_v20 = vld [vmem:[%s1594_s5 + $0x104] sm:$0xf0]  ;;  %v1223_v21 = vor.u32 %v1274_v7, %v1220_v8  ;;  %v1256_v22 = vld [vmem:[%s1594_s5 + $0xe4] sm:$0xf] }
  0x73   : > { %801 = vmatpush.bf16.msra.mxu0 %v1051_v45  ;;  %826 = vmatpush.bf16.msra.mxu2 %v1187_v47  ;;  %v1148_v23 = vld [vmem:[%s1594_s5 + $0xe8] sm:$0xf0]  ;;  %v1272_v24 = vld [vmem:[%s1594_s5 + $0x164] sm:$0xf]  ;;  %v1047_v27 = vor.u32 %v1230_v14, %v1044_v15  ;;  %v1163_v30 = vor.u32 %v1261_v20, %v1162_v19  ;;  %v1254_v35 = vld [vmem:[%s1594_s5 + $0xd4] sm:$0xf]  ;;  %v552_v39 = vpack.c.b16 %v549_v28, %v549_v28 }
  0x74   : > { %814 = vmatpush.bf16.msra.mxu1 %v1115_v50  ;;  %v1212_v25 = vld [vmem:[%s1594_s5 + $0x168] sm:$0xf0]  ;;  %v1228_v31 = vld [vmem:[%s1594_s5 + $0x4] sm:$0xf]  ;;  %v1151_v33 = vor.u32 %v1256_v22, %v1148_v23  ;;  %v1140_v36 = vld [vmem:[%s1594_s5 + $0xd8] sm:$0xf0] }
  0x75   : > { %839 = vmatpush.bf16.msra.mxu3 %v1063_v58  ;;  %v1036_v32 = vld [vmem:[%s1594_s5 + $0x8] sm:$0xf0]  ;;  %v1215_v34 = vor.u32 %v1272_v24, %v1212_v25  ;;  %v1270_v37 = vld [vmem:[%s1594_s5 + $0x154] sm:$0xf]  ;;  %v1204_v38 = vld [vmem:[%s1594_s5 + $0x158] sm:$0xf0]  ;;  %v1143_v41 = vor.u32 %v1254_v35, %v1140_v36 }
  0x76   : > { %v1039_v40 = vor.u32 %v1228_v31, %v1036_v32  ;;  %v1207_v42 = vor.u32 %v1270_v37, %v1204_v38  ;;  %v1252_v43 = vld [vmem:[%s1594_s5 + $0xc4] sm:$0xf]  ;;  %v1132_v44 = vld [vmem:[%s1594_s5 + $0xc8] sm:$0xf0]  ;;  %v1250_v49 = vld [vmem:[%s1594_s5 + $0xb4] sm:$0xf] }
  0x77   : > { %802 = vmatpush.bf16.msra.mxu0 %v1043_v59  ;;  %827 = vmatpush.bf16.msra.mxu2 %v1179_v60  ;;  %v1268_v45 = vld [vmem:[%s1594_s5 + $0x144] sm:$0xf]  ;;  %v1196_v46 = vld [vmem:[%s1594_s5 + $0x148] sm:$0xf0]  ;;  %v1135_v47 = vor.u32 %v1252_v43, %v1132_v44  ;;  %v1124_v50 = vld [vmem:[%s1594_s5 + $0xb8] sm:$0xf0] }
  0x78   : > { %815 = vmatpush.bf16.msra.mxu1 %v1107_v0  ;;  %v1199_v48 = vor.u32 %v1268_v45, %v1196_v46  ;;  %v1266_v51 = vld [vmem:[%s1594_s5 + $0x134] sm:$0xf]  ;;  %v1188_v52 = vld [vmem:[%s1594_s5 + $0x138] sm:$0xf0]  ;;  %v1127_v53 = vor.u32 %v1250_v49, %v1124_v50  ;;  %v1248_v55 = vld [vmem:[%s1594_s5 + $0xa4] sm:$0xf] }
  0x79   : > { %840 = vmatpush.bf16.msra.mxu3 %v1055_v9  ;;  %v1191_v54 = vor.u32 %v1266_v51, %v1188_v52  ;;  %v1116_v56 = vld [vmem:[%s1594_s5 + $0xa8] sm:$0xf0]  ;;  %v1264_v57 = vld [vmem:[%s1594_s5 + $0x124] sm:$0xf]  ;;  %v1246_v61 = vld [vmem:[%s1594_s5 + $0x94] sm:$0xf] }
  0x7a   : > { %v1180_v58 = vld [vmem:[%s1594_s5 + $0x128] sm:$0xf0]  ;;  %v1119_v59 = vor.u32 %v1248_v55, %v1116_v56  ;;  %v1108_v62 = vld [vmem:[%s1594_s5 + $0x98] sm:$0xf0]  ;;  %v1262_v63 = vld [vmem:[%s1594_s5 + $0x114] sm:$0xf] }
  0x7b   : > { %803 = vmatpush.bf16.msra.mxu0 %v1035_v11  ;;  %828 = vmatpush.bf16.msra.mxu2 %v1171_v12  ;;  %v1183_v60 = vor.u32 %v1264_v57, %v1180_v58  ;;  %v1172_v0 = vld [vmem:[%s1594_s5 + $0x118] sm:$0xf0]  ;;  %v1111_v1 = vor.u32 %v1246_v61, %v1108_v62  ;;  %v1244_v3 = vld [vmem:[%s1594_s5 + $0x84] sm:$0xf]  ;;  %v1100_v4 = vld [vmem:[%s1594_s5 + $0x88] sm:$0xf0] }
  0x7c   : > { %816 = vmatpush.bf16.msra.mxu1 %v1099_v17  ;;  %v1175_v2 = vor.u32 %v1262_v63, %v1172_v0  ;;  %v1260_v5 = vld [vmem:[%s1594_s5 + $0x104] sm:$0xf]  ;;  %v1164_v6 = vld [vmem:[%s1594_s5 + $0x108] sm:$0xf0]  ;;  %v1103_v7 = vor.u32 %v1244_v3, %v1100_v4  ;;  %v493_v14 = vld [vmem:[#allocation2] sm:$0xff] }
  0x7d   : > { %841 = vmatpush.bf16.msra.mxu3 %v1047_v27  ;;  %v1167_v8 = vor.u32 %v1260_v5, %v1164_v6  ;;  %v494_v24 = vld [vmem:[#allocation2 + $0x8] sm:$0xff] }
  0x7e   : > { %804 = vmatmul.bf16.vlgmr.msra.gmra.mxu0 %v550_v26 }
  0x7f   : > { %848 = vmatpush.bf16.msrb.mxu0 %v1159_v18  ;;  %817 = vmatmul.bf16.vlgmr.msra.gmra.mxu1 %v1669_v29 }
  0x80   : > { %861 = vmatpush.bf16.msrb.mxu1 %v1223_v21  ;;  %829 = vmatpush.bf16.msra.mxu2 %v1163_v30 }
  0x81   : > { %842 = vmatpush.bf16.msra.mxu3 %v1039_v40 }
  0x83   : > { %849 = vmatpush.bf16.msrb.mxu0 %v1151_v33  ;;  %830 = vmatmul.bf16.vlgmr.msra.gmra.mxu2 %v552_v39 }
  0x84   : > { %862 = vmatpush.bf16.msrb.mxu1 %v1215_v34  ;;  %843 = vmatmul.bf16.vlgmr.msra.gmra.mxu3 %v550_v26 }
  0x87   : > { %850 = vmatpush.bf16.msrb.mxu0 %v1143_v41 }
  0x88   : > { %863 = vmatpush.bf16.msrb.mxu1 %v1207_v42 }
  0x8b   : > { %851 = vmatpush.bf16.msrb.mxu0 %v1135_v47 }
  0x8c   : > { %864 = vmatpush.bf16.msrb.mxu1 %v1199_v48 }
  0x8f   : > { %852 = vmatpush.bf16.msrb.mxu0 %v1127_v53 }
  0x90   : > { %865 = vmatpush.bf16.msrb.mxu1 %v1191_v54 }
  0x93   : > { %853 = vmatpush.bf16.msrb.mxu0 %v1119_v59 }
  0x94   : > { %866 = vmatpush.bf16.msrb.mxu1 %v1183_v60 }
  0x97   : > { %854 = vmatpush.bf16.msrb.mxu0 %v1111_v1 }
  0x98   : > { %867 = vmatpush.bf16.msrb.mxu1 %v1175_v2 }
  0x9b   : > { %855 = vmatpush.bf16.msrb.mxu0 %v1103_v7 }
  0x9c   : > { %868 = vmatpush.bf16.msrb.mxu1 %v1167_v8 }
  0x9e   : > { %856 = vmatmul.bf16.vlgmr.msrb.gmra.mxu0 %v1669_v29 }
  0x9f   : > { %869 = vmatmul.bf16.vlgmr.msrb.gmra.mxu1 %v552_v39 }
  0xfb   : > { %v805_v9 = vpop.f32.mrf.mxu0 }
  0xfc   : > { %v818_v10 = vpop.f32.mrf.mxu1 }
  0xfd   : > { %v819_v11 = vadd.f32 %v818_v10, %v805_v9 }
 0x103   : > { %v807_v12 = vpop.f32.mrf.mxu0 }
 0x104   : > { %v820_v13 = vpop.f32.mrf.mxu1 }
 0x106   : > { %v831_v15 = vpop.f32.mrf.mxu2 }
 0x107   : > { %v832_v16 = vadd.f32 %v831_v15, %v819_v11  ;;  %v844_v18 = vpop.f32.mrf.mxu3 }
 0x109   : > { %v874_v17 = vadd.f32 %v832_v16, %v493_v14 }
 0x10b   : > { %876 = vst [vmem:[#allocation2] sm:$0xff] %v874_v17 }
 0x10e   : > { %v833_v19 = vpop.f32.mrf.mxu2 }
 0x10f   : > { %v846_v20 = vpop.f32.mrf.mxu3 }
 0x11b   : > { %v857_v21 = vpop.f32.mrf.mxu0 }
 0x11c   : > { %v858_v22 = vadd.f32 %v857_v21, %v844_v18  ;;  %v870_v23 = vpop.f32.mrf.mxu1 }
 0x11e   : > { %v871_v25 = vadd.f32 %v870_v23, %v858_v22 }
 0x120   : > { %v875_v26 = vadd.f32 %v871_v25, %v494_v24  ;;  %881 = sbr.rel (%p1224_p13) target bundleno = 305 (0x131), region = 78 }
 0x122   : > { %877 = vst [vmem:[#allocation2 + $0x8] sm:$0xff] %v875_v26 }
 0x123   : > { %v859_v27 = vpop.f32.mrf.mxu0 }
 0x124   : > { %v872_v28 = vpop.f32.mrf.mxu1 }
 0x125   : > { %v882_v29 = vld [vmem:[#allocation2] sm:$0xff] }
 0x126   : > { %v884_v31 = vld [vmem:[%s475_s12] sm:$0x3] }
 0x127   : > { %v886_v32 = vperm.slane %v884_v31, 0  ;;  %v887_v33 = vperm.slane %v884_v31, 1 }
 0x129   : > { %v883_v30 = vld [vmem:[#allocation2 + $0x8] sm:$0xff]  ;;  %v890_v34 = vadd.f32 %v886_v32, %v882_v29 }
 0x12a   : > { %v891_v35 = vadd.f32 %v887_v33, %v883_v30 }
 0x12b   : > { %v892_v36 = vmax.f32 %v890_v34, 0.0 }
 0x12c   : > { %v893_v37 = vmax.f32 %v891_v35, 0.0 }
 0x12e   : > { %v894_v38 = vpack.c.bf16 %v893_v37, %v892_v36 }
 0x130   : > { %895 = vst [vmem:[%s1592_s4] sm:$0xff] %v894_v38 }
 0x131 PF: > { %s13_s18 = sadd.s32 1, %s1389_s18   ;;  %s1731_s12 = smov %s1369_s13 }
 0x132   : > { %p10_p0 = scmp.ge.s32.totalorder %s13_s18, 38   ;;  %s1732_s13 = smov %s1463_s25 }
 0x133   : > { %s1733_s14 = smov %s1381_s16  ;;  %s1734_s15 = smov %s1385_s17 }
 0x134   : > { %s1735_s16 = smov %s1738_s19  ;;  %s1736_s17 = smov %s1742_s20 }
 0x135   :  { %12 = sbr.rel (!%p10_p0) target bundleno = 4 (0x4), region = 119 }

// kernel: resnet3d_forward.23
= control target key start
LH: loop header
LB: loop body
LE: loop exit
PB: predicated region body
PF: predicated region fallthrough
CT: control target
= control target key end

     0   :  { %s1101_s12 = smov 0   ;;  %s1103_s13 = smov 0   ;;  %s1306_s0 = inlined_call_operand.vmem [shape: bf16[8,256], index: 0, kind: input, shape index: {}]   ;;  %s1307_s1 = inlined_call_operand.vmem [shape: bf16[256,512], index: 1, kind: input, shape index: {}]   ;;  %s1308_s2 = inlined_call_operand.vmem [shape: f32[1,512], index: 2, kind: input, shape index: {}]   ;;  %s1309_s3 = inlined_call_operand.vmem [shape: bf16[8,512], index: 3, kind: output, shape index: {}]  }
   0x1   :  { %s1105_s14 = smov 0   ;;  %s1107_s15 = smov 0  }
   0x2   :  { %s1109_s16 = smov 0  }
   0x3 LB: > { %s28_s17 = sadd.s32 1, %s1075_s15  ;;  %p76_p1 = scmp.ne.s32.totalorder %s1067_s13, %s1063_s12  ;;  %s1079_s16 = sphi %s1109_s16, %s13_s16   ;;  %s1075_s15 = sphi %s1107_s15, %s1313_s15   ;;  %s1071_s14 = sphi %s1105_s14, %s1312_s14   ;;  %s1067_s13 = sphi %s1103_s13, %s1311_s13   ;;  %s1063_s12 = sphi %s1101_s12, %s1310_s12  }
   0x4   : > { %p30_p0 = scmp.ge.s32.totalorder %s28_s17, 2  ;;  %p77_p2 = scmp.eq.s32.totalorder %s1079_s16, 0 }
   0x5   : > { %s69_s19 = sadd.s32 1, %s1067_s13  ;;  %p829_p5 = scmp.ge.s32.totalorder %s1079_s16, 2 }
   0x6   : > { %s1315_s17 = smov (%p30_p0, %s28_s17), 0  ;;  %p78_p3 = por %p77_p2, %p76_p1 }
   0x7   : > { %s65_s18 = ssub.s32 %s1075_s15, %s1315_s17  ;;  %169 = sbr.rel (%p829_p5) target bundleno = 48 (0x30), region = 20 }
   0x8   : > { %p67_p4 = scmp.eq.s32.totalorder %s65_s18, 0 }
   0xa   : > { %s1136_s20 = scalar_select %p67_p4, %s1067_s13, %s69_s19  }
   0xc   : > { %172 = sbr.rel (!%p78_p3) target bundleno = 48 (0x30), region = 24  ;;  %s174_s21 = sand.u32 (%p78_p3), 1, %s1067_s13  }
   0xd   : > { %s968_s22 = sshll.u32 (%p78_p3), %s1075_s15, 3  ;;  %s830_s23 = sshll.u32 (%p78_p3), %s174_s21, 8 }
   0xe   : > { %s1144_s26 = scalar_lea.vmem (%p78_p3), %s1307_s1, %s968_s22  ;;  %s1149_s27 = scalar_lea.vmem (%p78_p3), [#allocation3], %s830_s23 }
   0xf   : > { %v273_v0 = vld [vmem:[%s1144_s26] sm:$0xff] (%p78_p3)  ;;  %v275_v1 = vld [vmem:[%s1144_s26 + $0x10] sm:$0xff] (%p78_p3) }
  0x10   : > { %v277_v2 = vld [vmem:[%s1144_s26 + $0x20] sm:$0xff] (%p78_p3)  ;;  %274 = vst [vmem:[%s1149_s27] sm:$0xff] (%p78_p3), %v273_v0  ;;  %v279_v3 = vld [vmem:[%s1144_s26 + $0x30] sm:$0xff] (%p78_p3) }
  0x11   : > { %276 = vst [vmem:[%s1149_s27 + $0x8] sm:$0xff] %v275_v1  ;;  %v281_v4 = vld [vmem:[%s1144_s26 + $0x40] sm:$0xff]  ;;  %v283_v5 = vld [vmem:[%s1144_s26 + $0x50] sm:$0xff] }
  0x12   : > { %278 = vst [vmem:[%s1149_s27 + $0x10] sm:$0xff] %v277_v2  ;;  %v285_v6 = vld [vmem:[%s1144_s26 + $0x60] sm:$0xff]  ;;  %v287_v7 = vld [vmem:[%s1144_s26 + $0x70] sm:$0xff] }
  0x13   : > { %280 = vst [vmem:[%s1149_s27 + $0x18] sm:$0xff] %v279_v3  ;;  %v289_v8 = vld [vmem:[%s1144_s26 + $0x80] sm:$0xff]  ;;  %v291_v9 = vld [vmem:[%s1144_s26 + $0x90] sm:$0xff] }
  0x14   : > { %282 = vst [vmem:[%s1149_s27 + $0x20] sm:$0xff] %v281_v4  ;;  %v293_v10 = vld [vmem:[%s1144_s26 + $0xa0] sm:$0xff]  ;;  %v295_v11 = vld [vmem:[%s1144_s26 + $0xb0] sm:$0xff] }
  0x15   : > { %284 = vst [vmem:[%s1149_s27 + $0x28] sm:$0xff] %v283_v5  ;;  %v297_v12 = vld [vmem:[%s1144_s26 + $0xc0] sm:$0xff]  ;;  %v299_v13 = vld [vmem:[%s1144_s26 + $0xd0] sm:$0xff] }
  0x16   : > { %286 = vst [vmem:[%s1149_s27 + $0x30] sm:$0xff] %v285_v6  ;;  %v301_v14 = vld [vmem:[%s1144_s26 + $0xe0] sm:$0xff]  ;;  %v303_v15 = vld [vmem:[%s1144_s26 + $0xf0] sm:$0xff] }
  0x17   : > { %288 = vst [vmem:[%s1149_s27 + $0x38] sm:$0xff] %v287_v7  ;;  %v305_v16 = vld [vmem:[%s1144_s26 + $0x100] sm:$0xff]  ;;  %v307_v17 = vld [vmem:[%s1144_s26 + $0x110] sm:$0xff] }
  0x18   : > { %290 = vst [vmem:[%s1149_s27 + $0x40] sm:$0xff] %v289_v8  ;;  %v309_v18 = vld [vmem:[%s1144_s26 + $0x120] sm:$0xff]  ;;  %v311_v19 = vld [vmem:[%s1144_s26 + $0x130] sm:$0xff] }
  0x19   : > { %292 = vst [vmem:[%s1149_s27 + $0x48] sm:$0xff] %v291_v9  ;;  %v313_v20 = vld [vmem:[%s1144_s26 + $0x140] sm:$0xff]  ;;  %v315_v21 = vld [vmem:[%s1144_s26 + $0x150] sm:$0xff] }
  0x1a   : > { %294 = vst [vmem:[%s1149_s27 + $0x50] sm:$0xff] %v293_v10  ;;  %v317_v22 = vld [vmem:[%s1144_s26 + $0x160] sm:$0xff]  ;;  %v319_v23 = vld [vmem:[%s1144_s26 + $0x170] sm:$0xff] }
  0x1b   : > { %296 = vst [vmem:[%s1149_s27 + $0x58] sm:$0xff] %v295_v11  ;;  %v321_v24 = vld [vmem:[%s1144_s26 + $0x180] sm:$0xff]  ;;  %v323_v25 = vld [vmem:[%s1144_s26 + $0x190] sm:$0xff] }
  0x1c   : > { %298 = vst [vmem:[%s1149_s27 + $0x60] sm:$0xff] %v297_v12  ;;  %v325_v26 = vld [vmem:[%s1144_s26 + $0x1a0] sm:$0xff]  ;;  %v327_v27 = vld [vmem:[%s1144_s26 + $0x1b0] sm:$0xff] }
  0x1d   : > { %300 = vst [vmem:[%s1149_s27 + $0x68] sm:$0xff] %v299_v13  ;;  %v329_v28 = vld [vmem:[%s1144_s26 + $0x1c0] sm:$0xff]  ;;  %v331_v29 = vld [vmem:[%s1144_s26 + $0x1d0] sm:$0xff] }
  0x1e   : > { %302 = vst [vmem:[%s1149_s27 + $0x70] sm:$0xff] %v301_v14  ;;  %v333_v30 = vld [vmem:[%s1144_s26 + $0x1e0] sm:$0xff]  ;;  %v335_v31 = vld [vmem:[%s1144_s26 + $0x1f0] sm:$0xff] }
  0x1f   : > { %304 = vst [vmem:[%s1149_s27 + $0x78] sm:$0xff] %v303_v15 }
  0x20   : > { %306 = vst [vmem:[%s1149_s27 + $0x80] sm:$0xff] %v305_v16 }
  0x21   : > { %308 = vst [vmem:[%s1149_s27 + $0x88] sm:$0xff] %v307_v17 }
  0x22   : > { %310 = vst [vmem:[%s1149_s27 + $0x90] sm:$0xff] %v309_v18 }
  0x23   : > { %312 = vst [vmem:[%s1149_s27 + $0x98] sm:$0xff] %v311_v19 }
  0x24   : > { %314 = vst [vmem:[%s1149_s27 + $0xa0] sm:$0xff] %v313_v20 }
  0x25   : > { %316 = vst [vmem:[%s1149_s27 + $0xa8] sm:$0xff] %v315_v21 }
  0x26   : > { %318 = vst [vmem:[%s1149_s27 + $0xb0] sm:$0xff] %v317_v22 }
  0x27   : > { %320 = vst [vmem:[%s1149_s27 + $0xb8] sm:$0xff] %v319_v23 }
  0x28   : > { %322 = vst [vmem:[%s1149_s27 + $0xc0] sm:$0xff] %v321_v24 }
  0x29   : > { %324 = vst [vmem:[%s1149_s27 + $0xc8] sm:$0xff] %v323_v25 }
  0x2a   : > { %326 = vst [vmem:[%s1149_s27 + $0xd0] sm:$0xff] %v325_v26 }
  0x2b   : > { %328 = vst [vmem:[%s1149_s27 + $0xd8] sm:$0xff] %v327_v27 }
  0x2c   : > { %330 = vst [vmem:[%s1149_s27 + $0xe0] sm:$0xff] %v329_v28 }
  0x2d   : > { %332 = vst [vmem:[%s1149_s27 + $0xe8] sm:$0xff] %v331_v29 }
  0x2e   : > { %334 = vst [vmem:[%s1149_s27 + $0xf0] sm:$0xff] %v333_v30 }
  0x2f   : > { %336 = vst [vmem:[%s1149_s27 + $0xf8] sm:$0xff] %v335_v31 }
  0x30 PF: > { %p833_p6 = scmp.ge.s32.totalorder %s1079_s16, 1  ;;  %p349_p7 = scmp.lt.s32.totalorder %s1079_s16, 3 }
  0x32   : > { %p350_p8 = pnand %p833_p6, %p349_p7 }
  0x33   : > { %s356_s28 = sand.u32 (!%p350_p8), 1, %s1063_s12   ;;  %s835_s6 = sshll.u32 (!%p350_p8), %s1071_s14, 1 }
  0x34   : > { %353 = sbr.rel (%p350_p8) target bundleno = 233 (0xe9), region = 66  ;;  %s834_s29 = sshll.u32 (!%p350_p8), %s356_s28, 8 }
  0x35   : > { %s1215_s30 = scalar_lea.vmem (!%p350_p8), [#allocation3], %s834_s29  ;;  %p409_p9 = scmp.lt.s32.totalorder (!%p350_p8), %s835_s6, 3 }
  0x39   : > { %v896_v32 = vld [vmem:[%s1215_s30 + $0x70] sm:$0xf]  ;;  %v984_v33 = vld [vmem:[%s1215_s30 + $0x74] sm:$0xf0]  ;;  %v983_v37 = vld [vmem:[%s1215_s30 + $0x74] sm:$0xf] }
  0x3a   : > { %v960_v34 = vld [vmem:[%s1215_s30 + $0xf0] sm:$0xf]  ;;  %v897_v35 = vor.u32 %v984_v33, %v896_v32  ;;  %v1000_v36 = vld [vmem:[%s1215_s30 + $0xf4] sm:$0xf0]  ;;  %v898_v38 = vld [vmem:[%s1215_s30 + $0x78] sm:$0xf0] }
  0x3b   : > { %v961_v39 = vor.u32 %v1000_v36, %v960_v34  ;;  %v901_v40 = vor.u32 %v983_v37, %v898_v38  ;;  %v999_v41 = vld [vmem:[%s1215_s30 + $0xf4] sm:$0xf]  ;;  %v962_v42 = vld [vmem:[%s1215_s30 + $0xf8] sm:$0xf0]  ;;  %v888_v43 = vld [vmem:[%s1215_s30 + $0x60] sm:$0xf] }
  0x3c   : > { %631 = vmatpush.bf16.msra.mxu0 %v897_v35  ;;  %v965_v44 = vor.u32 %v999_v41, %v962_v42  ;;  %v982_v45 = vld [vmem:[%s1215_s30 + $0x64] sm:$0xf0]  ;;  %v952_v46 = vld [vmem:[%s1215_s30 + $0xe0] sm:$0xf]  ;;  %v981_v50 = vld [vmem:[%s1215_s30 + $0x64] sm:$0xf] }
  0x3d   : > { %v998_v47 = vld [vmem:[%s1215_s30 + $0xe4] sm:$0xf0]  ;;  %644 = vmatpush.bf16.msra.mxu1 %v961_v39  ;;  %657 = vmatpush.bf16.msra.mxu2 %v901_v40  ;;  %v889_v48 = vor.u32 %v982_v45, %v888_v43  ;;  %v890_v51 = vld [vmem:[%s1215_s30 + $0x68] sm:$0xf0]  ;;  %v997_v52 = vld [vmem:[%s1215_s30 + $0xe4] sm:$0xf] }
  0x3e   : > { %v953_v49 = vor.u32 %v998_v47, %v952_v46  ;;  %670 = vmatpush.bf16.msra.mxu3 %v965_v44  ;;  %v893_v53 = vor.u32 %v981_v50, %v890_v51  ;;  %v954_v54 = vld [vmem:[%s1215_s30 + $0xe8] sm:$0xf0]  ;;  %v880_v55 = vld [vmem:[%s1215_s30 + $0x50] sm:$0xf]  ;;  %v980_v56 = vld [vmem:[%s1215_s30 + $0x54] sm:$0xf0] }
  0x3f   : > { %v957_v57 = vor.u32 %v997_v52, %v954_v54  ;;  %v944_v58 = vld [vmem:[%s1215_s30 + $0xd0] sm:$0xf]  ;;  %v996_v59 = vld [vmem:[%s1215_s30 + $0xd4] sm:$0xf0]  ;;  %v979_v60 = vld [vmem:[%s1215_s30 + $0x54] sm:$0xf]  ;;  %v881_v61 = vor.u32 %v980_v56, %v880_v55 }
  0x40   : > { %632 = vmatpush.bf16.msra.mxu0 %v889_v48  ;;  %v882_v62 = vld [vmem:[%s1215_s30 + $0x58] sm:$0xf0]  ;;  %v995_v63 = vld [vmem:[%s1215_s30 + $0xd4] sm:$0xf]  ;;  %v945_v1 = vor.u32 %v996_v59, %v944_v58  ;;  %v872_v3 = vld [vmem:[%s1215_s30 + $0x40] sm:$0xf] }
  0x41   : > { %v946_v0 = vld [vmem:[%s1215_s30 + $0xd8] sm:$0xf0]  ;;  %645 = vmatpush.bf16.msra.mxu1 %v953_v49  ;;  %658 = vmatpush.bf16.msra.mxu2 %v893_v53  ;;  %v885_v2 = vor.u32 %v979_v60, %v882_v62  ;;  %v978_v4 = vld [vmem:[%s1215_s30 + $0x44] sm:$0xf0]  ;;  %v936_v5 = vld [vmem:[%s1215_s30 + $0xc0] sm:$0xf] }
  0x42   : > { %671 = vmatpush.bf16.msra.mxu3 %v957_v57  ;;  %v949_v6 = vor.u32 %v995_v63, %v946_v0  ;;  %v994_v7 = vld [vmem:[%s1215_s30 + $0xc4] sm:$0xf0]  ;;  %v977_v8 = vld [vmem:[%s1215_s30 + $0x44] sm:$0xf]  ;;  %v874_v9 = vld [vmem:[%s1215_s30 + $0x48] sm:$0xf0]  ;;  %v873_v12 = vor.u32 %v978_v4, %v872_v3 }
  0x43   : > { %v993_v10 = vld [vmem:[%s1215_s30 + $0xc4] sm:$0xf]  ;;  %v938_v11 = vld [vmem:[%s1215_s30 + $0xc8] sm:$0xf0]  ;;  %v937_v13 = vor.u32 %v994_v7, %v936_v5  ;;  %v877_v14 = vor.u32 %v977_v8, %v874_v9  ;;  %v864_v15 = vld [vmem:[%s1215_s30 + $0x30] sm:$0xf] }
  0x44   : > { %633 = vmatpush.bf16.msra.mxu0 %v881_v61  ;;  %v976_v16 = vld [vmem:[%s1215_s30 + $0x34] sm:$0xf0]  ;;  %v928_v17 = vld [vmem:[%s1215_s30 + $0xb0] sm:$0xf]  ;;  %v941_v18 = vor.u32 %v993_v10, %v938_v11  ;;  %v975_v20 = vld [vmem:[%s1215_s30 + $0x34] sm:$0xf] }
  0x45   : > { %646 = vmatpush.bf16.msra.mxu1 %v945_v1  ;;  %659 = vmatpush.bf16.msra.mxu2 %v885_v2  ;;  %v992_v19 = vld [vmem:[%s1215_s30 + $0xb4] sm:$0xf0]  ;;  %v866_v21 = vld [vmem:[%s1215_s30 + $0x38] sm:$0xf0]  ;;  %v991_v22 = vld [vmem:[%s1215_s30 + $0xb4] sm:$0xf]  ;;  %v865_v24 = vor.u32 %v976_v16, %v864_v15 }
  0x46   : > { %672 = vmatpush.bf16.msra.mxu3 %v949_v6  ;;  %v930_v23 = vld [vmem:[%s1215_s30 + $0xb8] sm:$0xf0]  ;;  %v929_v25 = vor.u32 %v992_v19, %v928_v17  ;;  %v869_v26 = vor.u32 %v975_v20, %v866_v21  ;;  %v856_v27 = vld [vmem:[%s1215_s30 + $0x20] sm:$0xf]  ;;  %v974_v28 = vld [vmem:[%s1215_s30 + $0x24] sm:$0xf0] }
  0x47   : > { %v920_v29 = vld [vmem:[%s1215_s30 + $0xa0] sm:$0xf]  ;;  %v933_v30 = vor.u32 %v991_v22, %v930_v23  ;;  %v990_v31 = vld [vmem:[%s1215_s30 + $0xa4] sm:$0xf0]  ;;  %v973_v32 = vld [vmem:[%s1215_s30 + $0x24] sm:$0xf]  ;;  %v857_v36 = vor.u32 %v974_v28, %v856_v27 }
  0x48   : > { %634 = vmatpush.bf16.msra.mxu0 %v873_v12  ;;  %v858_v33 = vld [vmem:[%s1215_s30 + $0x28] sm:$0xf0]  ;;  %v989_v34 = vld [vmem:[%s1215_s30 + $0xa4] sm:$0xf]  ;;  %v921_v37 = vor.u32 %v990_v31, %v920_v29  ;;  %v848_v39 = vld [vmem:[%s1215_s30 + $0x10] sm:$0xf] }
  0x49   : > { %647 = vmatpush.bf16.msra.mxu1 %v937_v13  ;;  %660 = vmatpush.bf16.msra.mxu2 %v877_v14  ;;  %v922_v35 = vld [vmem:[%s1215_s30 + $0xa8] sm:$0xf0]  ;;  %v861_v38 = vor.u32 %v973_v32, %v858_v33  ;;  %v972_v40 = vld [vmem:[%s1215_s30 + $0x14] sm:$0xf0]  ;;  %v912_v41 = vld [vmem:[%s1215_s30 + $0x90] sm:$0xf] }
  0x4a   : > { %673 = vmatpush.bf16.msra.mxu3 %v941_v18  ;;  %v925_v42 = vor.u32 %v989_v34, %v922_v35  ;;  %v988_v43 = vld [vmem:[%s1215_s30 + $0x94] sm:$0xf0]  ;;  %v971_v44 = vld [vmem:[%s1215_s30 + $0x14] sm:$0xf]  ;;  %v850_v45 = vld [vmem:[%s1215_s30 + $0x18] sm:$0xf0]  ;;  %v849_v48 = vor.u32 %v972_v40, %v848_v39 }
  0x4b   : > { %v987_v46 = vld [vmem:[%s1215_s30 + $0x94] sm:$0xf]  ;;  %v914_v47 = vld [vmem:[%s1215_s30 + $0x98] sm:$0xf0]  ;;  %v431_v49 = vld [vmem:[%s1306_s0] sm:$0xff]  ;;  %v913_v50 = vor.u32 %v988_v43, %v912_v41  ;;  %v853_v51 = vor.u32 %v971_v44, %v850_v45  ;;  %s1317_s6 = smov (!%p409_p9, %s835_s6), 3 }
  0x4c   : > { %635 = vmatpush.bf16.msra.mxu0 %v865_v24  ;;  %v840_v52 = vld [vmem:[%s1215_s30] sm:$0xf]  ;;  %v970_v53 = vld [vmem:[%s1215_s30 + $0x4] sm:$0xf0]  ;;  %v917_v55 = vor.u32 %v987_v46, %v914_v47  ;;  %v969_v57 = vld [vmem:[%s1215_s30 + $0x4] sm:$0xf]  ;;  %v465_v61 = vunpack.c.l.b16 %v431_v49  ;;  %v466_v63 = vunpack.c.h.b16 %v431_v49  ;;  %s411_s9 = scalar_lea.vmem %s1308_s2, %s1317_s6 }
  0x4d   : > { %648 = vmatpush.bf16.msra.mxu1 %v929_v25  ;;  %661 = vmatpush.bf16.msra.mxu2 %v869_v26  ;;  %v904_v54 = vld [vmem:[%s1215_s30 + $0x80] sm:$0xf]  ;;  %v986_v56 = vld [vmem:[%s1215_s30 + $0x84] sm:$0xf0]  ;;  %v842_v58 = vld [vmem:[%s1215_s30 + $0x8] sm:$0xf0]  ;;  %v841_v62 = vor.u32 %v970_v53, %v840_v52 }
  0x4e   : > { %674 = vmatpush.bf16.msra.mxu3 %v933_v30  ;;  %v985_v59 = vld [vmem:[%s1215_s30 + $0x84] sm:$0xf]  ;;  %v906_v60 = vld [vmem:[%s1215_s30 + $0x88] sm:$0xf0]  ;;  %v905_v0 = vor.u32 %v986_v56, %v904_v54  ;;  %v845_v1 = vor.u32 %v969_v57, %v842_v58  ;;  %v467_v3 = vpack.c.b16 %v465_v61, %v465_v61  ;;  %v468_v4 = vpack.c.b16 %v466_v63, %v466_v63  ;;  %v692_v7 = vld [vmem:[%s411_s9] sm:$0x3] }
  0x4f   : > { %v909_v2 = vor.u32 %v985_v59, %v906_v60  ;;  %v694_v9 = vperm.slane %v692_v7, 0  ;;  %v695_v11 = vperm.slane %v692_v7, 1  ;;  %s837_s10 = sshll.u32 %s1317_s6, 2 }
  0x50   : > { %636 = vmatpush.bf16.msra.mxu0 %v857_v36  ;;  %s421_s14 = scalar_lea.vmem %s1309_s3, %s837_s10 }
  0x51   : > { %649 = vmatpush.bf16.msra.mxu1 %v921_v37  ;;  %662 = vmatpush.bf16.msra.mxu2 %v861_v38 }
  0x52   : > { %675 = vmatpush.bf16.msra.mxu3 %v925_v42 }
  0x54   : > { %637 = vmatpush.bf16.msra.mxu0 %v849_v48 }
  0x55   : > { %650 = vmatpush.bf16.msra.mxu1 %v913_v50  ;;  %663 = vmatpush.bf16.msra.mxu2 %v853_v51 }
  0x56   : > { %676 = vmatpush.bf16.msra.mxu3 %v917_v55 }
  0x58   : > { %638 = vmatpush.bf16.msra.mxu0 %v841_v62 }
  0x59   : > { %651 = vmatpush.bf16.msra.mxu1 %v905_v0  ;;  %664 = vmatpush.bf16.msra.mxu2 %v845_v1 }
  0x5a   : > { %677 = vmatpush.bf16.msra.mxu3 %v909_v2 }
  0x5b   : > { %639 = vmatmul.bf16.vlgmr.msra.gmra.mxu0 %v467_v3 }
  0x5c   : > { %652 = vmatmul.bf16.vlgmr.msra.gmra.mxu1 %v468_v4  ;;  %665 = vmatmul.bf16.vlgmr.msra.gmra.mxu2 %v467_v3 }
  0x5d   : > { %678 = vmatmul.bf16.vlgmr.msra.gmra.mxu3 %v468_v4 }
  0xd8   : > { %v640_v5 = vpop.f32.mrf.mxu0 }
  0xd9   : > { %v653_v6 = vpop.f32.mrf.mxu1 }
  0xda   : > { %v654_v8 = vadd.f32 %v653_v6, %v640_v5 }
  0xdc   : > { %v698_v14 = vadd.f32 %v694_v9, %v654_v8 }
  0xdf   : > { %v666_v10 = vpop.f32.mrf.mxu2 }
  0xe0   : > { %v679_v12 = vpop.f32.mrf.mxu3  ;;  %v642_v13 = vpop.f32.mrf.mxu0 }
  0xe1   : > { %v680_v15 = vadd.f32 %v679_v12, %v666_v10  ;;  %v655_v16 = vpop.f32.mrf.mxu1 }
  0xe3   : > { %v699_v17 = vadd.f32 %v695_v11, %v680_v15 }
  0xe5   : > { %v700_v18 = vpack.c.bf16 %v699_v17, %v698_v14 }
  0xe7   : > { %701 = vst [vmem:[%s421_s14] sm:$0xff] %v700_v18  ;;  %v668_v19 = vpop.f32.mrf.mxu2 }
  0xe8   : > { %v681_v20 = vpop.f32.mrf.mxu3 }
  0xe9 PF: > { %s13_s16 = sadd.s32 1, %s1079_s16   ;;  %s1310_s12 = smov %s1067_s13 }
  0xea   : > { %p10_p10 = scmp.ge.s32.totalorder %s13_s16, 4   ;;  %s1311_s13 = smov %s1136_s20 }
  0xeb   : > { %s1312_s14 = smov %s1075_s15  ;;  %s1313_s15 = smov %s1315_s17 }
  0xec   :  { %12 = sbr.rel (!%p10_p10) target bundleno = 3 (0x3), region = 119 }

// kernel: resnet3d_forward.24
= control target key start
LH: loop header
LB: loop body
LE: loop exit
PB: predicated region body
PF: predicated region fallthrough
CT: control target
= control target key end

     0   :  { %s1776_s15 = smov 0   ;;  %s1778_s16 = smov 0   ;;  %s2173_s0 = inlined_call_operand.vmem [shape: bf16[8,13824], index: 0, kind: input, shape index: {}]   ;;  %s2174_s1 = inlined_call_operand.vmem [shape: bf16[13824,512], index: 1, kind: input, shape index: {}]   ;;  %s2175_s2 = inlined_call_operand.vmem [shape: f32[1,512], index: 2, kind: input, shape index: {}]   ;;  %s2176_s3 = inlined_call_operand.vmem [shape: bf16[8,512], index: 3, kind: input, shape index: {}]   ;;  %s2177_s4 = inlined_call_operand.vmem [shape: bf16[8,512], index: 4, kind: output, shape index: {}]  }
   0x1   :  { %s1780_s17 = smov 0   ;;  %s1782_s18 = smov 0  }
   0x2   :  { %s1784_s19 = smov 0   ;;  %s1786_s20 = smov 0  }
   0x3   :  { %s1788_s21 = smov 0  }
   0x4 LB: > { %s26_s22 = sadd.s32 1, %s1740_s19  ;;  %s29_s23 = sadd.s32 1, %s1744_s20  ;;  %s1748_s21 = sphi %s1788_s21, %s14_s21   ;;  %s1744_s20 = sphi %s1786_s20, %s2183_s20   ;;  %s1740_s19 = sphi %s1784_s19, %s2182_s19   ;;  %s1736_s18 = sphi %s1782_s18, %s2181_s18   ;;  %s1732_s17 = sphi %s1780_s17, %s2180_s17   ;;  %s1728_s16 = sphi %s1778_s16, %s2179_s16   ;;  %s1724_s15 = sphi %s1776_s15, %s2178_s15  }
   0x5   : > { %p27_p0 = scmp.ge.s32.totalorder %s26_s22, 27  ;;  %p77_p1 = scmp.ne.s32.totalorder %s1728_s16, %s1724_s15 }
   0x6   : > { %p78_p2 = scmp.eq.s32.totalorder %s1748_s21, 0  ;;  %s70_s27 = sadd.s32 1, %s1728_s16 }
   0x7   : > { %s2185_s22 = smov (%p27_p0, %s26_s22), 0  ;;  %s2187_s23 = smov (!%p27_p0, %s29_s23), %s1744_s20 }
   0x8   : > { %p79_p3 = por %p78_p2, %p77_p1  ;;  %p31_p4 = scmp.ge.s32.totalorder %s2187_s23, 2 }
   0x9   : > { %s65_s24 = ssub.s32 %s1740_s19, %s2185_s22  ;;  %p1297_p6 = scmp.ge.s32.totalorder %s1748_s21, 54 }
   0xa   : > { %s2189_s23 = smov (%p31_p4, %s2187_s23), 0 }
   0xb   : > { %s66_s25 = ssub.s32 %s1744_s20, %s2189_s23  ;;  %185 = sbr.rel (%p1297_p6) target bundleno = 87 (0x57), region = 16 }
   0xc   : > { %s67_s26 = sor.u32 %s66_s25, %s65_s24 }
   0xd   : > { %p68_p5 = scmp.eq.s32.totalorder %s67_s26, 0 }
   0xf   : > { %s1827_s28 = scalar_select %p68_p5, %s1728_s16, %s70_s27  }
  0x10   : > { %201 = sbr.rel (!%p79_p3) target bundleno = 87 (0x57), region = 24  ;;  %s203_s29 = sand.u32 (%p79_p3), 1, %s1728_s16  }
  0x11   : > { %s1300_s30 = sshll.u32 (%p79_p3), %s1744_s20, 1  ;;  %s1298_s5 = sshll.u32 (%p79_p3), %s203_s29, 9 }
  0x12   : > { %s1572_s6 = sshll.u32 (%p79_p3), %s1740_s19, 8  ;;  %s1841_s12 = scalar_lea.vmem (%p79_p3), [#allocation3], %s1298_s5 }
  0x13   : > { %s209_s7 = sadd.s32 (%p79_p3), %s1572_s6, %s1300_s30 }
  0x14   : > { %s1302_s8 = sshll.u32 (%p79_p3), %s209_s7, 2 }
  0x15   : > { %s1836_s11 = scalar_lea.vmem %s2174_s1, %s1302_s8 }
  0x16   : > { %v366_v0 = vld [vmem:[%s1836_s11] sm:$0xff]  ;;  %v368_v1 = vld [vmem:[%s1836_s11 + $0x10] sm:$0xff] }
  0x17   : > { %v370_v2 = vld [vmem:[%s1836_s11 + $0x20] sm:$0xff]  ;;  %367 = vst [vmem:[%s1841_s12] sm:$0xff] %v366_v0  ;;  %v372_v3 = vld [vmem:[%s1836_s11 + $0x30] sm:$0xff] }
  0x18   : > { %369 = vst [vmem:[%s1841_s12 + $0x8] sm:$0xff] %v368_v1  ;;  %v374_v4 = vld [vmem:[%s1836_s11 + $0x40] sm:$0xff]  ;;  %v376_v5 = vld [vmem:[%s1836_s11 + $0x50] sm:$0xff] }
  0x19   : > { %371 = vst [vmem:[%s1841_s12 + $0x10] sm:$0xff] %v370_v2  ;;  %v378_v6 = vld [vmem:[%s1836_s11 + $0x60] sm:$0xff]  ;;  %v380_v7 = vld [vmem:[%s1836_s11 + $0x70] sm:$0xff] }
  0x1a   : > { %373 = vst [vmem:[%s1841_s12 + $0x18] sm:$0xff] %v372_v3  ;;  %v382_v8 = vld [vmem:[%s1836_s11 + $0x80] sm:$0xff]  ;;  %v384_v9 = vld [vmem:[%s1836_s11 + $0x90] sm:$0xff] }
  0x1b   : > { %375 = vst [vmem:[%s1841_s12 + $0x20] sm:$0xff] %v374_v4  ;;  %v386_v10 = vld [vmem:[%s1836_s11 + $0xa0] sm:$0xff]  ;;  %v388_v11 = vld [vmem:[%s1836_s11 + $0xb0] sm:$0xff] }
  0x1c   : > { %377 = vst [vmem:[%s1841_s12 + $0x28] sm:$0xff] %v376_v5  ;;  %v390_v12 = vld [vmem:[%s1836_s11 + $0xc0] sm:$0xff]  ;;  %v392_v13 = vld [vmem:[%s1836_s11 + $0xd0] sm:$0xff] }
  0x1d   : > { %379 = vst [vmem:[%s1841_s12 + $0x30] sm:$0xff] %v378_v6  ;;  %v394_v14 = vld [vmem:[%s1836_s11 + $0xe0] sm:$0xff]  ;;  %v396_v15 = vld [vmem:[%s1836_s11 + $0xf0] sm:$0xff] }
  0x1e   : > { %381 = vst [vmem:[%s1841_s12 + $0x38] sm:$0xff] %v380_v7  ;;  %v398_v16 = vld [vmem:[%s1836_s11 + $0x100] sm:$0xff]  ;;  %v400_v17 = vld [vmem:[%s1836_s11 + $0x110] sm:$0xff] }
  0x1f   : > { %383 = vst [vmem:[%s1841_s12 + $0x40] sm:$0xff] %v382_v8  ;;  %v402_v18 = vld [vmem:[%s1836_s11 + $0x120] sm:$0xff]  ;;  %v404_v19 = vld [vmem:[%s1836_s11 + $0x130] sm:$0xff] }
  0x20   : > { %385 = vst [vmem:[%s1841_s12 + $0x48] sm:$0xff] %v384_v9  ;;  %v406_v20 = vld [vmem:[%s1836_s11 + $0x140] sm:$0xff]  ;;  %v408_v21 = vld [vmem:[%s1836_s11 + $0x150] sm:$0xff] }
  0x21   : > { %387 = vst [vmem:[%s1841_s12 + $0x50] sm:$0xff] %v386_v10  ;;  %v410_v22 = vld [vmem:[%s1836_s11 + $0x160] sm:$0xff]  ;;  %v412_v23 = vld [vmem:[%s1836_s11 + $0x170] sm:$0xff] }
  0x22   : > { %389 = vst [vmem:[%s1841_s12 + $0x58] sm:$0xff] %v388_v11  ;;  %v414_v24 = vld [vmem:[%s1836_s11 + $0x180] sm:$0xff]  ;;  %v416_v25 = vld [vmem:[%s1836_s11 + $0x190] sm:$0xff] }
  0x23   : > { %391 = vst [vmem:[%s1841_s12 + $0x60] sm:$0xff] %v390_v12  ;;  %v418_v26 = vld [vmem:[%s1836_s11 + $0x1a0] sm:$0xff]  ;;  %v420_v27 = vld [vmem:[%s1836_s11 + $0x1b0] sm:$0xff] }
  0x24   : > { %393 = vst [vmem:[%s1841_s12 + $0x68] sm:$0xff] %v392_v13  ;;  %v422_v28 = vld [vmem:[%s1836_s11 + $0x1c0] sm:$0xff]  ;;  %v424_v29 = vld [vmem:[%s1836_s11 + $0x1d0] sm:$0xff] }
  0x25   : > { %395 = vst [vmem:[%s1841_s12 + $0x70] sm:$0xff] %v394_v14  ;;  %v426_v30 = vld [vmem:[%s1836_s11 + $0x1e0] sm:$0xff]  ;;  %v428_v31 = vld [vmem:[%s1836_s11 + $0x1f0] sm:$0xff] }
  0x26   : > { %397 = vst [vmem:[%s1841_s12 + $0x78] sm:$0xff] %v396_v15  ;;  %v430_v32 = vld [vmem:[%s1836_s11 + $0x200] sm:$0xff]  ;;  %v432_v33 = vld [vmem:[%s1836_s11 + $0x210] sm:$0xff] }
  0x27   : > { %399 = vst [vmem:[%s1841_s12 + $0x80] sm:$0xff] %v398_v16  ;;  %v434_v34 = vld [vmem:[%s1836_s11 + $0x220] sm:$0xff]  ;;  %v436_v35 = vld [vmem:[%s1836_s11 + $0x230] sm:$0xff] }
  0x28   : > { %401 = vst [vmem:[%s1841_s12 + $0x88] sm:$0xff] %v400_v17  ;;  %v438_v36 = vld [vmem:[%s1836_s11 + $0x240] sm:$0xff]  ;;  %v440_v37 = vld [vmem:[%s1836_s11 + $0x250] sm:$0xff] }
  0x29   : > { %403 = vst [vmem:[%s1841_s12 + $0x90] sm:$0xff] %v402_v18  ;;  %v442_v38 = vld [vmem:[%s1836_s11 + $0x260] sm:$0xff]  ;;  %v444_v39 = vld [vmem:[%s1836_s11 + $0x270] sm:$0xff] }
  0x2a   : > { %405 = vst [vmem:[%s1841_s12 + $0x98] sm:$0xff] %v404_v19  ;;  %v446_v40 = vld [vmem:[%s1836_s11 + $0x280] sm:$0xff]  ;;  %v448_v41 = vld [vmem:[%s1836_s11 + $0x290] sm:$0xff] }
  0x2b   : > { %407 = vst [vmem:[%s1841_s12 + $0xa0] sm:$0xff] %v406_v20  ;;  %v450_v42 = vld [vmem:[%s1836_s11 + $0x2a0] sm:$0xff]  ;;  %v452_v43 = vld [vmem:[%s1836_s11 + $0x2b0] sm:$0xff] }
  0x2c   : > { %409 = vst [vmem:[%s1841_s12 + $0xa8] sm:$0xff] %v408_v21  ;;  %v454_v44 = vld [vmem:[%s1836_s11 + $0x2c0] sm:$0xff]  ;;  %v456_v45 = vld [vmem:[%s1836_s11 + $0x2d0] sm:$0xff] }
  0x2d   : > { %411 = vst [vmem:[%s1841_s12 + $0xb0] sm:$0xff] %v410_v22  ;;  %v458_v46 = vld [vmem:[%s1836_s11 + $0x2e0] sm:$0xff]  ;;  %v460_v47 = vld [vmem:[%s1836_s11 + $0x2f0] sm:$0xff] }
  0x2e   : > { %413 = vst [vmem:[%s1841_s12 + $0xb8] sm:$0xff] %v412_v23  ;;  %v462_v48 = vld [vmem:[%s1836_s11 + $0x300] sm:$0xff]  ;;  %v464_v49 = vld [vmem:[%s1836_s11 + $0x310] sm:$0xff] }
  0x2f   : > { %415 = vst [vmem:[%s1841_s12 + $0xc0] sm:$0xff] %v414_v24  ;;  %v466_v50 = vld [vmem:[%s1836_s11 + $0x320] sm:$0xff]  ;;  %v468_v51 = vld [vmem:[%s1836_s11 + $0x330] sm:$0xff] }
  0x30   : > { %417 = vst [vmem:[%s1841_s12 + $0xc8] sm:$0xff] %v416_v25  ;;  %v470_v52 = vld [vmem:[%s1836_s11 + $0x340] sm:$0xff]  ;;  %v472_v53 = vld [vmem:[%s1836_s11 + $0x350] sm:$0xff] }
  0x31   : > { %419 = vst [vmem:[%s1841_s12 + $0xd0] sm:$0xff] %v418_v26  ;;  %v474_v54 = vld [vmem:[%s1836_s11 + $0x360] sm:$0xff]  ;;  %v476_v55 = vld [vmem:[%s1836_s11 + $0x370] sm:$0xff] }
  0x32   : > { %421 = vst [vmem:[%s1841_s12 + $0xd8] sm:$0xff] %v420_v27  ;;  %v478_v56 = vld [vmem:[%s1836_s11 + $0x380] sm:$0xff]  ;;  %v480_v57 = vld [vmem:[%s1836_s11 + $0x390] sm:$0xff] }
  0x33   : > { %423 = vst [vmem:[%s1841_s12 + $0xe0] sm:$0xff] %v422_v28  ;;  %v482_v58 = vld [vmem:[%s1836_s11 + $0x3a0] sm:$0xff]  ;;  %v484_v59 = vld [vmem:[%s1836_s11 + $0x3b0] sm:$0xff] }
  0x34   : > { %425 = vst [vmem:[%s1841_s12 + $0xe8] sm:$0xff] %v424_v29  ;;  %v486_v60 = vld [vmem:[%s1836_s11 + $0x3c0] sm:$0xff]  ;;  %v488_v61 = vld [vmem:[%s1836_s11 + $0x3d0] sm:$0xff] }
  0x35   : > { %427 = vst [vmem:[%s1841_s12 + $0xf0] sm:$0xff] %v426_v30  ;;  %v490_v62 = vld [vmem:[%s1836_s11 + $0x3e0] sm:$0xff]  ;;  %v492_v63 = vld [vmem:[%s1836_s11 + $0x3f0] sm:$0xff] }
  0x36   : > { %429 = vst [vmem:[%s1841_s12 + $0xf8] sm:$0xff] %v428_v31 }
  0x37   : > { %431 = vst [vmem:[%s1841_s12 + $0x100] sm:$0xff] %v430_v32 }
  0x38   : > { %433 = vst [vmem:[%s1841_s12 + $0x108] sm:$0xff] %v432_v33 }
  0x39   : > { %435 = vst [vmem:[%s1841_s12 + $0x110] sm:$0xff] %v434_v34 }
  0x3a   : > { %437 = vst [vmem:[%s1841_s12 + $0x118] sm:$0xff] %v436_v35 }
  0x3b   : > { %439 = vst [vmem:[%s1841_s12 + $0x120] sm:$0xff] %v438_v36 }
  0x3c   : > { %441 = vst [vmem:[%s1841_s12 + $0x128] sm:$0xff] %v440_v37 }
  0x3d   : > { %443 = vst [vmem:[%s1841_s12 + $0x130] sm:$0xff] %v442_v38 }
  0x3e   : > { %445 = vst [vmem:[%s1841_s12 + $0x138] sm:$0xff] %v444_v39 }
  0x3f   : > { %447 = vst [vmem:[%s1841_s12 + $0x140] sm:$0xff] %v446_v40 }
  0x40   : > { %449 = vst [vmem:[%s1841_s12 + $0x148] sm:$0xff] %v448_v41 }
  0x41   : > { %451 = vst [vmem:[%s1841_s12 + $0x150] sm:$0xff] %v450_v42 }
  0x42   : > { %453 = vst [vmem:[%s1841_s12 + $0x158] sm:$0xff] %v452_v43 }
  0x43   : > { %455 = vst [vmem:[%s1841_s12 + $0x160] sm:$0xff] %v454_v44 }
  0x44   : > { %457 = vst [vmem:[%s1841_s12 + $0x168] sm:$0xff] %v456_v45 }
  0x45   : > { %459 = vst [vmem:[%s1841_s12 + $0x170] sm:$0xff] %v458_v46 }
  0x46   : > { %461 = vst [vmem:[%s1841_s12 + $0x178] sm:$0xff] %v460_v47 }
  0x47   : > { %463 = vst [vmem:[%s1841_s12 + $0x180] sm:$0xff] %v462_v48 }
  0x48   : > { %465 = vst [vmem:[%s1841_s12 + $0x188] sm:$0xff] %v464_v49 }
  0x49   : > { %467 = vst [vmem:[%s1841_s12 + $0x190] sm:$0xff] %v466_v50 }
  0x4a   : > { %469 = vst [vmem:[%s1841_s12 + $0x198] sm:$0xff] %v468_v51 }
  0x4b   : > { %471 = vst [vmem:[%s1841_s12 + $0x1a0] sm:$0xff] %v470_v52 }
  0x4c   : > { %473 = vst [vmem:[%s1841_s12 + $0x1a8] sm:$0xff] %v472_v53 }
  0x4d   : > { %475 = vst [vmem:[%s1841_s12 + $0x1b0] sm:$0xff] %v474_v54 }
  0x4e   : > { %477 = vst [vmem:[%s1841_s12 + $0x1b8] sm:$0xff] %v476_v55 }
  0x4f   : > { %479 = vst [vmem:[%s1841_s12 + $0x1c0] sm:$0xff] %v478_v56 }
  0x50   : > { %481 = vst [vmem:[%s1841_s12 + $0x1c8] sm:$0xff] %v480_v57 }
  0x51   : > { %483 = vst [vmem:[%s1841_s12 + $0x1d0] sm:$0xff] %v482_v58 }
  0x52   : > { %485 = vst [vmem:[%s1841_s12 + $0x1d8] sm:$0xff] %v484_v59 }
  0x53   : > { %487 = vst [vmem:[%s1841_s12 + $0x1e0] sm:$0xff] %v486_v60 }
  0x54   : > { %489 = vst [vmem:[%s1841_s12 + $0x1e8] sm:$0xff] %v488_v61 }
  0x55   : > { %491 = vst [vmem:[%s1841_s12 + $0x1f0] sm:$0xff] %v490_v62 }
  0x56   : > { %493 = vst [vmem:[%s1841_s12 + $0x1f8] sm:$0xff] %v492_v63 }
  0x57 PF: > { %p1303_p7 = scmp.ge.s32.totalorder %s1748_s21, 1  ;;  %p519_p8 = scmp.lt.s32.totalorder %s1748_s21, 55 }
  0x59   : > { %p520_p9 = pnand %p1303_p7, %p519_p8 }
  0x5a   : > { %s526_s13 = sand.u32 (!%p520_p9), 1, %s1724_s15   ;;  %s1305_s14 = sshll.u32 (!%p520_p9), %s1732_s17, 2 }
  0x5b   : > { %523 = sbr.rel (%p520_p9) target bundleno = 331 (0x14b), region = 70  ;;  %s1304_s24 = sshll.u32 (!%p520_p9), %s526_s13, 9 }
  0x5c   : > { %p580_p10 = scmp.lt.s32.totalorder (!%p520_p9), %s1305_s14, 107  ;;  %s1307_s25 = sshll.u32 (!%p520_p9), %s1736_s18, 1 }
  0x5d   : > { %p590_p11 = scmp.lt.s32.totalorder (!%p520_p9), %s1307_s25, 3  ;;  %s1995_s13 = scalar_lea.vmem (!%p520_p9), [#allocation3], %s1304_s24 }
  0x5e   : > { %p1312_p12 = scmp.ne.s32.totalorder (!%p520_p9), %s1732_s17, 0 }
  0x60   : > { %s2191_s14 = smov (!%p580_p10, %s1305_s14), 107  ;;  %s2193_s25 = smov (!%p590_p11, %s1307_s25), 3 }
  0x61   : > { %s1306_s26 = sshll.u32 %s2191_s14, 2  ;;  %s592_s15 = scalar_lea.vmem %s2175_s2, %s2193_s25 }
  0x62   : > { %s1976_s30 = scalar_lea.vmem %s2173_s0, %s1306_s26  ;;  %s1309_s7 = sshll.u32 %s2193_s25, 2 }
  0x63   : > { %s1988_s18 = scalar_lea.vmem %s2176_s3, %s1309_s7  ;;  %s1993_s12 = scalar_lea.vmem %s2177_s4, %s1309_s7 }
  0x64   : > { %617 = sbr.rel (%p1312_p12) target bundleno = 108 (0x6c), region = 78 }
  0x69   : > { %v1750_v0 = vmov 0.0  }
  0x6a   : > { %618 = vst [vmem:[#allocation2] sm:$0xff] %v1750_v0 }
  0x6b   : > { %619 = vst [vmem:[#allocation2 + $0x8] sm:$0xff] %v1750_v0 }
  0x6c PF: > { %v1371_v1 = vld [vmem:[%s1995_s13 + $0x70] sm:$0xf]  ;;  %v1588_v2 = vld [vmem:[%s1995_s13 + $0x74] sm:$0xf0]  ;;  %v1363_v12 = vld [vmem:[%s1995_s13 + $0x60] sm:$0xf] }
  0x6d   : > { %v1435_v3 = vld [vmem:[%s1995_s13 + $0xf0] sm:$0xf]  ;;  %v1372_v4 = vor.u32 %v1588_v2, %v1371_v1  ;;  %v1604_v5 = vld [vmem:[%s1995_s13 + $0xf4] sm:$0xf0]  ;;  %v1586_v14 = vld [vmem:[%s1995_s13 + $0x64] sm:$0xf0] }
  0x6e   : > { %v1499_v6 = vld [vmem:[%s1995_s13 + $0x170] sm:$0xf]  ;;  %v1620_v7 = vld [vmem:[%s1995_s13 + $0x174] sm:$0xf0]  ;;  %v1436_v8 = vor.u32 %v1604_v5, %v1435_v3  ;;  %v1427_v15 = vld [vmem:[%s1995_s13 + $0xe0] sm:$0xf]  ;;  %v1364_v17 = vor.u32 %v1586_v14, %v1363_v12 }
  0x6f   : > { %v1500_v9 = vor.u32 %v1620_v7, %v1499_v6  ;;  %v1563_v10 = vld [vmem:[%s1995_s13 + $0x1f0] sm:$0xf]  ;;  %v1636_v11 = vld [vmem:[%s1995_s13 + $0x1f4] sm:$0xf0]  ;;  %1022 = vmatpush.bf16.msra.mxu0 %v1372_v4  ;;  %v1602_v16 = vld [vmem:[%s1995_s13 + $0xe4] sm:$0xf0] }
  0x70   : > { %v1564_v13 = vor.u32 %v1636_v11, %v1563_v10  ;;  %1035 = vmatpush.bf16.msra.mxu1 %v1436_v8  ;;  %v1428_v18 = vor.u32 %v1602_v16, %v1427_v15  ;;  %v1491_v19 = vld [vmem:[%s1995_s13 + $0x160] sm:$0xf]  ;;  %v1618_v20 = vld [vmem:[%s1995_s13 + $0x164] sm:$0xf0]  ;;  %v1355_v24 = vld [vmem:[%s1995_s13 + $0x50] sm:$0xf] }
  0x71   : > { %1048 = vmatpush.bf16.msra.mxu2 %v1500_v9  ;;  %v1555_v21 = vld [vmem:[%s1995_s13 + $0x1e0] sm:$0xf]  ;;  %v1492_v22 = vor.u32 %v1618_v20, %v1491_v19  ;;  %v1634_v23 = vld [vmem:[%s1995_s13 + $0x1e4] sm:$0xf0]  ;;  %v1584_v25 = vld [vmem:[%s1995_s13 + $0x54] sm:$0xf0] }
  0x72   : > { %1061 = vmatpush.bf16.msra.mxu3 %v1564_v13  ;;  %v1556_v26 = vor.u32 %v1634_v23, %v1555_v21  ;;  %v1419_v27 = vld [vmem:[%s1995_s13 + $0xd0] sm:$0xf]  ;;  %v1600_v28 = vld [vmem:[%s1995_s13 + $0xd4] sm:$0xf0]  ;;  %v1356_v30 = vor.u32 %v1584_v25, %v1355_v24  ;;  %v1347_v36 = vld [vmem:[%s1995_s13 + $0x40] sm:$0xf] }
  0x73   : > { %v1483_v29 = vld [vmem:[%s1995_s13 + $0x150] sm:$0xf]  ;;  %1023 = vmatpush.bf16.msra.mxu0 %v1364_v17  ;;  %v1616_v31 = vld [vmem:[%s1995_s13 + $0x154] sm:$0xf0]  ;;  %v1420_v34 = vor.u32 %v1600_v28, %v1419_v27  ;;  %v1582_v37 = vld [vmem:[%s1995_s13 + $0x44] sm:$0xf0] }
  0x74   : > { %v1547_v32 = vld [vmem:[%s1995_s13 + $0x1d0] sm:$0xf]  ;;  %v1632_v33 = vld [vmem:[%s1995_s13 + $0x1d4] sm:$0xf0]  ;;  %1036 = vmatpush.bf16.msra.mxu1 %v1428_v18  ;;  %v1484_v35 = vor.u32 %v1616_v31, %v1483_v29  ;;  %v1411_v38 = vld [vmem:[%s1995_s13 + $0xc0] sm:$0xf]  ;;  %v1348_v45 = vor.u32 %v1582_v37, %v1347_v36 }
  0x75   : > { %1049 = vmatpush.bf16.msra.mxu2 %v1492_v22  ;;  %v1548_v39 = vor.u32 %v1632_v33, %v1547_v32  ;;  %v1598_v40 = vld [vmem:[%s1995_s13 + $0xc4] sm:$0xf0]  ;;  %v1475_v41 = vld [vmem:[%s1995_s13 + $0x140] sm:$0xf]  ;;  %v1339_v48 = vld [vmem:[%s1995_s13 + $0x30] sm:$0xf] }
  0x76   : > { %1062 = vmatpush.bf16.msra.mxu3 %v1556_v26  ;;  %v1614_v42 = vld [vmem:[%s1995_s13 + $0x144] sm:$0xf0]  ;;  %v1539_v43 = vld [vmem:[%s1995_s13 + $0x1c0] sm:$0xf]  ;;  %v1412_v46 = vor.u32 %v1598_v40, %v1411_v38  ;;  %v1580_v49 = vld [vmem:[%s1995_s13 + $0x34] sm:$0xf0] }
  0x77   : > { %v1630_v44 = vld [vmem:[%s1995_s13 + $0x1c4] sm:$0xf0]  ;;  %1024 = vmatpush.bf16.msra.mxu0 %v1356_v30  ;;  %v1476_v47 = vor.u32 %v1614_v42, %v1475_v41  ;;  %v1403_v50 = vld [vmem:[%s1995_s13 + $0xb0] sm:$0xf]  ;;  %v1596_v52 = vld [vmem:[%s1995_s13 + $0xb4] sm:$0xf0]  ;;  %v1340_v57 = vor.u32 %v1580_v49, %v1339_v48 }
  0x78   : > { %1037 = vmatpush.bf16.msra.mxu1 %v1420_v34  ;;  %v1540_v51 = vor.u32 %v1630_v44, %v1539_v43  ;;  %v1467_v53 = vld [vmem:[%s1995_s13 + $0x130] sm:$0xf]  ;;  %v1612_v54 = vld [vmem:[%s1995_s13 + $0x134] sm:$0xf0]  ;;  %v1404_v58 = vor.u32 %v1596_v52, %v1403_v50  ;;  %v1331_v60 = vld [vmem:[%s1995_s13 + $0x20] sm:$0xf] }
  0x79   : > { %1050 = vmatpush.bf16.msra.mxu2 %v1484_v35  ;;  %v1531_v55 = vld [vmem:[%s1995_s13 + $0x1b0] sm:$0xf]  ;;  %v1628_v56 = vld [vmem:[%s1995_s13 + $0x1b4] sm:$0xf0]  ;;  %v1468_v59 = vor.u32 %v1612_v54, %v1467_v53  ;;  %v1578_v61 = vld [vmem:[%s1995_s13 + $0x24] sm:$0xf0] }
  0x7a   : > { %1063 = vmatpush.bf16.msra.mxu3 %v1548_v39  ;;  %v1395_v62 = vld [vmem:[%s1995_s13 + $0xa0] sm:$0xf]  ;;  %v1532_v63 = vor.u32 %v1628_v56, %v1531_v55  ;;  %v1594_v0 = vld [vmem:[%s1995_s13 + $0xa4] sm:$0xf0]  ;;  %v1332_v5 = vor.u32 %v1578_v61, %v1331_v60  ;;  %v1323_v8 = vld [vmem:[%s1995_s13 + $0x10] sm:$0xf] }
  0x7b   : > { %1025 = vmatpush.bf16.msra.mxu0 %v1348_v45  ;;  %v1459_v1 = vld [vmem:[%s1995_s13 + $0x120] sm:$0xf]  ;;  %v1610_v2 = vld [vmem:[%s1995_s13 + $0x124] sm:$0xf0]  ;;  %v1396_v6 = vor.u32 %v1594_v0, %v1395_v62  ;;  %v1576_v9 = vld [vmem:[%s1995_s13 + $0x14] sm:$0xf0] }
  0x7c   : > { %1038 = vmatpush.bf16.msra.mxu1 %v1412_v46  ;;  %v1523_v3 = vld [vmem:[%s1995_s13 + $0x1a0] sm:$0xf]  ;;  %v1626_v4 = vld [vmem:[%s1995_s13 + $0x1a4] sm:$0xf0]  ;;  %v1460_v7 = vor.u32 %v1610_v2, %v1459_v1  ;;  %v1387_v10 = vld [vmem:[%s1995_s13 + $0x90] sm:$0xf]  ;;  %v1324_v17 = vor.u32 %v1576_v9, %v1323_v8 }
  0x7d   : > { %1051 = vmatpush.bf16.msra.mxu2 %v1476_v47  ;;  %v1524_v11 = vor.u32 %v1626_v4, %v1523_v3  ;;  %v1592_v12 = vld [vmem:[%s1995_s13 + $0x94] sm:$0xf0]  ;;  %v1451_v13 = vld [vmem:[%s1995_s13 + $0x110] sm:$0xf]  ;;  %v1315_v18 = vld [vmem:[%s1995_s13] sm:$0xf] }
  0x7e   : > { %1064 = vmatpush.bf16.msra.mxu3 %v1540_v51  ;;  %v1608_v14 = vld [vmem:[%s1995_s13 + $0x114] sm:$0xf0]  ;;  %v1515_v15 = vld [vmem:[%s1995_s13 + $0x190] sm:$0xf]  ;;  %v1574_v19 = vld [vmem:[%s1995_s13 + $0x4] sm:$0xf0]  ;;  %v1388_v21 = vor.u32 %v1592_v12, %v1387_v10 }
  0x7f   : > { %1026 = vmatpush.bf16.msra.mxu0 %v1340_v57  ;;  %v1624_v16 = vld [vmem:[%s1995_s13 + $0x194] sm:$0xf0]  ;;  %v1379_v20 = vld [vmem:[%s1995_s13 + $0x80] sm:$0xf]  ;;  %v1452_v22 = vor.u32 %v1608_v14, %v1451_v13  ;;  %v1590_v23 = vld [vmem:[%s1995_s13 + $0x84] sm:$0xf0]  ;;  %v1316_v33 = vor.u32 %v1574_v19, %v1315_v18 }
  0x80   : > { %1039 = vmatpush.bf16.msra.mxu1 %v1404_v58  ;;  %v1443_v24 = vld [vmem:[%s1995_s13 + $0x100] sm:$0xf]  ;;  %v1606_v25 = vld [vmem:[%s1995_s13 + $0x104] sm:$0xf0]  ;;  %v1516_v26 = vor.u32 %v1624_v16, %v1515_v15  ;;  %v1587_v29 = vld [vmem:[%s1995_s13 + $0x74] sm:$0xf]  ;;  %v1380_v38 = vor.u32 %v1590_v23, %v1379_v20 }
  0x81   : > { %1052 = vmatpush.bf16.msra.mxu2 %v1468_v59  ;;  %v1507_v27 = vld [vmem:[%s1995_s13 + $0x180] sm:$0xf]  ;;  %v1622_v28 = vld [vmem:[%s1995_s13 + $0x184] sm:$0xf0]  ;;  %v1373_v30 = vld [vmem:[%s1995_s13 + $0x78] sm:$0xf0]  ;;  %v1444_v39 = vor.u32 %v1606_v25, %v1443_v24 }
  0x82   : > { %1065 = vmatpush.bf16.msra.mxu3 %v1532_v63  ;;  %v1603_v31 = vld [vmem:[%s1995_s13 + $0xf4] sm:$0xf]  ;;  %v623_v32 = vld [vmem:[%s1976_s30 + $0x8] sm:$0xff]  ;;  %v1508_v43 = vor.u32 %v1622_v28, %v1507_v27  ;;  %v1376_v44 = vor.u32 %v1587_v29, %v1373_v30  ;;  %v1585_v48 = vld [vmem:[%s1995_s13 + $0x64] sm:$0xf]  ;;  %p1569_p13 = scmp.ne.s32.totalorder %s1732_s17, 26 }
  0x83   : > { %1027 = vmatpush.bf16.msra.mxu0 %v1332_v5  ;;  %v1437_v34 = vld [vmem:[%s1995_s13 + $0xf8] sm:$0xf0]  ;;  %v1619_v35 = vld [vmem:[%s1995_s13 + $0x174] sm:$0xf]  ;;  %v692_v37 = vunpack.c.l.b16 %v623_v32  ;;  %v693_v42 = vunpack.c.h.b16 %v623_v32  ;;  %v1365_v49 = vld [vmem:[%s1995_s13 + $0x68] sm:$0xf0] }
  0x84   : > { %1040 = vmatpush.bf16.msra.mxu1 %v1396_v6  ;;  %v1501_v36 = vld [vmem:[%s1995_s13 + $0x178] sm:$0xf0]  ;;  %v1635_v40 = vld [vmem:[%s1995_s13 + $0x1f4] sm:$0xf]  ;;  %v1440_v46 = vor.u32 %v1603_v31, %v1437_v34  ;;  %v1601_v50 = vld [vmem:[%s1995_s13 + $0xe4] sm:$0xf]  ;;  %v1368_v62 = vor.u32 %v1585_v48, %v1365_v49 }
  0x85   : > { %1053 = vmatpush.bf16.msra.mxu2 %v1460_v7  ;;  %v1565_v41 = vld [vmem:[%s1995_s13 + $0x1f8] sm:$0xf0]  ;;  %v622_v45 = vld [vmem:[%s1976_s30] sm:$0xff]  ;;  %v1504_v47 = vor.u32 %v1619_v35, %v1501_v36  ;;  %v1429_v54 = vld [vmem:[%s1995_s13 + $0xe8] sm:$0xf0]  ;;  %v2078_v57 = vpack.c.b16 %v692_v37, %v692_v37  ;;  %v2082_v60 = vpack.c.b16 %v693_v42, %v693_v42 }
  0x86   : > { %1066 = vmatpush.bf16.msra.mxu3 %v1524_v11  ;;  %v690_v51 = vunpack.c.l.b16 %v622_v45  ;;  %v691_v52 = vunpack.c.h.b16 %v622_v45  ;;  %v1568_v53 = vor.u32 %v1635_v40, %v1565_v41  ;;  %v1617_v55 = vld [vmem:[%s1995_s13 + $0x164] sm:$0xf]  ;;  %v1493_v56 = vld [vmem:[%s1995_s13 + $0x168] sm:$0xf0]  ;;  %v1432_v0 = vor.u32 %v1601_v50, %v1429_v54  ;;  %v1583_v2 = vld [vmem:[%s1995_s13 + $0x54] sm:$0xf] }
  0x87   : > { %1028 = vmatpush.bf16.msra.mxu0 %v1324_v17  ;;  %v1633_v58 = vld [vmem:[%s1995_s13 + $0x1e4] sm:$0xf]  ;;  %v1557_v59 = vld [vmem:[%s1995_s13 + $0x1e8] sm:$0xf0]  ;;  %v1496_v1 = vor.u32 %v1617_v55, %v1493_v56  ;;  %v1357_v3 = vld [vmem:[%s1995_s13 + $0x58] sm:$0xf0] }
  0x88   : > { %1041 = vmatpush.bf16.msra.mxu1 %v1388_v21  ;;  %v2084_v61 = vpack.c.b16 %v690_v51, %v690_v51  ;;  %v2086_v63 = vpack.c.b16 %v691_v52, %v691_v52  ;;  %v1599_v4 = vld [vmem:[%s1995_s13 + $0xd4] sm:$0xf]  ;;  %v1560_v5 = vor.u32 %v1633_v58, %v1557_v59  ;;  %v1421_v6 = vld [vmem:[%s1995_s13 + $0xd8] sm:$0xf0]  ;;  %v1360_v11 = vor.u32 %v1583_v2, %v1357_v3  ;;  %v1581_v14 = vld [vmem:[%s1995_s13 + $0x44] sm:$0xf] }
  0x89   : > { %1054 = vmatpush.bf16.msra.mxu2 %v1452_v22  ;;  %v1615_v7 = vld [vmem:[%s1995_s13 + $0x154] sm:$0xf]  ;;  %v1485_v8 = vld [vmem:[%s1995_s13 + $0x158] sm:$0xf0]  ;;  %v1424_v12 = vor.u32 %v1599_v4, %v1421_v6  ;;  %v1349_v15 = vld [vmem:[%s1995_s13 + $0x48] sm:$0xf0] }
  0x8a   : > { %1067 = vmatpush.bf16.msra.mxu3 %v1516_v26  ;;  %v1631_v9 = vld [vmem:[%s1995_s13 + $0x1d4] sm:$0xf]  ;;  %v1549_v10 = vld [vmem:[%s1995_s13 + $0x1d8] sm:$0xf0]  ;;  %v1488_v13 = vor.u32 %v1615_v7, %v1485_v8  ;;  %v1597_v16 = vld [vmem:[%s1995_s13 + $0xc4] sm:$0xf]  ;;  %v1352_v23 = vor.u32 %v1581_v14, %v1349_v15 }
  0x8b   : > { %1029 = vmatpush.bf16.msra.mxu0 %v1316_v33  ;;  %v1552_v17 = vor.u32 %v1631_v9, %v1549_v10  ;;  %v1413_v18 = vld [vmem:[%s1995_s13 + $0xc8] sm:$0xf0]  ;;  %v1613_v19 = vld [vmem:[%s1995_s13 + $0x144] sm:$0xf]  ;;  %v1579_v26 = vld [vmem:[%s1995_s13 + $0x34] sm:$0xf] }
  0x8c   : > { %1042 = vmatpush.bf16.msra.mxu1 %v1380_v38  ;;  %v1477_v20 = vld [vmem:[%s1995_s13 + $0x148] sm:$0xf0]  ;;  %v1629_v21 = vld [vmem:[%s1995_s13 + $0x1c4] sm:$0xf]  ;;  %v1416_v24 = vor.u32 %v1597_v16, %v1413_v18  ;;  %v1341_v27 = vld [vmem:[%s1995_s13 + $0x38] sm:$0xf0] }
  0x8d   : > { %1055 = vmatpush.bf16.msra.mxu2 %v1444_v39  ;;  %v1541_v22 = vld [vmem:[%s1995_s13 + $0x1c8] sm:$0xf0]  ;;  %v1480_v25 = vor.u32 %v1613_v19, %v1477_v20  ;;  %v1595_v28 = vld [vmem:[%s1995_s13 + $0xb4] sm:$0xf]  ;;  %v1405_v30 = vld [vmem:[%s1995_s13 + $0xb8] sm:$0xf0]  ;;  %v1344_v35 = vor.u32 %v1579_v26, %v1341_v27 }
  0x8e   : > { %1068 = vmatpush.bf16.msra.mxu3 %v1508_v43  ;;  %1030 = vmatmul.bf16.vlgmr.msra.gmra.mxu0 %v2084_v61  ;;  %v1544_v29 = vor.u32 %v1629_v21, %v1541_v22  ;;  %v1611_v31 = vld [vmem:[%s1995_s13 + $0x134] sm:$0xf]  ;;  %v1469_v32 = vld [vmem:[%s1995_s13 + $0x138] sm:$0xf0]  ;;  %v1408_v36 = vor.u32 %v1595_v28, %v1405_v30  ;;  %v1577_v38 = vld [vmem:[%s1995_s13 + $0x24] sm:$0xf] }
  0x8f   : > { %1074 = vmatpush.bf16.msrb.mxu0 %v1376_v44  ;;  %1043 = vmatmul.bf16.vlgmr.msra.gmra.mxu1 %v2086_v63  ;;  %v1627_v33 = vld [vmem:[%s1995_s13 + $0x1b4] sm:$0xf]  ;;  %v1533_v34 = vld [vmem:[%s1995_s13 + $0x1b8] sm:$0xf0]  ;;  %v1472_v37 = vor.u32 %v1611_v31, %v1469_v32  ;;  %v1333_v39 = vld [vmem:[%s1995_s13 + $0x28] sm:$0xf0] }
  0x90   : > { %1087 = vmatpush.bf16.msrb.mxu1 %v1440_v46  ;;  %1056 = vmatmul.bf16.vlgmr.msra.gmra.mxu2 %v2078_v57  ;;  %v1593_v40 = vld [vmem:[%s1995_s13 + $0xa4] sm:$0xf]  ;;  %v1536_v41 = vor.u32 %v1627_v33, %v1533_v34  ;;  %v1397_v42 = vld [vmem:[%s1995_s13 + $0xa8] sm:$0xf0]  ;;  %v1575_v50 = vld [vmem:[%s1995_s13 + $0x14] sm:$0xf] }
  0x91   : > { %1100 = vmatpush.bf16.msrb.mxu2 %v1504_v47  ;;  %1069 = vmatmul.bf16.vlgmr.msra.gmra.mxu3 %v2082_v60  ;;  %v1609_v43 = vld [vmem:[%s1995_s13 + $0x124] sm:$0xf]  ;;  %v1461_v44 = vld [vmem:[%s1995_s13 + $0x128] sm:$0xf0]  ;;  %v1336_v47 = vor.u32 %v1577_v38, %v1333_v39  ;;  %v1400_v48 = vor.u32 %v1593_v40, %v1397_v42  ;;  %v1325_v51 = vld [vmem:[%s1995_s13 + $0x18] sm:$0xf0] }
  0x92   : > { %1113 = vmatpush.bf16.msrb.mxu3 %v1568_v53  ;;  %v1625_v45 = vld [vmem:[%s1995_s13 + $0x1a4] sm:$0xf]  ;;  %v1525_v46 = vld [vmem:[%s1995_s13 + $0x1a8] sm:$0xf0]  ;;  %v1464_v49 = vor.u32 %v1609_v43, %v1461_v44  ;;  %v1591_v52 = vld [vmem:[%s1995_s13 + $0x94] sm:$0xf] }
  0x93   : > { %1075 = vmatpush.bf16.msrb.mxu0 %v1368_v62  ;;  %v1528_v53 = vor.u32 %v1625_v45, %v1525_v46  ;;  %v1389_v54 = vld [vmem:[%s1995_s13 + $0x98] sm:$0xf0]  ;;  %v1607_v55 = vld [vmem:[%s1995_s13 + $0x114] sm:$0xf]  ;;  %v1328_v62 = vor.u32 %v1575_v50, %v1325_v51  ;;  %v1573_v2 = vld [vmem:[%s1995_s13 + $0x4] sm:$0xf] }
  0x94   : > { %1088 = vmatpush.bf16.msrb.mxu1 %v1432_v0  ;;  %v1453_v56 = vld [vmem:[%s1995_s13 + $0x118] sm:$0xf0]  ;;  %v1623_v58 = vld [vmem:[%s1995_s13 + $0x194] sm:$0xf]  ;;  %v1392_v0 = vor.u32 %v1591_v52, %v1389_v54  ;;  %v1317_v3 = vld [vmem:[%s1995_s13 + $0x8] sm:$0xf0] }
  0x95   : > { %1101 = vmatpush.bf16.msrb.mxu2 %v1496_v1  ;;  %v1517_v59 = vld [vmem:[%s1995_s13 + $0x198] sm:$0xf0]  ;;  %v1456_v1 = vor.u32 %v1607_v55, %v1453_v56  ;;  %v1589_v4 = vld [vmem:[%s1995_s13 + $0x84] sm:$0xf]  ;;  %v1381_v6 = vld [vmem:[%s1995_s13 + $0x88] sm:$0xf0] }
  0x96   : > { %1114 = vmatpush.bf16.msrb.mxu3 %v1560_v5  ;;  %v1520_v5 = vor.u32 %v1623_v58, %v1517_v59  ;;  %v1605_v7 = vld [vmem:[%s1995_s13 + $0x104] sm:$0xf]  ;;  %v1445_v8 = vld [vmem:[%s1995_s13 + $0x108] sm:$0xf0]  ;;  %v620_v21 = vld [vmem:[#allocation2] sm:$0xff] }
  0x97   : > { %1076 = vmatpush.bf16.msrb.mxu0 %v1360_v11  ;;  %v1621_v9 = vld [vmem:[%s1995_s13 + $0x184] sm:$0xf]  ;;  %v1509_v10 = vld [vmem:[%s1995_s13 + $0x188] sm:$0xf0]  ;;  %v1320_v11 = vor.u32 %v1573_v2, %v1317_v3  ;;  %v621_v31 = vld [vmem:[#allocation2 + $0x8] sm:$0xff] }
  0x98   : > { %1089 = vmatpush.bf16.msrb.mxu1 %v1424_v12  ;;  %v1384_v12 = vor.u32 %v1589_v4, %v1381_v6  ;;  %v1512_v14 = vor.u32 %v1621_v9, %v1509_v10 }
  0x99   : > { %1102 = vmatpush.bf16.msrb.mxu2 %v1488_v13  ;;  %v1448_v13 = vor.u32 %v1605_v7, %v1445_v8 }
  0x9a   : > { %1115 = vmatpush.bf16.msrb.mxu3 %v1552_v17 }
  0x9b   : > { %1077 = vmatpush.bf16.msrb.mxu0 %v1352_v23 }
  0x9c   : > { %1090 = vmatpush.bf16.msrb.mxu1 %v1416_v24 }
  0x9d   : > { %1103 = vmatpush.bf16.msrb.mxu2 %v1480_v25 }
  0x9e   : > { %1116 = vmatpush.bf16.msrb.mxu3 %v1544_v29 }
  0x9f   : > { %1078 = vmatpush.bf16.msrb.mxu0 %v1344_v35 }
  0xa0   : > { %1091 = vmatpush.bf16.msrb.mxu1 %v1408_v36 }
  0xa1   : > { %1104 = vmatpush.bf16.msrb.mxu2 %v1472_v37 }
  0xa2   : > { %1117 = vmatpush.bf16.msrb.mxu3 %v1536_v41 }
  0xa3   : > { %1079 = vmatpush.bf16.msrb.mxu0 %v1336_v47 }
  0xa4   : > { %1092 = vmatpush.bf16.msrb.mxu1 %v1400_v48 }
  0xa5   : > { %1105 = vmatpush.bf16.msrb.mxu2 %v1464_v49 }
  0xa6   : > { %1118 = vmatpush.bf16.msrb.mxu3 %v1528_v53 }
  0xa7   : > { %1080 = vmatpush.bf16.msrb.mxu0 %v1328_v62 }
  0xa8   : > { %1093 = vmatpush.bf16.msrb.mxu1 %v1392_v0 }
  0xa9   : > { %1106 = vmatpush.bf16.msrb.mxu2 %v1456_v1 }
  0xaa   : > { %1119 = vmatpush.bf16.msrb.mxu3 %v1520_v5 }
  0xab   : > { %1081 = vmatpush.bf16.msrb.mxu0 %v1320_v11 }
  0xac   : > { %1094 = vmatpush.bf16.msrb.mxu1 %v1384_v12 }
  0xad   : > { %1107 = vmatpush.bf16.msrb.mxu2 %v1448_v13 }
  0xae   : > { %1120 = vmatpush.bf16.msrb.mxu3 %v1512_v14  ;;  %1082 = vmatmul.bf16.vlgmr.msrb.gmra.mxu0 %v2084_v61 }
  0xaf   : > { %1095 = vmatmul.bf16.vlgmr.msrb.gmra.mxu1 %v2086_v63 }
  0xb0   : > { %1108 = vmatmul.bf16.vlgmr.msrb.gmra.mxu2 %v2078_v57 }
  0xb1   : > { %1121 = vmatmul.bf16.vlgmr.msrb.gmra.mxu3 %v2082_v60 }
 0x10b   : > { %v1031_v15 = vpop.f32.mrf.mxu0 }
 0x10c   : > { %v1044_v16 = vpop.f32.mrf.mxu1 }
 0x10d   : > { %v1045_v17 = vadd.f32 %v1044_v16, %v1031_v15 }
 0x113   : > { %v1057_v18 = vpop.f32.mrf.mxu2  ;;  %v1033_v23 = vpop.f32.mrf.mxu0 }
 0x114   : > { %v1058_v19 = vadd.f32 %v1057_v18, %v1045_v17  ;;  %v1070_v20 = vpop.f32.mrf.mxu3  ;;  %v1046_v24 = vpop.f32.mrf.mxu1 }
 0x116   : > { %v1071_v22 = vadd.f32 %v1070_v20, %v1058_v19 }
 0x118   : > { %v1126_v25 = vadd.f32 %v1071_v22, %v620_v21 }
 0x11a   : > { %1128 = vst [vmem:[#allocation2] sm:$0xff] %v1126_v25 }
 0x11b   : > { %v1059_v26 = vpop.f32.mrf.mxu2 }
 0x11c   : > { %v1072_v61 = vpop.f32.mrf.mxu3 }
 0x12b   : > { %v1083_v27 = vpop.f32.mrf.mxu0 }
 0x12c   : > { %v1096_v63 = vpop.f32.mrf.mxu1 }
 0x12d   : > { %v1097_v28 = vadd.f32 %v1096_v63, %v1083_v27 }
 0x133   : > { %v1109_v57 = vpop.f32.mrf.mxu2  ;;  %v1085_v30 = vpop.f32.mrf.mxu0 }
 0x134   : > { %v1110_v29 = vadd.f32 %v1109_v57, %v1097_v28  ;;  %v1122_v60 = vpop.f32.mrf.mxu3  ;;  %v1098_v32 = vpop.f32.mrf.mxu1 }
 0x136   : > { %v1123_v33 = vadd.f32 %v1122_v60, %v1110_v29 }
 0x138   : > { %v1127_v34 = vadd.f32 %v1123_v33, %v621_v31  ;;  %1133 = sbr.rel (%p1569_p13) target bundleno = 331 (0x14b), region = 82 }
 0x13a   : > { %1129 = vst [vmem:[#allocation2 + $0x8] sm:$0xff] %v1127_v34 }
 0x13b   : > { %v1111_v35 = vpop.f32.mrf.mxu2 }
 0x13c   : > { %v1124_v36 = vpop.f32.mrf.mxu3 }
 0x13d   : > { %v1134_v37 = vld [vmem:[#allocation2] sm:$0xff] }
 0x13e   : > { %v1136_v39 = vld [vmem:[%s592_s15] sm:$0x3] }
 0x13f   : > { %v1138_v40 = vperm.slane %v1136_v39, 0  ;;  %v1139_v41 = vperm.slane %v1136_v39, 1  ;;  %v1144_v42 = vld [vmem:[%s1988_s18] sm:$0xff] }
 0x140   : > { %v1145_v43 = vunpack.c.l.bf16 %v1144_v42  ;;  %v1146_v44 = vunpack.c.h.bf16 %v1144_v42 }
 0x141   : > { %v1135_v38 = vld [vmem:[#allocation2 + $0x8] sm:$0xff]  ;;  %v1142_v45 = vadd.f32 %v1138_v40, %v1134_v37 }
 0x142   : > { %v1143_v46 = vadd.f32 %v1139_v41, %v1135_v38 }
 0x143   : > { %v1147_v47 = vadd.f32 %v1145_v43, %v1142_v45 }
 0x144   : > { %v1148_v48 = vadd.f32 %v1146_v44, %v1143_v46 }
 0x145   : > { %v1149_v49 = vmax.f32 %v1147_v47, 0.0 }
 0x146   : > { %v1150_v50 = vmax.f32 %v1148_v48, 0.0 }
 0x148   : > { %v1151_v51 = vpack.c.bf16 %v1150_v50, %v1149_v49 }
 0x14a   : > { %1152 = vst [vmem:[%s1993_s12] sm:$0xff] %v1151_v51 }
 0x14b PF: > { %s14_s21 = sadd.s32 1, %s1748_s21   ;;  %s2178_s15 = smov %s1728_s16 }
 0x14c   : > { %p11_p0 = scmp.ge.s32.totalorder %s14_s21, 56   ;;  %s2179_s16 = smov %s1827_s28 }
 0x14d   : > { %s2180_s17 = smov %s1740_s19  ;;  %s2181_s18 = smov %s1744_s20 }
 0x14e   : > { %s2182_s19 = smov %s2185_s22  ;;  %s2183_s20 = smov %s2189_s23 }
 0x14f   :  { %13 = sbr.rel (!%p11_p0) target bundleno = 4 (0x4), region = 126 }

// kernel: resnet3d_forward.25
= control target key start
LH: loop header
LB: loop body
LE: loop exit
PB: predicated region body
PF: predicated region fallthrough
CT: control target
= control target key end

     0   :  { %vm94_vm0 = vcmask 1041408   ;;  %vm96_vm1 = vcmask 1045508   ;;  %vm98_vm2 = vcmask 1043456   ;;  %vm108_vm3 = vcmask 1041409   ;;  %s517_s1 = inlined_call_operand.vmem [shape: f32[512,128], index: 1, kind: input, shape index: {}]   ;;  %s518_s0 = inlined_call_operand.vmem [shape: bf16[2,8,512], index: 0, kind: input, shape index: {}]   ;;  %s519_s2 = inlined_call_operand.vmem [shape: f32[1,128], index: 2, kind: input, shape index: {}]   ;;  %s520_s3 = inlined_call_operand.vmem [shape: f32[2,128], index: 3, kind: output, shape index: {}]  }
   0x1   :  { %v170_v0 = vld [vmem:[%s517_s1 + $0x178] sm:$0xff]  ;;  %v169_v2 = vld [vmem:[%s517_s1 + $0x170] sm:$0xff]  ;;  %v168_v6 = vld [vmem:[%s517_s1 + $0x168] sm:$0xff]  ;;  %vm110_vm4 = vcmask 1043459   ;;  %vm112_vm5 = vcmask 1045509   ;;  %vm114_vm6 = vcmask 1047559  }
   0x2   :  { %v138_v1 = vld [vmem:[%s517_s1 + $0x78] sm:$0xff]  ;;  %241 = vmatpush.msra.mxu2 %v170_v0  ;;  %v137_v4 = vld [vmem:[%s517_s1 + $0x70] sm:$0xff]  ;;  %v136_v8 = vld [vmem:[%s517_s1 + $0x68] sm:$0xff] }
   0x3   :  { %201 = vmatpush.msra.mxu0 %v138_v1  ;;  %v186_v3 = vld [vmem:[%s517_s1 + $0x1f8] sm:$0xff]  ;;  %v185_v7 = vld [vmem:[%s517_s1 + $0x1f0] sm:$0xff]  ;;  %v184_v10 = vld [vmem:[%s517_s1 + $0x1e8] sm:$0xff] }
   0x4   :  { %v154_v5 = vld [vmem:[%s517_s1 + $0xf8] sm:$0xff]  ;;  %261 = vmatpush.msra.mxu3 %v186_v3  ;;  %242 = vmatpush.msra.mxu2 %v169_v2  ;;  %v153_v9 = vld [vmem:[%s517_s1 + $0xf0] sm:$0xff]  ;;  %v167_v11 = vld [vmem:[%s517_s1 + $0x160] sm:$0xff] }
   0x5   :  { %221 = vmatpush.msra.mxu1 %v154_v5  ;;  %202 = vmatpush.msra.mxu0 %v137_v4  ;;  %v135_v12 = vld [vmem:[%s517_s1 + $0x60] sm:$0xff]  ;;  %v152_v13 = vld [vmem:[%s517_s1 + $0xe8] sm:$0xff]  ;;  %v166_v16 = vld [vmem:[%s517_s1 + $0x158] sm:$0xff] }
   0x6   :  { %262 = vmatpush.msra.mxu3 %v185_v7  ;;  %243 = vmatpush.msra.mxu2 %v168_v6  ;;  %v183_v14 = vld [vmem:[%s517_s1 + $0x1e0] sm:$0xff]  ;;  %v134_v17 = vld [vmem:[%s517_s1 + $0x58] sm:$0xff]  ;;  %v165_v20 = vld [vmem:[%s517_s1 + $0x150] sm:$0xff] }
   0x7   :  { %222 = vmatpush.msra.mxu1 %v153_v9  ;;  %203 = vmatpush.msra.mxu0 %v136_v8  ;;  %v151_v15 = vld [vmem:[%s517_s1 + $0xe0] sm:$0xff]  ;;  %v182_v18 = vld [vmem:[%s517_s1 + $0x1d8] sm:$0xff]  ;;  %v133_v21 = vld [vmem:[%s517_s1 + $0x50] sm:$0xff] }
   0x8   :  { %263 = vmatpush.msra.mxu3 %v184_v10  ;;  %244 = vmatpush.msra.mxu2 %v167_v11  ;;  %v150_v19 = vld [vmem:[%s517_s1 + $0xd8] sm:$0xff]  ;;  %v181_v22 = vld [vmem:[%s517_s1 + $0x1d0] sm:$0xff]  ;;  %v164_v24 = vld [vmem:[%s517_s1 + $0x148] sm:$0xff] }
   0x9   :  { %223 = vmatpush.msra.mxu1 %v152_v13  ;;  %204 = vmatpush.msra.mxu0 %v135_v12  ;;  %v149_v23 = vld [vmem:[%s517_s1 + $0xd0] sm:$0xff]  ;;  %v132_v25 = vld [vmem:[%s517_s1 + $0x48] sm:$0xff]  ;;  %v163_v28 = vld [vmem:[%s517_s1 + $0x140] sm:$0xff] }
   0xa   :  { %264 = vmatpush.msra.mxu3 %v183_v14  ;;  %245 = vmatpush.msra.mxu2 %v166_v16  ;;  %v180_v26 = vld [vmem:[%s517_s1 + $0x1c8] sm:$0xff]  ;;  %v131_v29 = vld [vmem:[%s517_s1 + $0x40] sm:$0xff]  ;;  %v162_v32 = vld [vmem:[%s517_s1 + $0x138] sm:$0xff] }
   0xb   :  { %224 = vmatpush.msra.mxu1 %v151_v15  ;;  %205 = vmatpush.msra.mxu0 %v134_v17  ;;  %v148_v27 = vld [vmem:[%s517_s1 + $0xc8] sm:$0xff]  ;;  %v179_v30 = vld [vmem:[%s517_s1 + $0x1c0] sm:$0xff]  ;;  %v130_v33 = vld [vmem:[%s517_s1 + $0x38] sm:$0xff] }
   0xc   :  { %265 = vmatpush.msra.mxu3 %v182_v18  ;;  %246 = vmatpush.msra.mxu2 %v165_v20  ;;  %v147_v31 = vld [vmem:[%s517_s1 + $0xc0] sm:$0xff]  ;;  %v178_v34 = vld [vmem:[%s517_s1 + $0x1b8] sm:$0xff]  ;;  %v161_v36 = vld [vmem:[%s517_s1 + $0x130] sm:$0xff] }
   0xd   :  { %225 = vmatpush.msra.mxu1 %v150_v19  ;;  %206 = vmatpush.msra.mxu0 %v133_v21  ;;  %v146_v35 = vld [vmem:[%s517_s1 + $0xb8] sm:$0xff]  ;;  %v129_v37 = vld [vmem:[%s517_s1 + $0x30] sm:$0xff]  ;;  %v160_v38 = vld [vmem:[%s517_s1 + $0x128] sm:$0xff] }
   0xe   :  { %266 = vmatpush.msra.mxu3 %v181_v22  ;;  %247 = vmatpush.msra.mxu2 %v164_v24  ;;  %v177_v39 = vld [vmem:[%s517_s1 + $0x1b0] sm:$0xff]  ;;  %v128_v41 = vld [vmem:[%s517_s1 + $0x28] sm:$0xff]  ;;  %v159_v42 = vld [vmem:[%s517_s1 + $0x120] sm:$0xff] }
   0xf   :  { %226 = vmatpush.msra.mxu1 %v149_v23  ;;  %207 = vmatpush.msra.mxu0 %v132_v25  ;;  %v145_v40 = vld [vmem:[%s517_s1 + $0xb0] sm:$0xff]  ;;  %v176_v43 = vld [vmem:[%s517_s1 + $0x1a8] sm:$0xff]  ;;  %v127_v44 = vld [vmem:[%s517_s1 + $0x20] sm:$0xff] }
  0x10   :  { %267 = vmatpush.msra.mxu3 %v180_v26  ;;  %248 = vmatpush.msra.mxu2 %v163_v28  ;;  %v144_v45 = vld [vmem:[%s517_s1 + $0xa8] sm:$0xff]  ;;  %v175_v46 = vld [vmem:[%s517_s1 + $0x1a0] sm:$0xff]  ;;  %v22_v49 = vld [vmem:[%s518_s0 + $0x10] sm:$0xff] }
  0x11   :  { %227 = vmatpush.msra.mxu1 %v148_v27  ;;  %208 = vmatpush.msra.mxu0 %v131_v29  ;;  %v20_v47 = vld [vmem:[%s518_s0] sm:$0xff]  ;;  %v21_v48 = vld [vmem:[%s518_s0 + $0x8] sm:$0xff]  ;;  %v23_v51 = vld [vmem:[%s518_s0 + $0x18] sm:$0xff]  ;;  %v28_v58 = vunpack.c.l.bf16 %v22_v49  ;;  %v29_v59 = vunpack.c.h.bf16 %v22_v49 }
  0x12   :  { %268 = vmatpush.msra.mxu3 %v179_v30  ;;  %249 = vmatpush.msra.mxu2 %v162_v32  ;;  %v143_v50 = vld [vmem:[%s517_s1 + $0xa0] sm:$0xff]  ;;  %v24_v52 = vunpack.c.l.bf16 %v20_v47  ;;  %v25_v53 = vunpack.c.h.bf16 %v20_v47  ;;  %v26_v54 = vunpack.c.l.bf16 %v21_v48  ;;  %v27_v55 = vunpack.c.h.bf16 %v21_v48  ;;  %v158_v56 = vld [vmem:[%s517_s1 + $0x118] sm:$0xff]  ;;  %v157_v4 = vld [vmem:[%s517_s1 + $0x110] sm:$0xff] }
  0x13   :  { %228 = vmatpush.msra.mxu1 %v147_v31  ;;  %209 = vmatpush.msra.mxu0 %v130_v33  ;;  %v126_v57 = vld [vmem:[%s517_s1 + $0x18] sm:$0xff]  ;;  %v30_v60 = vunpack.c.l.bf16 %v23_v51  ;;  %v31_v61 = vunpack.c.h.bf16 %v23_v51  ;;  %v125_v5 = vld [vmem:[%s517_s1 + $0x10] sm:$0xff]  ;;  %v56_v6 = vrot.slane %v28_v58, 4  ;;  %v62_v7 = vrot.slane %v29_v59, 4  ;;  %v156_v15 = vld [vmem:[%s517_s1 + $0x108] sm:$0xff] }
  0x14   :  { %269 = vmatpush.msra.mxu3 %v178_v34  ;;  %250 = vmatpush.msra.mxu2 %v161_v36  ;;  %v174_v62 = vld [vmem:[%s517_s1 + $0x198] sm:$0xff]  ;;  %v32_v0 = vrot.slane %v24_v52, 4  ;;  %v38_v1 = vrot.slane %v25_v53, 4  ;;  %v44_v2 = vrot.slane %v26_v54, 4  ;;  %v50_v3 = vrot.slane %v27_v55, 4  ;;  %v173_v10 = vld [vmem:[%s517_s1 + $0x190] sm:$0xff] }
  0x15   :  { %229 = vmatpush.msra.mxu1 %v146_v35  ;;  %210 = vmatpush.msra.mxu0 %v129_v37  ;;  %v142_v63 = vld [vmem:[%s517_s1 + $0x98] sm:$0xff]  ;;  %v68_v8 = vrot.slane %v30_v60, 4  ;;  %v74_v9 = vrot.slane %v31_v61, 4  ;;  %v141_v11 = vld [vmem:[%s517_s1 + $0x90] sm:$0xff]  ;;  %v124_v16 = vld [vmem:[%s517_s1 + $0x8] sm:$0xff]  ;;  %v57_v18 = vadd.f32 %v56_v6, %v28_v58  ;;  %v63_v19 = vadd.f32 %v62_v7, %v29_v59 }
  0x16   :  { %270 = vmatpush.msra.mxu3 %v177_v39  ;;  %251 = vmatpush.msra.mxu2 %v160_v38  ;;  %v33_v12 = vadd.f32 %v32_v0, %v24_v52  ;;  %v39_v13 = vadd.f32 %v38_v1, %v25_v53  ;;  %v45_v14 = vadd.f32 %v44_v2, %v26_v54  ;;  %v172_v20 = vld [vmem:[%s517_s1 + $0x188] sm:$0xff]  ;;  %v155_v26 = vld [vmem:[%s517_s1 + $0x100] sm:$0xff] }
  0x17   :  { %230 = vmatpush.msra.mxu1 %v145_v40  ;;  %211 = vmatpush.msra.mxu0 %v128_v41  ;;  %v51_v17 = vadd.f32 %v50_v3, %v27_v55  ;;  %v69_v24 = vadd.f32 %v68_v8, %v30_v60  ;;  %v140_v25 = vld [vmem:[%s517_s1 + $0x88] sm:$0xff]  ;;  %v58_v28 = vrot.slane %v57_v18, 2  ;;  %v64_v29 = vrot.slane %v63_v19, 2  ;;  %v123_v31 = vld [vmem:[%s517_s1] sm:$0xff] }
  0x18   :  { %271 = vmatpush.msra.mxu3 %v176_v43  ;;  %252 = vmatpush.msra.mxu2 %v159_v42  ;;  %v34_v21 = vrot.slane %v33_v12, 2  ;;  %v40_v22 = vrot.slane %v39_v13, 2  ;;  %v46_v23 = vrot.slane %v45_v14, 2  ;;  %v75_v30 = vadd.f32 %v74_v9, %v31_v61  ;;  %v171_v36 = vld [vmem:[%s517_s1 + $0x180] sm:$0xff] }
  0x19   :  { %231 = vmatpush.msra.mxu1 %v144_v45  ;;  %212 = vmatpush.msra.mxu0 %v127_v44  ;;  %v52_v27 = vrot.slane %v51_v17, 2  ;;  %v70_v35 = vrot.slane %v69_v24, 2  ;;  %v139_v37 = vld [vmem:[%s517_s1 + $0x80] sm:$0xff]  ;;  %v59_v39 = vadd.f32 %v58_v28, %v57_v18  ;;  %v65_v40 = vadd.f32 %v64_v29, %v63_v19 }
  0x1a   :  { %272 = vmatpush.msra.mxu3 %v175_v46  ;;  %253 = vmatpush.msra.mxu2 %v158_v56  ;;  %v35_v32 = vadd.f32 %v34_v21, %v33_v12  ;;  %v41_v33 = vadd.f32 %v40_v22, %v39_v13  ;;  %v47_v34 = vadd.f32 %v46_v23, %v45_v14  ;;  %v76_v41 = vrot.slane %v75_v30, 2 }
  0x1b   :  { %232 = vmatpush.msra.mxu1 %v143_v50  ;;  %213 = vmatpush.msra.mxu0 %v126_v57  ;;  %v53_v38 = vadd.f32 %v52_v27, %v51_v17  ;;  %v71_v45 = vadd.f32 %v70_v35, %v69_v24  ;;  %v60_v47 = vrot.slane %v59_v39, 1  ;;  %v66_v48 = vrot.slane %v65_v40, 1  ;;  %v286_v17 = vld [vmem:[%s519_s2] ss:$0 sm:$0xff] }
  0x1c   :  { %273 = vmatpush.msra.mxu3 %v174_v62  ;;  %254 = vmatpush.msra.mxu2 %v157_v4  ;;  %v36_v42 = vrot.slane %v35_v32, 1  ;;  %v42_v43 = vrot.slane %v41_v33, 1  ;;  %v48_v44 = vrot.slane %v47_v34, 1  ;;  %v77_v49 = vadd.f32 %v76_v41, %v75_v30 }
  0x1d   :  { %233 = vmatpush.msra.mxu1 %v142_v63  ;;  %214 = vmatpush.msra.mxu0 %v125_v5  ;;  %v54_v46 = vrot.slane %v53_v38, 1  ;;  %v72_v53 = vrot.slane %v71_v45, 1  ;;  %v61_v55 = vadd.f32 %v60_v47, %v59_v39  ;;  %v67_v56 = vadd.f32 %v66_v48, %v65_v40 }
  0x1e   :  { %274 = vmatpush.msra.mxu3 %v173_v10  ;;  %255 = vmatpush.msra.mxu2 %v156_v15  ;;  %v37_v50 = vadd.f32 %v36_v42, %v35_v32  ;;  %v43_v51 = vadd.f32 %v42_v43, %v41_v33  ;;  %v49_v52 = vadd.f32 %v48_v44, %v47_v34  ;;  %v78_v57 = vrot.slane %v77_v49, 1 }
  0x1f   :  { %234 = vmatpush.msra.mxu1 %v141_v11  ;;  %215 = vmatpush.msra.mxu0 %v124_v16  ;;  %v55_v54 = vadd.f32 %v54_v46, %v53_v38  ;;  %v73_v58 = vadd.f32 %v72_v53, %v71_v45  ;;  %v91_v63 = vrot.slane %v67_v56, 6 }
  0x20   :  { %275 = vmatpush.msra.mxu3 %v172_v20  ;;  %256 = vmatpush.msra.mxu2 %v155_v26  ;;  %v88_v59 = vrot.slane %v43_v51, 6  ;;  %v89_v60 = vrot.slane %v49_v52, 4  ;;  %v79_v61 = vadd.f32 %v78_v57, %v77_v49 }
  0x21   :  { %235 = vmatpush.msra.mxu1 %v140_v25  ;;  %216 = vmatpush.msra.mxu0 %v123_v31  ;;  %v90_v62 = vrot.slane %v55_v54, 2  ;;  %v92_v0 = vrot.slane %v73_v58, 4  ;;  %v100_v4 = vsel %vm94_vm0, %v61_v55, %v91_v63 }
  0x22   :  { %276 = vmatpush.msra.mxu3 %v171_v36  ;;  %v93_v1 = vrot.slane %v79_v61, 2  ;;  %v95_v2 = vsel %vm94_vm0, %v37_v50, %v88_v59 }
  0x23   :  { %236 = vmatpush.msra.mxu1 %v139_v37  ;;  %v97_v3 = vsel %vm96_vm1, %v89_v60, %v90_v62 }
  0x24   :  { %v101_v5 = vsel %vm96_vm1, %v92_v0, %v93_v1  ;;  %v99_v6 = vsel %vm98_vm2, %v95_v2, %v97_v3 }
  0x25   :  { %v102_v7 = vsel %vm98_vm2, %v100_v4, %v101_v5 }
  0x26   :  { %v107_v8 = vrot.slane %v102_v7, 7 }
  0x28   :  { %v109_v9 = vsel %vm108_vm3, %v107_v8, %v99_v6 }
  0x29   :  { %v111_v10 = vsel %vm110_vm4, %v107_v8, %v109_v9 }
  0x2a   :  { %v113_v11 = vsel %vm112_vm5, %v107_v8, %v111_v10 }
  0x2b   :  { %v115_v12 = vsel %vm114_vm6, %v107_v8, %v113_v11 }
  0x2c   :  { %192 = vst [vmem:[#allocation1] ss:$4 sm:$0xff] %v115_v12 }
  0x33   :  { %v195_v13 = vld.sshfl [vmem:[#allocation1 + $0x10] sm:$0xff pattern:$0x73625140]  ;;  %v193_v14 = vld.sshfl [vmem:[#allocation1] sm:$0xff pattern:$0x73625140] }
  0x34   :  { %257 = vmatmul.f32.vlgmr.msra.gmra.mxu2 %v195_v13  ;;  %217 = vmatmul.f32.vlgmr.msra.gmra.mxu0 %v193_v14  ;;  %v196_v15 = vld.sshfl [vmem:[#allocation1 + $0x18] sm:$0xff pattern:$0x73625140]  ;;  %v194_v16 = vld.sshfl [vmem:[#allocation1 + $0x8] sm:$0xff pattern:$0x73625140] }
  0x35   :  { %277 = vmatmul.f32.vlgmr.msra.gmra.mxu3 %v196_v15  ;;  %237 = vmatmul.f32.vlgmr.msra.gmra.mxu1 %v194_v16 }
  0xb1   :  { %v218_v18 = vpop.f32.mrf.mxu0 }
  0xb2   :  { %v219_v19 = vadd.f32 %v286_v17, %v218_v18  ;;  %v238_v20 = vpop.f32.mrf.mxu1 }
  0xb4   :  { %v239_v21 = vadd.f32 %v238_v20, %v219_v19 }
  0xb7   :  { %v258_v22 = vpop.f32.mrf.mxu2 }
  0xb8   :  { %v259_v23 = vadd.f32 %v258_v22, %v239_v21  ;;  %v278_v24 = vpop.f32.mrf.mxu3 }
  0xba   :  { %v279_v25 = vadd.f32 %v278_v24, %v259_v23 }
  0xbc   :  { %281 = vst [vmem:[%s520_s3] sm:$0x3] %v279_v25 }

</bundles_post_ra>
